<compile_context>
chip_gen: v6e
topology: v6e:2x2x1
jax: 0.10.0
libtpu: 0.0.40
codegen_flags: <defaults>
</compile_context>

<pallas_src>
import jax
import jax.numpy as jnp
from jax.experimental import pallas as pl
from jax.experimental.pallas import tpu as pltpu

TEXT_DIM = 768     # text_encoder last_hidden_state[:, 0]  (e.g. BERT CLS)
IMG_DIM = 512      # image_encoder.get_image_features      (e.g. CLIP)
HIDDEN = 512
OUT_DIM = 2
OUT_PAD = 128      # lane-dense padded output width
VMEM_LIMIT_BYTES = 48 * 1024 * 1024   # explicit scoped-VMEM limit (< v7x 64 MiB physical)


def _round_up(x, m):
    return ((x + m - 1) // m) * m


def _pick_tile(batch, block_b):
    """Batch tile: multiple of 16, divides round_up(batch, 16), and leaves
    >= 2 grid steps (v7x megacore) whenever the batch allows."""
    block_b = max(16, (block_b // 16) * 16)          # bf16 sublane packing
    bp = _round_up(max(batch, 1), 16)                # pad at most 15 rows, ever
    cap = min(block_b, bp)
    if bp >= 32:                                     # keep both v7x TCs busy
        cap = min(cap, max(16, (bp // 2 // 16) * 16))
    tb = 16
    for cand in range(cap, 15, -16):
        if bp % cand == 0:
            tb = cand
            break
    return tb, bp


# ---------------------------------------------------------------------------
# Pallas kernel: fused (fusion-L1 + residual) -> fusion-L2/L3 -> regressor
# ---------------------------------------------------------------------------
def _head_kernel(txt_ref, img_ref,
                 w1r_t_ref, w1r_i_ref, b1r_ref,      # fused layer1 | residual
                 w2_ref, b2_ref, w3_ref, b3_ref,     # fusion layers 2, 3
                 wq1_ref, bq1_ref, wq2_ref, bq2_ref,  # regressor (wq2 padded)
                 out_ref):
    # Cast after the DMA (inputs arrive bf16 from the encoders; no-op then).
    txt = txt_ref[...].astype(jnp.bfloat16)           # [TB, 768]
    img = img_ref[...].astype(jnp.bfloat16)           # [TB, 512]

    # Single K-split pass produces fusion-layer-1 and residual side by side.
    y = (jnp.dot(txt, w1r_t_ref[...], preferred_element_type=jnp.float32)
         + jnp.dot(img, w1r_i_ref[...], preferred_element_type=jnp.float32)
         + b1r_ref[...])                              # [TB, 1024] f32
    h = jnp.maximum(y[:, :HIDDEN], 0.0)               # fusion L1 + ReLU
    res = y[:, HIDDEN:]                               # residual (no ReLU)

    # fusion layers 2, 3 (Dropout = identity in eval mode)
    h = jnp.dot(h.astype(jnp.bfloat16), w2_ref[...],
                preferred_element_type=jnp.float32) + b2_ref[...]
    h = jnp.maximum(h, 0.0)
    h = jnp.dot(h.astype(jnp.bfloat16), w3_ref[...],
                preferred_element_type=jnp.float32) + b3_ref[...]
    h = jnp.maximum(h, 0.0)

    x = (h + res).astype(jnp.bfloat16)                # [TB, 512]

    # regressor: Linear -> ReLU -> Linear (output padded to 128 lanes)
    q = jnp.dot(x, wq1_ref[...], preferred_element_type=jnp.float32) + bq1_ref[...]
    q = jnp.maximum(q, 0.0)
    out_ref[...] = (jnp.dot(q.astype(jnp.bfloat16), wq2_ref[...],
                            preferred_element_type=jnp.float32) + bq2_ref[...])


def multimodal_head(text_feat, image_feat, head_params, *, block_b=512):
    """Fusion + residual + regressor head as one batch-tiled Pallas call.

    block_b guidance: 512-1024 on v6e/v7x, 256-512 on v5e (16 MiB scoped VMEM
    default).  The tile is rounded to a multiple of 16 and capped so at least
    two grid steps exist (v7x megacore) when batch >= 32.
    """
    B = text_feat.shape[0]
    TB, Bp = _pick_tile(B, block_b)
    if Bp != B:
        # At most 15 rows of padding (TB divides round_up(B, 16)); no copy at
        # all when B is already a multiple of 16.
        pad = ((0, Bp - B), (0, 0))
        text_feat = jnp.pad(text_feat, pad)
        image_feat = jnp.pad(image_feat, pad)

    hp = head_params
    weights = (hp["w1r_t"], hp["w1r_i"], hp["b1r"],
               hp["w2"], hp["b2"], hp["w3"], hp["b3"],
               hp["wq1"], hp["bq1"], hp["wq2"], hp["bq2"])

    # MXU MACs per batch row (layer1+residual, L2, L3, q1, padded q2).
    macs_per_row = (TEXT_DIM * 2 * HIDDEN + IMG_DIM * 2 * HIDDEN
                    + 2 * HIDDEN * HIDDEN + HIDDEN * (HIDDEN // 2)
                    + (HIDDEN // 2) * OUT_PAD)
    weight_bytes = sum(int(w.size) * w.dtype.itemsize for w in weights)
    feat_bytes = (text_feat.dtype.itemsize * TEXT_DIM
                  + image_feat.dtype.itemsize * IMG_DIM + 4 * OUT_PAD)
    cost = pl.CostEstimate(flops=2 * macs_per_row * Bp, transcendentals=0,
                           bytes_accessed=Bp * feat_bytes + weight_bytes)

    def call(single_buffer_weights):
        wmode = pl.Buffered(1) if single_buffer_weights else None

        def resident(w):
            # Constant index_map -> same block every step -> VMEM-resident.
            # Single buffer reclaims the duplicate-weight VMEM (~3.8 MiB).
            if wmode is None:
                return pl.BlockSpec(w.shape, lambda i: (0, 0))
            return pl.BlockSpec(w.shape, lambda i: (0, 0), pipeline_mode=wmode)

        return pl.pallas_call(
            _head_kernel,
            out_shape=jax.ShapeDtypeStruct((Bp, OUT_PAD), jnp.float32),
            grid=(Bp // TB,),
            in_specs=[pl.BlockSpec((TB, TEXT_DIM), lambda i: (i, 0)),
                      pl.BlockSpec((TB, IMG_DIM), lambda i: (i, 0))]
                     + [resident(w) for w in weights],
            out_specs=pl.BlockSpec((TB, OUT_PAD), lambda i: (i, 0)),
            compiler_params=pltpu.CompilerParams(
                dimension_semantics=("parallel",),
                vmem_limit_bytes=VMEM_LIMIT_BYTES),
            cost_estimate=cost,
        )(text_feat, image_feat, *weights)

    try:
        out = call(single_buffer_weights=True)
    except Exception:
        # TODO(synk): jax builds without BlockSpec(pipeline_mode=...) support
        # fall back to default double-buffered resident weights.
        out = call(single_buffer_weights=False)
    return out[:B, :OUT_DIM]


# ---------------------------------------------------------------------------
# Deterministic parameter init (synthetic; no checkpoint load)
# ---------------------------------------------------------------------------
def init_params(key):
    keys = jax.random.split(key, 14)

    def lin(kw, kb, fan_in, fan_out):
        bound = 1.0 / jnp.sqrt(fan_in)
        w = jax.random.uniform(kw, (fan_in, fan_out), jnp.float32, -bound, bound)
        b = jax.random.uniform(kb, (1, fan_out), jnp.float32, -bound, bound)
        return w, b

    p = {}
    FUSED = TEXT_DIM + IMG_DIM
    p["w1"], p["b1"] = lin(keys[0], keys[1], FUSED, HIDDEN)
    p["w2"], p["b2"] = lin(keys[2], keys[3], HIDDEN, HIDDEN)
    p["w3"], p["b3"] = lin(keys[4], keys[5], HIDDEN, HIDDEN)
    p["wr"], p["br"] = lin(keys[6], keys[7], FUSED, HIDDEN)
    p["wq1"], p["bq1"] = lin(keys[8], keys[9], HIDDEN, HIDDEN // 2)
    p["wq2"], p["bq2"] = lin(keys[10], keys[11], HIDDEN // 2, OUT_DIM)
    # stand-in encoder params
    p["tok_emb"] = jax.random.normal(keys[12], (100, TEXT_DIM), jnp.float32) * 0.02
    p["img_proj"] = jax.random.normal(keys[13], (3 * 16 * 16, IMG_DIM), jnp.float32) * 0.02
    return p


def prepare_head_params(p, dtype=jnp.bfloat16):
    """Repack PyTorch-equivalent params into the kernel layout.

    * w1|wr concatenated along N into one [1280, 1024] weight, then split
      along K into text rows [768, 1024] and image rows [512, 1024].
    * wq2/bq2 zero-padded from N=2 to N=128 for a lane-dense output store.
    * matmul weights in bf16, biases kept f32 (added post-accumulation).
    """
    w1r = jnp.concatenate([p["w1"], p["wr"]], axis=1)          # [1280, 1024]
    b1r = jnp.concatenate([p["b1"], p["br"]], axis=1)          # [1, 1024]
    wq2 = jnp.zeros((HIDDEN // 2, OUT_PAD), jnp.float32).at[:, :OUT_DIM].set(p["wq2"])
    bq2 = jnp.zeros((1, OUT_PAD), jnp.float32).at[:, :OUT_DIM].set(p["bq2"])
    return {
        "w1r_t": w1r[:TEXT_DIM].astype(dtype),
        "w1r_i": w1r[TEXT_DIM:].astype(dtype),
        "b1r": b1r,
        "w2": p["w2"].astype(dtype), "b2": p["b2"],
        "w3": p["w3"].astype(dtype), "b3": p["b3"],
        "wq1": p["wq1"].astype(dtype), "bq1": p["bq1"],
        "wq2": wq2.astype(dtype), "bq2": bq2,
    }


# ---------------------------------------------------------------------------
# Stand-in encoders (glue, plain JAX) — bf16 epilogue so the head never needs
# a separate feature-cast pass through HBM.
# ---------------------------------------------------------------------------
# TODO(synk): the pretrained text_encoder (BERT-style) and image_encoder
# (CLIP-style) submodules have no clean Pallas translation here; these
# deterministic stand-ins only produce correctly-shaped [B, 768] / [B, 512]
# features for the fused head.
def text_encoder_stub(params, input_ids, attention_mask):
    emb = params["tok_emb"][input_ids]                              # [B, S, 768]
    mask = attention_mask[..., None].astype(jnp.float32)
    feat = (emb * mask).sum(1) / jnp.maximum(mask.sum(1), 1.0)      # [B, 768]
    return feat.astype(jnp.bfloat16)


def image_encoder_stub(params, pixel_values):
    B = pixel_values.shape[0]
    flat = pixel_values.reshape(B, -1)                              # [B, 3*16*16]
    return (flat @ params["img_proj"]).astype(jnp.bfloat16)         # [B, 512]


# ---------------------------------------------------------------------------
# Full forward (matches MultimodalRegressor.forward, eval mode)
# ---------------------------------------------------------------------------
def multimodal_regressor_forward(params, head_params, input_ids, attention_mask,
                                 pixel_values):
    text_feat = text_encoder_stub(params, input_ids, attention_mask)   # [B, 768] bf16
    image_feat = image_encoder_stub(params, pixel_values)              # [B, 512] bf16
    # No jnp.concatenate: the head consumes the two feature blocks directly.
    return multimodal_head(text_feat, image_feat, head_params)         # [B, 2]


# pure-JAX reference for the head, following the same bf16/f32 precision path
def _head_ref(text_feat, image_feat, hp):
    b = lambda v: v.astype(jnp.bfloat16)
    y = (jnp.dot(b(text_feat), hp["w1r_t"], preferred_element_type=jnp.float32)
         + jnp.dot(b(image_feat), hp["w1r_i"], preferred_element_type=jnp.float32)
         + hp["b1r"])
    h = jnp.maximum(y[:, :HIDDEN], 0.0)
    res = y[:, HIDDEN:]
    h = jnp.maximum(jnp.dot(b(h), hp["w2"], preferred_element_type=jnp.float32)
                    + hp["b2"], 0.0)
    h = jnp.maximum(jnp.dot(b(h), hp["w3"], preferred_element_type=jnp.float32)
                    + hp["b3"], 0.0)
    x = h + res
    q = jnp.maximum(jnp.dot(b(x), hp["wq1"], preferred_element_type=jnp.float32)
                    + hp["bq1"], 0.0)
    out = jnp.dot(b(q), hp["wq2"], preferred_element_type=jnp.float32) + hp["bq2"]
    return out[:, :OUT_DIM]


if __name__ == "__main__":
    key = jax.random.PRNGKey(0)
    kp, ki, kx = jax.random.split(key, 3)

    B, SEQ = 2, 8
    params = init_params(kp)
    head_params = prepare_head_params(params)

    input_ids = jax.random.randint(ki, (B, SEQ), 0, 100, dtype=jnp.int32)
    attention_mask = jnp.ones((B, SEQ), dtype=jnp.int32)
    pixel_values = jax.random.normal(kx, (B, 3, 16, 16), jnp.float32)  # NCHW

    out = multimodal_regressor_forward(params, head_params, input_ids,
                                       attention_mask, pixel_values)
    out = jax.block_until_ready(out)

    # sanity: Pallas head matches pure-JAX head at matching precision
    text_feat = text_encoder_stub(params, input_ids, attention_mask)
    image_feat = image_encoder_stub(params, pixel_values)
    ref = _head_ref(text_feat, image_feat, head_params)
    assert out.shape == (B, OUT_DIM)
    assert jnp.allclose(out, ref, atol=1e-3, rtol=1e-3)

    print("KERNEL_OK")
</pallas_src>

<mosaic_0001>
module attributes {stable_mosaic.version = 11 : i64} {
  func.func @_head_kernel(%arg0: i32, %arg1: memref<16x768xbf16, #tpu.memory_space<vmem>>, %arg2: memref<16x512xbf16, #tpu.memory_space<vmem>>, %arg3: memref<768x1024xbf16, #tpu.memory_space<vmem>>, %arg4: memref<512x1024xbf16, #tpu.memory_space<vmem>>, %arg5: memref<1x1024xf32, #tpu.memory_space<vmem>>, %arg6: memref<512x512xbf16, #tpu.memory_space<vmem>>, %arg7: memref<1x512xf32, #tpu.memory_space<vmem>>, %arg8: memref<512x512xbf16, #tpu.memory_space<vmem>>, %arg9: memref<1x512xf32, #tpu.memory_space<vmem>>, %arg10: memref<512x256xbf16, #tpu.memory_space<vmem>>, %arg11: memref<1x256xf32, #tpu.memory_space<vmem>>, %arg12: memref<256x128xbf16, #tpu.memory_space<vmem>>, %arg13: memref<1x128xf32, #tpu.memory_space<vmem>>, %arg14: memref<16x128xf32, #tpu.memory_space<vmem>>) attributes {dimension_semantics = [#tpu.dimension_semantics<parallel>], iteration_bounds = array<i64: 1>, scalar_prefetch = 0 : i64, scratch_operands = 0 : i64, tpu.core_type = #tpu.core_type<tc>, window_params = [{transform_indices = @transform_0, window_bounds = array<i64: 16, 768>}, {transform_indices = @transform_1, window_bounds = array<i64: 16, 512>}, {pipeline_mode = #tpu.pipeline_mode<synchronous>, transform_indices = @transform_2, window_bounds = array<i64: 768, 1024>}, {pipeline_mode = #tpu.pipeline_mode<synchronous>, transform_indices = @transform_3, window_bounds = array<i64: 512, 1024>}, {pipeline_mode = #tpu.pipeline_mode<synchronous>, transform_indices = @transform_4, window_bounds = array<i64: 1, 1024>}, {pipeline_mode = #tpu.pipeline_mode<synchronous>, transform_indices = @transform_5, window_bounds = array<i64: 512, 512>}, {pipeline_mode = #tpu.pipeline_mode<synchronous>, transform_indices = @transform_6, window_bounds = array<i64: 1, 512>}, {pipeline_mode = #tpu.pipeline_mode<synchronous>, transform_indices = @transform_7, window_bounds = array<i64: 512, 512>}, {pipeline_mode = #tpu.pipeline_mode<synchronous>, transform_indices = @transform_8, window_bounds = array<i64: 1, 512>}, {pipeline_mode = #tpu.pipeline_mode<synchronous>, transform_indices = @transform_9, window_bounds = array<i64: 512, 256>}, {pipeline_mode = #tpu.pipeline_mode<synchronous>, transform_indices = @transform_10, window_bounds = array<i64: 1, 256>}, {pipeline_mode = #tpu.pipeline_mode<synchronous>, transform_indices = @transform_11, window_bounds = array<i64: 256, 128>}, {pipeline_mode = #tpu.pipeline_mode<synchronous>, transform_indices = @transform_12, window_bounds = array<i64: 1, 128>}, {transform_indices = @transform_13, window_bounds = array<i64: 16, 128>}]} {
    %c0 = arith.constant 0 : index
    %c0_0 = arith.constant 0 : index
    %0 = vector.load %arg1[%c0, %c0_0] : memref<16x768xbf16, #tpu.memory_space<vmem>>, vector<16x768xbf16>
    %c0_1 = arith.constant 0 : index
    %c0_2 = arith.constant 0 : index
    %1 = vector.load %arg2[%c0_1, %c0_2] : memref<16x512xbf16, #tpu.memory_space<vmem>>, vector<16x512xbf16>
    %c0_3 = arith.constant 0 : index
    %c0_4 = arith.constant 0 : index
    %2 = vector.load %arg3[%c0_3, %c0_4] : memref<768x1024xbf16, #tpu.memory_space<vmem>>, vector<768x1024xbf16>
    %cst = arith.constant dense<0.000000e+00> : vector<16x1024xf32>
    %3 = tpu.matmul %0, %2, %cst {dimension_numbers = #tpu.dot_dimension_numbers<[1], [0], [0], [1], [0, 0, 1, 1], [], []>} : vector<16x768xbf16>, vector<768x1024xbf16>, vector<16x1024xf32> -> vector<16x1024xf32>
    %c0_5 = arith.constant 0 : index
    %c0_6 = arith.constant 0 : index
    %4 = vector.load %arg4[%c0_5, %c0_6] : memref<512x1024xbf16, #tpu.memory_space<vmem>>, vector<512x1024xbf16>
    %cst_7 = arith.constant dense<0.000000e+00> : vector<16x1024xf32>
    %5 = tpu.matmul %1, %4, %cst_7 {dimension_numbers = #tpu.dot_dimension_numbers<[1], [0], [0], [1], [0, 0, 1, 1], [], []>} : vector<16x512xbf16>, vector<512x1024xbf16>, vector<16x1024xf32> -> vector<16x1024xf32>
    %6 = arith.addf %3, %5 : vector<16x1024xf32>
    %c0_8 = arith.constant 0 : index
    %c0_9 = arith.constant 0 : index
    %7 = vector.load %arg5[%c0_8, %c0_9] : memref<1x1024xf32, #tpu.memory_space<vmem>>, vector<1x1024xf32>
    %8 = vector.broadcast %7 : vector<1x1024xf32> to vector<16x1024xf32>
    %9 = arith.addf %6, %8 : vector<16x1024xf32>
    %10 = vector.extract_strided_slice %9 {offsets = [0, 0], sizes = [16, 512], strides = [1, 1]} : vector<16x1024xf32> to vector<16x512xf32>
    %cst_10 = arith.constant 0.000000e+00 : f32
    %11 = vector.broadcast %cst_10 : f32 to vector<16x512xf32>
    %12 = arith.maximumf %10, %11 : vector<16x512xf32>
    %13 = vector.extract_strided_slice %9 {offsets = [0, 512], sizes = [16, 512], strides = [1, 1]} : vector<16x1024xf32> to vector<16x512xf32>
    %14 = arith.truncf %12 : vector<16x512xf32> to vector<16x512xbf16>
    %c0_11 = arith.constant 0 : index
    %c0_12 = arith.constant 0 : index
    %15 = vector.load %arg6[%c0_11, %c0_12] : memref<512x512xbf16, #tpu.memory_space<vmem>>, vector<512x512xbf16>
    %cst_13 = arith.constant dense<0.000000e+00> : vector<16x512xf32>
    %16 = tpu.matmul %14, %15, %cst_13 {dimension_numbers = #tpu.dot_dimension_numbers<[1], [0], [0], [1], [0, 0, 1, 1], [], []>} : vector<16x512xbf16>, vector<512x512xbf16>, vector<16x512xf32> -> vector<16x512xf32>
    %c0_14 = arith.constant 0 : index
    %c0_15 = arith.constant 0 : index
    %17 = vector.load %arg7[%c0_14, %c0_15] : memref<1x512xf32, #tpu.memory_space<vmem>>, vector<1x512xf32>
    %18 = vector.broadcast %17 : vector<1x512xf32> to vector<16x512xf32>
    %19 = arith.addf %16, %18 : vector<16x512xf32>
    %cst_16 = arith.constant 0.000000e+00 : f32
    %20 = vector.broadcast %cst_16 : f32 to vector<16x512xf32>
    %21 = arith.maximumf %19, %20 : vector<16x512xf32>
    %22 = arith.truncf %21 : vector<16x512xf32> to vector<16x512xbf16>
    %c0_17 = arith.constant 0 : index
    %c0_18 = arith.constant 0 : index
    %23 = vector.load %arg8[%c0_17, %c0_18] : memref<512x512xbf16, #tpu.memory_space<vmem>>, vector<512x512xbf16>
    %cst_19 = arith.constant dense<0.000000e+00> : vector<16x512xf32>
    %24 = tpu.matmul %22, %23, %cst_19 {dimension_numbers = #tpu.dot_dimension_numbers<[1], [0], [0], [1], [0, 0, 1, 1], [], []>} : vector<16x512xbf16>, vector<512x512xbf16>, vector<16x512xf32> -> vector<16x512xf32>
    %c0_20 = arith.constant 0 : index
    %c0_21 = arith.constant 0 : index
    %25 = vector.load %arg9[%c0_20, %c0_21] : memref<1x512xf32, #tpu.memory_space<vmem>>, vector<1x512xf32>
    %26 = vector.broadcast %25 : vector<1x512xf32> to vector<16x512xf32>
    %27 = arith.addf %24, %26 : vector<16x512xf32>
    %cst_22 = arith.constant 0.000000e+00 : f32
    %28 = vector.broadcast %cst_22 : f32 to vector<16x512xf32>
    %29 = arith.maximumf %27, %28 : vector<16x512xf32>
    %30 = arith.addf %29, %13 : vector<16x512xf32>
    %31 = arith.truncf %30 : vector<16x512xf32> to vector<16x512xbf16>
    %c0_23 = arith.constant 0 : index
    %c0_24 = arith.constant 0 : index
    %32 = vector.load %arg10[%c0_23, %c0_24] : memref<512x256xbf16, #tpu.memory_space<vmem>>, vector<512x256xbf16>
    %cst_25 = arith.constant dense<0.000000e+00> : vector<16x256xf32>
    %33 = tpu.matmul %31, %32, %cst_25 {dimension_numbers = #tpu.dot_dimension_numbers<[1], [0], [0], [1], [0, 0, 1, 1], [], []>} : vector<16x512xbf16>, vector<512x256xbf16>, vector<16x256xf32> -> vector<16x256xf32>
    %c0_26 = arith.constant 0 : index
    %c0_27 = arith.constant 0 : index
    %34 = vector.load %arg11[%c0_26, %c0_27] : memref<1x256xf32, #tpu.memory_space<vmem>>, vector<1x256xf32>
    %35 = vector.broadcast %34 : vector<1x256xf32> to vector<16x256xf32>
    %36 = arith.addf %33, %35 : vector<16x256xf32>
    %cst_28 = arith.constant 0.000000e+00 : f32
    %37 = vector.broadcast %cst_28 : f32 to vector<16x256xf32>
    %38 = arith.maximumf %36, %37 : vector<16x256xf32>
    %39 = arith.truncf %38 : vector<16x256xf32> to vector<16x256xbf16>
    %c0_29 = arith.constant 0 : index
    %c0_30 = arith.constant 0 : index
    %40 = vector.load %arg12[%c0_29, %c0_30] : memref<256x128xbf16, #tpu.memory_space<vmem>>, vector<256x128xbf16>
    %cst_31 = arith.constant dense<0.000000e+00> : vector<16x128xf32>
    %41 = tpu.matmul %39, %40, %cst_31 {dimension_numbers = #tpu.dot_dimension_numbers<[1], [0], [0], [1], [0, 0, 1, 1], [], []>} : vector<16x256xbf16>, vector<256x128xbf16>, vector<16x128xf32> -> vector<16x128xf32>
    %c0_32 = arith.constant 0 : index
    %c0_33 = arith.constant 0 : index
    %42 = vector.load %arg13[%c0_32, %c0_33] : memref<1x128xf32, #tpu.memory_space<vmem>>, vector<1x128xf32>
    %43 = vector.broadcast %42 : vector<1x128xf32> to vector<16x128xf32>
    %44 = arith.addf %41, %43 : vector<16x128xf32>
    %c0_34 = arith.constant 0 : index
    %c0_35 = arith.constant 0 : index
    %45 = vector.load %arg14[%c0_34, %c0_35] : memref<16x128xf32, #tpu.memory_space<vmem>>, vector<16x128xf32>
    tpu.vector_store %arg14[%c0_34, %c0_35], %44 {strides = array<i32>} : memref<16x128xf32, #tpu.memory_space<vmem>>, vector<16x128xf32>,
    return
  }
  func.func @transform_0(%arg0: i32) -> (i32, i32) {
    %c0_i32 = arith.constant 0 : i32
    %c0_i32_0 = arith.constant 0 : i32
    return %arg0, %c0_i32 : i32, i32
  }
  func.func @transform_1(%arg0: i32) -> (i32, i32) {
    %c0_i32 = arith.constant 0 : i32
    %c0_i32_0 = arith.constant 0 : i32
    return %arg0, %c0_i32 : i32, i32
  }
  func.func @transform_2(%arg0: i32) -> (i32, i32) {
    %c0_i32 = arith.constant 0 : i32
    %c0_i32_0 = arith.constant 0 : i32
    %c0_i32_1 = arith.constant 0 : i32
    return %c0_i32, %c0_i32_0 : i32, i32
  }
  func.func @transform_3(%arg0: i32) -> (i32, i32) {
    %c0_i32 = arith.constant 0 : i32
    %c0_i32_0 = arith.constant 0 : i32
    %c0_i32_1 = arith.constant 0 : i32
    return %c0_i32, %c0_i32_0 : i32, i32
  }
  func.func @transform_4(%arg0: i32) -> (i32, i32) {
    %c0_i32 = arith.constant 0 : i32
    %c0_i32_0 = arith.constant 0 : i32
    %c0_i32_1 = arith.constant 0 : i32
    return %c0_i32, %c0_i32_0 : i32, i32
  }
  func.func @transform_5(%arg0: i32) -> (i32, i32) {
    %c0_i32 = arith.constant 0 : i32
    %c0_i32_0 = arith.constant 0 : i32
    %c0_i32_1 = arith.constant 0 : i32
    return %c0_i32, %c0_i32_0 : i32, i32
  }
  func.func @transform_6(%arg0: i32) -> (i32, i32) {
    %c0_i32 = arith.constant 0 : i32
    %c0_i32_0 = arith.constant 0 : i32
    %c0_i32_1 = arith.constant 0 : i32
    return %c0_i32, %c0_i32_0 : i32, i32
  }
  func.func @transform_7(%arg0: i32) -> (i32, i32) {
    %c0_i32 = arith.constant 0 : i32
    %c0_i32_0 = arith.constant 0 : i32
    %c0_i32_1 = arith.constant 0 : i32
    return %c0_i32, %c0_i32_0 : i32, i32
  }
  func.func @transform_8(%arg0: i32) -> (i32, i32) {
    %c0_i32 = arith.constant 0 : i32
    %c0_i32_0 = arith.constant 0 : i32
    %c0_i32_1 = arith.constant 0 : i32
    return %c0_i32, %c0_i32_0 : i32, i32
  }
  func.func @transform_9(%arg0: i32) -> (i32, i32) {
    %c0_i32 = arith.constant 0 : i32
    %c0_i32_0 = arith.constant 0 : i32
    %c0_i32_1 = arith.constant 0 : i32
    return %c0_i32, %c0_i32_0 : i32, i32
  }
  func.func @transform_10(%arg0: i32) -> (i32, i32) {
    %c0_i32 = arith.constant 0 : i32
    %c0_i32_0 = arith.constant 0 : i32
    %c0_i32_1 = arith.constant 0 : i32
    return %c0_i32, %c0_i32_0 : i32, i32
  }
  func.func @transform_11(%arg0: i32) -> (i32, i32) {
    %c0_i32 = arith.constant 0 : i32
    %c0_i32_0 = arith.constant 0 : i32
    %c0_i32_1 = arith.constant 0 : i32
    return %c0_i32, %c0_i32_0 : i32, i32
  }
  func.func @transform_12(%arg0: i32) -> (i32, i32) {
    %c0_i32 = arith.constant 0 : i32
    %c0_i32_0 = arith.constant 0 : i32
    %c0_i32_1 = arith.constant 0 : i32
    return %c0_i32, %c0_i32_0 : i32, i32
  }
  func.func @transform_13(%arg0: i32) -> (i32, i32) {
    %c0_i32 = arith.constant 0 : i32
    %c0_i32_0 = arith.constant 0 : i32
    return %arg0, %c0_i32 : i32, i32
  }
}

module attributes {stable_mosaic.version = 11 : i64} {
  func.func @_head_kernel(%arg0: i32, %arg1: memref<16x768xbf16, #tpu.memory_space<vmem>>, %arg2: memref<16x512xbf16, #tpu.memory_space<vmem>>, %arg3: memref<768x1024xbf16, #tpu.memory_space<vmem>>, %arg4: memref<512x1024xbf16, #tpu.memory_space<vmem>>, %arg5: memref<1x1024xf32, #tpu.memory_space<vmem>>, %arg6: memref<512x512xbf16, #tpu.memory_space<vmem>>, %arg7: memref<1x512xf32, #tpu.memory_space<vmem>>, %arg8: memref<512x512xbf16, #tpu.memory_space<vmem>>, %arg9: memref<1x512xf32, #tpu.memory_space<vmem>>, %arg10: memref<512x256xbf16, #tpu.memory_space<vmem>>, %arg11: memref<1x256xf32, #tpu.memory_space<vmem>>, %arg12: memref<256x128xbf16, #tpu.memory_space<vmem>>, %arg13: memref<1x128xf32, #tpu.memory_space<vmem>>, %arg14: memref<16x128xf32, #tpu.memory_space<vmem>>) attributes {dimension_semantics = [#tpu.dimension_semantics<parallel>], iteration_bounds = array<i64: 1>, scalar_prefetch = 0 : i64, scratch_operands = 0 : i64, tpu.core_type = #tpu.core_type<tc>, window_params = [{transform_indices = @transform_0, window_bounds = array<i64: 16, 768>}, {transform_indices = @transform_1, window_bounds = array<i64: 16, 512>}, {pipeline_mode = #tpu.pipeline_mode<synchronous>, transform_indices = @transform_2, window_bounds = array<i64: 768, 1024>}, {pipeline_mode = #tpu.pipeline_mode<synchronous>, transform_indices = @transform_3, window_bounds = array<i64: 512, 1024>}, {pipeline_mode = #tpu.pipeline_mode<synchronous>, transform_indices = @transform_4, window_bounds = array<i64: 1, 1024>}, {pipeline_mode = #tpu.pipeline_mode<synchronous>, transform_indices = @transform_5, window_bounds = array<i64: 512, 512>}, {pipeline_mode = #tpu.pipeline_mode<synchronous>, transform_indices = @transform_6, window_bounds = array<i64: 1, 512>}, {pipeline_mode = #tpu.pipeline_mode<synchronous>, transform_indices = @transform_7, window_bounds = array<i64: 512, 512>}, {pipeline_mode = #tpu.pipeline_mode<synchronous>, transform_indices = @transform_8, window_bounds = array<i64: 1, 512>}, {pipeline_mode = #tpu.pipeline_mode<synchronous>, transform_indices = @transform_9, window_bounds = array<i64: 512, 256>}, {pipeline_mode = #tpu.pipeline_mode<synchronous>, transform_indices = @transform_10, window_bounds = array<i64: 1, 256>}, {pipeline_mode = #tpu.pipeline_mode<synchronous>, transform_indices = @transform_11, window_bounds = array<i64: 256, 128>}, {pipeline_mode = #tpu.pipeline_mode<synchronous>, transform_indices = @transform_12, window_bounds = array<i64: 1, 128>}, {transform_indices = @transform_13, window_bounds = array<i64: 16, 128>}]} {
    %c0 = arith.constant 0 : index
    %c0_0 = arith.constant 0 : index
    %0 = vector.load %arg1[%c0, %c0_0] : memref<16x768xbf16, #tpu.memory_space<vmem>>, vector<16x768xbf16>
    %c0_1 = arith.constant 0 : index
    %c0_2 = arith.constant 0 : index
    %1 = vector.load %arg2[%c0_1, %c0_2] : memref<16x512xbf16, #tpu.memory_space<vmem>>, vector<16x512xbf16>
    %c0_3 = arith.constant 0 : index
    %c0_4 = arith.constant 0 : index
    %2 = vector.load %arg3[%c0_3, %c0_4] : memref<768x1024xbf16, #tpu.memory_space<vmem>>, vector<768x1024xbf16>
    %cst = arith.constant dense<0.000000e+00> : vector<16x1024xf32>
    %3 = tpu.matmul %0, %2, %cst {dimension_numbers = #tpu.dot_dimension_numbers<[1], [0], [0], [1], [0, 0, 1, 1], [], []>} : vector<16x768xbf16>, vector<768x1024xbf16>, vector<16x1024xf32> -> vector<16x1024xf32>
    %c0_5 = arith.constant 0 : index
    %c0_6 = arith.constant 0 : index
    %4 = vector.load %arg4[%c0_5, %c0_6] : memref<512x1024xbf16, #tpu.memory_space<vmem>>, vector<512x1024xbf16>
    %cst_7 = arith.constant dense<0.000000e+00> : vector<16x1024xf32>
    %5 = tpu.matmul %1, %4, %cst_7 {dimension_numbers = #tpu.dot_dimension_numbers<[1], [0], [0], [1], [0, 0, 1, 1], [], []>} : vector<16x512xbf16>, vector<512x1024xbf16>, vector<16x1024xf32> -> vector<16x1024xf32>
    %6 = arith.addf %3, %5 : vector<16x1024xf32>
    %c0_8 = arith.constant 0 : index
    %c0_9 = arith.constant 0 : index
    %7 = vector.load %arg5[%c0_8, %c0_9] : memref<1x1024xf32, #tpu.memory_space<vmem>>, vector<1x1024xf32>
    %8 = vector.broadcast %7 : vector<1x1024xf32> to vector<16x1024xf32>
    %9 = arith.addf %6, %8 : vector<16x1024xf32>
    %10 = vector.extract_strided_slice %9 {offsets = [0, 0], sizes = [16, 512], strides = [1, 1]} : vector<16x1024xf32> to vector<16x512xf32>
    %cst_10 = arith.constant 0.000000e+00 : f32
    %11 = vector.broadcast %cst_10 : f32 to vector<16x512xf32>
    %12 = arith.maximumf %10, %11 : vector<16x512xf32>
    %13 = vector.extract_strided_slice %9 {offsets = [0, 512], sizes = [16, 512], strides = [1, 1]} : vector<16x1024xf32> to vector<16x512xf32>
    %14 = arith.truncf %12 : vector<16x512xf32> to vector<16x512xbf16>
    %c0_11 = arith.constant 0 : index
    %c0_12 = arith.constant 0 : index
    %15 = vector.load %arg6[%c0_11, %c0_12] : memref<512x512xbf16, #tpu.memory_space<vmem>>, vector<512x512xbf16>
    %cst_13 = arith.constant dense<0.000000e+00> : vector<16x512xf32>
    %16 = tpu.matmul %14, %15, %cst_13 {dimension_numbers = #tpu.dot_dimension_numbers<[1], [0], [0], [1], [0, 0, 1, 1], [], []>} : vector<16x512xbf16>, vector<512x512xbf16>, vector<16x512xf32> -> vector<16x512xf32>
    %c0_14 = arith.constant 0 : index
    %c0_15 = arith.constant 0 : index
    %17 = vector.load %arg7[%c0_14, %c0_15] : memref<1x512xf32, #tpu.memory_space<vmem>>, vector<1x512xf32>
    %18 = vector.broadcast %17 : vector<1x512xf32> to vector<16x512xf32>
    %19 = arith.addf %16, %18 : vector<16x512xf32>
    %cst_16 = arith.constant 0.000000e+00 : f32
    %20 = vector.broadcast %cst_16 : f32 to vector<16x512xf32>
    %21 = arith.maximumf %19, %20 : vector<16x512xf32>
    %22 = arith.truncf %21 : vector<16x512xf32> to vector<16x512xbf16>
    %c0_17 = arith.constant 0 : index
    %c0_18 = arith.constant 0 : index
    %23 = vector.load %arg8[%c0_17, %c0_18] : memref<512x512xbf16, #tpu.memory_space<vmem>>, vector<512x512xbf16>
    %cst_19 = arith.constant dense<0.000000e+00> : vector<16x512xf32>
    %24 = tpu.matmul %22, %23, %cst_19 {dimension_numbers = #tpu.dot_dimension_numbers<[1], [0], [0], [1], [0, 0, 1, 1], [], []>} : vector<16x512xbf16>, vector<512x512xbf16>, vector<16x512xf32> -> vector<16x512xf32>
    %c0_20 = arith.constant 0 : index
    %c0_21 = arith.constant 0 : index
    %25 = vector.load %arg9[%c0_20, %c0_21] : memref<1x512xf32, #tpu.memory_space<vmem>>, vector<1x512xf32>
    %26 = vector.broadcast %25 : vector<1x512xf32> to vector<16x512xf32>
    %27 = arith.addf %24, %26 : vector<16x512xf32>
    %cst_22 = arith.constant 0.000000e+00 : f32
    %28 = vector.broadcast %cst_22 : f32 to vector<16x512xf32>
    %29 = arith.maximumf %27, %28 : vector<16x512xf32>
    %30 = arith.addf %29, %13 : vector<16x512xf32>
    %31 = arith.truncf %30 : vector<16x512xf32> to vector<16x512xbf16>
    %c0_23 = arith.constant 0 : index
    %c0_24 = arith.constant 0 : index
    %32 = vector.load %arg10[%c0_23, %c0_24] : memref<512x256xbf16, #tpu.memory_space<vmem>>, vector<512x256xbf16>
    %cst_25 = arith.constant dense<0.000000e+00> : vector<16x256xf32>
    %33 = tpu.matmul %31, %32, %cst_25 {dimension_numbers = #tpu.dot_dimension_numbers<[1], [0], [0], [1], [0, 0, 1, 1], [], []>} : vector<16x512xbf16>, vector<512x256xbf16>, vector<16x256xf32> -> vector<16x256xf32>
    %c0_26 = arith.constant 0 : index
    %c0_27 = arith.constant 0 : index
    %34 = vector.load %arg11[%c0_26, %c0_27] : memref<1x256xf32, #tpu.memory_space<vmem>>, vector<1x256xf32>
    %35 = vector.broadcast %34 : vector<1x256xf32> to vector<16x256xf32>
    %36 = arith.addf %33, %35 : vector<16x256xf32>
    %cst_28 = arith.constant 0.000000e+00 : f32
    %37 = vector.broadcast %cst_28 : f32 to vector<16x256xf32>
    %38 = arith.maximumf %36, %37 : vector<16x256xf32>
    %39 = arith.truncf %38 : vector<16x256xf32> to vector<16x256xbf16>
    %c0_29 = arith.constant 0 : index
    %c0_30 = arith.constant 0 : index
    %40 = vector.load %arg12[%c0_29, %c0_30] : memref<256x128xbf16, #tpu.memory_space<vmem>>, vector<256x128xbf16>
    %cst_31 = arith.constant dense<0.000000e+00> : vector<16x128xf32>
    %41 = tpu.matmul %39, %40, %cst_31 {dimension_numbers = #tpu.dot_dimension_numbers<[1], [0], [0], [1], [0, 0, 1, 1], [], []>} : vector<16x256xbf16>, vector<256x128xbf16>, vector<16x128xf32> -> vector<16x128xf32>
    %c0_32 = arith.constant 0 : index
    %c0_33 = arith.constant 0 : index
    %42 = vector.load %arg13[%c0_32, %c0_33] : memref<1x128xf32, #tpu.memory_space<vmem>>, vector<1x128xf32>
    %43 = vector.broadcast %42 : vector<1x128xf32> to vector<16x128xf32>
    %44 = arith.addf %41, %43 : vector<16x128xf32>
    %c0_34 = arith.constant 0 : index
    %c0_35 = arith.constant 0 : index
    %45 = vector.load %arg14[%c0_34, %c0_35] : memref<16x128xf32, #tpu.memory_space<vmem>>, vector<16x128xf32>
    tpu.vector_store %arg14[%c0_34, %c0_35], %44 {strides = array<i32>} : memref<16x128xf32, #tpu.memory_space<vmem>>, vector<16x128xf32>,
    return
  }
  func.func @transform_0(%arg0: i32) -> (i32, i32) {
    %c0_i32 = arith.constant 0 : i32
    %c0_i32_0 = arith.constant 0 : i32
    return %arg0, %c0_i32 : i32, i32
  }
  func.func @transform_1(%arg0: i32) -> (i32, i32) {
    %c0_i32 = arith.constant 0 : i32
    %c0_i32_0 = arith.constant 0 : i32
    return %arg0, %c0_i32 : i32, i32
  }
  func.func @transform_2(%arg0: i32) -> (i32, i32) {
    %c0_i32 = arith.constant 0 : i32
    %c0_i32_0 = arith.constant 0 : i32
    %c0_i32_1 = arith.constant 0 : i32
    return %c0_i32, %c0_i32_0 : i32, i32
  }
  func.func @transform_3(%arg0: i32) -> (i32, i32) {
    %c0_i32 = arith.constant 0 : i32
    %c0_i32_0 = arith.constant 0 : i32
    %c0_i32_1 = arith.constant 0 : i32
    return %c0_i32, %c0_i32_0 : i32, i32
  }
  func.func @transform_4(%arg0: i32) -> (i32, i32) {
    %c0_i32 = arith.constant 0 : i32
    %c0_i32_0 = arith.constant 0 : i32
    %c0_i32_1 = arith.constant 0 : i32
    return %c0_i32, %c0_i32_0 : i32, i32
  }
  func.func @transform_5(%arg0: i32) -> (i32, i32) {
    %c0_i32 = arith.constant 0 : i32
    %c0_i32_0 = arith.constant 0 : i32
    %c0_i32_1 = arith.constant 0 : i32
    return %c0_i32, %c0_i32_0 : i32, i32
  }
  func.func @transform_6(%arg0: i32) -> (i32, i32) {
    %c0_i32 = arith.constant 0 : i32
    %c0_i32_0 = arith.constant 0 : i32
    %c0_i32_1 = arith.constant 0 : i32
    return %c0_i32, %c0_i32_0 : i32, i32
  }
  func.func @transform_7(%arg0: i32) -> (i32, i32) {
    %c0_i32 = arith.constant 0 : i32
    %c0_i32_0 = arith.constant 0 : i32
    %c0_i32_1 = arith.constant 0 : i32
    return %c0_i32, %c0_i32_0 : i32, i32
  }
  func.func @transform_8(%arg0: i32) -> (i32, i32) {
    %c0_i32 = arith.constant 0 : i32
    %c0_i32_0 = arith.constant 0 : i32
    %c0_i32_1 = arith.constant 0 : i32
    return %c0_i32, %c0_i32_0 : i32, i32
  }
  func.func @transform_9(%arg0: i32) -> (i32, i32) {
    %c0_i32 = arith.constant 0 : i32
    %c0_i32_0 = arith.constant 0 : i32
    %c0_i32_1 = arith.constant 0 : i32
    return %c0_i32, %c0_i32_0 : i32, i32
  }
  func.func @transform_10(%arg0: i32) -> (i32, i32) {
    %c0_i32 = arith.constant 0 : i32
    %c0_i32_0 = arith.constant 0 : i32
    %c0_i32_1 = arith.constant 0 : i32
    return %c0_i32, %c0_i32_0 : i32, i32
  }
  func.func @transform_11(%arg0: i32) -> (i32, i32) {
    %c0_i32 = arith.constant 0 : i32
    %c0_i32_0 = arith.constant 0 : i32
    %c0_i32_1 = arith.constant 0 : i32
    return %c0_i32, %c0_i32_0 : i32, i32
  }
  func.func @transform_12(%arg0: i32) -> (i32, i32) {
    %c0_i32 = arith.constant 0 : i32
    %c0_i32_0 = arith.constant 0 : i32
    %c0_i32_1 = arith.constant 0 : i32
    return %c0_i32, %c0_i32_0 : i32, i32
  }
  func.func @transform_13(%arg0: i32) -> (i32, i32) {
    %c0_i32 = arith.constant 0 : i32
    %c0_i32_0 = arith.constant 0 : i32
    return %arg0, %c0_i32 : i32, i32
  }
}

</mosaic_0001>

<bundles_post_ra>
// kernel: tpu_custom_call.1
= control target key start
LH: loop header
LB: loop body
LE: loop exit
PB: predicated region body
PF: predicated region fallthrough
CT: control target
= control target key end

     0   :  { %18 = vsyncpa [#allocation3], 0  ;;  %s9963_s0 = inlined_call_operand.hbm [shape: bf16[16,768], index: 0, kind: input, shape index: {}]   ;;  %s9964_s1 = inlined_call_operand.hbm [shape: bf16[16,512], index: 1, kind: input, shape index: {}]   ;;  %s9965_s2 = inlined_call_operand.hbm [shape: bf16[768,1024], index: 2, kind: input, shape index: {}]   ;;  %s9966_s3 = inlined_call_operand.hbm [shape: bf16[512,1024], index: 3, kind: input, shape index: {}]   ;;  %s9967_s4 = inlined_call_operand.hbm [shape: f32[1,1024], index: 4, kind: input, shape index: {}]   ;;  %s9968_s5 = inlined_call_operand.hbm [shape: bf16[512,512], index: 5, kind: input, shape index: {}]   ;;  %s9969_s6 = inlined_call_operand.hbm [shape: f32[1,512], index: 6, kind: input, shape index: {}]   ;;  %s9970_s7 = inlined_call_operand.hbm [shape: bf16[512,512], index: 7, kind: input, shape index: {}]   ;;  %s9971_s8 = inlined_call_operand.hbm [shape: f32[1,512], index: 8, kind: input, shape index: {}]   ;;  %s9972_s9 = inlined_call_operand.hbm [shape: bf16[512,256], index: 9, kind: input, shape index: {}]   ;;  %s9973_s10 = inlined_call_operand.hbm [shape: f32[1,256], index: 10, kind: input, shape index: {}]   ;;  %s9974_s11 = inlined_call_operand.hbm [shape: bf16[256,128], index: 11, kind: input, shape index: {}]   ;;  %s9975_s12 = inlined_call_operand.hbm [shape: f32[1,128], index: 12, kind: input, shape index: {}]   ;;  %s9976_s13 = inlined_call_operand.hbm [shape: f32[16,128], index: 13, kind: output, shape index: {}]  }
   0x1   :  { %19 = vsyncpa [#allocation6], 0 }
   0x2   :  { %20 = vsyncpa [#allocation9], 0 }
   0x3   :  { %21 = vsyncpa [#allocation12], 0 }
   0x4   :  { %22 = vsyncpa [#allocation15], 0 }
   0x5   :  { %23 = vsyncpa [#allocation18], 0 }
   0x6   :  { %24 = vsyncpa [#allocation21], 0 }
   0x7   :  { %25 = vsyncpa [#allocation4], 0  ;;  %s9538_s25 = smov [#allocation5]  }
   0x8   :  { %s43_s26 = sshll.u32 %s9538_s25, 4  ;;  %s44_s26 = int_to_ptr.vmem [resolvable:$true] %s43_s26 }
   0x9   :  { %s9250_s27 = scalar_lea.vmem %s44_s26, 512  ;;  %p9255_p1 = scmp.lt.s32.totalorder %s44_s26, %s44_s26 }
   0xa   :  { %p9251_p0 = scmp.ne.s32.totalorder %s44_s26, %s9250_s27  ;;  %p9256_p2 = scmp.lt.s32.totalorder %s9250_s27, %s9250_s27 }
   0xc   :  { %p9257_p3 = por %p9256_p2, %p9255_p1 }
   0xe   :  { %p9258_p4 = pnand %p9257_p3, %p9251_p0 }
  0x10   :  { %9261 = shalt.err (!%p9258_p4)
}
  0x11   :  { %s9539_s28 = smov 256   ;;  %s9540_s29 = smov 16  }
  0x12   :  { %49 = dma.hbm_to_vmem [thread:$0]  %s9964_s1, 512, %s44_s26, [#allocation6], %s9539_s28, %s9539_s28, %s9540_s29  }
  0x13   :  { %s9541_s15 = smov [#allocation8]   ;;  %s9542_s17 = smov [#allocation11]  }
  0x14   :  { %s67_s16 = sshll.u32 %s9541_s15, 4  ;;  %s89_s18 = sshll.u32 %s9542_s17, 4  ;;  %s68_s16 = int_to_ptr.vmem [resolvable:$true] %s67_s16  ;;  %s90_s18 = int_to_ptr.vmem [resolvable:$true] %s89_s18 }
  0x15   :  { %s9270_s19 = scalar_lea.vmem %s68_s16, 32768  ;;  %p9275_p6 = scmp.lt.s32.totalorder %s68_s16, %s68_s16 }
  0x16   :  { %p9271_p5 = scmp.ne.s32.totalorder %s68_s16, %s9270_s19  ;;  %p9276_p7 = scmp.lt.s32.totalorder %s9270_s19, %s9270_s19 }
  0x18   :  { %p9277_p8 = por %p9276_p7, %p9275_p6 }
  0x1a   :  { %p9278_p9 = pnand %p9277_p8, %p9271_p5 }
  0x1c   :  { %9281 = shalt.err (!%p9278_p9)
}
  0x1d   :  { %s9543_s20 = smov 512   ;;  %s9544_s21 = smov 32  }
  0x1e   :  { %73 = dma.hbm_to_vmem [thread:$0]  %s9966_s3, 32768, %s68_s16, [#allocation9], %s9543_s20, %s9543_s20, %s9544_s21  }
  0x1f   :  { %s9290_s1 = scalar_lea.vmem %s90_s18, 16384  ;;  %p9295_p11 = scmp.lt.s32.totalorder %s90_s18, %s90_s18 }
  0x20   :  { %p9291_p10 = scmp.ne.s32.totalorder %s90_s18, %s9290_s1  ;;  %p9296_p12 = scmp.lt.s32.totalorder %s9290_s1, %s9290_s1 }
  0x22   :  { %p9297_p13 = por %p9296_p12, %p9295_p11 }
  0x24   :  { %p9298_p0 = pnand %p9297_p13, %p9291_p10 }
  0x26   :  { %9301 = shalt.err (!%p9298_p0)
}
  0x27   :  { %95 = dma.hbm_to_vmem [thread:$0]  %s9968_s5, 16384, %s90_s18, [#allocation12], %s9539_s28, %s9539_s28, %s9540_s29  }
  0x28   :  { %s9545_s26 = smov [#allocation14]   ;;  %s9546_s30 = smov [#allocation17]  }
  0x29   :  { %s111_s27 = sshll.u32 %s9545_s26, 4  ;;  %s133_s3 = sshll.u32 %s9546_s30, 4  ;;  %s112_s27 = int_to_ptr.vmem [resolvable:$true] %s111_s27  ;;  %s134_s3 = int_to_ptr.vmem [resolvable:$true] %s133_s3 }
  0x2a   :  { %s9310_s14 = scalar_lea.vmem %s112_s27, 16384  ;;  %p9315_p2 = scmp.lt.s32.totalorder %s112_s27, %s112_s27 }
  0x2b   :  { %p9311_p1 = scmp.ne.s32.totalorder %s112_s27, %s9310_s14  ;;  %p9316_p3 = scmp.lt.s32.totalorder %s9310_s14, %s9310_s14 }
  0x2d   :  { %p9317_p4 = por %p9316_p3, %p9315_p2 }
  0x2f   :  { %p9318_p5 = pnand %p9317_p4, %p9311_p1 }
  0x31   :  { %9321 = shalt.err (!%p9318_p5)
}
  0x32   :  { %117 = dma.hbm_to_vmem [thread:$0]  %s9970_s7, 16384, %s112_s27, [#allocation15], %s9539_s28, %s9539_s28, %s9540_s29  }
  0x33   :  { %s9330_s5 = scalar_lea.vmem %s134_s3, 8192  ;;  %p9335_p7 = scmp.lt.s32.totalorder %s134_s3, %s134_s3 }
  0x34   :  { %p9331_p6 = scmp.ne.s32.totalorder %s134_s3, %s9330_s5  ;;  %p9336_p8 = scmp.lt.s32.totalorder %s9330_s5, %s9330_s5 }
  0x36   :  { %p9337_p9 = por %p9336_p8, %p9335_p7 }
  0x38   :  { %p9338_p10 = pnand %p9337_p9, %p9331_p6 }
  0x3a   :  { %9341 = shalt.err (!%p9338_p10)
}
  0x3b   :  { %s9547_s17 = smov 128   ;;  %s9548_s18 = smov 8  }
  0x3c   :  { %139 = dma.hbm_to_vmem [thread:$0]  %s9972_s9, 8192, %s134_s3, [#allocation18], %s9547_s17, %s9547_s17, %s9548_s18  }
  0x3d   :  { %s9549_s23 = smov [#allocation20]  }
  0x3e   :  { %s155_s1 = sshll.u32 %s9549_s23, 4  ;;  %s156_s1 = int_to_ptr.vmem [resolvable:$true] %s155_s1 }
  0x3f   :  { %s9350_s7 = scalar_lea.vmem %s156_s1, 2048  ;;  %p9355_p12 = scmp.lt.s32.totalorder %s156_s1, %s156_s1 }
  0x40   :  { %p9351_p11 = scmp.ne.s32.totalorder %s156_s1, %s9350_s7  ;;  %p9356_p13 = scmp.lt.s32.totalorder %s9350_s7, %s9350_s7 }
  0x42   :  { %p9357_p0 = por %p9356_p13, %p9355_p12 }
  0x44   :  { %p9358_p1 = pnand %p9357_p0, %p9351_p11 }
  0x46   :  { %9361 = shalt.err (!%p9358_p1)
}
  0x47   :  { %s9550_s28 = smov 64   ;;  %s9551_s29 = smov 4  }
  0x48   :  { %161 = dma.hbm_to_vmem [thread:$0]  %s9974_s11, 2048, %s156_s1, [#allocation21], %s9550_s28, %s9550_s28, %s9551_s29  }
  0x49   :  { %s9552_s26 = smov [#allocation2]  }
  0x4a   :  { %s31_s27 = sshll.u32 %s9552_s26, 4  ;;  %s32_s27 = int_to_ptr.vmem [resolvable:$true] %s31_s27 }
  0x4b   :  { %s9370_s9 = scalar_lea.vmem %s32_s27, 768  ;;  %p9375_p3 = scmp.lt.s32.totalorder %s32_s27, %s32_s27 }
  0x4c   :  { %p9371_p2 = scmp.ne.s32.totalorder %s32_s27, %s9370_s9  ;;  %p9376_p4 = scmp.lt.s32.totalorder %s9370_s9, %s9370_s9 }
  0x4e   :  { %p9377_p5 = por %p9376_p4, %p9375_p3 }
  0x50   :  { %p9378_p6 = pnand %p9377_p5, %p9371_p2 }
  0x52   :  { %9381 = shalt.err (!%p9378_p6)
}
  0x53   :  { %s9553_s30 = smov 384   ;;  %s9554_s3 = smov 24  }
  0x54   :  { %37 = dma.hbm_to_vmem [thread:$0]  %s9963_s0, 768, %s32_s27, [#allocation3], %s9553_s30, %s9553_s30, %s9554_s3  }
  0x55   :  { %s9555_s16 = smov [#allocation7]   ;;  %s9556_s11 = smov [#allocation10]  }
  0x56   :  { %s55_s5 = sshll.u32 %s9555_s16, 4  ;;  %s80_s19 = sshll.u32 %s9556_s11, 4  ;;  %s56_s5 = int_to_ptr.vmem [resolvable:$true] %s55_s5  ;;  %s81_s19 = int_to_ptr.vmem [resolvable:$true] %s80_s19 }
  0x57   :  { %s9390_s22 = scalar_lea.vmem %s56_s5, 49152  ;;  %p9395_p8 = scmp.lt.s32.totalorder %s56_s5, %s56_s5 }
  0x58   :  { %p9391_p7 = scmp.ne.s32.totalorder %s56_s5, %s9390_s22  ;;  %p9396_p9 = scmp.lt.s32.totalorder %s9390_s22, %s9390_s22 }
  0x5a   :  { %p9397_p10 = por %p9396_p9, %p9395_p8 }
  0x5c   :  { %p9398_p11 = pnand %p9397_p10, %p9391_p7 }
  0x5e   :  { %9401 = shalt.err (!%p9398_p11)
}
  0x5f   :  { %61 = dma.hbm_to_vmem [thread:$0]  %s9965_s2, 49152, %s56_s5, [#allocation6], %s9543_s20, %s9543_s20, %s9544_s21  }
  0x60   :  { %s9410_s0 = scalar_lea.vmem %s81_s19, 128  ;;  %p9415_p13 = scmp.lt.s32.totalorder %s81_s19, %s81_s19 }
  0x61   :  { %p9411_p12 = scmp.ne.s32.totalorder %s81_s19, %s9410_s0  ;;  %p9416_p0 = scmp.lt.s32.totalorder %s9410_s0, %s9410_s0 }
  0x63   :  { %p9417_p1 = por %p9416_p0, %p9415_p13 }
  0x65   :  { %p9418_p2 = pnand %p9417_p1, %p9411_p12 }
  0x67   :  { %9421 = shalt.err (!%p9418_p2)
}
  0x68   :  { %83 = dma.hbm_to_vmem [thread:$0]  %s9967_s4, 128, %s81_s19, [#allocation9]  }
  0x69   :  { %s9557_s29 = smov [#allocation13]   ;;  %s9558_s25 = smov [#allocation16]  }
  0x6a   :  { %s102_s24 = sshll.u32 %s9557_s29, 4  ;;  %s124_s26 = sshll.u32 %s9558_s25, 4  ;;  %s103_s24 = int_to_ptr.vmem [resolvable:$true] %s102_s24  ;;  %s125_s26 = int_to_ptr.vmem [resolvable:$true] %s124_s26 }
  0x6b   :  { %s9430_s27 = scalar_lea.vmem %s103_s24, 64  ;;  %p9435_p4 = scmp.lt.s32.totalorder %s103_s24, %s103_s24 }
  0x6c   :  { %p9431_p3 = scmp.ne.s32.totalorder %s103_s24, %s9430_s27  ;;  %p9436_p5 = scmp.lt.s32.totalorder %s9430_s27, %s9430_s27 }
  0x6e   :  { %p9437_p6 = por %p9436_p5, %p9435_p4 }
  0x70   :  { %p9438_p7 = pnand %p9437_p6, %p9431_p3 }
  0x72   :  { %9441 = shalt.err (!%p9438_p7)
}
  0x73   :  { %105 = dma.hbm_to_vmem [thread:$0]  %s9969_s6, 64, %s103_s24, [#allocation12]  }
  0x74   :  { %s9450_s21 = scalar_lea.vmem %s125_s26, 64  ;;  %p9455_p9 = scmp.lt.s32.totalorder %s125_s26, %s125_s26 }
  0x75   :  { %p9451_p8 = scmp.ne.s32.totalorder %s125_s26, %s9450_s21  ;;  %p9456_p10 = scmp.lt.s32.totalorder %s9450_s21, %s9450_s21 }
  0x77   :  { %p9457_p11 = por %p9456_p10, %p9455_p9 }
  0x79   :  { %p9458_p12 = pnand %p9457_p11, %p9451_p8 }
  0x7b   :  { %9461 = shalt.err (!%p9458_p12)
}
  0x7c   :  { %127 = dma.hbm_to_vmem [thread:$0]  %s9971_s8, 64, %s125_s26, [#allocation15]  }
  0x7d   :  { %s9559_s30 = smov [#allocation19]   ;;  %s9560_s14 = smov [#allocation22]  }
  0x7e   :  { %s146_s3 = sshll.u32 %s9559_s30, 4  ;;  %s168_s15 = sshll.u32 %s9560_s14, 4  ;;  %s147_s3 = int_to_ptr.vmem [resolvable:$true] %s146_s3  ;;  %s169_s15 = int_to_ptr.vmem [resolvable:$true] %s168_s15 }
  0x7f   :  { %s9470_s16 = scalar_lea.vmem %s147_s3, 32  ;;  %p9475_p0 = scmp.lt.s32.totalorder %s147_s3, %s147_s3 }
  0x80   :  { %p9471_p13 = scmp.ne.s32.totalorder %s147_s3, %s9470_s16  ;;  %p9476_p1 = scmp.lt.s32.totalorder %s9470_s16, %s9470_s16 }
  0x82   :  { %p9477_p2 = por %p9476_p1, %p9475_p0 }
  0x84   :  { %p9478_p3 = pnand %p9477_p2, %p9471_p13 }
  0x86   :  { %9481 = shalt.err (!%p9478_p3)
}
  0x87   :  { %149 = dma.hbm_to_vmem [thread:$0]  %s9973_s10, 32, %s147_s3, [#allocation18]  }
  0x88   :  { %s9490_s11 = scalar_lea.vmem %s169_s15, 16  ;;  %s9494_s8 = scalar_lea.vmem %s169_s15, 32 }
  0x89   :  { %p9491_p4 = scmp.ne.s32.totalorder %s169_s15, %s9490_s11  ;;  %p9495_p5 = scmp.lt.s32.totalorder %s169_s15, %s169_s15 }
  0x8a   :  { %p9496_p6 = scmp.lt.s32.totalorder %s9494_s8, %s9490_s11 }
  0x8c   :  { %p9497_p7 = por %p9496_p6, %p9495_p5 }
  0x8e   :  { %p9498_p8 = pnand %p9497_p7, %p9491_p4 }
  0x90   :  { %9501 = shalt.err (!%p9498_p8)
}
  0x91   :  { %171 = dma.hbm_to_vmem [thread:$0]  %s9975_s12, 16, %s169_s15, [#allocation21]  }
  0x92   :  { %9522 = dma.done.wait [#allocation3], 768  }
  0x93   :  { %9523 = vsyncadd [#allocation3], 4294966528 }
  0x94   :  { %9524 = dma.done.wait [#allocation6], 49664  }
  0x95   :  { %9525 = vsyncadd [#allocation6], 4294917632 }
  0x96   :  { %9526 = dma.done.wait [#allocation9], 32896  }
  0x97   :  { %9527 = vsyncadd [#allocation9], 4294934400 }
  0x98   :  { %9528 = dma.done.wait [#allocation12], 16448  }
  0x99   :  { %9529 = vsyncadd [#allocation12], 4294950848 }
  0x9a   :  { %9530 = dma.done.wait [#allocation15], 16448  }
  0x9b   :  { %9531 = vsyncadd [#allocation15], 4294950848 }
  0x9c   :  { %9532 = dma.done.wait [#allocation18], 8224  }
  0x9d   :  { %9533 = vsyncadd [#allocation18], 4294959072 }
  0x9e   :  { %9534 = dma.done.wait [#allocation21], 2064  }
  0x9f   :  { %9535 = vsyncadd [#allocation21], 4294965232  ;;  %v662_v0 = vld [vmem:[#allocation8 + $0x1c0] sm:$0xff]  ;;  %v9691_v59 = vld [vmem:[#allocation5 + $0xc] ss:$16 sps:$4 sm:$0xff]   ;;  %s9561_s10 = smov [#allocation23]  }
  0xa0   :  { %v666_v1 = vld [vmem:[#allocation8 + $0x1e0] sm:$0xff]  ;;  %2237 = vmatprep.mubr.bf16.mxu1 %v9691_v59  ;;  %s7669_s12 = sshll.u32 %s9561_s10, 4  ;;  %s7670_s12 = int_to_ptr.vmem [resolvable:$true] %s7669_s12 }
  0xa1   :  { %v790_v2 = vld [vmem:[#allocation8 + $0x5c0] sm:$0xff]  ;;  %v7748_v3 = vcombine.high %v662_v0, %v666_v1  ;;  %v7747_v5 = vcombine.low %v662_v0, %v666_v1  ;;  %s9502_s23 = scalar_lea.vmem %s7670_s12, 256  ;;  %p9507_p10 = scmp.lt.s32.totalorder %s7670_s12, %s7670_s12 }
  0xa2   :  { %v794_v4 = vld [vmem:[#allocation8 + $0x5e0] sm:$0xff]  ;;  %p9503_p9 = scmp.ne.s32.totalorder %s7670_s12, %s9502_s23  ;;  %p9508_p11 = scmp.lt.s32.totalorder %s9502_s23, %s9502_s23 }
  0xa3   :  { %v654_v6 = vld [vmem:[#allocation8 + $0x180] sm:$0xff]  ;;  %v7876_v8 = vcombine.high %v790_v2, %v794_v4  ;;  %v7875_v9 = vcombine.low %v790_v2, %v794_v4  ;;  %2162 = vmatprep.subr.bf16.mxu0 %v7748_v3 }
  0xa4   :  { %v658_v7 = vld [vmem:[#allocation8 + $0x1a0] sm:$0xff]  ;;  %2163 = vmatpush1.bf16.msra.mxu0 %v7747_v5  ;;  %p9509_p12 = por %p9508_p11, %p9507_p10 }
  0xa5   :  { %v7740_v10 = vcombine.high %v654_v6, %v658_v7  ;;  %v782_v11 = vld [vmem:[#allocation8 + $0x580] sm:$0xff]  ;;  %2205 = vmatprep.subr.bf16.mxu1 %v7876_v8  ;;  %v7739_v18 = vcombine.low %v654_v6, %v658_v7 }
  0xa6   :  { %v786_v12 = vld [vmem:[#allocation8 + $0x5a0] sm:$0xff]  ;;  %2206 = vmatpush1.bf16.msra.mxu1 %v7875_v9  ;;  %p9510_p13 = pnand %p9509_p12, %p9503_p9 }
  0xa7   :  { %v646_v13 = vld [vmem:[#allocation8 + $0x140] sm:$0xff]  ;;  %v7868_v14 = vcombine.high %v782_v11, %v786_v12  ;;  %2164 = vmatprep.subr.bf16.mxu0 %v7740_v10  ;;  %v7867_v19 = vcombine.low %v782_v11, %v786_v12 }
  0xa8   :  { %v650_v15 = vld [vmem:[#allocation8 + $0x160] sm:$0xff]  ;;  %2165 = vmatpush1.bf16.msra.mxu0 %v7739_v18 }
  0xa9   :  { %v774_v16 = vld [vmem:[#allocation8 + $0x540] sm:$0xff]  ;;  %v7732_v20 = vcombine.high %v646_v13, %v650_v15  ;;  %2207 = vmatprep.subr.bf16.mxu1 %v7868_v14  ;;  %v7731_v26 = vcombine.low %v646_v13, %v650_v15 }
  0xaa   :  { %v778_v17 = vld [vmem:[#allocation8 + $0x560] sm:$0xff]  ;;  %2208 = vmatpush1.bf16.msra.mxu1 %v7867_v19 }
  0xab   :  { %v7860_v21 = vcombine.high %v774_v16, %v778_v17  ;;  %v638_v22 = vld [vmem:[#allocation8 + $0x100] sm:$0xff]  ;;  %2166 = vmatprep.subr.bf16.mxu0 %v7732_v20  ;;  %v7859_v27 = vcombine.low %v774_v16, %v778_v17 }
  0xac   :  { %v642_v23 = vld [vmem:[#allocation8 + $0x120] sm:$0xff]  ;;  %2167 = vmatpush1.bf16.msra.mxu0 %v7731_v26 }
  0xad   :  { %v766_v24 = vld [vmem:[#allocation8 + $0x500] sm:$0xff]  ;;  %v7724_v28 = vcombine.high %v638_v22, %v642_v23  ;;  %2209 = vmatprep.subr.bf16.mxu1 %v7860_v21  ;;  %v7723_v34 = vcombine.low %v638_v22, %v642_v23 }
  0xae   :  { %v770_v25 = vld [vmem:[#allocation8 + $0x520] sm:$0xff]  ;;  %2210 = vmatpush1.bf16.msra.mxu1 %v7859_v27 }
  0xaf   :  { %v7852_v29 = vcombine.high %v766_v24, %v770_v25  ;;  %v630_v30 = vld [vmem:[#allocation8 + $0xc0] sm:$0xff]  ;;  %2168 = vmatprep.subr.bf16.mxu0 %v7724_v28  ;;  %v7851_v35 = vcombine.low %v766_v24, %v770_v25 }
  0xb0   :  { %v634_v31 = vld [vmem:[#allocation8 + $0xe0] sm:$0xff]  ;;  %2169 = vmatpush1.bf16.msra.mxu0 %v7723_v34 }
  0xb1   :  { %v758_v32 = vld [vmem:[#allocation8 + $0x4c0] sm:$0xff]  ;;  %v7716_v36 = vcombine.high %v630_v30, %v634_v31  ;;  %2211 = vmatprep.subr.bf16.mxu1 %v7852_v29  ;;  %v7715_v42 = vcombine.low %v630_v30, %v634_v31 }
  0xb2   :  { %v762_v33 = vld [vmem:[#allocation8 + $0x4e0] sm:$0xff]  ;;  %2212 = vmatpush1.bf16.msra.mxu1 %v7851_v35 }
  0xb3   :  { %v7844_v37 = vcombine.high %v758_v32, %v762_v33  ;;  %v622_v38 = vld [vmem:[#allocation8 + $0x80] sm:$0xff]  ;;  %2170 = vmatprep.subr.bf16.mxu0 %v7716_v36  ;;  %v7843_v43 = vcombine.low %v758_v32, %v762_v33 }
  0xb4   :  { %v626_v39 = vld [vmem:[#allocation8 + $0xa0] sm:$0xff]  ;;  %2171 = vmatpush1.bf16.msra.mxu0 %v7715_v42 }
  0xb5   :  { %v750_v40 = vld [vmem:[#allocation8 + $0x480] sm:$0xff]  ;;  %v7708_v44 = vcombine.high %v622_v38, %v626_v39  ;;  %2213 = vmatprep.subr.bf16.mxu1 %v7844_v37  ;;  %v7707_v50 = vcombine.low %v622_v38, %v626_v39 }
  0xb6   :  { %v754_v41 = vld [vmem:[#allocation8 + $0x4a0] sm:$0xff]  ;;  %2214 = vmatpush1.bf16.msra.mxu1 %v7843_v43 }
  0xb7   :  { %v7836_v45 = vcombine.high %v750_v40, %v754_v41  ;;  %v614_v46 = vld [vmem:[#allocation8 + $0x40] sm:$0xff]  ;;  %2172 = vmatprep.subr.bf16.mxu0 %v7708_v44  ;;  %v7835_v52 = vcombine.low %v750_v40, %v754_v41 }
  0xb8   :  { %v618_v47 = vld [vmem:[#allocation8 + $0x60] sm:$0xff]  ;;  %2173 = vmatpush1.bf16.msra.mxu0 %v7707_v50 }
  0xb9   :  { %v742_v48 = vld [vmem:[#allocation8 + $0x440] sm:$0xff]  ;;  %v7700_v53 = vcombine.high %v614_v46, %v618_v47  ;;  %2215 = vmatprep.subr.bf16.mxu1 %v7836_v45  ;;  %v7699_v60 = vcombine.low %v614_v46, %v618_v47 }
  0xba   :  { %v746_v49 = vld [vmem:[#allocation8 + $0x460] sm:$0xff]  ;;  %2216 = vmatpush1.bf16.msra.mxu1 %v7835_v52 }
  0xbb   :  { %v606_v51 = vld [vmem:[#allocation8] sm:$0xff]  ;;  %v7828_v55 = vcombine.high %v742_v48, %v746_v49  ;;  %2174 = vmatprep.subr.bf16.mxu0 %v7700_v53  ;;  %v7827_v61 = vcombine.low %v742_v48, %v746_v49 }
  0xbc   :  { %v610_v54 = vld [vmem:[#allocation8 + $0x20] sm:$0xff]  ;;  %2175 = vmatpush1.bf16.msra.mxu0 %v7699_v60 }
  0xbd   :  { %v9689_v56 = vld [vmem:[#allocation5 + $0x4] ss:$16 sps:$4 sm:$0xff]   ;;  %v7692_v62 = vcombine.high %v606_v51, %v610_v54  ;;  %2217 = vmatprep.subr.bf16.mxu1 %v7828_v55  ;;  %v7691_v4 = vcombine.low %v606_v51, %v610_v54 }
  0xbe   :  { %v734_v57 = vld [vmem:[#allocation8 + $0x400] sm:$0xff]  ;;  %2194 = vmatprep.mubr.bf16.mxu0 %v9689_v56  ;;  %2218 = vmatpush1.bf16.msra.mxu1 %v7827_v61 }
  0xbf   :  { %v738_v58 = vld [vmem:[#allocation8 + $0x420] sm:$0xff]  ;;  %2176 = vmatprep.subr.bf16.mxu0 %v7692_v62 }
  0xc0   :  { %v7820_v63 = vcombine.high %v734_v57, %v738_v58  ;;  %v726_v0 = vld [vmem:[#allocation8 + $0x3c0] sm:$0xff]  ;;  %v7819_v5 = vcombine.low %v734_v57, %v738_v58  ;;  %2177 = vmatpush1.bf16.msra.mxu0 %v7691_v4  ;;  %v791_v4 = vld [vmem:[#allocation8 + $0x5c8] sm:$0xff] }
  0xc1   :  { %v730_v1 = vld [vmem:[#allocation8 + $0x3e0] sm:$0xff] }
  0xc2   :  { %v854_v2 = vld [vmem:[#allocation8 + $0x7c0] sm:$0xff]  ;;  %v7812_v6 = vcombine.high %v726_v0, %v730_v1  ;;  %2219 = vmatprep.subr.bf16.mxu1 %v7820_v63  ;;  %v7811_v12 = vcombine.low %v726_v0, %v730_v1 }
  0xc3   :  { %v858_v3 = vld [vmem:[#allocation8 + $0x7e0] sm:$0xff]  ;;  %2220 = vmatpush1.bf16.msra.mxu1 %v7819_v5  ;;  %v795_v5 = vld [vmem:[#allocation8 + $0x5e8] sm:$0xff] }
  0xc4   :  { %v7940_v7 = vcombine.high %v854_v2, %v858_v3  ;;  %v718_v8 = vld [vmem:[#allocation8 + $0x380] sm:$0xff]  ;;  %2178 = vmatprep.subr.bf16.mxu0 %v7812_v6  ;;  %v7939_v13 = vcombine.low %v854_v2, %v858_v3  ;;  %v663_v2 = vld [vmem:[#allocation8 + $0x1c8] sm:$0xff] }
  0xc5   :  { %v722_v9 = vld [vmem:[#allocation8 + $0x3a0] sm:$0xff]  ;;  %2179 = vmatpush2.bf16.msra.mxu0 %v7811_v12  ;;  %v667_v3 = vld [vmem:[#allocation8 + $0x1e8] sm:$0xff] }
  0xc6   :  { %v846_v10 = vld [vmem:[#allocation8 + $0x780] sm:$0xff]  ;;  %v7804_v14 = vcombine.high %v718_v8, %v722_v9  ;;  %2221 = vmatprep.subr.bf16.mxu1 %v7940_v7  ;;  %v7803_v20 = vcombine.low %v718_v8, %v722_v9  ;;  %v7750_v8 = vcombine.high %v663_v2, %v667_v3  ;;  %v7878_v9 = vcombine.high %v791_v4, %v795_v5 }
  0xc7   :  { %v850_v11 = vld [vmem:[#allocation8 + $0x7a0] sm:$0xff]  ;;  %2222 = vmatpush2.bf16.msra.mxu1 %v7939_v13  ;;  %v783_v13 = vld [vmem:[#allocation8 + $0x588] sm:$0xff] }
  0xc8   :  { %v7932_v15 = vcombine.high %v846_v10, %v850_v11  ;;  %v710_v16 = vld [vmem:[#allocation8 + $0x340] sm:$0xff]  ;;  %2180 = vmatprep.subr.bf16.mxu0 %v7804_v14  ;;  %v7931_v21 = vcombine.low %v846_v10, %v850_v11  ;;  %v655_v10 = vld [vmem:[#allocation8 + $0x188] sm:$0xff] }
  0xc9   :  { %v714_v17 = vld [vmem:[#allocation8 + $0x360] sm:$0xff]  ;;  %2181 = vmatpush2.bf16.msra.mxu0 %v7803_v20  ;;  %v659_v11 = vld [vmem:[#allocation8 + $0x1a8] sm:$0xff] }
  0xca   :  { %v838_v18 = vld [vmem:[#allocation8 + $0x740] sm:$0xff]  ;;  %v7796_v22 = vcombine.high %v710_v16, %v714_v17  ;;  %2223 = vmatprep.subr.bf16.mxu1 %v7932_v15  ;;  %v7795_v28 = vcombine.low %v710_v16, %v714_v17  ;;  %v787_v14 = vld [vmem:[#allocation8 + $0x5a8] sm:$0xff]  ;;  %v7749_v16 = vcombine.low %v663_v2, %v667_v3  ;;  %v7877_v17 = vcombine.low %v791_v4, %v795_v5 }
  0xcb   :  { %v842_v19 = vld [vmem:[#allocation8 + $0x760] sm:$0xff]  ;;  %2224 = vmatpush2.bf16.msra.mxu1 %v7931_v21  ;;  %v9697_v15 = vld [vmem:[#allocation5 + $0x8] ss:$16 sps:$4 sm:$0xff]  }
  0xcc   :  { %v7924_v23 = vcombine.high %v838_v18, %v842_v19  ;;  %v702_v24 = vld [vmem:[#allocation8 + $0x300] sm:$0xff]  ;;  %2182 = vmatprep.subr.bf16.mxu0 %v7796_v22  ;;  %v7923_v29 = vcombine.low %v838_v18, %v842_v19  ;;  %v7742_v18 = vcombine.high %v655_v10, %v659_v11  ;;  %v7870_v19 = vcombine.high %v783_v13, %v787_v14  ;;  %v647_v20 = vld [vmem:[#allocation8 + $0x148] sm:$0xff] }
  0xcd   :  { %v706_v25 = vld [vmem:[#allocation8 + $0x320] sm:$0xff]  ;;  %2183 = vmatpush2.bf16.msra.mxu0 %v7795_v28  ;;  %v651_v21 = vld [vmem:[#allocation8 + $0x168] sm:$0xff] }
  0xce   :  { %v830_v26 = vld [vmem:[#allocation8 + $0x700] sm:$0xff]  ;;  %v7788_v30 = vcombine.high %v702_v24, %v706_v25  ;;  %2225 = vmatprep.subr.bf16.mxu1 %v7924_v23  ;;  %v7787_v36 = vcombine.low %v702_v24, %v706_v25  ;;  %v775_v22 = vld [vmem:[#allocation8 + $0x548] sm:$0xff]  ;;  %v7741_v24 = vcombine.low %v655_v10, %v659_v11  ;;  %v7869_v25 = vcombine.low %v783_v13, %v787_v14 }
  0xcf   :  { %v834_v27 = vld [vmem:[#allocation8 + $0x720] sm:$0xff]  ;;  %2226 = vmatpush2.bf16.msra.mxu1 %v7923_v29  ;;  %v779_v23 = vld [vmem:[#allocation8 + $0x568] sm:$0xff] }
  0xd0   :  { %v7916_v31 = vcombine.high %v830_v26, %v834_v27  ;;  %v694_v32 = vld [vmem:[#allocation8 + $0x2c0] sm:$0xff]  ;;  %2184 = vmatprep.subr.bf16.mxu0 %v7788_v30  ;;  %v7915_v37 = vcombine.low %v830_v26, %v834_v27  ;;  %v7734_v26 = vcombine.high %v647_v20, %v651_v21  ;;  %v639_v27 = vld [vmem:[#allocation8 + $0x108] sm:$0xff]  ;;  %v7862_v30 = vcombine.high %v775_v22, %v779_v23 }
  0xd1   :  { %v698_v33 = vld [vmem:[#allocation8 + $0x2e0] sm:$0xff]  ;;  %2185 = vmatpush2.bf16.msra.mxu0 %v7787_v36  ;;  %v643_v28 = vld [vmem:[#allocation8 + $0x128] sm:$0xff] }
  0xd2   :  { %v822_v34 = vld [vmem:[#allocation8 + $0x6c0] sm:$0xff]  ;;  %v7780_v38 = vcombine.high %v694_v32, %v698_v33  ;;  %2227 = vmatprep.subr.bf16.mxu1 %v7916_v31  ;;  %v7779_v44 = vcombine.low %v694_v32, %v698_v33  ;;  %v767_v29 = vld [vmem:[#allocation8 + $0x508] sm:$0xff]  ;;  %v7733_v32 = vcombine.low %v647_v20, %v651_v21  ;;  %v7861_v33 = vcombine.low %v775_v22, %v779_v23 }
  0xd3   :  { %v826_v35 = vld [vmem:[#allocation8 + $0x6e0] sm:$0xff]  ;;  %2228 = vmatpush2.bf16.msra.mxu1 %v7915_v37  ;;  %v771_v31 = vld [vmem:[#allocation8 + $0x528] sm:$0xff] }
  0xd4   :  { %v7908_v39 = vcombine.high %v822_v34, %v826_v35  ;;  %v686_v40 = vld [vmem:[#allocation8 + $0x280] sm:$0xff]  ;;  %2186 = vmatprep.subr.bf16.mxu0 %v7780_v38  ;;  %v7907_v45 = vcombine.low %v822_v34, %v826_v35  ;;  %v7726_v34 = vcombine.high %v639_v27, %v643_v28  ;;  %v631_v35 = vld [vmem:[#allocation8 + $0xc8] sm:$0xff]  ;;  %v7854_v38 = vcombine.high %v767_v29, %v771_v31 }
  0xd5   :  { %v690_v41 = vld [vmem:[#allocation8 + $0x2a0] sm:$0xff]  ;;  %2187 = vmatpush2.bf16.msra.mxu0 %v7779_v44  ;;  %v635_v36 = vld [vmem:[#allocation8 + $0xe8] sm:$0xff] }
  0xd6   :  { %v814_v42 = vld [vmem:[#allocation8 + $0x680] sm:$0xff]  ;;  %v7772_v46 = vcombine.high %v686_v40, %v690_v41  ;;  %2229 = vmatprep.subr.bf16.mxu1 %v7908_v39  ;;  %v7771_v52 = vcombine.low %v686_v40, %v690_v41  ;;  %v759_v37 = vld [vmem:[#allocation8 + $0x4c8] sm:$0xff]  ;;  %v7725_v40 = vcombine.low %v639_v27, %v643_v28  ;;  %v7853_v41 = vcombine.low %v767_v29, %v771_v31 }
  0xd7   :  { %v818_v43 = vld [vmem:[#allocation8 + $0x6a0] sm:$0xff]  ;;  %2230 = vmatpush2.bf16.msra.mxu1 %v7907_v45  ;;  %v763_v39 = vld [vmem:[#allocation8 + $0x4e8] sm:$0xff] }
  0xd8   :  { %v7900_v47 = vcombine.high %v814_v42, %v818_v43  ;;  %v678_v48 = vld [vmem:[#allocation8 + $0x240] sm:$0xff]  ;;  %2188 = vmatprep.subr.bf16.mxu0 %v7772_v46  ;;  %v7899_v53 = vcombine.low %v814_v42, %v818_v43  ;;  %v7718_v42 = vcombine.high %v631_v35, %v635_v36  ;;  %v623_v43 = vld [vmem:[#allocation8 + $0x88] sm:$0xff]  ;;  %v7846_v46 = vcombine.high %v759_v37, %v763_v39 }
  0xd9   :  { %v682_v49 = vld [vmem:[#allocation8 + $0x260] sm:$0xff]  ;;  %2189 = vmatpush2.bf16.msra.mxu0 %v7771_v52  ;;  %v627_v44 = vld [vmem:[#allocation8 + $0xa8] sm:$0xff] }
  0xda   :  { %v806_v50 = vld [vmem:[#allocation8 + $0x640] sm:$0xff]  ;;  %v7764_v54 = vcombine.high %v678_v48, %v682_v49  ;;  %2231 = vmatprep.subr.bf16.mxu1 %v7900_v47  ;;  %v7763_v62 = vcombine.low %v678_v48, %v682_v49  ;;  %v751_v45 = vld [vmem:[#allocation8 + $0x488] sm:$0xff]  ;;  %v7717_v48 = vcombine.low %v631_v35, %v635_v36  ;;  %v7845_v49 = vcombine.low %v759_v37, %v763_v39 }
  0xdb   :  { %v810_v51 = vld [vmem:[#allocation8 + $0x660] sm:$0xff]  ;;  %2232 = vmatpush2.bf16.msra.mxu1 %v7899_v53  ;;  %v755_v47 = vld [vmem:[#allocation8 + $0x4a8] sm:$0xff] }
  0xdc   :  { %v7892_v55 = vcombine.high %v806_v50, %v810_v51  ;;  %v670_v57 = vld [vmem:[#allocation8 + $0x200] sm:$0xff]  ;;  %2190 = vmatprep.subr.bf16.mxu0 %v7764_v54  ;;  %v7891_v63 = vcombine.low %v806_v50, %v810_v51  ;;  %v7710_v50 = vcombine.high %v623_v43, %v627_v44  ;;  %v615_v51 = vld [vmem:[#allocation8 + $0x48] sm:$0xff]  ;;  %v7838_v54 = vcombine.high %v751_v45, %v755_v47 }
  0xdd   :  { %v674_v58 = vld [vmem:[#allocation8 + $0x220] sm:$0xff]  ;;  %2191 = vmatpush2.bf16.msra.mxu0 %v7763_v62  ;;  %v619_v52 = vld [vmem:[#allocation8 + $0x68] sm:$0xff] }
  0xde   :  { %v798_v60 = vld [vmem:[#allocation8 + $0x600] sm:$0xff]  ;;  %v7756_v0 = vcombine.high %v670_v57, %v674_v58  ;;  %2233 = vmatprep.subr.bf16.mxu1 %v7892_v55  ;;  %v7755_v6 = vcombine.low %v670_v57, %v674_v58  ;;  %v743_v53 = vld [vmem:[#allocation8 + $0x448] sm:$0xff]  ;;  %v7709_v57 = vcombine.low %v623_v43, %v627_v44  ;;  %v7837_v58 = vcombine.low %v751_v45, %v755_v47 }
  0xdf   :  { %v802_v61 = vld [vmem:[#allocation8 + $0x620] sm:$0xff]  ;;  %2234 = vmatpush2.bf16.msra.mxu1 %v7891_v63  ;;  %v747_v55 = vld [vmem:[#allocation8 + $0x468] sm:$0xff]  ;;  %v7701_v2 = vcombine.low %v615_v51, %v619_v52 }
  0xe0   :  { %v7884_v1 = vcombine.high %v798_v60, %v802_v61  ;;  %2192 = vmatprep.subr.bf16.mxu0 %v7756_v0  ;;  %v7883_v7 = vcombine.low %v798_v60, %v802_v61  ;;  %v9695_v12 = vld [vmem:[#allocation5] ss:$16 sps:$4 sm:$0xff]   ;;  %v7702_v60 = vcombine.high %v615_v51, %v619_v52  ;;  %v607_v61 = vld [vmem:[#allocation8 + $0x8] sm:$0xff]  ;;  %v7830_v0 = vcombine.high %v743_v53, %v747_v55 }
  0xe1   :  { %2193 = vmatpush2.bf16.msra.mxu0 %v7755_v6  ;;  %v611_v62 = vld [vmem:[#allocation8 + $0x28] sm:$0xff]  ;;  %v7829_v3 = vcombine.low %v743_v53, %v747_v55 }
  0xe2   :  { %2235 = vmatprep.subr.bf16.mxu1 %v7884_v1  ;;  %2248 = vmatprep.subr.bf16.mxu0 %v7750_v8  ;;  %v735_v63 = vld [vmem:[#allocation8 + $0x408] sm:$0xff]  ;;  %v7694_v4 = vcombine.high %v607_v61, %v611_v62  ;;  %v7693_v10 = vcombine.low %v607_v61, %v611_v62 }
  0xe3   :  { %2236 = vmatpush2.bf16.msra.mxu1 %v7883_v7  ;;  %v739_v1 = vld [vmem:[#allocation8 + $0x428] sm:$0xff] }
  0xe4   :  { %2291 = vmatprep.subr.bf16.mxu1 %v7878_v9  ;;  %2195 = vmatmul.mubr.bf16.vlgmr.msra.gmra.mxu0 %v9695_v12  ;;  %v727_v5 = vld [vmem:[#allocation8 + $0x3c8] sm:$0xff]  ;;  %v7822_v8 = vcombine.high %v735_v63, %v739_v1  ;;  %v7821_v11 = vcombine.low %v735_v63, %v739_v1 }
  0xe5   :  { %2249 = vmatpush1.bf16.msra.mxu0 %v7749_v16  ;;  %2280 = vmatprep.mubr.bf16.mxu0 %v9689_v56  ;;  %v731_v6 = vld [vmem:[#allocation8 + $0x3e8] sm:$0xff] }
  0xe6   :  { %2238 = vmatmul.mubr.bf16.vlgmr.msra.gmra.mxu1 %v9697_v15  ;;  %2250 = vmatprep.subr.bf16.mxu0 %v7742_v18  ;;  %v855_v7 = vld [vmem:[#allocation8 + $0x7c8] sm:$0xff]  ;;  %v7814_v13 = vcombine.high %v727_v5, %v731_v6  ;;  %v7813_v20 = vcombine.low %v727_v5, %v731_v6 }
  0xe7   :  { %2292 = vmatpush1.bf16.msra.mxu1 %v7877_v17  ;;  %2323 = vmatprep.mubr.bf16.mxu1 %v9691_v59  ;;  %v859_v9 = vld [vmem:[#allocation8 + $0x7e8] sm:$0xff] }
  0xe8   :  { %2293 = vmatprep.subr.bf16.mxu1 %v7870_v19  ;;  %v719_v14 = vld [vmem:[#allocation8 + $0x388] sm:$0xff]  ;;  %v7942_v18 = vcombine.high %v855_v7, %v859_v9  ;;  %v7941_v21 = vcombine.low %v855_v7, %v859_v9  ;;  %v664_v9 = vld [vmem:[#allocation8 + $0x1d0] sm:$0xff] }
  0xe9   :  { %2251 = vmatpush1.bf16.msra.mxu0 %v7741_v24  ;;  %v723_v16 = vld [vmem:[#allocation8 + $0x3a8] sm:$0xff] }
  0xea   :  { %2252 = vmatprep.subr.bf16.mxu0 %v7734_v26  ;;  %v847_v17 = vld [vmem:[#allocation8 + $0x788] sm:$0xff]  ;;  %v7806_v22 = vcombine.high %v719_v14, %v723_v16  ;;  %v7805_v28 = vcombine.low %v719_v14, %v723_v16  ;;  %v796_v14 = vld [vmem:[#allocation8 + $0x5f0] sm:$0xff] }
  0xeb   :  { %2294 = vmatpush1.bf16.msra.mxu1 %v7869_v25  ;;  %v851_v19 = vld [vmem:[#allocation8 + $0x7a8] sm:$0xff] }
  0xec   :  { %2295 = vmatprep.subr.bf16.mxu1 %v7862_v30  ;;  %v711_v23 = vld [vmem:[#allocation8 + $0x348] sm:$0xff]  ;;  %v7934_v26 = vcombine.high %v847_v17, %v851_v19  ;;  %v7933_v29 = vcombine.low %v847_v17, %v851_v19  ;;  %v656_v19 = vld [vmem:[#allocation8 + $0x190] sm:$0xff] }
  0xed   :  { %2253 = vmatpush1.bf16.msra.mxu0 %v7733_v32  ;;  %v715_v24 = vld [vmem:[#allocation8 + $0x368] sm:$0xff] }
  0xee   :  { %2254 = vmatprep.subr.bf16.mxu0 %v7726_v34  ;;  %v839_v25 = vld [vmem:[#allocation8 + $0x748] sm:$0xff]  ;;  %v7798_v30 = vcombine.high %v711_v23, %v715_v24  ;;  %v7797_v36 = vcombine.low %v711_v23, %v715_v24  ;;  %v788_v23 = vld [vmem:[#allocation8 + $0x5b0] sm:$0xff] }
  0xef   :  { %2296 = vmatpush1.bf16.msra.mxu1 %v7861_v33  ;;  %v843_v27 = vld [vmem:[#allocation8 + $0x768] sm:$0xff] }
  0xf0   :  { %2297 = vmatprep.subr.bf16.mxu1 %v7854_v38  ;;  %v703_v31 = vld [vmem:[#allocation8 + $0x308] sm:$0xff]  ;;  %v7926_v34 = vcombine.high %v839_v25, %v843_v27  ;;  %v7925_v37 = vcombine.low %v839_v25, %v843_v27  ;;  %v648_v27 = vld [vmem:[#allocation8 + $0x150] sm:$0xff] }
  0xf1   :  { %2255 = vmatpush1.bf16.msra.mxu0 %v7725_v40  ;;  %v707_v32 = vld [vmem:[#allocation8 + $0x328] sm:$0xff] }
  0xf2   :  { %2256 = vmatprep.subr.bf16.mxu0 %v7718_v42  ;;  %v831_v33 = vld [vmem:[#allocation8 + $0x708] sm:$0xff]  ;;  %v7790_v38 = vcombine.high %v703_v31, %v707_v32  ;;  %v7789_v44 = vcombine.low %v703_v31, %v707_v32  ;;  %v780_v31 = vld [vmem:[#allocation8 + $0x570] sm:$0xff] }
  0xf3   :  { %2298 = vmatpush1.bf16.msra.mxu1 %v7853_v41  ;;  %v835_v35 = vld [vmem:[#allocation8 + $0x728] sm:$0xff] }
  0xf4   :  { %2299 = vmatprep.subr.bf16.mxu1 %v7846_v46  ;;  %v695_v39 = vld [vmem:[#allocation8 + $0x2c8] sm:$0xff]  ;;  %v7918_v42 = vcombine.high %v831_v33, %v835_v35  ;;  %v7917_v45 = vcombine.low %v831_v33, %v835_v35  ;;  %v640_v35 = vld [vmem:[#allocation8 + $0x110] sm:$0xff] }
  0xf5   :  { %2257 = vmatpush1.bf16.msra.mxu0 %v7717_v48  ;;  %v699_v40 = vld [vmem:[#allocation8 + $0x2e8] sm:$0xff] }
  0xf6   :  { %2258 = vmatprep.subr.bf16.mxu0 %v7710_v50  ;;  %v823_v41 = vld [vmem:[#allocation8 + $0x6c8] sm:$0xff]  ;;  %v7782_v46 = vcombine.high %v695_v39, %v699_v40  ;;  %v7781_v52 = vcombine.low %v695_v39, %v699_v40  ;;  %v772_v39 = vld [vmem:[#allocation8 + $0x530] sm:$0xff] }
  0xf7   :  { %2300 = vmatpush1.bf16.msra.mxu1 %v7845_v49  ;;  %v827_v43 = vld [vmem:[#allocation8 + $0x6e8] sm:$0xff] }
  0xf8   :  { %2301 = vmatprep.subr.bf16.mxu1 %v7838_v54  ;;  %v687_v47 = vld [vmem:[#allocation8 + $0x288] sm:$0xff]  ;;  %v7910_v50 = vcombine.high %v823_v41, %v827_v43  ;;  %v7909_v53 = vcombine.low %v823_v41, %v827_v43  ;;  %v632_v41 = vld [vmem:[#allocation8 + $0xd0] sm:$0xff] }
  0xf9   :  { %2259 = vmatpush1.bf16.msra.mxu0 %v7709_v57  ;;  %v691_v48 = vld [vmem:[#allocation8 + $0x2a8] sm:$0xff]  ;;  %v760_v43 = vld [vmem:[#allocation8 + $0x4d0] sm:$0xff] }
  0xfa   :  { %2260 = vmatprep.subr.bf16.mxu0 %v7702_v60  ;;  %v815_v49 = vld [vmem:[#allocation8 + $0x688] sm:$0xff]  ;;  %v7774_v54 = vcombine.high %v687_v47, %v691_v48  ;;  %v7773_v62 = vcombine.low %v687_v47, %v691_v48  ;;  %v624_v48 = vld [vmem:[#allocation8 + $0x90] sm:$0xff] }
  0xfb   :  { %2302 = vmatpush1.bf16.msra.mxu1 %v7837_v58  ;;  %v819_v51 = vld [vmem:[#allocation8 + $0x6a8] sm:$0xff] }
  0xfc   :  { %2303 = vmatprep.subr.bf16.mxu1 %v7830_v0  ;;  %v679_v55 = vld [vmem:[#allocation8 + $0x248] sm:$0xff]  ;;  %v7902_v60 = vcombine.high %v815_v49, %v819_v51  ;;  %v7901_v63 = vcombine.low %v815_v49, %v819_v51  ;;  %v752_v49 = vld [vmem:[#allocation8 + $0x490] sm:$0xff] }
  0xfd   :  { %2261 = vmatpush1.bf16.msra.mxu0 %v7701_v2  ;;  %v683_v57 = vld [vmem:[#allocation8 + $0x268] sm:$0xff]  ;;  %v756_v51 = vld [vmem:[#allocation8 + $0x4b0] sm:$0xff] }
  0xfe   :  { %2262 = vmatprep.subr.bf16.mxu0 %v7694_v4  ;;  %v807_v58 = vld [vmem:[#allocation8 + $0x648] sm:$0xff]  ;;  %v7766_v0 = vcombine.high %v679_v55, %v683_v57  ;;  %v7765_v6 = vcombine.low %v679_v55, %v683_v57  ;;  %v616_v55 = vld [vmem:[#allocation8 + $0x50] sm:$0xff] }
  0xff   :  { %2304 = vmatpush1.bf16.msra.mxu1 %v7829_v3  ;;  %v811_v61 = vld [vmem:[#allocation8 + $0x668] sm:$0xff]  ;;  %v620_v57 = vld [vmem:[#allocation8 + $0x70] sm:$0xff] }
 0x100   :  { %2305 = vmatprep.subr.bf16.mxu1 %v7822_v8  ;;  %v671_v1 = vld [vmem:[#allocation8 + $0x208] sm:$0xff]  ;;  %v7894_v4 = vcombine.high %v807_v58, %v811_v61  ;;  %v7893_v7 = vcombine.low %v807_v58, %v811_v61  ;;  %v744_v58 = vld [vmem:[#allocation8 + $0x450] sm:$0xff] }
 0x101   :  { %2263 = vmatpush1.bf16.msra.mxu0 %v7693_v10  ;;  %v675_v2 = vld [vmem:[#allocation8 + $0x228] sm:$0xff]  ;;  %v668_v10 = vld [vmem:[#allocation8 + $0x1f0] sm:$0xff] }
 0x102   :  { %2264 = vmatprep.subr.bf16.mxu0 %v7814_v13  ;;  %v799_v3 = vld [vmem:[#allocation8 + $0x608] sm:$0xff]  ;;  %v7758_v8 = vcombine.high %v671_v1, %v675_v2  ;;  %v7757_v16 = vcombine.low %v671_v1, %v675_v2  ;;  %v7751_v24 = vcombine.low %v664_v9, %v668_v10  ;;  %v748_v61 = vld [vmem:[#allocation8 + $0x470] sm:$0xff] }
 0x103   :  { %2306 = vmatpush1.bf16.msra.mxu1 %v7821_v11  ;;  %v803_v5 = vld [vmem:[#allocation8 + $0x628] sm:$0xff]  ;;  %v792_v11 = vld [vmem:[#allocation8 + $0x5d0] sm:$0xff] }
 0x104   :  { %2307 = vmatprep.subr.bf16.mxu1 %v7942_v18  ;;  %v7886_v13 = vcombine.high %v799_v3, %v803_v5  ;;  %v7885_v17 = vcombine.low %v799_v3, %v803_v5  ;;  %v7752_v18 = vcombine.high %v664_v9, %v668_v10  ;;  %v7879_v25 = vcombine.low %v792_v11, %v796_v14  ;;  %v608_v1 = vld [vmem:[#allocation8 + $0x10] sm:$0xff] }
 0x105   :  { %2265 = vmatpush2.bf16.msra.mxu0 %v7813_v20  ;;  %v660_v20 = vld [vmem:[#allocation8 + $0x1b0] sm:$0xff] }
 0x106   :  { %2266 = vmatprep.subr.bf16.mxu0 %v7806_v22  ;;  %v7880_v22 = vcombine.high %v792_v11, %v796_v14  ;;  %v7743_v32 = vcombine.low %v656_v19, %v660_v20  ;;  %v612_v2 = vld [vmem:[#allocation8 + $0x30] sm:$0xff] }
 0x107   :  { %2308 = vmatpush2.bf16.msra.mxu1 %v7941_v21  ;;  %v784_v21 = vld [vmem:[#allocation8 + $0x590] sm:$0xff] }
 0x108   :  { %2309 = vmatprep.subr.bf16.mxu1 %v7934_v26  ;;  %v7744_v26 = vcombine.high %v656_v19, %v660_v20  ;;  %v7871_v33 = vcombine.low %v784_v21, %v788_v23  ;;  %v736_v3 = vld [vmem:[#allocation8 + $0x410] sm:$0xff] }
 0x109   :  { %2267 = vmatpush2.bf16.msra.mxu0 %v7805_v28  ;;  %v652_v28 = vld [vmem:[#allocation8 + $0x170] sm:$0xff] }
 0x10a   :  { %2268 = vmatprep.subr.bf16.mxu0 %v7798_v30  ;;  %v7872_v30 = vcombine.high %v784_v21, %v788_v23  ;;  %v740_v5 = vld [vmem:[#allocation8 + $0x430] sm:$0xff] }
 0x10b   :  { %2310 = vmatpush2.bf16.msra.mxu1 %v7933_v29  ;;  %v776_v29 = vld [vmem:[#allocation8 + $0x550] sm:$0xff] }
 0x10c   :  { %2311 = vmatprep.subr.bf16.mxu1 %v7926_v34  ;;  %v7736_v34 = vcombine.high %v648_v27, %v652_v28  ;;  %v728_v9 = vld [vmem:[#allocation8 + $0x3d0] sm:$0xff] }
 0x10d   :  { %2269 = vmatpush2.bf16.msra.mxu0 %v7797_v36  ;;  %v644_v36 = vld [vmem:[#allocation8 + $0x130] sm:$0xff] }
 0x10e   :  { %2270 = vmatprep.subr.bf16.mxu0 %v7790_v38  ;;  %v7864_v38 = vcombine.high %v776_v29, %v780_v31  ;;  %v7728_v40 = vcombine.high %v640_v35, %v644_v36  ;;  %v732_v10 = vld [vmem:[#allocation8 + $0x3f0] sm:$0xff] }
 0x10f   :  { %2312 = vmatpush2.bf16.msra.mxu1 %v7925_v37  ;;  %v768_v37 = vld [vmem:[#allocation8 + $0x510] sm:$0xff] }
 0x110   :  { %2313 = vmatprep.subr.bf16.mxu1 %v7918_v42  ;;  %v636_v42 = vld [vmem:[#allocation8 + $0xf0] sm:$0xff]  ;;  %v7855_v47 = vcombine.low %v768_v37, %v772_v39 }
 0x111   :  { %2271 = vmatpush2.bf16.msra.mxu0 %v7789_v44  ;;  %v7856_v44 = vcombine.high %v768_v37, %v772_v39  ;;  %v856_v11 = vld [vmem:[#allocation8 + $0x7d0] sm:$0xff] }
 0x112   :  { %2272 = vmatprep.subr.bf16.mxu0 %v7782_v46  ;;  %v7727_v46 = vcombine.low %v640_v35, %v644_v36  ;;  %v860_v14 = vld [vmem:[#allocation8 + $0x7f0] sm:$0xff] }
 0x113   :  { %2314 = vmatpush2.bf16.msra.mxu1 %v7917_v45  ;;  %v764_v45 = vld [vmem:[#allocation8 + $0x4f0] sm:$0xff] }
 0x114   :  { %2315 = vmatprep.subr.bf16.mxu1 %v7910_v50  ;;  %v7848_v50 = vcombine.high %v760_v43, %v764_v45  ;;  %v720_v19 = vld [vmem:[#allocation8 + $0x390] sm:$0xff] }
 0x115   :  { %2273 = vmatpush2.bf16.msra.mxu0 %v7781_v52  ;;  %v7719_v52 = vcombine.low %v632_v41, %v636_v42  ;;  %v724_v20 = vld [vmem:[#allocation8 + $0x3b0] sm:$0xff] }
 0x116   :  { %2274 = vmatprep.subr.bf16.mxu0 %v7774_v54  ;;  %v848_v21 = vld [vmem:[#allocation8 + $0x790] sm:$0xff] }
 0x117   :  { %2316 = vmatpush2.bf16.msra.mxu1 %v7909_v53  ;;  %v7847_v53 = vcombine.low %v760_v43, %v764_v45  ;;  %v852_v23 = vld [vmem:[#allocation8 + $0x7b0] sm:$0xff] }
 0x118   :  { %2317 = vmatprep.subr.bf16.mxu1 %v7902_v60  ;;  %v7840_v60 = vcombine.high %v752_v49, %v756_v51  ;;  %v704_v35 = vld [vmem:[#allocation8 + $0x310] sm:$0xff] }
 0x119   :  { %2275 = vmatpush2.bf16.msra.mxu0 %v7773_v62  ;;  %v708_v36 = vld [vmem:[#allocation8 + $0x330] sm:$0xff] }
 0x11a   :  { %2276 = vmatprep.subr.bf16.mxu0 %v7766_v0  ;;  %v7704_v0 = vcombine.high %v616_v55, %v620_v57  ;;  %v832_v37 = vld [vmem:[#allocation8 + $0x710] sm:$0xff] }
 0x11b   :  { %2318 = vmatpush2.bf16.msra.mxu1 %v7901_v63  ;;  %v7839_v63 = vcombine.low %v752_v49, %v756_v51  ;;  %v836_v39 = vld [vmem:[#allocation8 + $0x730] sm:$0xff] }
 0x11c   :  { %2319 = vmatprep.subr.bf16.mxu1 %v7894_v4  ;;  %v7832_v4 = vcombine.high %v744_v58, %v748_v61  ;;  %v824_v43 = vld [vmem:[#allocation8 + $0x6d0] sm:$0xff] }
 0x11d   :  { %2277 = vmatpush2.bf16.msra.mxu0 %v7765_v6  ;;  %v7703_v6 = vcombine.low %v616_v55, %v620_v57  ;;  %v828_v45 = vld [vmem:[#allocation8 + $0x6f0] sm:$0xff] }
 0x11e   :  { %2278 = vmatprep.subr.bf16.mxu0 %v7758_v8  ;;  %v7696_v8 = vcombine.high %v608_v1, %v612_v2  ;;  %v816_v49 = vld [vmem:[#allocation8 + $0x690] sm:$0xff] }
 0x11f   :  { %2320 = vmatpush2.bf16.msra.mxu1 %v7893_v7  ;;  %v7831_v7 = vcombine.low %v744_v58, %v748_v61  ;;  %v820_v51 = vld [vmem:[#allocation8 + $0x6b0] sm:$0xff] }
 0x120   :  { %2321 = vmatprep.subr.bf16.mxu1 %v7886_v13  ;;  %v7824_v13 = vcombine.high %v736_v3, %v740_v5  ;;  %v680_v55 = vld [vmem:[#allocation8 + $0x250] sm:$0xff] }
 0x121   :  { %2279 = vmatpush2.bf16.msra.mxu0 %v7757_v16  ;;  %v7695_v16 = vcombine.low %v608_v1, %v612_v2  ;;  %v684_v57 = vld [vmem:[#allocation8 + $0x270] sm:$0xff] }
 0x122   :  { %2334 = vmatprep.subr.bf16.mxu0 %v7752_v18  ;;  %v7816_v18 = vcombine.high %v728_v9, %v732_v10  ;;  %v808_v58 = vld [vmem:[#allocation8 + $0x650] sm:$0xff] }
 0x123   :  { %2322 = vmatpush2.bf16.msra.mxu1 %v7885_v17  ;;  %v7823_v17 = vcombine.low %v736_v3, %v740_v5  ;;  %v812_v61 = vld [vmem:[#allocation8 + $0x670] sm:$0xff] }
 0x124   :  { %2377 = vmatprep.subr.bf16.mxu1 %v7880_v22  ;;  %2281 = vmatmul.mubr.bf16.vlgmr.msra.gmra.mxu0 %v9695_v12  ;;  %v7735_v12 = vcombine.low %v648_v27, %v652_v28  ;;  %v7944_v22 = vcombine.high %v856_v11, %v860_v14  ;;  %v712_v27 = vld [vmem:[#allocation8 + $0x350] sm:$0xff] }
 0x125   :  { %2335 = vmatpush1.bf16.msra.mxu0 %v7751_v24  ;;  %2366 = vmatprep.mubr.bf16.mxu0 %v9689_v56  ;;  %v7720_v56 = vcombine.high %v632_v41, %v636_v42  ;;  %v7815_v24 = vcombine.low %v728_v9, %v732_v10  ;;  %v716_v28 = vld [vmem:[#allocation8 + $0x370] sm:$0xff]  ;;  %v665_v9 = vld [vmem:[#allocation8 + $0x1d8] sm:$0xff] }
 0x126   :  { %2324 = vmatmul.mubr.bf16.vlgmr.msra.gmra.mxu1 %v9697_v15  ;;  %2336 = vmatprep.subr.bf16.mxu0 %v7744_v26  ;;  %v7863_v15 = vcombine.low %v776_v29, %v780_v31  ;;  %v7808_v26 = vcombine.high %v720_v19, %v724_v20  ;;  %v840_v29 = vld [vmem:[#allocation8 + $0x750] sm:$0xff]  ;;  %v669_v10 = vld [vmem:[#allocation8 + $0x1f8] sm:$0xff] }
 0x127   :  { %2378 = vmatpush1.bf16.msra.mxu1 %v7879_v25  ;;  %2409 = vmatprep.mubr.bf16.mxu1 %v9691_v59  ;;  %v628_v59 = vld [vmem:[#allocation8 + $0xb0] sm:$0xff]  ;;  %v7943_v25 = vcombine.low %v856_v11, %v860_v14  ;;  %v793_v11 = vld [vmem:[#allocation8 + $0x5d8] sm:$0xff] }
 0x128   :  { %2379 = vmatprep.subr.bf16.mxu1 %v7872_v30  ;;  %v7712_v54 = vcombine.high %v624_v48, %v628_v59  ;;  %v7711_v62 = vcombine.low %v624_v48, %v628_v59  ;;  %v7936_v30 = vcombine.high %v848_v21, %v852_v23  ;;  %v844_v31 = vld [vmem:[#allocation8 + $0x770] sm:$0xff]  ;;  %v797_v14 = vld [vmem:[#allocation8 + $0x5f8] sm:$0xff] }
 0x129   :  { %2337 = vmatpush1.bf16.msra.mxu0 %v7743_v32  ;;  %v7807_v32 = vcombine.low %v720_v19, %v724_v20  ;;  %v696_v41 = vld [vmem:[#allocation8 + $0x2d0] sm:$0xff]  ;;  %v657_v19 = vld [vmem:[#allocation8 + $0x198] sm:$0xff] }
 0x12a   :  { %2338 = vmatprep.subr.bf16.mxu0 %v7736_v34  ;;  %v7800_v34 = vcombine.high %v712_v27, %v716_v28  ;;  %v700_v42 = vld [vmem:[#allocation8 + $0x2f0] sm:$0xff]  ;;  %v661_v20 = vld [vmem:[#allocation8 + $0x1b8] sm:$0xff] }
 0x12b   :  { %2380 = vmatpush1.bf16.msra.mxu1 %v7871_v33  ;;  %v7935_v33 = vcombine.low %v848_v21, %v852_v23  ;;  %v688_v48 = vld [vmem:[#allocation8 + $0x290] sm:$0xff]  ;;  %v785_v21 = vld [vmem:[#allocation8 + $0x598] sm:$0xff] }
 0x12c   :  { %2381 = vmatprep.subr.bf16.mxu1 %v7864_v38  ;;  %v7928_v38 = vcombine.high %v840_v29, %v844_v31  ;;  %v692_v59 = vld [vmem:[#allocation8 + $0x2b0] sm:$0xff]  ;;  %v789_v23 = vld [vmem:[#allocation8 + $0x5b8] sm:$0xff] }
 0x12d   :  { %2339 = vmatpush1.bf16.msra.mxu0 %v7735_v12  ;;  %v7799_v12 = vcombine.low %v712_v27, %v716_v28  ;;  %v672_v1 = vld [vmem:[#allocation8 + $0x210] sm:$0xff]  ;;  %v7874_v27 = vcombine.high %v785_v21, %v789_v23  ;;  %v649_v28 = vld [vmem:[#allocation8 + $0x158] sm:$0xff] }
 0x12e   :  { %2340 = vmatprep.subr.bf16.mxu0 %v7728_v40  ;;  %v7792_v40 = vcombine.high %v704_v35, %v708_v36  ;;  %v676_v2 = vld [vmem:[#allocation8 + $0x230] sm:$0xff] }
 0x12f   :  { %2382 = vmatpush1.bf16.msra.mxu1 %v7863_v15  ;;  %v7927_v15 = vcombine.low %v840_v29, %v844_v31  ;;  %v800_v3 = vld [vmem:[#allocation8 + $0x610] sm:$0xff]  ;;  %v653_v29 = vld [vmem:[#allocation8 + $0x178] sm:$0xff] }
 0x130   :  { %2383 = vmatprep.subr.bf16.mxu1 %v7856_v44  ;;  %v7920_v44 = vcombine.high %v832_v37, %v836_v39  ;;  %v804_v5 = vld [vmem:[#allocation8 + $0x630] sm:$0xff]  ;;  %v777_v31 = vld [vmem:[#allocation8 + $0x558] sm:$0xff] }
 0x131   :  { %2341 = vmatpush1.bf16.msra.mxu0 %v7727_v46  ;;  %v7791_v46 = vcombine.low %v704_v35, %v708_v36  ;;  %v7873_v35 = vcombine.low %v785_v21, %v789_v23  ;;  %v7738_v36 = vcombine.high %v649_v28, %v653_v29  ;;  %v721_v23 = vld [vmem:[#allocation8 + $0x398] sm:$0xff] }
 0x132   :  { %2342 = vmatprep.subr.bf16.mxu0 %v7720_v56  ;;  %v7784_v56 = vcombine.high %v696_v41, %v700_v42 }
 0x133   :  { %2384 = vmatpush1.bf16.msra.mxu1 %v7855_v47  ;;  %v7919_v47 = vcombine.low %v832_v37, %v836_v39  ;;  %v641_v37 = vld [vmem:[#allocation8 + $0x118] sm:$0xff] }
 0x134   :  { %2385 = vmatprep.subr.bf16.mxu1 %v7848_v50  ;;  %v7912_v50 = vcombine.high %v824_v43, %v828_v45  ;;  %v769_v39 = vld [vmem:[#allocation8 + $0x518] sm:$0xff] }
 0x135   :  { %2343 = vmatpush1.bf16.msra.mxu0 %v7719_v52  ;;  %v7783_v52 = vcombine.low %v696_v41, %v700_v42  ;;  %v9234_v41 = vld [vmem:[#allocation5 + $0xc] ss:$16 sps:$4 sm:$0xff]   ;;  %v7737_v42 = vcombine.low %v649_v28, %v653_v29 }
 0x136   :  { %2344 = vmatprep.subr.bf16.mxu0 %v7712_v54  ;;  %v7776_v54 = vcombine.high %v688_v48, %v692_v59 }
 0x137   :  { %2386 = vmatpush1.bf16.msra.mxu1 %v7847_v53  ;;  %v7911_v53 = vcombine.low %v824_v43, %v828_v45  ;;  %v633_v45 = vld [vmem:[#allocation8 + $0xd8] sm:$0xff] }
 0x138   :  { %2387 = vmatprep.subr.bf16.mxu1 %v7840_v60  ;;  %v7904_v60 = vcombine.high %v816_v49, %v820_v51 }
 0x139   :  { %2345 = vmatpush1.bf16.msra.mxu0 %v7711_v62  ;;  %v7775_v62 = vcombine.low %v688_v48, %v692_v59  ;;  %v765_v48 = vld [vmem:[#allocation8 + $0x4f8] sm:$0xff] }
 0x13a   :  { %2346 = vmatprep.subr.bf16.mxu0 %v7704_v0  ;;  %v7768_v0 = vcombine.high %v680_v55, %v684_v57 }
 0x13b   :  { %2388 = vmatpush1.bf16.msra.mxu1 %v7839_v63  ;;  %v7903_v63 = vcombine.low %v816_v49, %v820_v51  ;;  %v625_v51 = vld [vmem:[#allocation8 + $0x98] sm:$0xff] }
 0x13c   :  { %2389 = vmatprep.subr.bf16.mxu1 %v7832_v4  ;;  %v7896_v4 = vcombine.high %v808_v58, %v812_v61 }
 0x13d   :  { %2347 = vmatpush1.bf16.msra.mxu0 %v7703_v6  ;;  %v7767_v6 = vcombine.low %v680_v55, %v684_v57  ;;  %v757_v55 = vld [vmem:[#allocation8 + $0x4b8] sm:$0xff] }
 0x13e   :  { %2348 = vmatprep.subr.bf16.mxu0 %v7696_v8  ;;  %v7760_v8 = vcombine.high %v672_v1, %v676_v2 }
 0x13f   :  { %2390 = vmatpush1.bf16.msra.mxu1 %v7831_v7  ;;  %v7895_v7 = vcombine.low %v808_v58, %v812_v61  ;;  %v617_v61 = vld [vmem:[#allocation8 + $0x58] sm:$0xff] }
 0x140   :  { %2391 = vmatprep.subr.bf16.mxu1 %v7824_v13  ;;  %v7888_v13 = vcombine.high %v800_v3, %v804_v5 }
 0x141   :  { %2349 = vmatpush1.bf16.msra.mxu0 %v7695_v16  ;;  %v7759_v16 = vcombine.low %v672_v1, %v676_v2  ;;  %v749_v1 = vld [vmem:[#allocation8 + $0x478] sm:$0xff] }
 0x142   :  { %2350 = vmatprep.subr.bf16.mxu0 %v7816_v18  ;;  %v7754_v18 = vcombine.high %v665_v9, %v669_v10 }
 0x143   :  { %2392 = vmatpush1.bf16.msra.mxu1 %v7823_v17  ;;  %v7887_v17 = vcombine.low %v800_v3, %v804_v5  ;;  %v609_v5 = vld [vmem:[#allocation8 + $0x18] sm:$0xff] }
 0x144   :  { %2393 = vmatprep.subr.bf16.mxu1 %v7944_v22  ;;  %v7882_v22 = vcombine.high %v793_v11, %v797_v14 }
 0x145   :  { %2351 = vmatpush2.bf16.msra.mxu0 %v7815_v24  ;;  %v7753_v24 = vcombine.low %v665_v9, %v669_v10  ;;  %v741_v9 = vld [vmem:[#allocation8 + $0x438] sm:$0xff] }
 0x146   :  { %2352 = vmatprep.subr.bf16.mxu0 %v7808_v26  ;;  %v7746_v26 = vcombine.high %v657_v19, %v661_v20 }
 0x147   :  { %2394 = vmatpush2.bf16.msra.mxu1 %v7943_v25  ;;  %v7881_v25 = vcombine.low %v793_v11, %v797_v14  ;;  %v729_v14 = vld [vmem:[#allocation8 + $0x3d8] sm:$0xff] }
 0x148   :  { %2395 = vmatprep.subr.bf16.mxu1 %v7936_v30  ;;  %v9707_v30 = vld [vmem:[#allocation5] ss:$16 sps:$4 sm:$0xff]  }
 0x149   :  { %2353 = vmatpush2.bf16.msra.mxu0 %v7807_v32  ;;  %v781_v32 = vld [vmem:[#allocation8 + $0x578] sm:$0xff] }
 0x14a   :  { %2354 = vmatprep.subr.bf16.mxu0 %v7800_v34  ;;  %v7745_v34 = vcombine.low %v657_v19, %v661_v20  ;;  %v7865_v43 = vcombine.low %v777_v31, %v781_v32  ;;  %v861_v19 = vld [vmem:[#allocation8 + $0x7f8] sm:$0xff] }
 0x14b   :  { %2396 = vmatpush2.bf16.msra.mxu1 %v7935_v33  ;;  %v9710_v33 = vld [vmem:[#allocation5 + $0x8] ss:$16 sps:$4 sm:$0xff]  }
 0x14c   :  { %2397 = vmatprep.subr.bf16.mxu1 %v7928_v38  ;;  %v645_v38 = vld [vmem:[#allocation8 + $0x138] sm:$0xff] }
 0x14d   :  { %2355 = vmatpush2.bf16.msra.mxu0 %v7799_v12  ;;  %v7866_v12 = vcombine.high %v777_v31, %v781_v32  ;;  %v7729_v59 = vcombine.low %v641_v37, %v645_v38  ;;  %v713_v32 = vld [vmem:[#allocation8 + $0x358] sm:$0xff] }
 0x14e   :  { %2356 = vmatprep.subr.bf16.mxu0 %v7792_v40  ;;  %v9233_v40 = vld [vmem:[#allocation5 + $0x4] ss:$16 sps:$4 sm:$0xff]  }
 0x14f   :  { %2398 = vmatpush2.bf16.msra.mxu1 %v7927_v15  ;;  %v773_v15 = vld [vmem:[#allocation8 + $0x538] sm:$0xff] }
 0x150   :  { %2399 = vmatprep.subr.bf16.mxu1 %v7920_v44  ;;  %v7730_v44 = vcombine.high %v641_v37, %v645_v38  ;;  %v7857_v49 = vcombine.low %v769_v39, %v773_v15  ;;  %v845_v37 = vld [vmem:[#allocation8 + $0x778] sm:$0xff] }
 0x151   :  { %2357 = vmatpush2.bf16.msra.mxu0 %v7791_v46  ;;  %v637_v46 = vld [vmem:[#allocation8 + $0xf8] sm:$0xff] }
 0x152   :  { %2358 = vmatprep.subr.bf16.mxu0 %v7784_v56  ;;  %v7858_v56 = vcombine.high %v769_v39, %v773_v15  ;;  %v7721_v57 = vcombine.low %v633_v45, %v637_v46  ;;  %v705_v15 = vld [vmem:[#allocation8 + $0x318] sm:$0xff] }
 0x153   :  { %2400 = vmatpush2.bf16.msra.mxu1 %v7919_v47  ;;  %v761_v47 = vld [vmem:[#allocation8 + $0x4d8] sm:$0xff] }
 0x154   :  { %2401 = vmatprep.subr.bf16.mxu1 %v7912_v50  ;;  %v7722_v50 = vcombine.high %v633_v45, %v637_v46  ;;  %v7849_v58 = vcombine.low %v761_v47, %v765_v48 }
 0x155   :  { %2359 = vmatpush2.bf16.msra.mxu0 %v7783_v52  ;;  %v629_v52 = vld [vmem:[#allocation8 + $0xb8] sm:$0xff] }
 0x156   :  { %2360 = vmatprep.subr.bf16.mxu0 %v7776_v54  ;;  %v7850_v54 = vcombine.high %v761_v47, %v765_v48  ;;  %v7713_v2 = vcombine.low %v625_v51, %v629_v52  ;;  %v697_v47 = vld [vmem:[#allocation8 + $0x2d8] sm:$0xff] }
 0x157   :  { %2402 = vmatpush2.bf16.msra.mxu1 %v7911_v53  ;;  %v753_v53 = vld [vmem:[#allocation8 + $0x498] sm:$0xff] }
 0x158   :  { %2403 = vmatprep.subr.bf16.mxu1 %v7904_v60  ;;  %v7714_v60 = vcombine.high %v625_v51, %v629_v52  ;;  %v7841_v3 = vcombine.low %v753_v53, %v757_v55  ;;  %v825_v48 = vld [vmem:[#allocation8 + $0x6d8] sm:$0xff] }
 0x159   :  { %2361 = vmatpush2.bf16.msra.mxu0 %v7775_v62  ;;  %v621_v62 = vld [vmem:[#allocation8 + $0x78] sm:$0xff] }
 0x15a   :  { %2362 = vmatprep.subr.bf16.mxu0 %v7768_v0  ;;  %v7842_v0 = vcombine.high %v753_v53, %v757_v55  ;;  %v7705_v10 = vcombine.low %v617_v61, %v621_v62  ;;  %v689_v53 = vld [vmem:[#allocation8 + $0x298] sm:$0xff] }
 0x15b   :  { %2404 = vmatpush2.bf16.msra.mxu1 %v7903_v63  ;;  %v745_v63 = vld [vmem:[#allocation8 + $0x458] sm:$0xff] }
 0x15c   :  { %2405 = vmatprep.subr.bf16.mxu1 %v7896_v4  ;;  %v7706_v4 = vcombine.high %v617_v61, %v621_v62  ;;  %v7833_v11 = vcombine.low %v745_v63, %v749_v1  ;;  %v817_v55 = vld [vmem:[#allocation8 + $0x698] sm:$0xff] }
 0x15d   :  { %2363 = vmatpush2.bf16.msra.mxu0 %v7767_v6  ;;  %v613_v6 = vld [vmem:[#allocation8 + $0x38] sm:$0xff] }
 0x15e   :  { %2364 = vmatprep.subr.bf16.mxu0 %v7760_v8  ;;  %v7834_v8 = vcombine.high %v745_v63, %v749_v1  ;;  %v7697_v20 = vcombine.low %v609_v5, %v613_v6  ;;  %v681_v63 = vld [vmem:[#allocation8 + $0x258] sm:$0xff] }
 0x15f   :  { %2406 = vmatpush2.bf16.msra.mxu1 %v7895_v7  ;;  %v737_v7 = vld [vmem:[#allocation8 + $0x418] sm:$0xff] }
 0x160   :  { %2407 = vmatprep.subr.bf16.mxu1 %v7888_v13  ;;  %v7698_v13 = vcombine.high %v609_v5, %v613_v6  ;;  %v7825_v21 = vcombine.low %v737_v7, %v741_v9  ;;  %v809_v1 = vld [vmem:[#allocation8 + $0x658] sm:$0xff] }
 0x161   :  { %2365 = vmatpush2.bf16.msra.mxu0 %v7759_v16  ;;  %v733_v16 = vld [vmem:[#allocation8 + $0x3f8] sm:$0xff] }
 0x162   :  { %2420 = vmatprep.subr.bf16.mxu0 %v7754_v18  ;;  %v7826_v18 = vcombine.high %v737_v7, %v741_v9  ;;  %v7817_v28 = vcombine.low %v729_v14, %v733_v16  ;;  %v673_v7 = vld [vmem:[#allocation8 + $0x218] sm:$0xff] }
 0x163   :  { %2408 = vmatpush2.bf16.msra.mxu1 %v7887_v17  ;;  %v857_v17 = vld [vmem:[#allocation8 + $0x7d8] sm:$0xff] }
 0x164   :  { %2463 = vmatprep.subr.bf16.mxu1 %v7882_v22  ;;  %2367 = vmatmul.mubr.bf16.vlgmr.msra.gmra.mxu0 %v9707_v30  ;;  %v7818_v22 = vcombine.high %v729_v14, %v733_v16  ;;  %v7945_v29 = vcombine.low %v857_v17, %v861_v19  ;;  %v801_v9 = vld [vmem:[#allocation8 + $0x618] sm:$0xff] }
 0x165   :  { %2421 = vmatpush1.bf16.msra.mxu0 %v7753_v24  ;;  %2452 = vmatprep.mubr.bf16.mxu0 %v9233_v40  ;;  %v725_v24 = vld [vmem:[#allocation8 + $0x3b8] sm:$0xff] }
 0x166   :  { %2410 = vmatmul.mubr.bf16.vlgmr.msra.gmra.mxu1 %v9710_v33  ;;  %2422 = vmatprep.subr.bf16.mxu0 %v7746_v26  ;;  %v7946_v26 = vcombine.high %v857_v17, %v861_v19  ;;  %v7810_v31 = vcombine.high %v721_v23, %v725_v24  ;;  %v7809_v38 = vcombine.low %v721_v23, %v725_v24  ;;  %v709_v40 = vld [vmem:[#allocation8 + $0x338] sm:$0xff]  ;;  %v282_v19 = vld [vmem:[#allocation7 + $0x1e0] sm:$0xff] }
 0x167   :  { %2464 = vmatpush1.bf16.msra.mxu1 %v7881_v25  ;;  %2495 = vmatprep.mubr.bf16.mxu1 %v9234_v41  ;;  %v849_v25 = vld [vmem:[#allocation8 + $0x798] sm:$0xff]  ;;  %v7794_v46 = vcombine.high %v705_v15, %v709_v40 }
 0x168   :  { %2465 = vmatprep.subr.bf16.mxu1 %v7874_v27  ;;  %v853_v27 = vld [vmem:[#allocation8 + $0x7b8] sm:$0xff] }
 0x169   :  { %2423 = vmatpush1.bf16.msra.mxu0 %v7745_v34  ;;  %v717_v34 = vld [vmem:[#allocation8 + $0x378] sm:$0xff]  ;;  %v7937_v39 = vcombine.low %v849_v25, %v853_v27 }
 0x16a   :  { %2424 = vmatprep.subr.bf16.mxu0 %v7738_v36  ;;  %v7938_v36 = vcombine.high %v849_v25, %v853_v27  ;;  %v833_v41 = vld [vmem:[#allocation8 + $0x718] sm:$0xff]  ;;  %v274_v27 = vld [vmem:[#allocation7 + $0x1a0] sm:$0xff] }
 0x16b   :  { %2466 = vmatpush1.bf16.msra.mxu1 %v7873_v35  ;;  %v841_v35 = vld [vmem:[#allocation8 + $0x758] sm:$0xff] }
 0x16c   :  { %2467 = vmatprep.subr.bf16.mxu1 %v7866_v12  ;;  %v7802_v12 = vcombine.high %v713_v32, %v717_v34  ;;  %v7929_v45 = vcombine.low %v841_v35, %v845_v37 }
 0x16d   :  { %2425 = vmatpush1.bf16.msra.mxu0 %v7737_v42  ;;  %v7930_v42 = vcombine.high %v841_v35, %v845_v37  ;;  %v266_v37 = vld [vmem:[#allocation7 + $0x160] sm:$0xff] }
 0x16e   :  { %2426 = vmatprep.subr.bf16.mxu0 %v7730_v44  ;;  %v7801_v44 = vcombine.low %v713_v32, %v717_v34 }
 0x16f   :  { %2468 = vmatpush1.bf16.msra.mxu1 %v7865_v43  ;;  %v837_v43 = vld [vmem:[#allocation8 + $0x738] sm:$0xff] }
 0x170   :  { %2469 = vmatprep.subr.bf16.mxu1 %v7858_v56  ;;  %v701_v56 = vld [vmem:[#allocation8 + $0x2f8] sm:$0xff]  ;;  %v7921_v51 = vcombine.low %v833_v41, %v837_v43 }
 0x171   :  { %2427 = vmatpush1.bf16.msra.mxu0 %v7729_v59  ;;  %v7922_v59 = vcombine.high %v833_v41, %v837_v43  ;;  %v7786_v52 = vcombine.high %v697_v47, %v701_v56 }
 0x172   :  { %2428 = vmatprep.subr.bf16.mxu0 %v7722_v50  ;;  %v7793_v50 = vcombine.low %v705_v15, %v709_v40  ;;  %v394_v15 = vld [vmem:[#allocation7 + $0x560] sm:$0xff]  ;;  %v9716_v40 = vld [vmem:[#allocation2 + $0xc] ss:$24 sps:$4 sm:$0xff]  }
 0x173   :  { %2470 = vmatpush1.bf16.msra.mxu1 %v7857_v49  ;;  %v829_v49 = vld [vmem:[#allocation8 + $0x6f8] sm:$0xff] }
 0x174   :  { %2471 = vmatprep.subr.bf16.mxu1 %v7850_v54  ;;  %v693_v54 = vld [vmem:[#allocation8 + $0x2b8] sm:$0xff]  ;;  %v7913_v61 = vcombine.low %v825_v48, %v829_v49 }
 0x175   :  { %2429 = vmatpush1.bf16.msra.mxu0 %v7721_v57  ;;  %v7914_v57 = vcombine.high %v825_v48, %v829_v49  ;;  %v7778_v62 = vcombine.high %v689_v53, %v693_v54  ;;  %v258_v48 = vld [vmem:[#allocation7 + $0x120] sm:$0xff] }
 0x176   :  { %2430 = vmatprep.subr.bf16.mxu0 %v7714_v60  ;;  %v7785_v60 = vcombine.low %v697_v47, %v701_v56  ;;  %v254_v56 = vld [vmem:[#allocation7 + $0x100] sm:$0xff] }
 0x177   :  { %2472 = vmatpush1.bf16.msra.mxu1 %v7849_v58  ;;  %v821_v58 = vld [vmem:[#allocation8 + $0x6b8] sm:$0xff]  ;;  %v386_v49 = vld [vmem:[#allocation7 + $0x520] sm:$0xff] }
 0x178   :  { %2473 = vmatprep.subr.bf16.mxu1 %v7842_v0  ;;  %v685_v0 = vld [vmem:[#allocation8 + $0x278] sm:$0xff]  ;;  %v7905_v5 = vcombine.low %v817_v55, %v821_v58 }
 0x179   :  { %2431 = vmatpush1.bf16.msra.mxu0 %v7713_v2  ;;  %v7906_v2 = vcombine.high %v817_v55, %v821_v58  ;;  %v7770_v6 = vcombine.high %v681_v63, %v685_v0  ;;  %v250_v58 = vld [vmem:[#allocation7 + $0xe0] sm:$0xff] }
 0x17a   :  { %2432 = vmatprep.subr.bf16.mxu0 %v7706_v4  ;;  %v7777_v4 = vcombine.low %v689_v53, %v693_v54  ;;  %v7986_v54 = vcombine.high %v254_v56, %v258_v48 }
 0x17b   :  { %2474 = vmatpush1.bf16.msra.mxu1 %v7841_v3  ;;  %v813_v3 = vld [vmem:[#allocation8 + $0x678] sm:$0xff] }
 0x17c   :  { %2475 = vmatprep.subr.bf16.mxu1 %v7834_v8  ;;  %v677_v8 = vld [vmem:[#allocation8 + $0x238] sm:$0xff]  ;;  %v7897_v14 = vcombine.low %v809_v1, %v813_v3 }
 0x17d   :  { %2433 = vmatpush1.bf16.msra.mxu0 %v7705_v10  ;;  %v7898_v10 = vcombine.high %v809_v1, %v813_v3  ;;  %v7762_v16 = vcombine.high %v673_v7, %v677_v8  ;;  %v242_v3 = vld [vmem:[#allocation7 + $0xa0] sm:$0xff] }
 0x17e   :  { %2434 = vmatprep.subr.bf16.mxu0 %v7698_v13  ;;  %v7769_v13 = vcombine.low %v681_v63, %v685_v0 }
 0x17f   :  { %2476 = vmatpush1.bf16.msra.mxu1 %v7833_v11  ;;  %v805_v11 = vld [vmem:[#allocation8 + $0x638] sm:$0xff] }
 0x180   :  { %2477 = vmatprep.subr.bf16.mxu1 %v7826_v18  ;;  %v7890_v17 = vcombine.high %v801_v9, %v805_v11  ;;  %v278_v18 = vld [vmem:[#allocation7 + $0x1c0] sm:$0xff]  ;;  %v7889_v23 = vcombine.low %v801_v9, %v805_v11 }
 0x181   :  { %2435 = vmatpush1.bf16.msra.mxu0 %v7697_v20  ;;  %v406_v20 = vld [vmem:[#allocation7 + $0x5c0] sm:$0xff]  ;;  %v8010_v24 = vcombine.high %v278_v18, %v282_v19 }
 0x182   :  { %2436 = vmatprep.subr.bf16.mxu0 %v7818_v22  ;;  %v7761_v22 = vcombine.low %v673_v7, %v677_v8  ;;  %v234_v11 = vld [vmem:[#allocation7 + $0x60] sm:$0xff] }
 0x183   :  { %2478 = vmatpush1.bf16.msra.mxu1 %v7825_v21  ;;  %v410_v21 = vld [vmem:[#allocation7 + $0x5e0] sm:$0xff] }
 0x184   :  { %2479 = vmatprep.subr.bf16.mxu1 %v7946_v26  ;;  %v8138_v25 = vcombine.high %v406_v20, %v410_v21  ;;  %v270_v26 = vld [vmem:[#allocation7 + $0x180] sm:$0xff]  ;;  %v8137_v32 = vcombine.low %v406_v20, %v410_v21 }
 0x185   :  { %2437 = vmatpush2.bf16.msra.mxu0 %v7817_v28  ;;  %v398_v28 = vld [vmem:[#allocation7 + $0x580] sm:$0xff]  ;;  %v8002_v34 = vcombine.high %v270_v26, %v274_v27 }
 0x186   :  { %2438 = vmatprep.subr.bf16.mxu0 %v7810_v31  ;;  %v8009_v31 = vcombine.low %v278_v18, %v282_v19  ;;  %v222_v20 = vld [vmem:[#allocation7] sm:$0xff] }
 0x187   :  { %2480 = vmatpush2.bf16.msra.mxu1 %v7945_v29  ;;  %v402_v29 = vld [vmem:[#allocation7 + $0x5a0] sm:$0xff] }
 0x188   :  { %2481 = vmatprep.subr.bf16.mxu1 %v7938_v36  ;;  %v8130_v35 = vcombine.high %v398_v28, %v402_v29  ;;  %v262_v36 = vld [vmem:[#allocation7 + $0x140] sm:$0xff] }
 0x189   :  { %2439 = vmatpush2.bf16.msra.mxu0 %v7809_v38  ;;  %v9713_v38 = vld [vmem:[#allocation2 + $0x4] ss:$24 sps:$4 sm:$0xff]   ;;  %v226_v21 = vld [vmem:[#allocation7 + $0x20] sm:$0xff] }
 0x18a   :  { %2440 = vmatprep.subr.bf16.mxu0 %v7802_v12  ;;  %v390_v12 = vld [vmem:[#allocation7 + $0x540] sm:$0xff] }
 0x18b   :  { %2482 = vmatpush2.bf16.msra.mxu1 %v7937_v39  ;;  %v8121_v53 = vcombine.low %v390_v12, %v394_v15 }
 0x18c   :  { %2483 = vmatprep.subr.bf16.mxu1 %v7930_v42  ;;  %v8001_v42 = vcombine.low %v270_v26, %v274_v27  ;;  %v7954_v26 = vcombine.high %v222_v20, %v226_v21 }
 0x18d   :  { %2441 = vmatpush2.bf16.msra.mxu0 %v7801_v44 }
 0x18e   :  { %2442 = vmatprep.subr.bf16.mxu0 %v7794_v46  ;;  %v7994_v46 = vcombine.high %v262_v36, %v266_v37 }
 0x18f   :  { %2484 = vmatpush2.bf16.msra.mxu1 %v7929_v45  ;;  %v8129_v45 = vcombine.low %v398_v28, %v402_v29  ;;  %v342_v28 = vld [vmem:[#allocation7 + $0x3c0] sm:$0xff] }
 0x190   :  { %2485 = vmatprep.subr.bf16.mxu1 %v7922_v59  ;;  %v346_v29 = vld [vmem:[#allocation7 + $0x3e0] sm:$0xff] }
 0x191   :  { %2443 = vmatpush2.bf16.msra.mxu0 %v7793_v50 }
 0x192   :  { %2444 = vmatprep.subr.bf16.mxu0 %v7786_v52 }
 0x193   :  { %2486 = vmatpush2.bf16.msra.mxu1 %v7921_v51  ;;  %v7993_v51 = vcombine.low %v262_v36, %v266_v37  ;;  %v8074_v36 = vcombine.high %v342_v28, %v346_v29 }
 0x194   :  { %2487 = vmatprep.subr.bf16.mxu1 %v7914_v57  ;;  %v246_v57 = vld [vmem:[#allocation7 + $0xc0] sm:$0xff] }
 0x195   :  { %2445 = vmatpush2.bf16.msra.mxu0 %v7785_v60  ;;  %v374_v60 = vld [vmem:[#allocation7 + $0x4c0] sm:$0xff]  ;;  %v7978_v0 = vcombine.high %v246_v57, %v250_v58 }
 0x196   :  { %2446 = vmatprep.subr.bf16.mxu0 %v7778_v62  ;;  %v7985_v62 = vcombine.low %v254_v56, %v258_v48  ;;  %v326_v56 = vld [vmem:[#allocation7 + $0x340] sm:$0xff] }
 0x197   :  { %2488 = vmatpush2.bf16.msra.mxu1 %v7913_v61  ;;  %v378_v61 = vld [vmem:[#allocation7 + $0x4e0] sm:$0xff] }
 0x198   :  { %2489 = vmatprep.subr.bf16.mxu1 %v7906_v2  ;;  %v8106_v1 = vcombine.high %v374_v60, %v378_v61  ;;  %v238_v2 = vld [vmem:[#allocation7 + $0x80] sm:$0xff]  ;;  %v8105_v7 = vcombine.low %v374_v60, %v378_v61 }
 0x199   :  { %2447 = vmatpush2.bf16.msra.mxu0 %v7777_v4  ;;  %v366_v4 = vld [vmem:[#allocation7 + $0x480] sm:$0xff]  ;;  %v7970_v8 = vcombine.high %v238_v2, %v242_v3 }
 0x19a   :  { %2448 = vmatprep.subr.bf16.mxu0 %v7770_v6  ;;  %v7977_v6 = vcombine.low %v246_v57, %v250_v58  ;;  %v330_v48 = vld [vmem:[#allocation7 + $0x360] sm:$0xff] }
 0x19b   :  { %2490 = vmatpush2.bf16.msra.mxu1 %v7905_v5  ;;  %v370_v5 = vld [vmem:[#allocation7 + $0x4a0] sm:$0xff]  ;;  %v8057_v60 = vcombine.low %v326_v56, %v330_v48 }
 0x19c   :  { %2491 = vmatprep.subr.bf16.mxu1 %v7898_v10  ;;  %v8098_v9 = vcombine.high %v366_v4, %v370_v5  ;;  %v230_v10 = vld [vmem:[#allocation7 + $0x40] sm:$0xff] }
 0x19d   :  { %2449 = vmatpush2.bf16.msra.mxu0 %v7769_v13  ;;  %v358_v13 = vld [vmem:[#allocation7 + $0x440] sm:$0xff]  ;;  %v7962_v18 = vcombine.high %v230_v10, %v234_v11 }
 0x19e   :  { %2450 = vmatprep.subr.bf16.mxu0 %v7762_v16  ;;  %v7969_v16 = vcombine.low %v238_v2, %v242_v3  ;;  %v446_v57 = vld [vmem:[#allocation7 + $0x700] sm:$0xff] }
 0x19f   :  { %2492 = vmatpush2.bf16.msra.mxu1 %v7897_v14  ;;  %v362_v14 = vld [vmem:[#allocation7 + $0x460] sm:$0xff] }
 0x1a0   :  { %2493 = vmatprep.subr.bf16.mxu1 %v7890_v17  ;;  %v8097_v17 = vcombine.low %v366_v4, %v370_v5  ;;  %v8090_v19 = vcombine.high %v358_v13, %v362_v14  ;;  %v450_v58 = vld [vmem:[#allocation7 + $0x720] sm:$0xff] }
 0x1a1   :  { %2451 = vmatpush2.bf16.msra.mxu0 %v7761_v22  ;;  %v350_v22 = vld [vmem:[#allocation7 + $0x400] sm:$0xff]  ;;  %v8177_v5 = vcombine.low %v446_v57, %v450_v58 }
 0x1a2   :  { %4456 = vmatprep.subr.bf16.mxu0 %v8010_v24  ;;  %v7961_v24 = vcombine.low %v230_v10, %v234_v11  ;;  %v438_v2 = vld [vmem:[#allocation7 + $0x6c0] sm:$0xff] }
 0x1a3   :  { %2494 = vmatpush2.bf16.msra.mxu1 %v7889_v23  ;;  %v354_v23 = vld [vmem:[#allocation7 + $0x420] sm:$0xff] }
 0x1a4   :  { %4499 = vmatprep.subr.bf16.mxu1 %v8138_v25  ;;  %v2196_v39 = vpop.f32.mrf.mxu0  ;;  %2453 = vmatmul.mubr.bf16.vlgmr.msra.gmra.mxu0 %v9707_v30  ;;  %v8122_v30 = vcombine.high %v390_v12, %v394_v15  ;;  %v8089_v25 = vcombine.low %v358_v13, %v362_v14  ;;  %v8082_v27 = vcombine.high %v350_v22, %v354_v23  ;;  %v338_v12 = vld [vmem:[#allocation7 + $0x3a0] sm:$0xff] }
 0x1a5   :  { %4457 = vmatpush1.bf16.msra.mxu0 %v8009_v31  ;;  %4488 = vmatprep.mubr.bf16.mxu0 %v9713_v38  ;;  %v470_v31 = vld [vmem:[#allocation7 + $0x7c0] sm:$0xff] }
 0x1a6   :  { %v2239_v41 = vpop.f32.mrf.mxu1  ;;  %2496 = vmatmul.mubr.bf16.vlgmr.msra.gmra.mxu1 %v9710_v33  ;;  %v9721_v44 = vpop.f32.mrf.mxu0  ;;  %4458 = vmatprep.subr.bf16.mxu0 %v8002_v34  ;;  %v382_v33 = vld [vmem:[#allocation7 + $0x500] sm:$0xff]  ;;  %v7953_v34 = vcombine.low %v222_v20, %v226_v21 }
 0x1a7   :  { %v9719_v43 = vadd.f32 %v2239_v41, %v2196_v39  ;;  %4500 = vmatpush1.bf16.msra.mxu1 %v8137_v32  ;;  %4531 = vmatprep.mubr.bf16.mxu1 %v9716_v40  ;;  %v8114_v55 = vcombine.high %v382_v33, %v386_v49  ;;  %v8113_v63 = vcombine.low %v382_v33, %v386_v49  ;;  %v474_v32 = vld [vmem:[#allocation7 + $0x7e0] sm:$0xff] }
 0x1a8   :  { %v9723_v47 = vpop.f32.mrf.mxu1  ;;  %4501 = vmatprep.subr.bf16.mxu1 %v8130_v35  ;;  %v2200_v59 = vpop.f32.mrf.mxu0  ;;  %v8081_v35 = vcombine.low %v350_v22, %v354_v23  ;;  %v8202_v37 = vcombine.high %v470_v31, %v474_v32  ;;  %v334_v39 = vld [vmem:[#allocation7 + $0x380] sm:$0xff] }
 0x1a9   :  { %4459 = vmatpush1.bf16.msra.mxu0 %v8001_v42  ;;  %v462_v15 = vld [vmem:[#allocation7 + $0x780] sm:$0xff]  ;;  %v8073_v42 = vcombine.low %v342_v28, %v346_v29  ;;  %v8065_v49 = vcombine.low %v334_v39, %v338_v12 }
 0x1aa   :  { %v2243_v50 = vpop.f32.mrf.mxu1  ;;  %4460 = vmatprep.subr.bf16.mxu0 %v7994_v46  ;;  %v466_v41 = vld [vmem:[#allocation7 + $0x7a0] sm:$0xff]  ;;  %v8066_v46 = vcombine.high %v334_v39, %v338_v12  ;;  %v279_v39 = vld [vmem:[#allocation7 + $0x1c8] sm:$0xff] }
 0x1ab   :  { %v9727_v52 = vadd.f32 %v2243_v50, %v2200_v59  ;;  %4502 = vmatpush1.bf16.msra.mxu1 %v8129_v45  ;;  %v8201_v45 = vcombine.low %v470_v31, %v474_v32  ;;  %v454_v59 = vld [vmem:[#allocation7 + $0x740] sm:$0xff]  ;;  %v8193_v50 = vcombine.low %v462_v15, %v466_v41  ;;  %v283_v12 = vld [vmem:[#allocation7 + $0x1e8] sm:$0xff] }
 0x1ac   :  { %4503 = vmatprep.subr.bf16.mxu1 %v8122_v30  ;;  %v8194_v30 = vcombine.high %v462_v15, %v466_v41  ;;  %v458_v33 = vld [vmem:[#allocation7 + $0x760] sm:$0xff] }
 0x1ad   :  { %4461 = vmatpush1.bf16.msra.mxu0 %v7993_v51  ;;  %v8058_v51 = vcombine.high %v326_v56, %v330_v48  ;;  %v8185_v61 = vcombine.low %v454_v59, %v458_v33  ;;  %v442_v3 = vld [vmem:[#allocation7 + $0x6e0] sm:$0xff]  ;;  %v9729_v56 = vld [vmem:[#allocation2] ss:$24 sps:$4 sm:$0xff]  }
 0x1ae   :  { %4462 = vmatprep.subr.bf16.mxu0 %v7986_v54  ;;  %v318_v54 = vld [vmem:[#allocation7 + $0x300] sm:$0xff]  ;;  %v8169_v14 = vcombine.low %v438_v2, %v442_v3  ;;  %v271_v48 = vld [vmem:[#allocation7 + $0x188] sm:$0xff] }
 0x1af   :  { %4504 = vmatpush1.bf16.msra.mxu1 %v8121_v53  ;;  %v8186_v53 = vcombine.high %v454_v59, %v458_v33  ;;  %v430_v10 = vld [vmem:[#allocation7 + $0x680] sm:$0xff]  ;;  %v275_v59 = vld [vmem:[#allocation7 + $0x1a8] sm:$0xff]  ;;  %v9731_v33 = vld [vmem:[#allocation2 + $0x8] ss:$24 sps:$4 sm:$0xff]  }
 0x1b0   :  { %4505 = vmatprep.subr.bf16.mxu1 %v8114_v55  ;;  %v322_v55 = vld [vmem:[#allocation7 + $0x320] sm:$0xff] }
 0x1b1   :  { %4463 = vmatpush1.bf16.msra.mxu0 %v7985_v62  ;;  %v8050_v62 = vcombine.high %v318_v54, %v322_v55  ;;  %v8049_v4 = vcombine.low %v318_v54, %v322_v55  ;;  %v434_v11 = vld [vmem:[#allocation7 + $0x6a0] sm:$0xff]  ;;  %v9735_v54 = vpop.f32.mrf.mxu1  ;;  %v8004_v55 = vcombine.high %v271_v48, %v275_v59 }
 0x1b2   :  { %4464 = vmatprep.subr.bf16.mxu0 %v7978_v0  ;;  %v310_v0 = vld [vmem:[#allocation7 + $0x2c0] sm:$0xff]  ;;  %v8161_v23 = vcombine.low %v430_v10, %v434_v11 }
 0x1b3   :  { %4506 = vmatpush1.bf16.msra.mxu1 %v8113_v63  ;;  %v8178_v63 = vcombine.high %v446_v57, %v450_v58  ;;  %v422_v20 = vld [vmem:[#allocation7 + $0x640] sm:$0xff] }
 0x1b4   :  { %4507 = vmatprep.subr.bf16.mxu1 %v8106_v1  ;;  %v314_v1 = vld [vmem:[#allocation7 + $0x2e0] sm:$0xff] }
 0x1b5   :  { %4465 = vmatpush1.bf16.msra.mxu0 %v7977_v6  ;;  %v8042_v6 = vcombine.high %v310_v0, %v314_v1  ;;  %v8041_v13 = vcombine.low %v310_v0, %v314_v1  ;;  %v426_v21 = vld [vmem:[#allocation7 + $0x660] sm:$0xff] }
 0x1b6   :  { %4466 = vmatprep.subr.bf16.mxu0 %v7970_v8  ;;  %v302_v8 = vld [vmem:[#allocation7 + $0x280] sm:$0xff]  ;;  %v8153_v32 = vcombine.low %v422_v20, %v426_v21 }
 0x1b7   :  { %4508 = vmatpush1.bf16.msra.mxu1 %v8105_v7  ;;  %v8170_v7 = vcombine.high %v438_v2, %v442_v3  ;;  %v414_v28 = vld [vmem:[#allocation7 + $0x600] sm:$0xff] }
 0x1b8   :  { %4509 = vmatprep.subr.bf16.mxu1 %v8098_v9  ;;  %v306_v9 = vld [vmem:[#allocation7 + $0x2a0] sm:$0xff] }
 0x1b9   :  { %4467 = vmatpush1.bf16.msra.mxu0 %v7969_v16  ;;  %v8034_v16 = vcombine.high %v302_v8, %v306_v9  ;;  %v8033_v22 = vcombine.low %v302_v8, %v306_v9  ;;  %v418_v29 = vld [vmem:[#allocation7 + $0x620] sm:$0xff] }
 0x1ba   :  { %4468 = vmatprep.subr.bf16.mxu0 %v7962_v18  ;;  %v294_v18 = vld [vmem:[#allocation7 + $0x240] sm:$0xff]  ;;  %v8145_v41 = vcombine.low %v414_v28, %v418_v29 }
 0x1bb   :  { %4510 = vmatpush1.bf16.msra.mxu1 %v8097_v17  ;;  %v8162_v17 = vcombine.high %v430_v10, %v434_v11  ;;  %v518_v57 = vld [vmem:[#allocation7 + $0x940] sm:$0xff]  ;;  %v255_v11 = vld [vmem:[#allocation7 + $0x108] sm:$0xff] }
 0x1bc   :  { %4511 = vmatprep.subr.bf16.mxu1 %v8090_v19  ;;  %v298_v19 = vld [vmem:[#allocation7 + $0x260] sm:$0xff] }
 0x1bd   :  { %4469 = vmatpush1.bf16.msra.mxu0 %v7961_v24  ;;  %v8026_v24 = vcombine.high %v294_v18, %v298_v19  ;;  %v8025_v31 = vcombine.low %v294_v18, %v298_v19  ;;  %v522_v58 = vld [vmem:[#allocation7 + $0x960] sm:$0xff] }
 0x1be   :  { %4470 = vmatprep.subr.bf16.mxu0 %v7954_v26  ;;  %v286_v26 = vld [vmem:[#allocation7 + $0x200] sm:$0xff] }
 0x1bf   :  { %4512 = vmatpush1.bf16.msra.mxu1 %v8089_v25  ;;  %v8154_v25 = vcombine.high %v422_v20, %v426_v21  ;;  %v510_v8 = vld [vmem:[#allocation7 + $0x900] sm:$0xff] }
 0x1c0   :  { %4513 = vmatprep.subr.bf16.mxu1 %v8082_v27  ;;  %v290_v27 = vld [vmem:[#allocation7 + $0x220] sm:$0xff] }
 0x1c1   :  { %4471 = vmatpush1.bf16.msra.mxu0 %v7953_v34  ;;  %v8018_v34 = vcombine.high %v286_v26, %v290_v27  ;;  %v8017_v15 = vcombine.low %v286_v26, %v290_v27  ;;  %v514_v9 = vld [vmem:[#allocation7 + $0x920] sm:$0xff] }
 0x1c2   :  { %4472 = vmatprep.subr.bf16.mxu0 %v8074_v36  ;;  %v534_v36 = vld [vmem:[#allocation7 + $0x9c0] sm:$0xff]  ;;  %v8242_v19 = vcombine.high %v510_v8, %v514_v9 }
 0x1c3   :  { %4514 = vmatpush1.bf16.msra.mxu1 %v8081_v35  ;;  %v8146_v35 = vcombine.high %v414_v28, %v418_v29  ;;  %v502_v21 = vld [vmem:[#allocation7 + $0x8c0] sm:$0xff] }
 0x1c4   :  { %4515 = vmatprep.subr.bf16.mxu1 %v8202_v37  ;;  %v538_v37 = vld [vmem:[#allocation7 + $0x9e0] sm:$0xff] }
 0x1c5   :  { %4473 = vmatpush2.bf16.msra.mxu0 %v8073_v42  ;;  %v8266_v42 = vcombine.high %v534_v36, %v538_v37  ;;  %v494_v28 = vld [vmem:[#allocation7 + $0x880] sm:$0xff] }
 0x1c6   :  { %4474 = vmatprep.subr.bf16.mxu0 %v8066_v46  ;;  %v526_v46 = vld [vmem:[#allocation7 + $0x980] sm:$0xff] }
 0x1c7   :  { %4516 = vmatpush2.bf16.msra.mxu1 %v8201_v45  ;;  %v8012_v45 = vcombine.high %v279_v39, %v283_v12  ;;  %v498_v29 = vld [vmem:[#allocation7 + $0x8a0] sm:$0xff] }
 0x1c8   :  { %4517 = vmatprep.subr.bf16.mxu1 %v8194_v30  ;;  %v530_v30 = vld [vmem:[#allocation7 + $0x9a0] sm:$0xff] }
 0x1c9   :  { %4475 = vmatpush2.bf16.msra.mxu0 %v8065_v49  ;;  %v8265_v49 = vcombine.low %v534_v36, %v538_v37  ;;  %v8257_v1 = vcombine.low %v526_v46, %v530_v30  ;;  %v8226_v36 = vcombine.high %v494_v28, %v498_v29 }
 0x1ca   :  { %4476 = vmatprep.subr.bf16.mxu0 %v8058_v51  ;;  %v8011_v51 = vcombine.low %v279_v39, %v283_v12  ;;  %v486_v39 = vld [vmem:[#allocation7 + $0x840] sm:$0xff] }
 0x1cb   :  { %4518 = vmatpush2.bf16.msra.mxu1 %v8193_v50  ;;  %v9733_v50 = vpop.f32.mrf.mxu0  ;;  %v490_v12 = vld [vmem:[#allocation7 + $0x860] sm:$0xff] }
 0x1cc   :  { %4519 = vmatprep.subr.bf16.mxu1 %v8186_v53  ;;  %v8258_v53 = vcombine.high %v526_v46, %v530_v30  ;;  %v8218_v46 = vcombine.high %v486_v39, %v490_v12 }
 0x1cd   :  { %4477 = vmatpush2.bf16.msra.mxu0 %v8057_v60  ;;  %v9737_v60 = vld [vmem:[#allocation2 + $0x14] ss:$24 sps:$4 sm:$0xff]  }
 0x1ce   :  { %4478 = vmatprep.subr.bf16.mxu0 %v8050_v62  ;;  %v263_v62 = vld [vmem:[#allocation7 + $0x148] sm:$0xff] }
 0x1cf   :  { %4520 = vmatpush2.bf16.msra.mxu1 %v8185_v61 }
 0x1d0   :  { %4521 = vmatprep.subr.bf16.mxu1 %v8178_v63  ;;  %v267_v63 = vld [vmem:[#allocation7 + $0x168] sm:$0xff] }
 0x1d1   :  { %4479 = vmatpush2.bf16.msra.mxu0 %v8049_v4  ;;  %v8003_v4 = vcombine.low %v271_v48, %v275_v59  ;;  %v7995_v18 = vcombine.low %v263_v62, %v267_v63  ;;  %v478_v48 = vld [vmem:[#allocation7 + $0x800] sm:$0xff] }
 0x1d2   :  { %4480 = vmatprep.subr.bf16.mxu0 %v8042_v6  ;;  %v482_v59 = vld [vmem:[#allocation7 + $0x820] sm:$0xff] }
 0x1d3   :  { %4522 = vmatpush2.bf16.msra.mxu1 %v8177_v5  ;;  %v8250_v5 = vcombine.high %v518_v57, %v522_v58 }
 0x1d4   :  { %4523 = vmatprep.subr.bf16.mxu1 %v8170_v7  ;;  %v7996_v7 = vcombine.high %v263_v62, %v267_v63  ;;  %v602_v62 = vld [vmem:[#allocation7 + $0xbe0] sm:$0xff]  ;;  %v343_v63 = vld [vmem:[#allocation7 + $0x3c8] sm:$0xff] }
 0x1d5   :  { %4481 = vmatpush2.bf16.msra.mxu0 %v8041_v13  ;;  %v259_v13 = vld [vmem:[#allocation7 + $0x128] sm:$0xff] }
 0x1d6   :  { %4482 = vmatprep.subr.bf16.mxu0 %v8034_v16  ;;  %v8249_v16 = vcombine.low %v518_v57, %v522_v58  ;;  %v7988_v20 = vcombine.high %v255_v11, %v259_v13  ;;  %v8210_v57 = vcombine.high %v478_v48, %v482_v59 }
 0x1d7   :  { %4524 = vmatpush2.bf16.msra.mxu1 %v8169_v14 }
 0x1d8   :  { %4525 = vmatprep.subr.bf16.mxu1 %v8162_v17 }
 0x1d9   :  { %4483 = vmatpush2.bf16.msra.mxu0 %v8033_v22  ;;  %v506_v22 = vld [vmem:[#allocation7 + $0x8e0] sm:$0xff] }
 0x1da   :  { %4484 = vmatprep.subr.bf16.mxu0 %v8026_v24  ;;  %v251_v24 = vld [vmem:[#allocation7 + $0xe8] sm:$0xff]  ;;  %v8234_v26 = vcombine.high %v502_v21, %v506_v22 }
 0x1db   :  { %4526 = vmatpush2.bf16.msra.mxu1 %v8161_v23  ;;  %v247_v23 = vld [vmem:[#allocation7 + $0xc8] sm:$0xff] }
 0x1dc   :  { %4527 = vmatprep.subr.bf16.mxu1 %v8154_v25  ;;  %v8241_v25 = vcombine.low %v510_v8, %v514_v9  ;;  %v7980_v27 = vcombine.high %v247_v23, %v251_v24  ;;  %v590_v8 = vld [vmem:[#allocation7 + $0xb80] sm:$0xff] }
 0x1dd   :  { %4485 = vmatpush2.bf16.msra.mxu0 %v8025_v31  ;;  %v239_v31 = vld [vmem:[#allocation7 + $0x88] sm:$0xff]  ;;  %v594_v9 = vld [vmem:[#allocation7 + $0xba0] sm:$0xff] }
 0x1de   :  { %4486 = vmatprep.subr.bf16.mxu0 %v8018_v34  ;;  %v8233_v34 = vcombine.low %v502_v21, %v506_v22  ;;  %v327_v21 = vld [vmem:[#allocation7 + $0x348] sm:$0xff] }
 0x1df   :  { %4528 = vmatpush2.bf16.msra.mxu1 %v8153_v32  ;;  %v243_v32 = vld [vmem:[#allocation7 + $0xa8] sm:$0xff] }
 0x1e0   :  { %4529 = vmatprep.subr.bf16.mxu1 %v8146_v35  ;;  %v7979_v35 = vcombine.low %v247_v23, %v251_v24  ;;  %v7972_v37 = vcombine.high %v239_v31, %v243_v32  ;;  %v331_v22 = vld [vmem:[#allocation7 + $0x368] sm:$0xff]  ;;  %v8321_v23 = vcombine.low %v590_v8, %v594_v9 }
 0x1e1   :  { %4487 = vmatpush2.bf16.msra.mxu0 %v8017_v15  ;;  %v231_v15 = vld [vmem:[#allocation7 + $0x48] sm:$0xff] }
 0x1e2   :  { %4542 = vmatprep.subr.bf16.mxu0 %v8266_v42  ;;  %v8225_v42 = vcombine.low %v494_v28, %v498_v29  ;;  %v319_v28 = vld [vmem:[#allocation7 + $0x308] sm:$0xff] }
 0x1e3   :  { %4530 = vmatpush2.bf16.msra.mxu1 %v8145_v41  ;;  %v235_v41 = vld [vmem:[#allocation7 + $0x68] sm:$0xff] }
 0x1e4   :  { %4585 = vmatprep.subr.bf16.mxu1 %v8012_v45  ;;  %v2282_v61 = vpop.f32.mrf.mxu0  ;;  %4489 = vmatmul.mubr.bf16.vlgmr.msra.gmra.mxu0 %v9729_v56  ;;  %v7971_v45 = vcombine.low %v239_v31, %v243_v32  ;;  %v7964_v30 = vcombine.high %v231_v15, %v235_v41  ;;  %v323_v29 = vld [vmem:[#allocation7 + $0x328] sm:$0xff]  ;;  %v8059_v32 = vcombine.low %v327_v21, %v331_v22 }
 0x1e5   :  { %4543 = vmatpush1.bf16.msra.mxu0 %v8265_v49  ;;  %4574 = vmatprep.mubr.bf16.mxu0 %v9737_v60  ;;  %v223_v49 = vld [vmem:[#allocation7 + $0x8] sm:$0xff] }
 0x1e6   :  { %v2325_v0 = vpop.f32.mrf.mxu1  ;;  %4532 = vmatmul.mubr.bf16.vlgmr.msra.gmra.mxu1 %v9731_v33  ;;  %v9743_v3 = vpop.f32.mrf.mxu0  ;;  %4544 = vmatprep.subr.bf16.mxu0 %v8258_v53  ;;  %v8217_v53 = vcombine.low %v486_v39, %v490_v12  ;;  %v311_v39 = vld [vmem:[#allocation7 + $0x2c8] sm:$0xff] }
 0x1e7   :  { %v9741_v2 = vadd.f32 %v2325_v0, %v2282_v61  ;;  %4586 = vmatpush1.bf16.msra.mxu1 %v8011_v51  ;;  %4617 = vmatprep.mubr.bf16.mxu1 %v9713_v38  ;;  %v7987_v38 = vcombine.low %v255_v11, %v259_v13  ;;  %v227_v51 = vld [vmem:[#allocation7 + $0x28] sm:$0xff]  ;;  %v598_v61 = vld [vmem:[#allocation7 + $0xbc0] sm:$0xff] }
 0x1e8   :  { %v9745_v6 = vpop.f32.mrf.mxu1  ;;  %4587 = vmatprep.subr.bf16.mxu1 %v8004_v55  ;;  %v2286_v10 = vpop.f32.mrf.mxu0  ;;  %v7963_v55 = vcombine.low %v231_v15, %v235_v41  ;;  %v7956_v58 = vcombine.high %v223_v49, %v227_v51  ;;  %v347_v0 = vld [vmem:[#allocation7 + $0x3e8] sm:$0xff]  ;;  %v8329_v13 = vcombine.low %v598_v61, %v602_v62  ;;  %v8051_v41 = vcombine.low %v319_v28, %v323_v29 }
 0x1e9   :  { %4545 = vmatpush1.bf16.msra.mxu0 %v8257_v1  ;;  %v8209_v1 = vcombine.low %v478_v48, %v482_v59  ;;  %v339_v11 = vld [vmem:[#allocation7 + $0x3a8] sm:$0xff] }
 0x1ea   :  { %v2329_v14 = vpop.f32.mrf.mxu1  ;;  %4546 = vmatprep.subr.bf16.mxu0 %v8250_v5  ;;  %v8330_v5 = vcombine.high %v598_v61, %v602_v62  ;;  %v315_v12 = vld [vmem:[#allocation7 + $0x2e8] sm:$0xff] }
 0x1eb   :  { %v9749_v17 = vadd.f32 %v2329_v14, %v2286_v10  ;;  %4588 = vmatpush1.bf16.msra.mxu1 %v8003_v4  ;;  %v7955_v4 = vcombine.low %v223_v49, %v227_v51  ;;  %v335_v10 = vld [vmem:[#allocation7 + $0x388] sm:$0xff]  ;;  %v8075_v14 = vcombine.low %v343_v63, %v347_v0  ;;  %v8043_v51 = vcombine.low %v311_v39, %v315_v12 }
 0x1ec   :  { %4589 = vmatprep.subr.bf16.mxu1 %v7996_v7  ;;  %v8076_v7 = vcombine.high %v343_v63, %v347_v0  ;;  %v8067_v24 = vcombine.low %v335_v10, %v339_v11  ;;  %v303_v48 = vld [vmem:[#allocation7 + $0x288] sm:$0xff] }
 0x1ed   :  { %4547 = vmatpush1.bf16.msra.mxu0 %v8249_v16  ;;  %v8322_v16 = vcombine.high %v590_v8, %v594_v9  ;;  %v307_v59 = vld [vmem:[#allocation7 + $0x2a8] sm:$0xff] }
 0x1ee   :  { %4548 = vmatprep.subr.bf16.mxu0 %v8242_v19  ;;  %v582_v19 = vld [vmem:[#allocation7 + $0xb40] sm:$0xff]  ;;  %v295_v61 = vld [vmem:[#allocation7 + $0x248] sm:$0xff]  ;;  %v8035_v0 = vcombine.low %v303_v48, %v307_v59 }
 0x1ef   :  { %4590 = vmatpush1.bf16.msra.mxu1 %v7995_v18  ;;  %v8068_v18 = vcombine.high %v335_v10, %v339_v11  ;;  %v299_v62 = vld [vmem:[#allocation7 + $0x268] sm:$0xff] }
 0x1f0   :  { %4591 = vmatprep.subr.bf16.mxu1 %v7988_v20  ;;  %v586_v20 = vld [vmem:[#allocation7 + $0xb60] sm:$0xff]  ;;  %v287_v8 = vld [vmem:[#allocation7 + $0x208] sm:$0xff]  ;;  %v8027_v11 = vcombine.low %v295_v61, %v299_v62 }
 0x1f1   :  { %4549 = vmatpush1.bf16.msra.mxu0 %v8241_v25  ;;  %v8314_v25 = vcombine.high %v582_v19, %v586_v20  ;;  %v8313_v31 = vcombine.low %v582_v19, %v586_v20  ;;  %v291_v9 = vld [vmem:[#allocation7 + $0x228] sm:$0xff] }
 0x1f2   :  { %4550 = vmatprep.subr.bf16.mxu0 %v8234_v26  ;;  %v574_v26 = vld [vmem:[#allocation7 + $0xb00] sm:$0xff]  ;;  %v535_v19 = vld [vmem:[#allocation7 + $0x9c8] sm:$0xff] }
 0x1f3   :  { %4592 = vmatpush1.bf16.msra.mxu1 %v7987_v38  ;;  %v8060_v38 = vcombine.high %v327_v21, %v331_v22  ;;  %v539_v20 = vld [vmem:[#allocation7 + $0x9e8] sm:$0xff]  ;;  %v8019_v22 = vcombine.low %v287_v8, %v291_v9 }
 0x1f4   :  { %4593 = vmatprep.subr.bf16.mxu1 %v7980_v27  ;;  %v578_v27 = vld [vmem:[#allocation7 + $0xb20] sm:$0xff] }
 0x1f5   :  { %4551 = vmatpush1.bf16.msra.mxu0 %v8233_v34  ;;  %v8306_v34 = vcombine.high %v574_v26, %v578_v27  ;;  %v8305_v15 = vcombine.low %v574_v26, %v578_v27  ;;  %v9751_v26 = vld [vmem:[#allocation2 + $0x10] ss:$24 sps:$4 sm:$0xff]   ;;  %v527_v27 = vld [vmem:[#allocation7 + $0x988] sm:$0xff] }
 0x1f6   :  { %4552 = vmatprep.subr.bf16.mxu0 %v8226_v36  ;;  %v566_v36 = vld [vmem:[#allocation7 + $0xac0] sm:$0xff] }
 0x1f7   :  { %4594 = vmatpush1.bf16.msra.mxu1 %v7979_v35  ;;  %v8052_v35 = vcombine.high %v319_v28, %v323_v29  ;;  %v531_v28 = vld [vmem:[#allocation7 + $0x9a8] sm:$0xff] }
 0x1f8   :  { %4595 = vmatprep.subr.bf16.mxu1 %v7972_v37  ;;  %v570_v37 = vld [vmem:[#allocation7 + $0xae0] sm:$0xff] }
 0x1f9   :  { %4553 = vmatpush1.bf16.msra.mxu0 %v8225_v42  ;;  %v8298_v42 = vcombine.high %v566_v36, %v570_v37  ;;  %v8297_v49 = vcombine.low %v566_v36, %v570_v37  ;;  %v8260_v36 = vcombine.high %v527_v27, %v531_v28  ;;  %v391_v37 = vld [vmem:[#allocation7 + $0x548] sm:$0xff] }
 0x1fa   :  { %4554 = vmatprep.subr.bf16.mxu0 %v8218_v46  ;;  %v558_v46 = vld [vmem:[#allocation7 + $0xa80] sm:$0xff] }
 0x1fb   :  { %4596 = vmatpush1.bf16.msra.mxu1 %v7971_v45  ;;  %v8044_v45 = vcombine.high %v311_v39, %v315_v12  ;;  %v395_v39 = vld [vmem:[#allocation7 + $0x568] sm:$0xff] }
 0x1fc   :  { %4597 = vmatprep.subr.bf16.mxu1 %v7964_v30  ;;  %v562_v30 = vld [vmem:[#allocation7 + $0xaa0] sm:$0xff] }
 0x1fd   :  { %4555 = vmatpush1.bf16.msra.mxu0 %v8217_v53  ;;  %v8290_v53 = vcombine.high %v558_v46, %v562_v30  ;;  %v8289_v63 = vcombine.low %v558_v46, %v562_v30 }
 0x1fe   :  { %4556 = vmatprep.subr.bf16.mxu0 %v8210_v57  ;;  %v550_v57 = vld [vmem:[#allocation7 + $0xa40] sm:$0xff] }
 0x1ff   :  { %4598 = vmatpush1.bf16.msra.mxu1 %v7963_v55  ;;  %v8036_v55 = vcombine.high %v303_v48, %v307_v59  ;;  %v8259_v48 = vcombine.low %v527_v27, %v531_v28  ;;  %v8124_v59 = vcombine.high %v391_v37, %v395_v39  ;;  %v359_v27 = vld [vmem:[#allocation7 + $0x448] sm:$0xff] }
 0x200   :  { %4599 = vmatprep.subr.bf16.mxu1 %v7956_v58  ;;  %v554_v58 = vld [vmem:[#allocation7 + $0xa60] sm:$0xff]  ;;  %v363_v28 = vld [vmem:[#allocation7 + $0x468] sm:$0xff] }
 0x201   :  { %4557 = vmatpush1.bf16.msra.mxu0 %v8209_v1  ;;  %v8282_v1 = vcombine.high %v550_v57, %v554_v58  ;;  %v8281_v10 = vcombine.low %v550_v57, %v554_v58 }
 0x202   :  { %4558 = vmatprep.subr.bf16.mxu0 %v8330_v5  ;;  %v542_v5 = vld [vmem:[#allocation7 + $0xa00] sm:$0xff] }
 0x203   :  { %4600 = vmatpush1.bf16.msra.mxu1 %v7955_v4  ;;  %v8028_v4 = vcombine.high %v295_v61, %v299_v62  ;;  %v515_v61 = vld [vmem:[#allocation7 + $0x928] sm:$0xff] }
 0x204   :  { %4601 = vmatprep.subr.bf16.mxu1 %v8076_v7  ;;  %v546_v7 = vld [vmem:[#allocation7 + $0xa20] sm:$0xff] }
 0x205   :  { %4559 = vmatpush2.bf16.msra.mxu0 %v8329_v13  ;;  %v8274_v13 = vcombine.high %v542_v5, %v546_v7  ;;  %v8273_v21 = vcombine.low %v542_v5, %v546_v7 }
 0x206   :  { %4560 = vmatprep.subr.bf16.mxu0 %v8322_v16  ;;  %v407_v16 = vld [vmem:[#allocation7 + $0x5c8] sm:$0xff] }
 0x207   :  { %4602 = vmatpush2.bf16.msra.mxu1 %v8075_v14  ;;  %v8020_v14 = vcombine.high %v287_v8, %v291_v9  ;;  %v375_v8 = vld [vmem:[#allocation7 + $0x4c8] sm:$0xff] }
 0x208   :  { %4603 = vmatprep.subr.bf16.mxu1 %v8068_v18  ;;  %v411_v18 = vld [vmem:[#allocation7 + $0x5e8] sm:$0xff] }
 0x209   :  { %4561 = vmatpush2.bf16.msra.mxu0 %v8321_v23  ;;  %v8140_v23 = vcombine.high %v407_v16, %v411_v18  ;;  %v8139_v29 = vcombine.low %v407_v16, %v411_v18  ;;  %v379_v9 = vld [vmem:[#allocation7 + $0x4e8] sm:$0xff] }
 0x20a   :  { %4562 = vmatprep.subr.bf16.mxu0 %v8314_v25  ;;  %v399_v25 = vld [vmem:[#allocation7 + $0x588] sm:$0xff]  ;;  %v8108_v16 = vcombine.high %v375_v8, %v379_v9 }
 0x20b   :  { %4604 = vmatpush2.bf16.msra.mxu1 %v8067_v24  ;;  %v8268_v24 = vcombine.high %v535_v19, %v539_v20 }
 0x20c   :  { %4605 = vmatprep.subr.bf16.mxu1 %v8060_v38  ;;  %v403_v38 = vld [vmem:[#allocation7 + $0x5a8] sm:$0xff] }
 0x20d   :  { %4563 = vmatpush2.bf16.msra.mxu0 %v8313_v31  ;;  %v9753_v31 = vpop.f32.mrf.mxu0 }
 0x20e   :  { %4564 = vmatprep.subr.bf16.mxu0 %v8306_v34  ;;  %v8132_v34 = vcombine.high %v399_v25, %v403_v38 }
 0x20f   :  { %4606 = vmatpush2.bf16.msra.mxu1 %v8059_v32  ;;  %v8267_v32 = vcombine.low %v535_v19, %v539_v20  ;;  %v367_v19 = vld [vmem:[#allocation7 + $0x488] sm:$0xff] }
 0x210   :  { %4607 = vmatprep.subr.bf16.mxu1 %v8052_v35  ;;  %v9755_v35 = vpop.f32.mrf.mxu1  ;;  %v371_v20 = vld [vmem:[#allocation7 + $0x4a8] sm:$0xff] }
 0x211   :  { %4565 = vmatpush2.bf16.msra.mxu0 %v8305_v15  ;;  %v519_v15 = vld [vmem:[#allocation7 + $0x948] sm:$0xff] }
 0x212   :  { %4566 = vmatprep.subr.bf16.mxu0 %v8298_v42 }
 0x213   :  { %4608 = vmatpush2.bf16.msra.mxu1 %v8051_v41  ;;  %v523_v41 = vld [vmem:[#allocation7 + $0x968] sm:$0xff] }
 0x214   :  { %4609 = vmatprep.subr.bf16.mxu1 %v8044_v45  ;;  %v8131_v45 = vcombine.low %v399_v25, %v403_v38  ;;  %v8100_v25 = vcombine.high %v367_v19, %v371_v20 }
 0x215   :  { %4567 = vmatpush2.bf16.msra.mxu0 %v8297_v49 }
 0x216   :  { %4568 = vmatprep.subr.bf16.mxu0 %v8290_v53  ;;  %v383_v53 = vld [vmem:[#allocation7 + $0x508] sm:$0xff] }
 0x217   :  { %4610 = vmatpush2.bf16.msra.mxu1 %v8043_v51  ;;  %v8252_v51 = vcombine.high %v519_v15, %v523_v41 }
 0x218   :  { %4611 = vmatprep.subr.bf16.mxu1 %v8036_v55  ;;  %v387_v55 = vld [vmem:[#allocation7 + $0x528] sm:$0xff] }
 0x219   :  { %4569 = vmatpush2.bf16.msra.mxu0 %v8289_v63  ;;  %v8123_v63 = vcombine.low %v391_v37, %v395_v39  ;;  %v8116_v5 = vcombine.high %v383_v53, %v387_v55  ;;  %v8092_v37 = vcombine.high %v359_v27, %v363_v28 }
 0x21a   :  { %4570 = vmatprep.subr.bf16.mxu0 %v8282_v1 }
 0x21b   :  { %4612 = vmatpush2.bf16.msra.mxu1 %v8035_v0 }
 0x21c   :  { %4613 = vmatprep.subr.bf16.mxu1 %v8028_v4  ;;  %v8251_v4 = vcombine.low %v519_v15, %v523_v41  ;;  %v355_v15 = vld [vmem:[#allocation7 + $0x428] sm:$0xff] }
 0x21d   :  { %4571 = vmatpush2.bf16.msra.mxu0 %v8281_v10  ;;  %v479_v41 = vld [vmem:[#allocation7 + $0x808] sm:$0xff] }
 0x21e   :  { %4572 = vmatprep.subr.bf16.mxu0 %v8274_v13  ;;  %v507_v13 = vld [vmem:[#allocation7 + $0x8e8] sm:$0xff] }
 0x21f   :  { %4614 = vmatpush2.bf16.msra.mxu1 %v8027_v11  ;;  %v503_v11 = vld [vmem:[#allocation7 + $0x8c8] sm:$0xff] }
 0x220   :  { %4615 = vmatprep.subr.bf16.mxu1 %v8020_v14  ;;  %v8236_v18 = vcombine.high %v503_v11, %v507_v13 }
 0x221   :  { %4573 = vmatpush2.bf16.msra.mxu0 %v8273_v21  ;;  %v495_v21 = vld [vmem:[#allocation7 + $0x888] sm:$0xff] }
 0x222   :  { %4628 = vmatprep.subr.bf16.mxu0 %v8140_v23  ;;  %v8107_v23 = vcombine.low %v375_v8, %v379_v9 }
 0x223   :  { %4616 = vmatpush2.bf16.msra.mxu1 %v8019_v22  ;;  %v499_v22 = vld [vmem:[#allocation7 + $0x8a8] sm:$0xff] }
 0x224   :  { %4671 = vmatprep.subr.bf16.mxu1 %v8268_v24  ;;  %v2368_v12 = vpop.f32.mrf.mxu0  ;;  %4575 = vmatmul.mubr.bf16.vlgmr.msra.gmra.mxu0 %v9751_v26  ;;  %v8235_v24 = vcombine.low %v503_v11, %v507_v13  ;;  %v8228_v38 = vcombine.high %v495_v21, %v499_v22  ;;  %v455_v11 = vld [vmem:[#allocation7 + $0x748] sm:$0xff] }
 0x225   :  { %4629 = vmatpush1.bf16.msra.mxu0 %v8139_v29  ;;  %4660 = vmatprep.mubr.bf16.mxu0 %v9716_v40  ;;  %v487_v29 = vld [vmem:[#allocation7 + $0x848] sm:$0xff] }
 0x226   :  { %v2411_v42 = vpop.f32.mrf.mxu1  ;;  %4618 = vmatmul.mubr.bf16.vlgmr.msra.gmra.mxu1 %v9729_v56  ;;  %v2370_v30 = vpop.f32.mrf.mxu0  ;;  %4630 = vmatprep.subr.bf16.mxu0 %v8132_v34  ;;  %v511_v56 = vld [vmem:[#allocation7 + $0x908] sm:$0xff]  ;;  %v8099_v34 = vcombine.low %v367_v19, %v371_v20 }
 0x227   :  { %v9759_v46 = vadd.f32 %v2411_v42, %v2368_v12  ;;  %4672 = vmatpush1.bf16.msra.mxu1 %v8267_v32  ;;  %4703 = vmatprep.mubr.bf16.mxu1 %v9737_v60  ;;  %v8244_v40 = vcombine.high %v511_v56, %v515_v61  ;;  %v8115_v60 = vcombine.low %v383_v53, %v387_v55  ;;  %v491_v32 = vld [vmem:[#allocation7 + $0x868] sm:$0xff] }
 0x228   :  { %v2413_v49 = vpop.f32.mrf.mxu1  ;;  %4673 = vmatprep.subr.bf16.mxu1 %v8260_v36  ;;  %v2372_v58 = vpop.f32.mrf.mxu0  ;;  %v8243_v14 = vcombine.low %v511_v56, %v515_v61  ;;  %v8227_v36 = vcombine.low %v495_v21, %v499_v22  ;;  %v8220_v39 = vcombine.high %v487_v29, %v491_v32  ;;  %v351_v12 = vld [vmem:[#allocation7 + $0x408] sm:$0xff] }
 0x229   :  { %v9762_v57 = vadd.f32 %v2413_v49, %v2370_v30  ;;  %4631 = vmatpush1.bf16.msra.mxu0 %v8131_v45  ;;  %v483_v42 = vld [vmem:[#allocation7 + $0x828] sm:$0xff]  ;;  %v8091_v45 = vcombine.low %v359_v27, %v363_v28  ;;  %v8219_v30 = vcombine.low %v487_v29, %v491_v32 }
 0x22a   :  { %v2415_v62 = vpop.f32.mrf.mxu1  ;;  %v2374_v1 = vpop.f32.mrf.mxu0  ;;  %4632 = vmatprep.subr.bf16.mxu0 %v8124_v59  ;;  %v8212_v59 = vcombine.high %v479_v41, %v483_v42  ;;  %v471_v49 = vld [vmem:[#allocation7 + $0x7c8] sm:$0xff]  ;;  %v8211_v56 = vcombine.low %v479_v41, %v483_v42 }
 0x22b   :  { %v9765_v0 = vadd.f32 %v2415_v62, %v2372_v58  ;;  %4674 = vmatpush1.bf16.msra.mxu1 %v8259_v48  ;;  %v8084_v48 = vcombine.high %v351_v12, %v355_v15  ;;  %v599_v53 = vld [vmem:[#allocation7 + $0xbc8] sm:$0xff]  ;;  %v8083_v58 = vcombine.low %v351_v12, %v355_v15 }
 0x22c   :  { %v2417_v7 = vpop.f32.mrf.mxu1  ;;  %4675 = vmatprep.subr.bf16.mxu1 %v8252_v51  ;;  %v475_v51 = vld [vmem:[#allocation7 + $0x7e8] sm:$0xff] }
 0x22d   :  { %v9767_v10 = vadd.f32 %v2417_v7, %v2374_v1  ;;  %4633 = vmatpush1.bf16.msra.mxu0 %v8123_v63  ;;  %v603_v55 = vld [vmem:[#allocation7 + $0xbe8] sm:$0xff]  ;;  %v8204_v61 = vcombine.high %v471_v49, %v475_v51  ;;  %v8203_v7 = vcombine.low %v471_v49, %v475_v51 }
 0x22e   :  { %4634 = vmatprep.subr.bf16.mxu0 %v8116_v5  ;;  %v8332_v62 = vcombine.high %v599_v53, %v603_v55  ;;  %v463_v63 = vld [vmem:[#allocation7 + $0x788] sm:$0xff] }
 0x22f   :  { %4676 = vmatpush1.bf16.msra.mxu1 %v8251_v4  ;;  %v467_v1 = vld [vmem:[#allocation7 + $0x7a8] sm:$0xff] }
 0x230   :  { %4677 = vmatprep.subr.bf16.mxu1 %v8244_v40  ;;  %v591_v4 = vld [vmem:[#allocation7 + $0xb88] sm:$0xff]  ;;  %v8331_v40 = vcombine.low %v599_v53, %v603_v55  ;;  %v8196_v8 = vcombine.high %v463_v63, %v467_v1 }
 0x231   :  { %4635 = vmatpush1.bf16.msra.mxu0 %v8115_v60  ;;  %v595_v5 = vld [vmem:[#allocation7 + $0xba8] sm:$0xff] }
 0x232   :  { %4636 = vmatprep.subr.bf16.mxu0 %v8108_v16  ;;  %v8324_v9 = vcombine.high %v591_v4, %v595_v5  ;;  %v459_v13 = vld [vmem:[#allocation7 + $0x768] sm:$0xff]  ;;  %v8195_v16 = vcombine.low %v463_v63, %v467_v1 }
 0x233   :  { %4678 = vmatpush1.bf16.msra.mxu1 %v8243_v14  ;;  %v583_v60 = vld [vmem:[#allocation7 + $0xb48] sm:$0xff]  ;;  %v8188_v19 = vcombine.high %v455_v11, %v459_v13 }
 0x234   :  { %4679 = vmatprep.subr.bf16.mxu1 %v8236_v18  ;;  %v587_v14 = vld [vmem:[#allocation7 + $0xb68] sm:$0xff]  ;;  %v8323_v18 = vcombine.low %v591_v4, %v595_v5 }
 0x235   :  { %4637 = vmatpush1.bf16.msra.mxu0 %v8107_v23  ;;  %v8316_v20 = vcombine.high %v583_v60, %v587_v14  ;;  %v447_v21 = vld [vmem:[#allocation7 + $0x708] sm:$0xff] }
 0x236   :  { %4638 = vmatprep.subr.bf16.mxu0 %v8100_v25  ;;  %v451_v22 = vld [vmem:[#allocation7 + $0x728] sm:$0xff]  ;;  %v8187_v25 = vcombine.low %v455_v11, %v459_v13 }
 0x237   :  { %4680 = vmatpush1.bf16.msra.mxu1 %v8235_v24  ;;  %v575_v23 = vld [vmem:[#allocation7 + $0xb08] sm:$0xff]  ;;  %v8180_v27 = vcombine.high %v447_v21, %v451_v22 }
 0x238   :  { %4681 = vmatprep.subr.bf16.mxu1 %v8228_v38  ;;  %v579_v24 = vld [vmem:[#allocation7 + $0xb28] sm:$0xff]  ;;  %v8315_v38 = vcombine.low %v583_v60, %v587_v14  ;;  %v280_v60 = vld [vmem:[#allocation7 + $0x1d0] sm:$0xff] }
 0x239   :  { %4639 = vmatpush1.bf16.msra.mxu0 %v8099_v34  ;;  %v8308_v28 = vcombine.high %v575_v23, %v579_v24  ;;  %v439_v29 = vld [vmem:[#allocation7 + $0x6c8] sm:$0xff]  ;;  %v284_v14 = vld [vmem:[#allocation7 + $0x1f0] sm:$0xff] }
 0x23a   :  { %4640 = vmatprep.subr.bf16.mxu0 %v8092_v37  ;;  %v443_v32 = vld [vmem:[#allocation7 + $0x6e8] sm:$0xff]  ;;  %v8179_v37 = vcombine.low %v447_v21, %v451_v22  ;;  %v8014_v21 = vcombine.high %v280_v60, %v284_v14 }
 0x23b   :  { %4682 = vmatpush1.bf16.msra.mxu1 %v8227_v36  ;;  %v567_v34 = vld [vmem:[#allocation7 + $0xac8] sm:$0xff]  ;;  %v8172_v12 = vcombine.high %v439_v29, %v443_v32 }
 0x23c   :  { %4683 = vmatprep.subr.bf16.mxu1 %v8220_v39  ;;  %v571_v36 = vld [vmem:[#allocation7 + $0xae8] sm:$0xff]  ;;  %v8307_v39 = vcombine.low %v575_v23, %v579_v24  ;;  %v272_v23 = vld [vmem:[#allocation7 + $0x190] sm:$0xff] }
 0x23d   :  { %4641 = vmatpush1.bf16.msra.mxu0 %v8091_v45  ;;  %v8300_v15 = vcombine.high %v567_v34, %v571_v36  ;;  %v431_v41 = vld [vmem:[#allocation7 + $0x688] sm:$0xff]  ;;  %v276_v24 = vld [vmem:[#allocation7 + $0x1b0] sm:$0xff] }
 0x23e   :  { %4642 = vmatprep.subr.bf16.mxu0 %v8084_v48  ;;  %v435_v42 = vld [vmem:[#allocation7 + $0x6a8] sm:$0xff]  ;;  %v8171_v48 = vcombine.low %v439_v29, %v443_v32  ;;  %v8006_v29 = vcombine.high %v272_v23, %v276_v24 }
 0x23f   :  { %4684 = vmatpush1.bf16.msra.mxu1 %v8219_v30  ;;  %v559_v45 = vld [vmem:[#allocation7 + $0xa88] sm:$0xff]  ;;  %v8164_v49 = vcombine.high %v431_v41, %v435_v42 }
 0x240   :  { %4685 = vmatprep.subr.bf16.mxu1 %v8212_v59  ;;  %v563_v30 = vld [vmem:[#allocation7 + $0xaa8] sm:$0xff]  ;;  %v8299_v59 = vcombine.low %v567_v34, %v571_v36  ;;  %v264_v34 = vld [vmem:[#allocation7 + $0x150] sm:$0xff] }
 0x241   :  { %4643 = vmatpush1.bf16.msra.mxu0 %v8083_v58  ;;  %v8292_v51 = vcombine.high %v559_v45, %v563_v30  ;;  %v423_v53 = vld [vmem:[#allocation7 + $0x648] sm:$0xff]  ;;  %v268_v36 = vld [vmem:[#allocation7 + $0x170] sm:$0xff] }
 0x242   :  { %4644 = vmatprep.subr.bf16.mxu0 %v8204_v61  ;;  %v427_v55 = vld [vmem:[#allocation7 + $0x668] sm:$0xff]  ;;  %v8163_v61 = vcombine.low %v431_v41, %v435_v42  ;;  %v8005_v41 = vcombine.low %v272_v23, %v276_v24  ;;  %v368_v23 = vld [vmem:[#allocation7 + $0x490] sm:$0xff] }
 0x243   :  { %4686 = vmatpush1.bf16.msra.mxu1 %v8211_v56  ;;  %v551_v58 = vld [vmem:[#allocation7 + $0xa48] sm:$0xff]  ;;  %v8156_v63 = vcombine.high %v423_v53, %v427_v55  ;;  %v372_v24 = vld [vmem:[#allocation7 + $0x4b0] sm:$0xff] }
 0x244   :  { %4687 = vmatprep.subr.bf16.mxu1 %v8332_v62  ;;  %v555_v56 = vld [vmem:[#allocation7 + $0xa68] sm:$0xff]  ;;  %v8291_v62 = vcombine.low %v559_v45, %v563_v30 }
 0x245   :  { %4645 = vmatpush2.bf16.msra.mxu0 %v8203_v7  ;;  %v8284_v1 = vcombine.high %v551_v58, %v555_v56  ;;  %v415_v4 = vld [vmem:[#allocation7 + $0x608] sm:$0xff] }
 0x246   :  { %4646 = vmatprep.subr.bf16.mxu0 %v8196_v8  ;;  %v419_v5 = vld [vmem:[#allocation7 + $0x628] sm:$0xff]  ;;  %v8155_v8 = vcombine.low %v423_v53, %v427_v55  ;;  %v260_v53 = vld [vmem:[#allocation7 + $0x130] sm:$0xff] }
 0x247   :  { %4688 = vmatpush2.bf16.msra.mxu1 %v8331_v40  ;;  %v543_v7 = vld [vmem:[#allocation7 + $0xa08] sm:$0xff]  ;;  %v8148_v11 = vcombine.high %v415_v4, %v419_v5 }
 0x248   :  { %4689 = vmatprep.subr.bf16.mxu1 %v8324_v9  ;;  %v547_v40 = vld [vmem:[#allocation7 + $0xa28] sm:$0xff]  ;;  %v8283_v9 = vcombine.low %v551_v58, %v555_v56  ;;  %v384_v58 = vld [vmem:[#allocation7 + $0x510] sm:$0xff] }
 0x249   :  { %4647 = vmatpush2.bf16.msra.mxu0 %v8195_v16  ;;  %v8276_v13 = vcombine.high %v543_v7, %v547_v40  ;;  %v408_v16 = vld [vmem:[#allocation7 + $0x5d0] sm:$0xff] }
 0x24a   :  { %4648 = vmatprep.subr.bf16.mxu0 %v8188_v19  ;;  %v8147_v19 = vcombine.low %v415_v4, %v419_v5  ;;  %v388_v56 = vld [vmem:[#allocation7 + $0x530] sm:$0xff] }
 0x24b   :  { %4690 = vmatpush2.bf16.msra.mxu1 %v8323_v18  ;;  %v412_v18 = vld [vmem:[#allocation7 + $0x5f0] sm:$0xff] }
 0x24c   :  { %4691 = vmatprep.subr.bf16.mxu1 %v8316_v20  ;;  %v8275_v20 = vcombine.low %v543_v7, %v547_v40  ;;  %v8142_v22 = vcombine.high %v408_v16, %v412_v18 }
 0x24d   :  { %4649 = vmatpush2.bf16.msra.mxu0 %v8187_v25  ;;  %v400_v25 = vld [vmem:[#allocation7 + $0x590] sm:$0xff] }
 0x24e   :  { %4650 = vmatprep.subr.bf16.mxu0 %v8180_v27  ;;  %v8013_v27 = vcombine.low %v280_v60, %v284_v14  ;;  %v376_v60 = vld [vmem:[#allocation7 + $0x4d0] sm:$0xff] }
 0x24f   :  { %4692 = vmatpush2.bf16.msra.mxu1 %v8315_v38  ;;  %v404_v38 = vld [vmem:[#allocation7 + $0x5b0] sm:$0xff] }
 0x250   :  { %4693 = vmatprep.subr.bf16.mxu1 %v8308_v28  ;;  %v8141_v28 = vcombine.low %v408_v16, %v412_v18  ;;  %v8134_v32 = vcombine.high %v400_v25, %v404_v38  ;;  %v8133_v30 = vcombine.low %v400_v25, %v404_v38  ;;  %v380_v14 = vld [vmem:[#allocation7 + $0x4f0] sm:$0xff]  ;;  %v8117_v18 = vcombine.low %v384_v58, %v388_v56 }
 0x251   :  { %4651 = vmatpush2.bf16.msra.mxu0 %v8179_v37  ;;  %v8109_v38 = vcombine.low %v376_v60, %v380_v14 }
 0x252   :  { %4652 = vmatprep.subr.bf16.mxu0 %v8172_v12  ;;  %v396_v12 = vld [vmem:[#allocation7 + $0x570] sm:$0xff] }
 0x253   :  { %4694 = vmatpush2.bf16.msra.mxu1 %v8307_v39  ;;  %v392_v39 = vld [vmem:[#allocation7 + $0x550] sm:$0xff] }
 0x254   :  { %4695 = vmatprep.subr.bf16.mxu1 %v8300_v15  ;;  %v8125_v5 = vcombine.low %v392_v39, %v396_v12 }
 0x255   :  { %4653 = vmatpush2.bf16.msra.mxu0 %v8171_v48  ;;  %v7998_v48 = vcombine.high %v264_v34, %v268_v36 }
 0x256   :  { %4654 = vmatprep.subr.bf16.mxu0 %v8164_v49  ;;  %v8126_v49 = vcombine.high %v392_v39, %v396_v12  ;;  %v8101_v39 = vcombine.low %v368_v23, %v372_v24 }
 0x257   :  { %4696 = vmatpush2.bf16.msra.mxu1 %v8299_v59 }
 0x258   :  { %4697 = vmatprep.subr.bf16.mxu1 %v8292_v51  ;;  %v256_v51 = vld [vmem:[#allocation7 + $0x110] sm:$0xff] }
 0x259   :  { %4655 = vmatpush2.bf16.msra.mxu0 %v8163_v61  ;;  %v9778_v61 = vld [vmem:[#allocation2 + $0xc] ss:$24 sps:$4 sm:$0xff]   ;;  %v7990_v7 = vcombine.high %v256_v51, %v260_v53  ;;  %v7989_v16 = vcombine.low %v256_v51, %v260_v53 }
 0x25a   :  { %4656 = vmatprep.subr.bf16.mxu0 %v8156_v63  ;;  %v7997_v63 = vcombine.low %v264_v34, %v268_v36  ;;  %v360_v34 = vld [vmem:[#allocation7 + $0x450] sm:$0xff] }
 0x25b   :  { %4698 = vmatpush2.bf16.msra.mxu1 %v8291_v62  ;;  %v364_v36 = vld [vmem:[#allocation7 + $0x470] sm:$0xff] }
 0x25c   :  { %4699 = vmatprep.subr.bf16.mxu1 %v8284_v1 }
 0x25d   :  { %4657 = vmatpush2.bf16.msra.mxu0 %v8155_v8  ;;  %v8118_v8 = vcombine.high %v384_v58, %v388_v56  ;;  %v348_v58 = vld [vmem:[#allocation7 + $0x3f0] sm:$0xff] }
 0x25e   :  { %4658 = vmatprep.subr.bf16.mxu0 %v8148_v11  ;;  %v252_v11 = vld [vmem:[#allocation7 + $0xf0] sm:$0xff] }
 0x25f   :  { %4700 = vmatpush2.bf16.msra.mxu1 %v8283_v9  ;;  %v248_v9 = vld [vmem:[#allocation7 + $0xd0] sm:$0xff] }
 0x260   :  { %4701 = vmatprep.subr.bf16.mxu1 %v8276_v13  ;;  %v7981_v25 = vcombine.low %v248_v9, %v252_v11  ;;  %v472_v56 = vld [vmem:[#allocation7 + $0x7d0] sm:$0xff] }
 0x261   :  { %4659 = vmatpush2.bf16.msra.mxu0 %v8147_v19  ;;  %v7982_v19 = vcombine.high %v248_v9, %v252_v11  ;;  %v464_v9 = vld [vmem:[#allocation7 + $0x790] sm:$0xff] }
 0x262   :  { %4714 = vmatprep.subr.bf16.mxu0 %v8014_v21  ;;  %v240_v21 = vld [vmem:[#allocation7 + $0x90] sm:$0xff] }
 0x263   :  { %4702 = vmatpush2.bf16.msra.mxu1 %v8275_v20  ;;  %v8110_v20 = vcombine.high %v376_v60, %v380_v14  ;;  %v468_v11 = vld [vmem:[#allocation7 + $0x7b0] sm:$0xff] }
 0x264   :  { %4757 = vmatprep.subr.bf16.mxu1 %v8142_v22  ;;  %v2454_v37 = vpop.f32.mrf.mxu0  ;;  %4661 = vmatmul.mubr.bf16.vlgmr.msra.gmra.mxu0 %v9731_v33  ;;  %v9773_v33 = vld [vmem:[#allocation2 + $0x4] ss:$24 sps:$4 sm:$0xff]  }
 0x265   :  { %4715 = vmatpush1.bf16.msra.mxu0 %v8013_v27  ;;  %4746 = vmatprep.mubr.bf16.mxu0 %v9773_v33  ;;  %v244_v22 = vld [vmem:[#allocation7 + $0xb0] sm:$0xff] }
 0x266   :  { %v2497_v15 = vpop.f32.mrf.mxu1  ;;  %4704 = vmatmul.mubr.bf16.vlgmr.msra.gmra.mxu1 %v9751_v26  ;;  %v2456_v45 = vpop.f32.mrf.mxu0  ;;  %4716 = vmatprep.subr.bf16.mxu0 %v8006_v29  ;;  %v7974_v27 = vcombine.high %v240_v21, %v244_v22  ;;  %v232_v29 = vld [vmem:[#allocation7 + $0x50] sm:$0xff] }
 0x267   :  { %v9771_v42 = vadd.f32 %v2497_v15, %v2454_v37  ;;  %4758 = vmatpush1.bf16.msra.mxu1 %v8141_v28  ;;  %4789 = vmatprep.mubr.bf16.mxu1 %v9778_v61  ;;  %v8102_v28 = vcombine.high %v368_v23, %v372_v24  ;;  %v7973_v37 = vcombine.low %v240_v21, %v244_v22  ;;  %v456_v21 = vld [vmem:[#allocation7 + $0x750] sm:$0xff] }
 0x268   :  { %v2499_v59 = vpop.f32.mrf.mxu1  ;;  %4759 = vmatprep.subr.bf16.mxu1 %v8134_v32  ;;  %v2458_v26 = vpop.f32.mrf.mxu0  ;;  %v236_v32 = vld [vmem:[#allocation7 + $0x70] sm:$0xff]  ;;  %v8094_v15 = vcombine.high %v360_v34, %v364_v36  ;;  %v8197_v24 = vcombine.low %v464_v9, %v468_v11 }
 0x269   :  { %v9776_v55 = vadd.f32 %v2499_v59, %v2456_v45  ;;  %4717 = vmatpush1.bf16.msra.mxu0 %v8005_v41  ;;  %v7966_v12 = vcombine.high %v232_v29, %v236_v32  ;;  %v224_v41 = vld [vmem:[#allocation7 + $0x10] sm:$0xff]  ;;  %v7965_v59 = vcombine.low %v232_v29, %v236_v32 }
 0x26a   :  { %v2501_v62 = vpop.f32.mrf.mxu1  ;;  %v2460_v4 = vpop.f32.mrf.mxu0  ;;  %4718 = vmatprep.subr.bf16.mxu0 %v7998_v48  ;;  %v228_v45 = vld [vmem:[#allocation7 + $0x30] sm:$0xff] }
 0x26b   :  { %v9781_v1 = vadd.f32 %v2501_v62, %v2458_v26  ;;  %4760 = vmatpush1.bf16.msra.mxu1 %v8133_v30  ;;  %v352_v30 = vld [vmem:[#allocation7 + $0x410] sm:$0xff]  ;;  %v7958_v51 = vcombine.high %v224_v41, %v228_v45 }
 0x26c   :  { %v2503_v40 = vpop.f32.mrf.mxu1  ;;  %4761 = vmatprep.subr.bf16.mxu1 %v8126_v49  ;;  %v356_v48 = vld [vmem:[#allocation7 + $0x430] sm:$0xff]  ;;  %v8093_v49 = vcombine.low %v360_v34, %v364_v36 }
 0x26d   :  { %v9783_v13 = vadd.f32 %v2503_v40, %v2460_v4  ;;  %4719 = vmatpush1.bf16.msra.mxu0 %v7997_v63  ;;  %v8086_v53 = vcombine.high %v352_v30, %v356_v48  ;;  %v344_v26 = vld [vmem:[#allocation7 + $0x3d0] sm:$0xff]  ;;  %v7957_v63 = vcombine.low %v224_v41, %v228_v45  ;;  %v8085_v4 = vcombine.low %v352_v30, %v356_v48 }
 0x26e   :  { %4720 = vmatprep.subr.bf16.mxu0 %v7990_v7  ;;  %v476_v62 = vld [vmem:[#allocation7 + $0x7f0] sm:$0xff]  ;;  %v8077_v60 = vcombine.low %v344_v26, %v348_v58 }
 0x26f   :  { %4762 = vmatpush1.bf16.msra.mxu1 %v8125_v5  ;;  %v8078_v5 = vcombine.high %v344_v26, %v348_v58  ;;  %v8206_v7 = vcombine.high %v472_v56, %v476_v62  ;;  %v336_v40 = vld [vmem:[#allocation7 + $0x390] sm:$0xff]  ;;  %v8205_v14 = vcombine.low %v472_v56, %v476_v62 }
 0x270   :  { %4763 = vmatprep.subr.bf16.mxu1 %v8118_v8  ;;  %v340_v8 = vld [vmem:[#allocation7 + $0x3b0] sm:$0xff] }
 0x271   :  { %4721 = vmatpush1.bf16.msra.mxu0 %v7989_v16  ;;  %v8070_v16 = vcombine.high %v336_v40, %v340_v8  ;;  %v460_v22 = vld [vmem:[#allocation7 + $0x770] sm:$0xff]  ;;  %v8069_v23 = vcombine.low %v336_v40, %v340_v8 }
 0x272   :  { %4722 = vmatprep.subr.bf16.mxu0 %v7982_v19  ;;  %v328_v19 = vld [vmem:[#allocation7 + $0x350] sm:$0xff]  ;;  %v8189_v36 = vcombine.low %v456_v21, %v460_v22 }
 0x273   :  { %4764 = vmatpush1.bf16.msra.mxu1 %v8117_v18  ;;  %v8198_v18 = vcombine.high %v464_v9, %v468_v11  ;;  %v448_v29 = vld [vmem:[#allocation7 + $0x710] sm:$0xff] }
 0x274   :  { %4765 = vmatprep.subr.bf16.mxu1 %v8110_v20  ;;  %v332_v20 = vld [vmem:[#allocation7 + $0x370] sm:$0xff] }
 0x275   :  { %4723 = vmatpush1.bf16.msra.mxu0 %v7981_v25  ;;  %v8062_v25 = vcombine.high %v328_v19, %v332_v20  ;;  %v452_v32 = vld [vmem:[#allocation7 + $0x730] sm:$0xff]  ;;  %v8061_v34 = vcombine.low %v328_v19, %v332_v20 }
 0x276   :  { %4724 = vmatprep.subr.bf16.mxu0 %v7974_v27  ;;  %v320_v27 = vld [vmem:[#allocation7 + $0x310] sm:$0xff]  ;;  %v8181_v48 = vcombine.low %v448_v29, %v452_v32 }
 0x277   :  { %4766 = vmatpush1.bf16.msra.mxu1 %v8109_v38  ;;  %v8190_v38 = vcombine.high %v456_v21, %v460_v22  ;;  %v440_v41 = vld [vmem:[#allocation7 + $0x6d0] sm:$0xff] }
 0x278   :  { %4767 = vmatprep.subr.bf16.mxu1 %v8102_v28  ;;  %v324_v28 = vld [vmem:[#allocation7 + $0x330] sm:$0xff] }
 0x279   :  { %4725 = vmatpush1.bf16.msra.mxu0 %v7973_v37  ;;  %v8054_v37 = vcombine.high %v320_v27, %v324_v28  ;;  %v444_v45 = vld [vmem:[#allocation7 + $0x6f0] sm:$0xff]  ;;  %v8053_v30 = vcombine.low %v320_v27, %v324_v28  ;;  %v281_v27 = vld [vmem:[#allocation7 + $0x1d8] sm:$0xff] }
 0x27a   :  { %4726 = vmatprep.subr.bf16.mxu0 %v7966_v12  ;;  %v312_v12 = vld [vmem:[#allocation7 + $0x2d0] sm:$0xff]  ;;  %v8173_v62 = vcombine.low %v440_v41, %v444_v45  ;;  %v285_v28 = vld [vmem:[#allocation7 + $0x1f8] sm:$0xff] }
 0x27b   :  { %4768 = vmatpush1.bf16.msra.mxu1 %v8101_v39  ;;  %v8182_v39 = vcombine.high %v448_v29, %v452_v32  ;;  %v432_v26 = vld [vmem:[#allocation7 + $0x690] sm:$0xff] }
 0x27c   :  { %4769 = vmatprep.subr.bf16.mxu1 %v8094_v15  ;;  %v316_v15 = vld [vmem:[#allocation7 + $0x2f0] sm:$0xff] }
 0x27d   :  { %4727 = vmatpush1.bf16.msra.mxu0 %v7965_v59  ;;  %v8046_v59 = vcombine.high %v312_v12, %v316_v15  ;;  %v436_v58 = vld [vmem:[#allocation7 + $0x6b0] sm:$0xff]  ;;  %v8045_v56 = vcombine.low %v312_v12, %v316_v15  ;;  %v273_v12 = vld [vmem:[#allocation7 + $0x198] sm:$0xff] }
 0x27e   :  { %4728 = vmatprep.subr.bf16.mxu0 %v7958_v51  ;;  %v304_v51 = vld [vmem:[#allocation7 + $0x290] sm:$0xff]  ;;  %v8165_v11 = vcombine.low %v432_v26, %v436_v58  ;;  %v277_v15 = vld [vmem:[#allocation7 + $0x1b8] sm:$0xff] }
 0x27f   :  { %4770 = vmatpush1.bf16.msra.mxu1 %v8093_v49  ;;  %v8174_v49 = vcombine.high %v440_v41, %v444_v45  ;;  %v424_v40 = vld [vmem:[#allocation7 + $0x650] sm:$0xff]  ;;  %v8015_v45 = vcombine.low %v281_v27, %v285_v28 }
 0x280   :  { %4771 = vmatprep.subr.bf16.mxu1 %v8086_v53  ;;  %v308_v53 = vld [vmem:[#allocation7 + $0x2b0] sm:$0xff] }
 0x281   :  { %4729 = vmatpush1.bf16.msra.mxu0 %v7957_v63  ;;  %v8038_v63 = vcombine.high %v304_v51, %v308_v53  ;;  %v428_v8 = vld [vmem:[#allocation7 + $0x670] sm:$0xff]  ;;  %v8037_v9 = vcombine.low %v304_v51, %v308_v53 }
 0x282   :  { %4730 = vmatprep.subr.bf16.mxu0 %v8078_v5  ;;  %v296_v5 = vld [vmem:[#allocation7 + $0x250] sm:$0xff]  ;;  %v8157_v22 = vcombine.low %v424_v40, %v428_v8 }
 0x283   :  { %4772 = vmatpush1.bf16.msra.mxu1 %v8085_v4  ;;  %v8166_v4 = vcombine.high %v432_v26, %v436_v58  ;;  %v416_v19 = vld [vmem:[#allocation7 + $0x610] sm:$0xff]  ;;  %v265_v26 = vld [vmem:[#allocation7 + $0x158] sm:$0xff] }
 0x284   :  { %4773 = vmatprep.subr.bf16.mxu1 %v8206_v7  ;;  %v300_v7 = vld [vmem:[#allocation7 + $0x270] sm:$0xff]  ;;  %v269_v58 = vld [vmem:[#allocation7 + $0x178] sm:$0xff] }
 0x285   :  { %4731 = vmatpush2.bf16.msra.mxu0 %v8077_v60  ;;  %v8030_v60 = vcombine.high %v296_v5, %v300_v7  ;;  %v420_v20 = vld [vmem:[#allocation7 + $0x630] sm:$0xff]  ;;  %v8029_v21 = vcombine.low %v296_v5, %v300_v7  ;;  %v8007_v7 = vcombine.low %v273_v12, %v277_v15 }
 0x286   :  { %4732 = vmatprep.subr.bf16.mxu0 %v8070_v16  ;;  %v288_v16 = vld [vmem:[#allocation7 + $0x210] sm:$0xff]  ;;  %v8149_v32 = vcombine.low %v416_v19, %v420_v20 }
 0x287   :  { %4774 = vmatpush2.bf16.msra.mxu1 %v8205_v14  ;;  %v8158_v14 = vcombine.high %v424_v40, %v428_v8  ;;  %v9785_v53 = vld [vmem:[#allocation2] ss:$24 sps:$4 sm:$0xff]  }
 0x288   :  { %4775 = vmatprep.subr.bf16.mxu1 %v8198_v18  ;;  %v292_v18 = vld [vmem:[#allocation7 + $0x230] sm:$0xff] }
 0x289   :  { %4733 = vmatpush2.bf16.msra.mxu0 %v8069_v23  ;;  %v8022_v23 = vcombine.high %v288_v16, %v292_v18  ;;  %v8021_v29 = vcombine.low %v288_v16, %v292_v18  ;;  %v257_v18 = vld [vmem:[#allocation7 + $0x118] sm:$0xff] }
 0x28a   :  { %4734 = vmatprep.subr.bf16.mxu0 %v8062_v25  ;;  %v536_v25 = vld [vmem:[#allocation7 + $0x9d0] sm:$0xff] }
 0x28b   :  { %4776 = vmatpush2.bf16.msra.mxu1 %v8197_v24  ;;  %v8150_v24 = vcombine.high %v416_v19, %v420_v20  ;;  %v261_v19 = vld [vmem:[#allocation7 + $0x138] sm:$0xff] }
 0x28c   :  { %4777 = vmatprep.subr.bf16.mxu1 %v8190_v38  ;;  %v540_v38 = vld [vmem:[#allocation7 + $0x9f0] sm:$0xff] }
 0x28d   :  { %4735 = vmatpush2.bf16.msra.mxu0 %v8061_v34  ;;  %v8270_v34 = vcombine.high %v536_v25, %v540_v38  ;;  %v8269_v41 = vcombine.low %v536_v25, %v540_v38  ;;  %v7992_v38 = vcombine.high %v257_v18, %v261_v19 }
 0x28e   :  { %4736 = vmatprep.subr.bf16.mxu0 %v8054_v37  ;;  %v528_v37 = vld [vmem:[#allocation7 + $0x990] sm:$0xff] }
 0x28f   :  { %4778 = vmatpush2.bf16.msra.mxu1 %v8189_v36  ;;  %v8016_v36 = vcombine.high %v281_v27, %v285_v28  ;;  %v504_v27 = vld [vmem:[#allocation7 + $0x8d0] sm:$0xff] }
 0x290   :  { %4779 = vmatprep.subr.bf16.mxu1 %v8182_v39  ;;  %v532_v39 = vld [vmem:[#allocation7 + $0x9b0] sm:$0xff] }
 0x291   :  { %4737 = vmatpush2.bf16.msra.mxu0 %v8053_v30  ;;  %v8262_v30 = vcombine.high %v528_v37, %v532_v39  ;;  %v508_v28 = vld [vmem:[#allocation7 + $0x8f0] sm:$0xff] }
 0x292   :  { %4738 = vmatprep.subr.bf16.mxu0 %v8046_v59  ;;  %v520_v59 = vld [vmem:[#allocation7 + $0x950] sm:$0xff] }
 0x293   :  { %4780 = vmatpush2.bf16.msra.mxu1 %v8181_v48  ;;  %v8008_v48 = vcombine.high %v273_v12, %v277_v15  ;;  %v241_v12 = vld [vmem:[#allocation7 + $0x98] sm:$0xff] }
 0x294   :  { %4781 = vmatprep.subr.bf16.mxu1 %v8174_v49  ;;  %v524_v49 = vld [vmem:[#allocation7 + $0x970] sm:$0xff]  ;;  %v245_v15 = vld [vmem:[#allocation7 + $0xb8] sm:$0xff] }
 0x295   :  { %4739 = vmatpush2.bf16.msra.mxu0 %v8045_v56  ;;  %v8254_v40 = vcombine.high %v520_v59, %v524_v49 }
 0x296   :  { %4740 = vmatprep.subr.bf16.mxu0 %v8038_v63  ;;  %v9789_v63 = vld [vmem:[#allocation2 + $0x8] ss:$24 sps:$4 sm:$0xff]  }
 0x297   :  { %4782 = vmatpush2.bf16.msra.mxu1 %v8173_v62 }
 0x298   :  { %4783 = vmatprep.subr.bf16.mxu1 %v8166_v4  ;;  %v8261_v4 = vcombine.low %v528_v37, %v532_v39  ;;  %v496_v37 = vld [vmem:[#allocation7 + $0x890] sm:$0xff] }
 0x299   :  { %4741 = vmatpush2.bf16.msra.mxu0 %v8037_v9  ;;  %v500_v39 = vld [vmem:[#allocation7 + $0x8b0] sm:$0xff] }
 0x29a   :  { %4742 = vmatprep.subr.bf16.mxu0 %v8030_v60  ;;  %v516_v60 = vld [vmem:[#allocation7 + $0x930] sm:$0xff] }
 0x29b   :  { %4784 = vmatpush2.bf16.msra.mxu1 %v8165_v11  ;;  %v8000_v11 = vcombine.high %v265_v26, %v269_v58 }
 0x29c   :  { %4785 = vmatprep.subr.bf16.mxu1 %v8158_v14  ;;  %v9798_v14 = vld [vmem:[#allocation2 + $0x14] ss:$24 sps:$4 sm:$0xff]  }
 0x29d   :  { %4743 = vmatpush2.bf16.msra.mxu0 %v8029_v21  ;;  %v8253_v21 = vcombine.low %v520_v59, %v524_v49  ;;  %v488_v59 = vld [vmem:[#allocation7 + $0x850] sm:$0xff] }
 0x29e   :  { %4744 = vmatprep.subr.bf16.mxu0 %v8022_v23  ;;  %v7999_v23 = vcombine.low %v265_v26, %v269_v58  ;;  %v492_v49 = vld [vmem:[#allocation7 + $0x870] sm:$0xff]  ;;  %v237_v26 = vld [vmem:[#allocation7 + $0x78] sm:$0xff]  ;;  %v8229_v58 = vcombine.low %v496_v37, %v500_v39 }
 0x29f   :  { %4786 = vmatpush2.bf16.msra.mxu1 %v8157_v22 }
 0x2a0   :  { %4787 = vmatprep.subr.bf16.mxu1 %v8150_v24 }
 0x2a1   :  { %4745 = vmatpush2.bf16.msra.mxu0 %v8021_v29  ;;  %v249_v29 = vld [vmem:[#allocation7 + $0xd8] sm:$0xff] }
 0x2a2   :  { %4800 = vmatprep.subr.bf16.mxu0 %v8270_v34 }
 0x2a3   :  { %4788 = vmatpush2.bf16.msra.mxu1 %v8149_v32  ;;  %v253_v32 = vld [vmem:[#allocation7 + $0xf8] sm:$0xff] }
 0x2a4   :  { %4843 = vmatprep.subr.bf16.mxu1 %v8016_v36  ;;  %v4490_v51 = vpop.f32.mrf.mxu0  ;;  %4747 = vmatmul.mubr.bf16.vlgmr.msra.gmra.mxu0 %v9785_v53  ;;  %v7984_v36 = vcombine.high %v249_v29, %v253_v32 }
 0x2a5   :  { %v4491_v56 = vadd.f32 %v4490_v51, %v9719_v43  ;;  %4801 = vmatpush1.bf16.msra.mxu0 %v8269_v41  ;;  %v512_v43 = vld [vmem:[#allocation7 + $0x910] sm:$0xff]  ;;  %4832 = vmatprep.mubr.bf16.mxu0 %v9798_v14  ;;  %v8237_v41 = vcombine.low %v504_v27, %v508_v28  ;;  %v233_v51 = vld [vmem:[#allocation7 + $0x58] sm:$0xff] }
 0x2a6   :  { %v4533_v62 = vpop.f32.mrf.mxu1  ;;  %4790 = vmatmul.mubr.bf16.vlgmr.msra.gmra.mxu1 %v9789_v63  ;;  %v9792_v5 = vpop.f32.mrf.mxu0  ;;  %4802 = vmatprep.subr.bf16.mxu0 %v8262_v30  ;;  %v8246_v24 = vcombine.high %v512_v43, %v516_v60  ;;  %v8245_v34 = vcombine.low %v512_v43, %v516_v60  ;;  %v8230_v30 = vcombine.high %v496_v37, %v500_v39  ;;  %v229_v43 = vld [vmem:[#allocation7 + $0x38] sm:$0xff] }
 0x2a7   :  { %4844 = vmatpush1.bf16.msra.mxu1 %v8015_v45  ;;  %v9794_v8 = vadd.f32 %v4533_v62, %v4491_v56  ;;  %4875 = vmatprep.mubr.bf16.mxu1 %v9773_v33  ;;  %v8238_v33 = vcombine.high %v504_v27, %v508_v28  ;;  %v7983_v45 = vcombine.low %v249_v29, %v253_v32  ;;  %v592_v29 = vld [vmem:[#allocation7 + $0xb90] sm:$0xff] }
 0x2a8   :  { %v9796_v9 = vpop.f32.mrf.mxu1  ;;  %4845 = vmatprep.subr.bf16.mxu1 %v8008_v48  ;;  %v4494_v16 = vpop.f32.mrf.mxu0  ;;  %v7976_v48 = vcombine.high %v241_v12, %v245_v15  ;;  %v7975_v56 = vcombine.low %v241_v12, %v245_v15  ;;  %v8222_v62 = vcombine.high %v488_v59, %v492_v49  ;;  %v8221_v60 = vcombine.low %v488_v59, %v492_v49  ;;  %v596_v32 = vld [vmem:[#allocation7 + $0xbb0] sm:$0xff] }
 0x2a9   :  { %v4495_v20 = vadd.f32 %v4494_v16, %v9727_v52  ;;  %4803 = vmatpush1.bf16.msra.mxu0 %v8261_v4  ;;  %v7991_v52 = vcombine.low %v257_v18, %v261_v19  ;;  %v7968_v4 = vcombine.high %v233_v51, %v237_v26  ;;  %v7967_v16 = vcombine.low %v233_v51, %v237_v26  ;;  %v584_v12 = vld [vmem:[#allocation7 + $0xb50] sm:$0xff] }
 0x2aa   :  { %v4537_v22 = vpop.f32.mrf.mxu1  ;;  %4804 = vmatprep.subr.bf16.mxu0 %v8254_v40  ;;  %v484_v40 = vld [vmem:[#allocation7 + $0x830] sm:$0xff]  ;;  %v8326_v37 = vcombine.high %v592_v29, %v596_v32 }
 0x2ab   :  { %4846 = vmatpush1.bf16.msra.mxu1 %v8007_v7  ;;  %v9803_v25 = vadd.f32 %v4537_v22, %v4495_v20  ;;  %v480_v7 = vld [vmem:[#allocation7 + $0x810] sm:$0xff]  ;;  %v345_v22 = vld [vmem:[#allocation7 + $0x3d8] sm:$0xff] }
 0x2ac   :  { %4847 = vmatprep.subr.bf16.mxu1 %v8000_v11  ;;  %v225_v11 = vld [vmem:[#allocation7 + $0x18] sm:$0xff]  ;;  %v8214_v18 = vcombine.high %v480_v7, %v484_v40  ;;  %v600_v20 = vld [vmem:[#allocation7 + $0xbd0] sm:$0xff] }
 0x2ad   :  { %4805 = vmatpush1.bf16.msra.mxu0 %v8253_v21  ;;  %v7960_v19 = vcombine.high %v225_v11, %v229_v43  ;;  %v604_v21 = vld [vmem:[#allocation7 + $0xbf0] sm:$0xff] }
 0x2ae   :  { %4806 = vmatprep.subr.bf16.mxu0 %v8246_v24  ;;  %v8213_v24 = vcombine.low %v480_v7, %v484_v40  ;;  %v8334_v27 = vcombine.high %v600_v20, %v604_v21  ;;  %v588_v15 = vld [vmem:[#allocation7 + $0xb70] sm:$0xff] }
 0x2af   :  { %4848 = vmatpush1.bf16.msra.mxu1 %v7999_v23  ;;  %v349_v23 = vld [vmem:[#allocation7 + $0x3f8] sm:$0xff]  ;;  %v8318_v59 = vcombine.high %v584_v12, %v588_v15  ;;  %v576_v51 = vld [vmem:[#allocation7 + $0xb10] sm:$0xff] }
 0x2b0   :  { %4849 = vmatprep.subr.bf16.mxu1 %v7992_v38  ;;  %v7959_v38 = vcombine.low %v225_v11, %v229_v43  ;;  %v8080_v28 = vcombine.high %v345_v22, %v349_v23  ;;  %v580_v26 = vld [vmem:[#allocation7 + $0xb30] sm:$0xff] }
 0x2b1   :  { %4807 = vmatpush1.bf16.msra.mxu0 %v8245_v34  ;;  %v337_v34 = vld [vmem:[#allocation7 + $0x398] sm:$0xff]  ;;  %v8310_v7 = vcombine.high %v576_v51, %v580_v26  ;;  %v568_v11 = vld [vmem:[#allocation7 + $0xad0] sm:$0xff] }
 0x2b2   :  { %4808 = vmatprep.subr.bf16.mxu0 %v8238_v33  ;;  %v8333_v33 = vcombine.low %v600_v20, %v604_v21  ;;  %v572_v43 = vld [vmem:[#allocation7 + $0xaf0] sm:$0xff] }
 0x2b3   :  { %4850 = vmatpush1.bf16.msra.mxu1 %v7991_v52  ;;  %v341_v52 = vld [vmem:[#allocation7 + $0x3b8] sm:$0xff]  ;;  %v8302_v20 = vcombine.high %v568_v11, %v572_v43 }
 0x2b4   :  { %4851 = vmatprep.subr.bf16.mxu1 %v7984_v36  ;;  %v8079_v36 = vcombine.low %v345_v22, %v349_v23  ;;  %v8072_v39 = vcombine.high %v337_v34, %v341_v52  ;;  %v560_v22 = vld [vmem:[#allocation7 + $0xa90] sm:$0xff] }
 0x2b5   :  { %4809 = vmatpush1.bf16.msra.mxu0 %v8237_v41  ;;  %v329_v41 = vld [vmem:[#allocation7 + $0x358] sm:$0xff]  ;;  %v564_v23 = vld [vmem:[#allocation7 + $0xab0] sm:$0xff] }
 0x2b6   :  { %4810 = vmatprep.subr.bf16.mxu0 %v8230_v30  ;;  %v8325_v30 = vcombine.low %v592_v29, %v596_v32  ;;  %v8294_v29 = vcombine.high %v560_v22, %v564_v23 }
 0x2b7   :  { %4852 = vmatpush1.bf16.msra.mxu1 %v7983_v45  ;;  %v333_v45 = vld [vmem:[#allocation7 + $0x378] sm:$0xff] }
 0x2b8   :  { %4853 = vmatprep.subr.bf16.mxu1 %v7976_v48  ;;  %v8071_v48 = vcombine.low %v337_v34, %v341_v52  ;;  %v8064_v49 = vcombine.high %v329_v41, %v333_v45  ;;  %v552_v34 = vld [vmem:[#allocation7 + $0xa50] sm:$0xff] }
 0x2b9   :  { %4811 = vmatpush1.bf16.msra.mxu0 %v8229_v58  ;;  %v321_v58 = vld [vmem:[#allocation7 + $0x318] sm:$0xff]  ;;  %v556_v52 = vld [vmem:[#allocation7 + $0xa70] sm:$0xff] }
 0x2ba   :  { %4812 = vmatprep.subr.bf16.mxu0 %v8222_v62  ;;  %v8317_v62 = vcombine.low %v584_v12, %v588_v15  ;;  %v8286_v12 = vcombine.high %v552_v34, %v556_v52 }
 0x2bb   :  { %4854 = vmatpush1.bf16.msra.mxu1 %v7975_v56  ;;  %v325_v56 = vld [vmem:[#allocation7 + $0x338] sm:$0xff] }
 0x2bc   :  { %4855 = vmatprep.subr.bf16.mxu1 %v7968_v4  ;;  %v8063_v4 = vcombine.low %v329_v41, %v333_v45  ;;  %v8056_v40 = vcombine.high %v321_v58, %v325_v56  ;;  %v544_v41 = vld [vmem:[#allocation7 + $0xa10] sm:$0xff] }
 0x2bd   :  { %4813 = vmatpush1.bf16.msra.mxu0 %v8221_v60  ;;  %v313_v60 = vld [vmem:[#allocation7 + $0x2d8] sm:$0xff]  ;;  %v548_v45 = vld [vmem:[#allocation7 + $0xa30] sm:$0xff] }
 0x2be   :  { %4814 = vmatprep.subr.bf16.mxu0 %v8214_v18  ;;  %v8309_v18 = vcombine.low %v576_v51, %v580_v26  ;;  %v8278_v26 = vcombine.high %v544_v41, %v548_v45 }
 0x2bf   :  { %4856 = vmatpush1.bf16.msra.mxu1 %v7967_v16  ;;  %v317_v16 = vld [vmem:[#allocation7 + $0x2f8] sm:$0xff] }
 0x2c0   :  { %4857 = vmatprep.subr.bf16.mxu1 %v7960_v19  ;;  %v8055_v19 = vcombine.low %v321_v58, %v325_v56  ;;  %v8048_v21 = vcombine.high %v313_v60, %v317_v16  ;;  %v409_v56 = vld [vmem:[#allocation7 + $0x5d8] sm:$0xff] }
 0x2c1   :  { %4815 = vmatpush1.bf16.msra.mxu0 %v8213_v24  ;;  %v305_v24 = vld [vmem:[#allocation7 + $0x298] sm:$0xff] }
 0x2c2   :  { %4816 = vmatprep.subr.bf16.mxu0 %v8334_v27  ;;  %v8301_v27 = vcombine.low %v568_v11, %v572_v43 }
 0x2c3   :  { %4858 = vmatpush1.bf16.msra.mxu1 %v7959_v38  ;;  %v309_v38 = vld [vmem:[#allocation7 + $0x2b8] sm:$0xff] }
 0x2c4   :  { %4859 = vmatprep.subr.bf16.mxu1 %v8080_v28  ;;  %v8047_v28 = vcombine.low %v313_v60, %v317_v16  ;;  %v8040_v32 = vcombine.high %v305_v24, %v309_v38 }
 0x2c5   :  { %4817 = vmatpush2.bf16.msra.mxu0 %v8333_v33  ;;  %v297_v33 = vld [vmem:[#allocation7 + $0x258] sm:$0xff] }
 0x2c6   :  { %4818 = vmatprep.subr.bf16.mxu0 %v8326_v37  ;;  %v8293_v37 = vcombine.low %v560_v22, %v564_v23 }
 0x2c7   :  { %4860 = vmatpush2.bf16.msra.mxu1 %v8079_v36  ;;  %v301_v36 = vld [vmem:[#allocation7 + $0x278] sm:$0xff] }
 0x2c8   :  { %4861 = vmatprep.subr.bf16.mxu1 %v8072_v39  ;;  %v8039_v39 = vcombine.low %v305_v24, %v309_v38  ;;  %v8032_v15 = vcombine.high %v297_v33, %v301_v36  ;;  %v8031_v51 = vcombine.low %v297_v33, %v301_v36  ;;  %v9810_v24 = vpop.f32.mrf.mxu0  ;;  %v9812_v38 = vld [vmem:[#allocation10] sm:$0xff]  ;;  %v521_v36 = vld [vmem:[#allocation7 + $0x958] sm:$0xff] }
 0x2c9   :  { %4819 = vmatpush2.bf16.msra.mxu0 %v8325_v30  ;;  %v289_v30 = vld [vmem:[#allocation7 + $0x218] sm:$0xff] }
 0x2ca   :  { %4820 = vmatprep.subr.bf16.mxu0 %v8318_v59  ;;  %v8285_v59 = vcombine.low %v552_v34, %v556_v52  ;;  %v397_v34 = vld [vmem:[#allocation7 + $0x578] sm:$0xff] }
 0x2cb   :  { %4862 = vmatpush2.bf16.msra.mxu1 %v8071_v48  ;;  %v293_v48 = vld [vmem:[#allocation7 + $0x238] sm:$0xff] }
 0x2cc   :  { %4863 = vmatprep.subr.bf16.mxu1 %v8064_v49  ;;  %v4974_v49 = vlaneseq  ;;  %v8024_v58 = vcombine.high %v289_v30, %v293_v48  ;;  %v8023_v43 = vcombine.low %v289_v30, %v293_v48  ;;  %v9814_v33 = vld [vmem:[#allocation2 + $0x10] ss:$24 sps:$4 sm:$0xff]  }
 0x2cd   :  { %4821 = vmatpush2.bf16.msra.mxu0 %v8317_v62  ;;  %v413_v62 = vld [vmem:[#allocation7 + $0x5f8] sm:$0xff] }
 0x2ce   :  { %4822 = vmatprep.subr.bf16.mxu0 %v8310_v7  ;;  %v541_v7 = vld [vmem:[#allocation7 + $0x9f8] sm:$0xff]  ;;  %v9805_v11 = vshrl.u32 %v4974_v49, 7  ;;  %v8144_v60 = vcombine.high %v409_v56, %v413_v62  ;;  %v8143_v23 = vcombine.low %v409_v56, %v413_v62 }
 0x2cf   :  { %4864 = vmatpush2.bf16.msra.mxu1 %v8063_v4  ;;  %v537_v4 = vld [vmem:[#allocation7 + $0x9d8] sm:$0xff] }
 0x2d0   :  { %4865 = vmatprep.subr.bf16.mxu1 %v8056_v40  ;;  %v8277_v40 = vcombine.low %v544_v41, %v548_v45  ;;  %v8272_v16 = vcombine.high %v537_v4, %v541_v7  ;;  %v9808_v22 = vsub.s32 0, %v9805_v11  ;;  %v389_v49 = vld [vmem:[#allocation7 + $0x538] sm:$0xff] }
 0x2d1   :  { %4823 = vmatpush2.bf16.msra.mxu0 %v8309_v18  ;;  %v401_v18 = vld [vmem:[#allocation7 + $0x598] sm:$0xff] }
 0x2d2   :  { %4824 = vmatprep.subr.bf16.mxu0 %v8302_v20  ;;  %v529_v20 = vld [vmem:[#allocation7 + $0x998] sm:$0xff] }
 0x2d3   :  { %4866 = vmatpush2.bf16.msra.mxu1 %v8055_v19  ;;  %v405_v19 = vld [vmem:[#allocation7 + $0x5b8] sm:$0xff] }
 0x2d4   :  { %4867 = vmatprep.subr.bf16.mxu1 %v8048_v21  ;;  %v533_v21 = vld [vmem:[#allocation7 + $0x9b8] sm:$0xff] }
 0x2d5   :  { %4825 = vmatpush2.bf16.msra.mxu0 %v8301_v27  ;;  %v8271_v27 = vcombine.low %v537_v4, %v541_v7  ;;  %v8263_v45 = vcombine.low %v529_v20, %v533_v21 }
 0x2d6   :  { %4826 = vmatprep.subr.bf16.mxu0 %v8294_v29  ;;  %v8264_v29 = vcombine.high %v529_v20, %v533_v21 }
 0x2d7   :  { %4868 = vmatpush2.bf16.msra.mxu1 %v8047_v28  ;;  %v8136_v28 = vcombine.high %v401_v18, %v405_v19 }
 0x2d8   :  { %4869 = vmatprep.subr.bf16.mxu1 %v8040_v32  ;;  %v393_v32 = vld [vmem:[#allocation7 + $0x558] sm:$0xff] }
 0x2d9   :  { %4827 = vmatpush2.bf16.msra.mxu0 %v8293_v37  ;;  %v525_v37 = vld [vmem:[#allocation7 + $0x978] sm:$0xff]  ;;  %v8128_v30 = vcombine.high %v393_v32, %v397_v34  ;;  %v8127_v56 = vcombine.low %v393_v32, %v397_v34 }
 0x2da   :  { %4828 = vmatprep.subr.bf16.mxu0 %v8286_v12  ;;  %v4977_v12 = vrot.slane %v9812_v38, %v9808_v22  ;;  %v8256_v48 = vcombine.high %v521_v36, %v525_v37  ;;  %v8255_v62 = vcombine.low %v521_v36, %v525_v37  ;;  %v501_v32 = vld [vmem:[#allocation7 + $0x8b8] sm:$0xff] }
 0x2db   :  { %4870 = vmatpush2.bf16.msra.mxu1 %v8039_v39 }
 0x2dc   :  { %4871 = vmatprep.subr.bf16.mxu1 %v8032_v15  ;;  %v8135_v15 = vcombine.low %v401_v18, %v405_v19 }
 0x2dd   :  { %4829 = vmatpush2.bf16.msra.mxu0 %v8285_v59  ;;  %v385_v59 = vld [vmem:[#allocation7 + $0x518] sm:$0xff] }
 0x2de   :  { %4830 = vmatprep.subr.bf16.mxu0 %v8278_v26  ;;  %v517_v26 = vld [vmem:[#allocation7 + $0x938] sm:$0xff]  ;;  %v8120_v4 = vcombine.high %v385_v59, %v389_v49 }
 0x2df   :  { %4872 = vmatpush2.bf16.msra.mxu1 %v8031_v51  ;;  %v513_v51 = vld [vmem:[#allocation7 + $0x918] sm:$0xff] }
 0x2e0   :  { %4873 = vmatprep.subr.bf16.mxu1 %v8024_v58 }
 0x2e1   :  { %4831 = vmatpush2.bf16.msra.mxu0 %v8277_v40  ;;  %v8248_v40 = vcombine.high %v513_v51, %v517_v26 }
 0x2e2   :  { %4886 = vmatprep.subr.bf16.mxu0 %v8144_v60  ;;  %v381_v60 = vld [vmem:[#allocation7 + $0x4f8] sm:$0xff] }
 0x2e3   :  { %4874 = vmatpush2.bf16.msra.mxu1 %v8023_v43  ;;  %v377_v43 = vld [vmem:[#allocation7 + $0x4d8] sm:$0xff] }
 0x2e4   :  { %4929 = vmatprep.subr.bf16.mxu1 %v8272_v16  ;;  %v4576_v52 = vpop.f32.mrf.mxu0  ;;  %4833 = vmatmul.mubr.bf16.vlgmr.msra.gmra.mxu0 %v9814_v33  ;;  %v509_v16 = vld [vmem:[#allocation7 + $0x8f8] sm:$0xff]  ;;  %v8112_v20 = vcombine.high %v377_v43, %v381_v60  ;;  %v8111_v34 = vcombine.low %v377_v43, %v381_v60 }
 0x2e5   :  { %v4577_v39 = vadd.f32 %v4576_v52, %v9794_v8  ;;  %4887 = vmatpush1.bf16.msra.mxu0 %v8143_v23  ;;  %4918 = vmatprep.mubr.bf16.mxu0 %v9778_v61  ;;  %v505_v61 = vld [vmem:[#allocation7 + $0x8d8] sm:$0xff] }
 0x2e6   :  { %4876 = vmatmul.mubr.bf16.vlgmr.msra.gmra.mxu1 %v9785_v53  ;;  %v9821_v41 = vpop.f32.mrf.mxu0  ;;  %4888 = vmatprep.subr.bf16.mxu0 %v8136_v28  ;;  %v8240_v23 = vcombine.high %v505_v61, %v509_v16  ;;  %v373_v28 = vld [vmem:[#allocation7 + $0x4b8] sm:$0xff]  ;;  %v8239_v52 = vcombine.low %v505_v61, %v509_v16 }
 0x2e7   :  { %4930 = vmatpush1.bf16.msra.mxu1 %v8271_v27  ;;  %4961 = vmatprep.mubr.bf16.mxu1 %v9798_v14  ;;  %v5014_v53 = vadd.f32 %v4977_v12, %v4577_v39  ;;  %v8119_v14 = vcombine.low %v385_v59, %v389_v49  ;;  %v369_v27 = vld [vmem:[#allocation7 + $0x498] sm:$0xff] }
 0x2e8   :  { %4931 = vmatprep.subr.bf16.mxu1 %v8264_v29  ;;  %v4580_v8 = vpop.f32.mrf.mxu0  ;;  %v497_v29 = vld [vmem:[#allocation7 + $0x898] sm:$0xff]  ;;  %v8104_v36 = vcombine.high %v369_v27, %v373_v28 }
 0x2e9   :  { %v4581_v58 = vadd.f32 %v4580_v8, %v9803_v25  ;;  %4889 = vmatpush1.bf16.msra.mxu0 %v8135_v15  ;;  %v5030_v18 = vmax.f32 %v5014_v53, 0.0  ;;  %v8247_v25 = vcombine.low %v513_v51, %v517_v26  ;;  %v8232_v37 = vcombine.high %v497_v29, %v501_v32  ;;  %v361_v39 = vld [vmem:[#allocation7 + $0x458] sm:$0xff] }
 0x2ea   :  { %4890 = vmatprep.subr.bf16.mxu0 %v8128_v30  ;;  %v489_v15 = vld [vmem:[#allocation7 + $0x858] sm:$0xff]  ;;  %v8103_v30 = vcombine.low %v369_v27, %v373_v28 }
 0x2eb   :  { %4932 = vmatpush1.bf16.msra.mxu1 %v8263_v45  ;;  %v5022_v7 = vadd.f32 %v4977_v12, %v4581_v58  ;;  %v365_v12 = vld [vmem:[#allocation7 + $0x478] sm:$0xff] }
 0x2ec   :  { %4933 = vmatprep.subr.bf16.mxu1 %v8256_v48  ;;  %v493_v45 = vld [vmem:[#allocation7 + $0x878] sm:$0xff]  ;;  %v8231_v48 = vcombine.low %v497_v29, %v501_v32  ;;  %v8096_v59 = vcombine.high %v361_v39, %v365_v12  ;;  %v8095_v58 = vcombine.low %v361_v39, %v365_v12 }
 0x2ed   :  { %v5034_v19 = vmax.f32 %v5022_v7, 0.0  ;;  %4891 = vmatpush1.bf16.msra.mxu0 %v8127_v56  ;;  %v8224_v49 = vcombine.high %v489_v15, %v493_v45  ;;  %v353_v8 = vld [vmem:[#allocation7 + $0x418] sm:$0xff]  ;;  %v8223_v56 = vcombine.low %v489_v15, %v493_v45 }
 0x2ee   :  { %4892 = vmatprep.subr.bf16.mxu0 %v8120_v4  ;;  %v357_v51 = vld [vmem:[#allocation7 + $0x438] sm:$0xff] }
 0x2ef   :  { %4934 = vmatpush1.bf16.msra.mxu1 %v8255_v62  ;;  %v9826_v21 = vpack.c.bf16 %v5034_v19, %v5030_v18  ;;  %v481_v26 = vld [vmem:[#allocation7 + $0x818] sm:$0xff]  ;;  %v8088_v62 = vcombine.high %v353_v8, %v357_v51  ;;  %v8087_v61 = vcombine.low %v353_v8, %v357_v51 }
 0x2f0   :  { %4935 = vmatprep.subr.bf16.mxu1 %v8248_v40  ;;  %v485_v53 = vld [vmem:[#allocation7 + $0x838] sm:$0xff] }
 0x2f1   :  { %4893 = vmatpush1.bf16.msra.mxu0 %v8119_v14  ;;  %v8216_v4 = vcombine.high %v481_v26, %v485_v53  ;;  %v473_v7 = vld [vmem:[#allocation7 + $0x7d8] sm:$0xff]  ;;  %v8215_v16 = vcombine.low %v481_v26, %v485_v53 }
 0x2f2   :  { %4894 = vmatprep.subr.bf16.mxu0 %v8112_v20  ;;  %v477_v40 = vld [vmem:[#allocation7 + $0x7f8] sm:$0xff] }
 0x2f3   :  { %4936 = vmatpush1.bf16.msra.mxu1 %v8247_v25  ;;  %v601_v43 = vld [vmem:[#allocation7 + $0xbd8] sm:$0xff]  ;;  %v8208_v18 = vcombine.high %v473_v7, %v477_v40  ;;  %v8207_v27 = vcombine.low %v473_v7, %v477_v40 }
 0x2f4   :  { %4937 = vmatprep.subr.bf16.mxu1 %v8240_v23  ;;  %v605_v60 = vld [vmem:[#allocation7 + $0xbf8] sm:$0xff] }
 0x2f5   :  { %4895 = vmatpush1.bf16.msra.mxu0 %v8111_v34  ;;  %v8336_v19 = vcombine.high %v601_v43, %v605_v60  ;;  %v465_v14 = vld [vmem:[#allocation7 + $0x798] sm:$0xff]  ;;  %v8335_v28 = vcombine.low %v601_v43, %v605_v60 }
 0x2f6   :  { %4896 = vmatprep.subr.bf16.mxu0 %v8104_v36  ;;  %v469_v25 = vld [vmem:[#allocation7 + $0x7b8] sm:$0xff] }
 0x2f7   :  { %4938 = vmatpush1.bf16.msra.mxu1 %v8239_v52  ;;  %v593_v20 = vld [vmem:[#allocation7 + $0xb98] sm:$0xff]  ;;  %v8200_v29 = vcombine.high %v465_v14, %v469_v25  ;;  %v8199_v39 = vcombine.low %v465_v14, %v469_v25  ;;  %v2242_v25 = vadd.f32 %v9723_v47, %v9721_v44  ;;  %v4582_v44 = vpop.f32.mrf.mxu0 }
 0x2f8   :  { %4939 = vmatprep.subr.bf16.mxu1 %v8232_v37  ;;  %v597_v23 = vld [vmem:[#allocation7 + $0xbb8] sm:$0xff] }
 0x2f9   :  { %4897 = vmatpush1.bf16.msra.mxu0 %v8103_v30  ;;  %v8328_v32 = vcombine.high %v593_v20, %v597_v23  ;;  %v457_v34 = vld [vmem:[#allocation7 + $0x758] sm:$0xff]  ;;  %v8327_v12 = vcombine.low %v593_v20, %v597_v23 }
 0x2fa   :  { %4898 = vmatprep.subr.bf16.mxu0 %v8096_v59  ;;  %v461_v52 = vld [vmem:[#allocation7 + $0x778] sm:$0xff] }
 0x2fb   :  { %4940 = vmatpush1.bf16.msra.mxu1 %v8231_v48  ;;  %v585_v36 = vld [vmem:[#allocation7 + $0xb58] sm:$0xff]  ;;  %v8192_v15 = vcombine.high %v457_v34, %v461_v52  ;;  %v8191_v8 = vcombine.low %v457_v34, %v461_v52  ;;  %v4493_v52 = vadd.f32 %v9792_v5, %v2242_v25 }
 0x2fc   :  { %4941 = vmatprep.subr.bf16.mxu1 %v8224_v49  ;;  %v589_v37 = vld [vmem:[#allocation7 + $0xb78] sm:$0xff] }
 0x2fd   :  { %4899 = vmatpush1.bf16.msra.mxu0 %v8095_v58  ;;  %v8320_v45 = vcombine.high %v585_v36, %v589_v37  ;;  %v449_v30 = vld [vmem:[#allocation7 + $0x718] sm:$0xff]  ;;  %v8319_v51 = vcombine.low %v585_v36, %v589_v37  ;;  %v4539_v36 = vpop.f32.mrf.mxu1  ;;  %v9835_v37 = vsub.s32 1, %v9805_v11  ;;  %v4536_v5 = vadd.f32 %v9796_v9, %v4493_v52 }
 0x2fe   :  { %4900 = vmatprep.subr.bf16.mxu0 %v8088_v62  ;;  %v453_v48 = vld [vmem:[#allocation7 + $0x738] sm:$0xff] }
 0x2ff   :  { %4942 = vmatpush1.bf16.msra.mxu1 %v8223_v56  ;;  %v577_v59 = vld [vmem:[#allocation7 + $0xb18] sm:$0xff]  ;;  %v8184_v26 = vcombine.high %v449_v30, %v453_v48  ;;  %v8183_v7 = vcombine.low %v449_v30, %v453_v48 }
 0x300   :  { %4943 = vmatprep.subr.bf16.mxu1 %v8216_v4  ;;  %v581_v49 = vld [vmem:[#allocation7 + $0xb38] sm:$0xff] }
 0x301   :  { %4901 = vmatpush1.bf16.msra.mxu0 %v8087_v61  ;;  %v8312_v53 = vcombine.high %v577_v59, %v581_v49  ;;  %v441_v58 = vld [vmem:[#allocation7 + $0x6d8] sm:$0xff]  ;;  %v8311_v40 = vcombine.low %v577_v59, %v581_v49 }
 0x302   :  { %4902 = vmatprep.subr.bf16.mxu0 %v8208_v18  ;;  %v445_v56 = vld [vmem:[#allocation7 + $0x6f8] sm:$0xff]  ;;  %v2246_v18 = vadd.f32 %v9735_v54, %v9733_v50 }
 0x303   :  { %4944 = vmatpush1.bf16.msra.mxu1 %v8215_v16  ;;  %v569_v62 = vld [vmem:[#allocation7 + $0xad8] sm:$0xff]  ;;  %v8176_v43 = vcombine.high %v441_v58, %v445_v56  ;;  %v8175_v20 = vcombine.low %v441_v58, %v445_v56 }
 0x304   :  { %4945 = vmatprep.subr.bf16.mxu1 %v8336_v19  ;;  %v573_v4 = vld [vmem:[#allocation7 + $0xaf8] sm:$0xff]  ;;  %v4497_v23 = vadd.f32 %v9810_v24, %v2246_v18 }
 0x305   :  { %4903 = vmatpush2.bf16.msra.mxu0 %v8207_v27  ;;  %v8304_v60 = vcombine.high %v569_v62, %v573_v4  ;;  %v433_v61 = vld [vmem:[#allocation7 + $0x698] sm:$0xff]  ;;  %v8303_v27 = vcombine.low %v569_v62, %v573_v4 }
 0x306   :  { %4904 = vmatprep.subr.bf16.mxu0 %v8200_v29  ;;  %v437_v16 = vld [vmem:[#allocation7 + $0x6b8] sm:$0xff]  ;;  %v4540_v24 = vadd.f32 %v4539_v36, %v4497_v23  ;;  %v9852_v36 = vsub.s32 3, %v9805_v11 }
 0x307   :  { %4946 = vmatpush2.bf16.msra.mxu1 %v8335_v28  ;;  %v561_v19 = vld [vmem:[#allocation7 + $0xa98] sm:$0xff]  ;;  %v8168_v28 = vcombine.high %v433_v61, %v437_v16  ;;  %v8167_v47 = vcombine.low %v433_v61, %v437_v16 }
 0x308   :  { %4947 = vmatprep.subr.bf16.mxu1 %v8328_v32  ;;  %v565_v14 = vld [vmem:[#allocation7 + $0xab8] sm:$0xff]  ;;  %v4583_v59 = vadd.f32 %v4582_v44, %v4540_v24 }
 0x309   :  { %4905 = vmatpush2.bf16.msra.mxu0 %v8199_v39  ;;  %v8296_v29 = vcombine.high %v561_v19, %v565_v14  ;;  %v425_v32 = vld [vmem:[#allocation7 + $0x658] sm:$0xff]  ;;  %v8295_v39 = vcombine.low %v561_v19, %v565_v14  ;;  %v9842_v14 = vsub.s32 2, %v9805_v11 }
 0x30a   :  { %4906 = vmatprep.subr.bf16.mxu0 %v8192_v15  ;;  %v429_v34 = vld [vmem:[#allocation7 + $0x678] sm:$0xff]  ;;  %v4619_v15 = vpop.f32.mrf.mxu1 }
 0x30b   :  { %4948 = vmatpush2.bf16.msra.mxu1 %v8327_v12  ;;  %v553_v50 = vld [vmem:[#allocation7 + $0xa58] sm:$0xff]  ;;  %v8160_v12 = vcombine.high %v425_v32, %v429_v34  ;;  %v4620_v23 = vadd.f32 %v4619_v15, %v9741_v2  ;;  %v2332_v2 = vadd.f32 %v9755_v35, %v9753_v31  ;;  %v4989_v35 = vrot.slane %v9812_v38, %v9852_v36 }
 0x30c   :  { %4949 = vmatprep.subr.bf16.mxu1 %v8320_v45  ;;  %v557_v54 = vld [vmem:[#allocation7 + $0xa78] sm:$0xff]  ;;  %v4621_v62 = vpop.f32.mrf.mxu1 }
 0x30d   :  { %4907 = vmatpush2.bf16.msra.mxu0 %v8191_v8  ;;  %v8288_v45 = vcombine.high %v553_v50, %v557_v54  ;;  %v417_v30 = vld [vmem:[#allocation7 + $0x618] sm:$0xff]  ;;  %v8287_v58 = vcombine.low %v553_v50, %v557_v54 }
 0x30e   :  { %4908 = vmatprep.subr.bf16.mxu0 %v8184_v26  ;;  %v421_v48 = vld [vmem:[#allocation7 + $0x638] sm:$0xff]  ;;  %v8159_v26 = vcombine.low %v425_v32, %v429_v34  ;;  %v4623_v61 = vpop.f32.mrf.mxu1 }
 0x30f   :  { %4950 = vmatpush2.bf16.msra.mxu1 %v8319_v51  ;;  %v545_v49 = vld [vmem:[#allocation7 + $0xa18] sm:$0xff]  ;;  %v4981_v51 = vrot.slane %v9812_v38, %v9835_v37  ;;  %v8152_v56 = vcombine.high %v417_v30, %v421_v48  ;;  %v8151_v9 = vcombine.low %v417_v30, %v421_v48  ;;  %v4624_v24 = vadd.f32 %v4623_v61, %v9749_v17 }
 0x310   :  { %4951 = vmatprep.subr.bf16.mxu1 %v8312_v53  ;;  %v549_v8 = vld [vmem:[#allocation7 + $0xa38] sm:$0xff]  ;;  %v4579_v53 = vadd.f32 %v9821_v41, %v4536_v5 }
 0x311   :  { %4909 = vmatpush2.bf16.msra.mxu0 %v8183_v7  ;;  %v8280_v4 = vcombine.high %v545_v49, %v549_v8  ;;  %v5023_v7 = vadd.f32 %v4981_v51, %v4583_v59  ;;  %v8740_v16 = vld [vmem:[#allocation11 + $0x2e4] ss:$16 sps:$4 sm:$0xff]   ;;  %v8735_v41 = vld [vmem:[#allocation11 + $0xe0] ss:$16 sps:$4 sm:$0xff]  }
 0x312   :  { %4910 = vmatprep.subr.bf16.mxu0 %v8176_v43  ;;  %v8279_v43 = vcombine.low %v545_v49, %v549_v8  ;;  %v8738_v25 = vld [vmem:[#allocation11 + $0x2e0] ss:$16 sps:$4 sm:$0xff]   ;;  %v8752_v15 = vld [vmem:[#allocation11 + $0x2a4] ss:$16 sps:$4 sm:$0xff]  }
 0x313   :  { %4952 = vmatpush2.bf16.msra.mxu1 %v8311_v40  ;;  %v5015_v40 = vadd.f32 %v4981_v51, %v4579_v53  ;;  %v5035_v18 = vmax.f32 %v5023_v7, 0.0  ;;  %v8744_v44 = vld [vmem:[#allocation11 + $0x2c0] ss:$16 sps:$4 sm:$0xff]   ;;  %v8755_v8 = vld [vmem:[#allocation11 + $0x84] ss:$16 sps:$4 sm:$0xff]  }
 0x314   :  { %4953 = vmatprep.subr.bf16.mxu1 %v8304_v60  ;;  %v8737_v60 = vld [vmem:[#allocation11 + $0xe4] ss:$16 sps:$4 sm:$0xff]   ;;  %v8747_v59 = vld [vmem:[#allocation11 + $0xa0] ss:$16 sps:$4 sm:$0xff]  }
 0x315   :  { %4911 = vmatpush2.bf16.msra.mxu0 %v8175_v20  ;;  %v5031_v19 = vmax.f32 %v5015_v40, 0.0  ;;  %v2328_v20 = vadd.f32 %v9745_v6, %v9743_v3  ;;  %v8741_v3 = vld [vmem:[#allocation11 + $0xc0] ss:$16 sps:$4 sm:$0xff]   ;;  %v4985_v6 = vrot.slane %v9812_v38, %v9842_v14  ;;  %v8761_v40 = vld [vmem:[#allocation11 + $0x64] ss:$16 sps:$4 sm:$0xff]  }
 0x316   :  { %4912 = vmatprep.subr.bf16.mxu0 %v8168_v28  ;;  %v8743_v28 = vld [vmem:[#allocation11 + $0xc4] ss:$16 sps:$4 sm:$0xff]   ;;  %v8750_v17 = vld [vmem:[#allocation11 + $0x2a0] ss:$16 sps:$4 sm:$0xff]  }
 0x317   :  { %4954 = vmatpush2.bf16.msra.mxu1 %v8303_v27  ;;  %v4625_v27 = vpop.f32.mrf.mxu1  ;;  %v9848_v34 = vpack.c.bf16 %v5035_v18, %v5031_v19  ;;  %v4622_v52 = vadd.f32 %v4621_v62, %v2328_v20  ;;  %v8753_v38 = vld [vmem:[#allocation11 + $0x80] ss:$16 sps:$4 sm:$0xff]  }
 0x318   :  { %4955 = vmatprep.subr.bf16.mxu1 %v8296_v29  ;;  %v8746_v29 = vld [vmem:[#allocation11 + $0x2c4] ss:$16 sps:$4 sm:$0xff]   ;;  %v4626_v30 = vadd.f32 %v4625_v27, %v2332_v2  ;;  %v8762_v20 = vld [vmem:[#allocation11 + $0x260] ss:$16 sps:$4 sm:$0xff]  }
 0x319   :  { %4913 = vmatpush2.bf16.msra.mxu0 %v8167_v47  ;;  %v8749_v47 = vld [vmem:[#allocation11 + $0xa4] ss:$16 sps:$4 sm:$0xff]  }
 0x31a   :  { %4914 = vmatprep.subr.bf16.mxu0 %v8160_v12  ;;  %v8779_v2 = vld [vmem:[#allocation11 + $0x4] ss:$16 sps:$4 sm:$0xff]  }
 0x31b   :  { %4956 = vmatpush2.bf16.msra.mxu1 %v8295_v39 }
 0x31c   :  { %4957 = vmatprep.subr.bf16.mxu1 %v8288_v45 }
 0x31d   :  { %4915 = vmatpush2.bf16.msra.mxu0 %v8159_v26 }
 0x31e   :  { %4916 = vmatprep.subr.bf16.mxu0 %v8152_v56 }
 0x31f   :  { %4958 = vmatpush2.bf16.msra.mxu1 %v8287_v58  ;;  %v8758_v58 = vld [vmem:[#allocation11 + $0x284] ss:$16 sps:$4 sm:$0xff]  }
 0x320   :  { %4959 = vmatprep.subr.bf16.mxu1 %v8280_v4 }
 0x321   :  { %4917 = vmatpush2.bf16.msra.mxu0 %v8151_v9  ;;  %v8756_v9 = vld [vmem:[#allocation11 + $0x280] ss:$16 sps:$4 sm:$0xff]  }
 0x322   :  { %5832 = vmatprep.subr.bf16.mxu0 %v8737_v60 }
 0x323   :  { %4960 = vmatpush2.bf16.msra.mxu1 %v8279_v43 }
 0x324   :  { %5875 = vmatprep.subr.bf16.mxu1 %v8740_v16  ;;  %v4662_v32 = vpop.f32.mrf.mxu0  ;;  %4919 = vmatmul.mubr.bf16.vlgmr.msra.gmra.mxu0 %v9789_v63  ;;  %v8764_v16 = vld [vmem:[#allocation11 + $0x264] ss:$16 sps:$4 sm:$0xff]  }
 0x325   :  { %v4663_v50 = vadd.f32 %v4662_v32, %v4620_v23  ;;  %5833 = vmatpush1.bf16.msra.mxu0 %v8735_v41  ;;  %5864 = vmatprep.mubr.bf16.mxu0 %v9848_v34  ;;  %v8767_v23 = vld [vmem:[#allocation11 + $0x44] ss:$16 sps:$4 sm:$0xff]   ;;  %v8768_v32 = vld [vmem:[#allocation11 + $0x240] ss:$16 sps:$4 sm:$0xff]  }
 0x326   :  { %v4705_v54 = vpop.f32.mrf.mxu1  ;;  %4962 = vmatmul.mubr.bf16.vlgmr.msra.gmra.mxu1 %v9814_v33  ;;  %v4664_v63 = vpop.f32.mrf.mxu0  ;;  %5834 = vmatprep.subr.bf16.mxu0 %v8743_v28  ;;  %v8770_v28 = vld [vmem:[#allocation11 + $0x244] ss:$16 sps:$4 sm:$0xff]  }
 0x327   :  { %5876 = vmatpush1.bf16.msra.mxu1 %v8738_v25  ;;  %v4706_v33 = vadd.f32 %v4705_v54, %v4663_v50  ;;  %v4665_v39 = vadd.f32 %v4664_v63, %v4622_v52  ;;  %v8759_v25 = vld [vmem:[#allocation11 + $0x60] ss:$16 sps:$4 sm:$0xff]   ;;  %v8773_v52 = vld [vmem:[#allocation11 + $0x24] ss:$16 sps:$4 sm:$0xff]  }
 0x328   :  { %v4707_v12 = vpop.f32.mrf.mxu1  ;;  %5877 = vmatprep.subr.bf16.mxu1 %v8746_v29  ;;  %v4666_v45 = vpop.f32.mrf.mxu0  ;;  %v8765_v29 = vld [vmem:[#allocation11 + $0x40] ss:$16 sps:$4 sm:$0xff]   ;;  %v8776_v50 = vld [vmem:[#allocation11 + $0x224] ss:$16 sps:$4 sm:$0xff]  }
 0x329   :  { %v4708_v31 = vadd.f32 %v4707_v12, %v4665_v39  ;;  %v4667_v48 = vadd.f32 %v4666_v45, %v4624_v24  ;;  %5835 = vmatpush1.bf16.msra.mxu0 %v8741_v3  ;;  %v5016_v51 = vadd.f32 %v4985_v6, %v4706_v33  ;;  %v8771_v54 = vld [vmem:[#allocation11 + $0x20] ss:$16 sps:$4 sm:$0xff]   ;;  %v8788_v24 = vld [vmem:[#allocation11 + $0x3e4] ss:$16 sps:$4 sm:$0xff]  }
 0x32a   :  { %v4709_v5 = vpop.f32.mrf.mxu1  ;;  %v4668_v49 = vpop.f32.mrf.mxu0  ;;  %5836 = vmatprep.subr.bf16.mxu0 %v8749_v47  ;;  %v8774_v3 = vld [vmem:[#allocation11 + $0x220] ss:$16 sps:$4 sm:$0xff]   ;;  %v8785_v47 = vld [vmem:[#allocation11 + $0x1e4] ss:$16 sps:$4 sm:$0xff]  }
 0x32b   :  { %5878 = vmatpush1.bf16.msra.mxu1 %v8744_v44  ;;  %v4710_v26 = vadd.f32 %v4709_v5, %v4667_v48  ;;  %v4669_v53 = vadd.f32 %v4668_v49, %v4626_v30  ;;  %v5017_v62 = vadd.f32 %v4989_v35, %v4708_v31  ;;  %v5032_v43 = vmax.f32 %v5016_v51, 0.0  ;;  %v8777_v63 = vld [vmem:[#allocation11] ss:$16 sps:$4 sm:$0xff]   ;;  %v8791_v12 = vld [vmem:[#allocation11 + $0x1c4] ss:$16 sps:$4 sm:$0xff]  }
 0x32c   :  { %5879 = vmatprep.subr.bf16.mxu1 %v8752_v15  ;;  %v4711_v56 = vpop.f32.mrf.mxu1  ;;  %v8780_v44 = vld [vmem:[#allocation11 + $0x200] ss:$16 sps:$4 sm:$0xff]   ;;  %v8794_v15 = vld [vmem:[#allocation11 + $0x3c4] ss:$16 sps:$4 sm:$0xff]  }
 0x32d   :  { %v5024_v4 = vadd.f32 %v4985_v6, %v4710_v26  ;;  %v4712_v7 = vadd.f32 %v4711_v56, %v4669_v53  ;;  %5837 = vmatpush1.bf16.msra.mxu0 %v8747_v59  ;;  %v5033_v18 = vmax.f32 %v5017_v62, 0.0  ;;  %v8782_v6 = vld [vmem:[#allocation11 + $0x204] ss:$16 sps:$4 sm:$0xff]   ;;  %v8783_v33 = vld [vmem:[#allocation11 + $0x1e0] ss:$16 sps:$4 sm:$0xff]  }
 0x32e   :  { %5838 = vmatprep.subr.bf16.mxu0 %v8755_v8  ;;  %v8786_v39 = vld [vmem:[#allocation11 + $0x3e0] ss:$16 sps:$4 sm:$0xff]   ;;  %v8797_v31 = vld [vmem:[#allocation11 + $0x1a4] ss:$16 sps:$4 sm:$0xff]  }
 0x32f   :  { %5880 = vmatpush1.bf16.msra.mxu1 %v8750_v17  ;;  %v5036_v60 = vmax.f32 %v5024_v4, 0.0  ;;  %v5025_v61 = vadd.f32 %v4989_v35, %v4712_v7  ;;  %v8789_v45 = vld [vmem:[#allocation11 + $0x1c0] ss:$16 sps:$4 sm:$0xff]   ;;  %v8800_v35 = vld [vmem:[#allocation11 + $0x3a4] ss:$16 sps:$4 sm:$0xff]  }
 0x330   :  { %5881 = vmatprep.subr.bf16.mxu1 %v8758_v58  ;;  %v8792_v30 = vld [vmem:[#allocation11 + $0x3c0] ss:$16 sps:$4 sm:$0xff]   ;;  %v8803_v59 = vld [vmem:[#allocation11 + $0x184] ss:$16 sps:$4 sm:$0xff]  }
 0x331   :  { %v9862_v41 = vpack.c.bf16 %v5036_v60, %v5032_v43  ;;  %v5037_v19 = vmax.f32 %v5025_v61, 0.0  ;;  %5839 = vmatpush1.bf16.msra.mxu0 %v8753_v38  ;;  %v8795_v48 = vld [vmem:[#allocation11 + $0x1a0] ss:$16 sps:$4 sm:$0xff]   ;;  %v8806_v49 = vld [vmem:[#allocation11 + $0x384] ss:$16 sps:$4 sm:$0xff]  }
 0x332   :  { %5840 = vmatprep.subr.bf16.mxu0 %v8761_v40  ;;  %v8798_v5 = vld [vmem:[#allocation11 + $0x3a0] ss:$16 sps:$4 sm:$0xff]   ;;  %v8809_v51 = vld [vmem:[#allocation11 + $0x164] ss:$16 sps:$4 sm:$0xff]  }
 0x333   :  { %5882 = vmatpush1.bf16.msra.mxu1 %v8756_v9  ;;  %v9864_v27 = vpack.c.bf16 %v5037_v19, %v5033_v18  ;;  %v8801_v17 = vld [vmem:[#allocation11 + $0x180] ss:$16 sps:$4 sm:$0xff]   ;;  %v8812_v26 = vld [vmem:[#allocation11 + $0x364] ss:$16 sps:$4 sm:$0xff]   ;;  %v8833_v19 = vld [vmem:[#allocation11 + $0xec] ss:$16 sps:$4 sm:$0xff]  }
 0x334   :  { %5883 = vmatprep.subr.bf16.mxu1 %v8764_v16  ;;  %v8804_v8 = vld [vmem:[#allocation11 + $0x380] ss:$16 sps:$4 sm:$0xff]   ;;  %v8815_v56 = vld [vmem:[#allocation11 + $0x144] ss:$16 sps:$4 sm:$0xff]  }
 0x335   :  { %5841 = vmatpush1.bf16.msra.mxu0 %v8759_v25  ;;  %5907 = vmatprep.mubr.bf16.mxu1 %v9864_v27  ;;  %v8807_v53 = vld [vmem:[#allocation11 + $0x160] ss:$16 sps:$4 sm:$0xff]   ;;  %v8818_v62 = vld [vmem:[#allocation11 + $0x344] ss:$16 sps:$4 sm:$0xff]   ;;  %v8836_v25 = vld [vmem:[#allocation11 + $0x2ec] ss:$16 sps:$4 sm:$0xff]  }
 0x336   :  { %5842 = vmatprep.subr.bf16.mxu0 %v8767_v23  ;;  %v8810_v58 = vld [vmem:[#allocation11 + $0x360] ss:$16 sps:$4 sm:$0xff]   ;;  %v8821_v38 = vld [vmem:[#allocation11 + $0x124] ss:$16 sps:$4 sm:$0xff]   ;;  %v8834_v23 = vld [vmem:[#allocation11 + $0x2e8] ss:$16 sps:$4 sm:$0xff]  }
 0x337   :  { %5884 = vmatpush1.bf16.msra.mxu1 %v8762_v20  ;;  %v8813_v4 = vld [vmem:[#allocation11 + $0x140] ss:$16 sps:$4 sm:$0xff]   ;;  %v8824_v9 = vld [vmem:[#allocation11 + $0x324] ss:$16 sps:$4 sm:$0xff]   ;;  %v8831_v20 = vld [vmem:[#allocation11 + $0xe8] ss:$16 sps:$4 sm:$0xff]  }
 0x338   :  { %5885 = vmatprep.subr.bf16.mxu1 %v8770_v28  ;;  %v8816_v7 = vld [vmem:[#allocation11 + $0x340] ss:$16 sps:$4 sm:$0xff]   ;;  %v8827_v60 = vld [vmem:[#allocation11 + $0x104] ss:$16 sps:$4 sm:$0xff]   ;;  %v8839_v28 = vld [vmem:[#allocation11 + $0xcc] ss:$16 sps:$4 sm:$0xff]  }
 0x339   :  { %5843 = vmatpush1.bf16.msra.mxu0 %v8765_v29  ;;  %v8819_v40 = vld [vmem:[#allocation11 + $0x120] ss:$16 sps:$4 sm:$0xff]   ;;  %v8830_v61 = vld [vmem:[#allocation11 + $0x304] ss:$16 sps:$4 sm:$0xff]  }
 0x33a   :  { %5844 = vmatprep.subr.bf16.mxu0 %v8773_v52  ;;  %v8822_v43 = vld [vmem:[#allocation11 + $0x320] ss:$16 sps:$4 sm:$0xff]  }
 0x33b   :  { %5886 = vmatpush1.bf16.msra.mxu1 %v8768_v32  ;;  %v8825_v16 = vld [vmem:[#allocation11 + $0x100] ss:$16 sps:$4 sm:$0xff]   ;;  %v8842_v32 = vld [vmem:[#allocation11 + $0x2cc] ss:$16 sps:$4 sm:$0xff]  }
 0x33c   :  { %5887 = vmatprep.subr.bf16.mxu1 %v8776_v50  ;;  %v8828_v18 = vld [vmem:[#allocation11 + $0x300] ss:$16 sps:$4 sm:$0xff]  }
 0x33d   :  { %5845 = vmatpush1.bf16.msra.mxu0 %v8771_v54  ;;  %v8837_v54 = vld [vmem:[#allocation11 + $0xc8] ss:$16 sps:$4 sm:$0xff]  }
 0x33e   :  { %5846 = vmatprep.subr.bf16.mxu0 %v8779_v2  ;;  %v8840_v2 = vld [vmem:[#allocation11 + $0x2c8] ss:$16 sps:$4 sm:$0xff]  }
 0x33f   :  { %5888 = vmatpush1.bf16.msra.mxu1 %v8774_v3 }
 0x340   :  { %5889 = vmatprep.subr.bf16.mxu1 %v8782_v6  ;;  %v8845_v6 = vld [vmem:[#allocation11 + $0xac] ss:$16 sps:$4 sm:$0xff]  }
 0x341   :  { %5847 = vmatpush1.bf16.msra.mxu0 %v8777_v63 }
 0x342   :  { %5848 = vmatprep.subr.bf16.mxu0 %v8785_v47 }
 0x343   :  { %5890 = vmatpush1.bf16.msra.mxu1 %v8780_v44 }
 0x344   :  { %5891 = vmatprep.subr.bf16.mxu1 %v8788_v24 }
 0x345   :  { %5849 = vmatpush2.bf16.msra.mxu0 %v8783_v33 }
 0x346   :  { %5850 = vmatprep.subr.bf16.mxu0 %v8791_v12  ;;  %v8843_v12 = vld [vmem:[#allocation11 + $0xa8] ss:$16 sps:$4 sm:$0xff]  }
 0x347   :  { %5892 = vmatpush2.bf16.msra.mxu1 %v8786_v39 }
 0x348   :  { %5893 = vmatprep.subr.bf16.mxu1 %v8794_v15 }
 0x349   :  { %5851 = vmatpush2.bf16.msra.mxu0 %v8789_v45  ;;  %v8846_v45 = vld [vmem:[#allocation11 + $0x2a8] ss:$16 sps:$4 sm:$0xff]  }
 0x34a   :  { %5852 = vmatprep.subr.bf16.mxu0 %v8797_v31  ;;  %v8854_v31 = vld [vmem:[#allocation11 + $0x28c] ss:$16 sps:$4 sm:$0xff]  }
 0x34b   :  { %5894 = vmatpush2.bf16.msra.mxu1 %v8792_v30  ;;  %v8851_v30 = vld [vmem:[#allocation11 + $0x8c] ss:$16 sps:$4 sm:$0xff]  }
 0x34c   :  { %5895 = vmatprep.subr.bf16.mxu1 %v8800_v35 }
 0x34d   :  { %5853 = vmatpush2.bf16.msra.mxu0 %v8795_v48 }
 0x34e   :  { %5854 = vmatprep.subr.bf16.mxu0 %v8803_v59  ;;  %v8857_v59 = vld [vmem:[#allocation11 + $0x6c] ss:$16 sps:$4 sm:$0xff]  }
 0x34f   :  { %5896 = vmatpush2.bf16.msra.mxu1 %v8798_v5  ;;  %v8849_v5 = vld [vmem:[#allocation11 + $0x88] ss:$16 sps:$4 sm:$0xff]  }
 0x350   :  { %5897 = vmatprep.subr.bf16.mxu1 %v8806_v49  ;;  %v8860_v49 = vld [vmem:[#allocation11 + $0x26c] ss:$16 sps:$4 sm:$0xff]  }
 0x351   :  { %5855 = vmatpush2.bf16.msra.mxu0 %v8801_v17  ;;  %v8855_v17 = vld [vmem:[#allocation11 + $0x68] ss:$16 sps:$4 sm:$0xff]  }
 0x352   :  { %5856 = vmatprep.subr.bf16.mxu0 %v8809_v51  ;;  %v8863_v51 = vld [vmem:[#allocation11 + $0x4c] ss:$16 sps:$4 sm:$0xff]  }
 0x353   :  { %5898 = vmatpush2.bf16.msra.mxu1 %v8804_v8  ;;  %v8858_v8 = vld [vmem:[#allocation11 + $0x268] ss:$16 sps:$4 sm:$0xff]  }
 0x354   :  { %5899 = vmatprep.subr.bf16.mxu1 %v8812_v26  ;;  %v8861_v26 = vld [vmem:[#allocation11 + $0x48] ss:$16 sps:$4 sm:$0xff]  }
 0x355   :  { %5857 = vmatpush2.bf16.msra.mxu0 %v8807_v53  ;;  %v8864_v53 = vld [vmem:[#allocation11 + $0x248] ss:$16 sps:$4 sm:$0xff]  }
 0x356   :  { %5858 = vmatprep.subr.bf16.mxu0 %v8815_v56  ;;  %v8872_v56 = vld [vmem:[#allocation11 + $0x22c] ss:$16 sps:$4 sm:$0xff]  }
 0x357   :  { %5900 = vmatpush2.bf16.msra.mxu1 %v8810_v58  ;;  %v8869_v58 = vld [vmem:[#allocation11 + $0x2c] ss:$16 sps:$4 sm:$0xff]  }
 0x358   :  { %5901 = vmatprep.subr.bf16.mxu1 %v8818_v62  ;;  %v8867_v62 = vld [vmem:[#allocation11 + $0x28] ss:$16 sps:$4 sm:$0xff]  }
 0x359   :  { %5859 = vmatpush2.bf16.msra.mxu0 %v8813_v4  ;;  %v8870_v4 = vld [vmem:[#allocation11 + $0x228] ss:$16 sps:$4 sm:$0xff]  }
 0x35a   :  { %5860 = vmatprep.subr.bf16.mxu0 %v8821_v38  ;;  %v8878_v38 = vld [vmem:[#allocation11 + $0x20c] ss:$16 sps:$4 sm:$0xff]  }
 0x35b   :  { %5902 = vmatpush2.bf16.msra.mxu1 %v8816_v7  ;;  %v8875_v7 = vld [vmem:[#allocation11 + $0xc] ss:$16 sps:$4 sm:$0xff]  }
 0x35c   :  { %5903 = vmatprep.subr.bf16.mxu1 %v8824_v9  ;;  %v8873_v9 = vld [vmem:[#allocation11 + $0x8] ss:$16 sps:$4 sm:$0xff]  }
 0x35d   :  { %5861 = vmatpush2.bf16.msra.mxu0 %v8819_v40  ;;  %v8876_v40 = vld [vmem:[#allocation11 + $0x208] ss:$16 sps:$4 sm:$0xff]  }
 0x35e   :  { %5862 = vmatprep.subr.bf16.mxu0 %v8827_v60  ;;  %v8884_v60 = vld [vmem:[#allocation11 + $0x3ec] ss:$16 sps:$4 sm:$0xff]  }
 0x35f   :  { %5904 = vmatpush2.bf16.msra.mxu1 %v8822_v43  ;;  %v8881_v43 = vld [vmem:[#allocation11 + $0x1ec] ss:$16 sps:$4 sm:$0xff]  }
 0x360   :  { %5905 = vmatprep.subr.bf16.mxu1 %v8830_v61  ;;  %v8879_v61 = vld [vmem:[#allocation11 + $0x1e8] ss:$16 sps:$4 sm:$0xff]  }
 0x361   :  { %5863 = vmatpush2.bf16.msra.mxu0 %v8825_v16  ;;  %v8882_v16 = vld [vmem:[#allocation11 + $0x3e8] ss:$16 sps:$4 sm:$0xff]  }
 0x362   :  { %5918 = vmatprep.subr.bf16.mxu0 %v8833_v19  ;;  %v8890_v19 = vld [vmem:[#allocation11 + $0x3cc] ss:$16 sps:$4 sm:$0xff]  }
 0x363   :  { %5906 = vmatpush2.bf16.msra.mxu1 %v8828_v18  ;;  %v8887_v18 = vld [vmem:[#allocation11 + $0x1cc] ss:$16 sps:$4 sm:$0xff]  }
 0x364   :  { %5961 = vmatprep.subr.bf16.mxu1 %v8836_v25  ;;  %v4748_v29 = vpop.f32.mrf.mxu0  ;;  %5865 = vmatmul.mubr.bf16.vlgmr.msra.gmra.mxu0 %v9826_v21  ;;  %v8885_v25 = vld [vmem:[#allocation11 + $0x1c8] ss:$16 sps:$4 sm:$0xff]  }
 0x365   :  { %v4749_v52 = vadd.f32 %v4748_v29, %v9759_v46  ;;  %5919 = vmatpush1.bf16.msra.mxu0 %v8831_v20  ;;  %5950 = vmatprep.mubr.bf16.mxu0 %v9848_v34  ;;  %v8848_v46 = vld [vmem:[#allocation11 + $0x2ac] ss:$16 sps:$4 sm:$0xff]   ;;  %v8888_v20 = vld [vmem:[#allocation11 + $0x3c8] ss:$16 sps:$4 sm:$0xff]  }
 0x366   :  { %v4791_v50 = vpop.f32.mrf.mxu1  ;;  %5908 = vmatmul.mubr.bf16.vlgmr.msra.gmra.mxu1 %v9862_v41  ;;  %v4750_v3 = vpop.f32.mrf.mxu0  ;;  %5920 = vmatprep.subr.bf16.mxu0 %v8839_v28  ;;  %v8896_v28 = vld [vmem:[#allocation11 + $0x3ac] ss:$16 sps:$4 sm:$0xff]   ;;  %v8891_v29 = vld [vmem:[#allocation11 + $0x1a8] ss:$16 sps:$4 sm:$0xff]  }
 0x367   :  { %5962 = vmatpush1.bf16.msra.mxu1 %v8834_v23  ;;  %v9871_v63 = vadd.f32 %v4791_v50, %v4749_v52  ;;  %5993 = vmatprep.mubr.bf16.mxu1 %v9864_v27  ;;  %v4751_v44 = vadd.f32 %v4750_v3, %v9762_v57  ;;  %v8893_v23 = vld [vmem:[#allocation11 + $0x1ac] ss:$16 sps:$4 sm:$0xff]   ;;  %v8900_v3 = vld [vmem:[#allocation11 + $0x388] ss:$16 sps:$4 sm:$0xff]  }
 0x368   :  { %v4793_v47 = vpop.f32.mrf.mxu1  ;;  %v4752_v24 = vpop.f32.mrf.mxu0  ;;  %5963 = vmatprep.subr.bf16.mxu1 %v8842_v32  ;;  %v8894_v32 = vld [vmem:[#allocation11 + $0x3a8] ss:$16 sps:$4 sm:$0xff]   ;;  %v8899_v52 = vld [vmem:[#allocation11 + $0x18c] ss:$16 sps:$4 sm:$0xff]  }
 0x369   :  { %v9875_v33 = vadd.f32 %v4793_v47, %v4751_v44  ;;  %v4753_v39 = vadd.f32 %v4752_v24, %v9765_v0  ;;  %5921 = vmatpush1.bf16.msra.mxu0 %v8837_v54  ;;  %v8852_v0 = vld [vmem:[#allocation11 + $0x288] ss:$16 sps:$4 sm:$0xff]   ;;  %v8902_v50 = vld [vmem:[#allocation11 + $0x38c] ss:$16 sps:$4 sm:$0xff]  }
 0x36a   :  { %v4795_v34 = vpop.f32.mrf.mxu1  ;;  %v4754_v15 = vpop.f32.mrf.mxu0  ;;  %5922 = vmatprep.subr.bf16.mxu0 %v8845_v6  ;;  %v8897_v54 = vld [vmem:[#allocation11 + $0x188] ss:$16 sps:$4 sm:$0xff]   ;;  %v8908_v6 = vld [vmem:[#allocation11 + $0x36c] ss:$16 sps:$4 sm:$0xff]  }
 0x36b   :  { %5964 = vmatpush1.bf16.msra.mxu1 %v8840_v2  ;;  %v9878_v27 = vadd.f32 %v4795_v34, %v4753_v39  ;;  %v4755_v57 = vadd.f32 %v4754_v15, %v9767_v10  ;;  %v8866_v10 = vld [vmem:[#allocation11 + $0x24c] ss:$16 sps:$4 sm:$0xff]   ;;  %v8903_v44 = vld [vmem:[#allocation11 + $0x168] ss:$16 sps:$4 sm:$0xff]  }
 0x36c   :  { %5965 = vmatprep.subr.bf16.mxu1 %v8848_v46  ;;  %v4797_v35 = vpop.f32.mrf.mxu1  ;;  %v8905_v2 = vld [vmem:[#allocation11 + $0x16c] ss:$16 sps:$4 sm:$0xff]   ;;  %v8906_v47 = vld [vmem:[#allocation11 + $0x368] ss:$16 sps:$4 sm:$0xff]  }
 0x36d   :  { %v9881_v48 = vadd.f32 %v4797_v35, %v4755_v57  ;;  %5923 = vmatpush1.bf16.msra.mxu0 %v8843_v12  ;;  %v8911_v46 = vld [vmem:[#allocation11 + $0x14c] ss:$16 sps:$4 sm:$0xff]   ;;  %v8909_v39 = vld [vmem:[#allocation11 + $0x148] ss:$16 sps:$4 sm:$0xff]  }
 0x36e   :  { %5924 = vmatprep.subr.bf16.mxu0 %v8851_v30  ;;  %v8914_v24 = vld [vmem:[#allocation11 + $0x34c] ss:$16 sps:$4 sm:$0xff]   ;;  %v8912_v34 = vld [vmem:[#allocation11 + $0x348] ss:$16 sps:$4 sm:$0xff]  }
 0x36f   :  { %5966 = vmatpush1.bf16.msra.mxu1 %v8846_v45  ;;  %v8917_v12 = vld [vmem:[#allocation11 + $0x12c] ss:$16 sps:$4 sm:$0xff]   ;;  %v8915_v45 = vld [vmem:[#allocation11 + $0x128] ss:$16 sps:$4 sm:$0xff]  }
 0x370   :  { %5967 = vmatprep.subr.bf16.mxu1 %v8854_v31  ;;  %v8920_v15 = vld [vmem:[#allocation11 + $0x32c] ss:$16 sps:$4 sm:$0xff]   ;;  %v8918_v30 = vld [vmem:[#allocation11 + $0x328] ss:$16 sps:$4 sm:$0xff]  }
 0x371   :  { %5925 = vmatpush1.bf16.msra.mxu0 %v8849_v5  ;;  %v8923_v57 = vld [vmem:[#allocation11 + $0x10c] ss:$16 sps:$4 sm:$0xff]   ;;  %v8921_v35 = vld [vmem:[#allocation11 + $0x108] ss:$16 sps:$4 sm:$0xff]  }
 0x372   :  { %5926 = vmatprep.subr.bf16.mxu0 %v8857_v59  ;;  %v8926_v31 = vld [vmem:[#allocation11 + $0x30c] ss:$16 sps:$4 sm:$0xff]   ;;  %v8924_v5 = vld [vmem:[#allocation11 + $0x308] ss:$16 sps:$4 sm:$0xff]   ;;  %v8927_v59 = vld [vmem:[#allocation14 + $0xe0] ss:$16 sps:$4 sm:$0xff]  }
 0x373   :  { %5968 = vmatpush1.bf16.msra.mxu1 %v8852_v0  ;;  %v8929_v0 = vld [vmem:[#allocation14 + $0xe4] ss:$16 sps:$4 sm:$0xff]  }
 0x374   :  { %5969 = vmatprep.subr.bf16.mxu1 %v8860_v49  ;;  %v8932_v49 = vld [vmem:[#allocation14 + $0xc4] ss:$16 sps:$4 sm:$0xff]  }
 0x375   :  { %5927 = vmatpush1.bf16.msra.mxu0 %v8855_v17 }
 0x376   :  { %5928 = vmatprep.subr.bf16.mxu0 %v8863_v51 }
 0x377   :  { %5970 = vmatpush1.bf16.msra.mxu1 %v8858_v8 }
 0x378   :  { %5971 = vmatprep.subr.bf16.mxu1 %v8866_v10  ;;  %v8930_v10 = vld [vmem:[#allocation14 + $0xc0] ss:$16 sps:$4 sm:$0xff]  }
 0x379   :  { %5929 = vmatpush1.bf16.msra.mxu0 %v8861_v26 }
 0x37a   :  { %5930 = vmatprep.subr.bf16.mxu0 %v8869_v58  ;;  %v8935_v58 = vld [vmem:[#allocation14 + $0xa4] ss:$16 sps:$4 sm:$0xff]  }
 0x37b   :  { %5972 = vmatpush1.bf16.msra.mxu1 %v8864_v53 }
 0x37c   :  { %5973 = vmatprep.subr.bf16.mxu1 %v8872_v56 }
 0x37d   :  { %5931 = vmatpush1.bf16.msra.mxu0 %v8867_v62 }
 0x37e   :  { %5932 = vmatprep.subr.bf16.mxu0 %v8875_v7  ;;  %v8933_v7 = vld [vmem:[#allocation14 + $0xa0] ss:$16 sps:$4 sm:$0xff]  }
 0x37f   :  { %5974 = vmatpush1.bf16.msra.mxu1 %v8870_v4 }
 0x380   :  { %5975 = vmatprep.subr.bf16.mxu1 %v8878_v38 }
 0x381   :  { %5933 = vmatpush1.bf16.msra.mxu0 %v8873_v9  ;;  %v8938_v9 = vld [vmem:[#allocation14 + $0x84] ss:$16 sps:$4 sm:$0xff]  }
 0x382   :  { %5934 = vmatprep.subr.bf16.mxu0 %v8881_v43  ;;  %v8936_v43 = vld [vmem:[#allocation14 + $0x80] ss:$16 sps:$4 sm:$0xff]  }
 0x383   :  { %5976 = vmatpush1.bf16.msra.mxu1 %v8876_v40 }
 0x384   :  { %5977 = vmatprep.subr.bf16.mxu1 %v8884_v60  ;;  %v8939_v60 = vld [vmem:[#allocation14 + $0x60] ss:$16 sps:$4 sm:$0xff]  }
 0x385   :  { %5935 = vmatpush2.bf16.msra.mxu0 %v8879_v61  ;;  %v8944_v61 = vld [vmem:[#allocation14 + $0x44] ss:$16 sps:$4 sm:$0xff]  }
 0x386   :  { %5936 = vmatprep.subr.bf16.mxu0 %v8887_v18  ;;  %v8942_v18 = vld [vmem:[#allocation14 + $0x40] ss:$16 sps:$4 sm:$0xff]  }
 0x387   :  { %5978 = vmatpush2.bf16.msra.mxu1 %v8882_v16  ;;  %v8977_v16 = vld [vmem:[#allocation14 + $0x2e4] ss:$16 sps:$4 sm:$0xff]  }
 0x388   :  { %5979 = vmatprep.subr.bf16.mxu1 %v8890_v19  ;;  %v8983_v19 = vld [vmem:[#allocation14 + $0x2c4] ss:$16 sps:$4 sm:$0xff]  }
 0x389   :  { %5937 = vmatpush2.bf16.msra.mxu0 %v8885_v25  ;;  %v8981_v25 = vld [vmem:[#allocation14 + $0x2c0] ss:$16 sps:$4 sm:$0xff]  }
 0x38a   :  { %5938 = vmatprep.subr.bf16.mxu0 %v8893_v23  ;;  %v8950_v23 = vld [vmem:[#allocation14 + $0x4] ss:$16 sps:$4 sm:$0xff]  }
 0x38b   :  { %5980 = vmatpush2.bf16.msra.mxu1 %v8888_v20  ;;  %v8989_v20 = vld [vmem:[#allocation14 + $0x2a4] ss:$16 sps:$4 sm:$0xff]  }
 0x38c   :  { %5981 = vmatprep.subr.bf16.mxu1 %v8896_v28  ;;  %v8987_v28 = vld [vmem:[#allocation14 + $0x2a0] ss:$16 sps:$4 sm:$0xff]  }
 0x38d   :  { %5939 = vmatpush2.bf16.msra.mxu0 %v8891_v29  ;;  %v8948_v29 = vld [vmem:[#allocation14] ss:$16 sps:$4 sm:$0xff]  }
 0x38e   :  { %5940 = vmatprep.subr.bf16.mxu0 %v8899_v52  ;;  %v8953_v52 = vld [vmem:[#allocation14 + $0x1e4] ss:$16 sps:$4 sm:$0xff]  }
 0x38f   :  { %5982 = vmatpush2.bf16.msra.mxu1 %v8894_v32  ;;  %v8995_v32 = vld [vmem:[#allocation14 + $0x284] ss:$16 sps:$4 sm:$0xff]  }
 0x390   :  { %5983 = vmatprep.subr.bf16.mxu1 %v8902_v50  ;;  %v8993_v50 = vld [vmem:[#allocation14 + $0x280] ss:$16 sps:$4 sm:$0xff]  }
 0x391   :  { %5941 = vmatpush2.bf16.msra.mxu0 %v8897_v54  ;;  %v8951_v54 = vld [vmem:[#allocation14 + $0x1e0] ss:$16 sps:$4 sm:$0xff]  }
 0x392   :  { %5942 = vmatprep.subr.bf16.mxu0 %v8905_v2  ;;  %v8956_v2 = vld [vmem:[#allocation14 + $0x1c4] ss:$16 sps:$4 sm:$0xff]  }
 0x393   :  { %5984 = vmatpush2.bf16.msra.mxu1 %v8900_v3  ;;  %v9001_v3 = vld [vmem:[#allocation14 + $0x264] ss:$16 sps:$4 sm:$0xff]  }
 0x394   :  { %5985 = vmatprep.subr.bf16.mxu1 %v8908_v6  ;;  %v8999_v6 = vld [vmem:[#allocation14 + $0x260] ss:$16 sps:$4 sm:$0xff]  }
 0x395   :  { %5943 = vmatpush2.bf16.msra.mxu0 %v8903_v44  ;;  %v8954_v44 = vld [vmem:[#allocation14 + $0x1c0] ss:$16 sps:$4 sm:$0xff]  }
 0x396   :  { %5944 = vmatprep.subr.bf16.mxu0 %v8911_v46  ;;  %v8959_v46 = vld [vmem:[#allocation14 + $0x1a4] ss:$16 sps:$4 sm:$0xff]  }
 0x397   :  { %5986 = vmatpush2.bf16.msra.mxu1 %v8906_v47  ;;  %v9007_v47 = vld [vmem:[#allocation14 + $0x244] ss:$16 sps:$4 sm:$0xff]  }
 0x398   :  { %5987 = vmatprep.subr.bf16.mxu1 %v8914_v24  ;;  %v9005_v24 = vld [vmem:[#allocation14 + $0x240] ss:$16 sps:$4 sm:$0xff]  }
 0x399   :  { %5945 = vmatpush2.bf16.msra.mxu0 %v8909_v39  ;;  %v8957_v39 = vld [vmem:[#allocation14 + $0x1a0] ss:$16 sps:$4 sm:$0xff]  }
 0x39a   :  { %5946 = vmatprep.subr.bf16.mxu0 %v8917_v12  ;;  %v8962_v12 = vld [vmem:[#allocation14 + $0x184] ss:$16 sps:$4 sm:$0xff]  }
 0x39b   :  { %5988 = vmatpush2.bf16.msra.mxu1 %v8912_v34  ;;  %v9013_v34 = vld [vmem:[#allocation14 + $0x224] ss:$16 sps:$4 sm:$0xff]  }
 0x39c   :  { %5989 = vmatprep.subr.bf16.mxu1 %v8920_v15  ;;  %v9011_v15 = vld [vmem:[#allocation14 + $0x220] ss:$16 sps:$4 sm:$0xff]  }
 0x39d   :  { %5947 = vmatpush2.bf16.msra.mxu0 %v8915_v45  ;;  %v8960_v45 = vld [vmem:[#allocation14 + $0x180] ss:$16 sps:$4 sm:$0xff]  }
 0x39e   :  { %5948 = vmatprep.subr.bf16.mxu0 %v8923_v57  ;;  %v8965_v57 = vld [vmem:[#allocation14 + $0x164] ss:$16 sps:$4 sm:$0xff]  }
 0x39f   :  { %5990 = vmatpush2.bf16.msra.mxu1 %v8918_v30  ;;  %v9019_v30 = vld [vmem:[#allocation14 + $0x204] ss:$16 sps:$4 sm:$0xff]  }
 0x3a0   :  { %5991 = vmatprep.subr.bf16.mxu1 %v8926_v31  ;;  %v9017_v31 = vld [vmem:[#allocation14 + $0x200] ss:$16 sps:$4 sm:$0xff]  }
 0x3a1   :  { %5949 = vmatpush2.bf16.msra.mxu0 %v8921_v35  ;;  %v8963_v35 = vld [vmem:[#allocation14 + $0x160] ss:$16 sps:$4 sm:$0xff]  }
 0x3a2   :  { %6806 = vmatprep.subr.bf16.mxu0 %v8929_v0  ;;  %v8968_v0 = vld [vmem:[#allocation14 + $0x144] ss:$16 sps:$4 sm:$0xff]  }
 0x3a3   :  { %5992 = vmatpush2.bf16.msra.mxu1 %v8924_v5  ;;  %v9025_v5 = vld [vmem:[#allocation14 + $0x3e4] ss:$16 sps:$4 sm:$0xff]  }
 0x3a4   :  { %v4834_v17 = vpop.f32.mrf.mxu0  ;;  %5951 = vmatmul.mubr.bf16.vlgmr.msra.gmra.mxu0 %v9826_v21  ;;  %6849 = vmatprep.subr.bf16.mxu1 %v8977_v16 }
 0x3a5   :  { %v9885_v8 = vadd.f32 %v4834_v17, %v9871_v63  ;;  %6807 = vmatpush1.bf16.msra.mxu0 %v8927_v59  ;;  %v9023_v59 = vld [vmem:[#allocation14 + $0x3e0] ss:$16 sps:$4 sm:$0xff]   ;;  %v9031_v17 = vld [vmem:[#allocation14 + $0x3c4] ss:$16 sps:$4 sm:$0xff]  }
 0x3a6   :  { %v4877_v51 = vpop.f32.mrf.mxu1  ;;  %5994 = vmatmul.mubr.bf16.vlgmr.msra.gmra.mxu1 %v9862_v41  ;;  %v4836_v53 = vpop.f32.mrf.mxu0  ;;  %6808 = vmatprep.subr.bf16.mxu0 %v8932_v49  ;;  %v8966_v49 = vld [vmem:[#allocation14 + $0x140] ss:$16 sps:$4 sm:$0xff]  }
 0x3a7   :  { %v9889_v26 = vadd.f32 %v4877_v51, %v9771_v42  ;;  %v9892_v56 = vadd.f32 %v4836_v53, %v9875_v33  ;;  %v8971_v51 = vld [vmem:[#allocation14 + $0x124] ss:$16 sps:$4 sm:$0xff]   ;;  %v8969_v53 = vld [vmem:[#allocation14 + $0x120] ss:$16 sps:$4 sm:$0xff]  }
 0x3a8   :  { %v4879_v62 = vpop.f32.mrf.mxu1  ;;  %v4838_v63 = vpop.f32.mrf.mxu0 }
 0x3a9   :  { %v9895_v21 = vadd.f32 %v4879_v62, %v9776_v55  ;;  %v9898_v4 = vadd.f32 %v4838_v63, %v9878_v27  ;;  %6809 = vmatpush1.bf16.msra.mxu0 %v8930_v10  ;;  %v8941_v27 = vld [vmem:[#allocation14 + $0x64] ss:$16 sps:$4 sm:$0xff]   ;;  %v9029_v10 = vld [vmem:[#allocation14 + $0x3c0] ss:$16 sps:$4 sm:$0xff]  }
 0x3aa   :  { %v4881_v41 = vpop.f32.mrf.mxu1  ;;  %v4840_v38 = vpop.f32.mrf.mxu0  ;;  %6810 = vmatprep.subr.bf16.mxu0 %v8935_v58  ;;  %v9037_v58 = vld [vmem:[#allocation14 + $0x3a4] ss:$16 sps:$4 sm:$0xff]   ;;  %v9035_v63 = vld [vmem:[#allocation14 + $0x3a0] ss:$16 sps:$4 sm:$0xff]  }
 0x3ab   :  { %v9901_v42 = vadd.f32 %v4881_v41, %v9781_v1  ;;  %v9904_v33 = vadd.f32 %v4840_v38, %v9881_v48  ;;  %v8975_v1 = vld [vmem:[#allocation14 + $0x2e0] ss:$16 sps:$4 sm:$0xff]   ;;  %v8947_v48 = vld [vmem:[#allocation14 + $0x24] ss:$16 sps:$4 sm:$0xff]   ;;  %v8980_v38 = vld [vmem:[#allocation14 + $0xec] ss:$16 sps:$4 sm:$0xff]  }
 0x3ac   :  { %v4883_v40 = vpop.f32.mrf.mxu1  ;;  %6850 = vmatpush1.bf16.msra.mxu1 %v8975_v1  ;;  %v8974_v62 = vld [vmem:[#allocation14 + $0x104] ss:$16 sps:$4 sm:$0xff]   ;;  %v8972_v41 = vld [vmem:[#allocation14 + $0x100] ss:$16 sps:$4 sm:$0xff]  }
 0x3ad   :  { %v9907_v55 = vadd.f32 %v4883_v40, %v9783_v13  ;;  %6811 = vmatpush1.bf16.msra.mxu0 %v8933_v7  ;;  %6851 = vmatprep.subr.bf16.mxu1 %v8983_v19  ;;  %v8945_v13 = vld [vmem:[#allocation14 + $0x20] ss:$16 sps:$4 sm:$0xff]   ;;  %v9043_v7 = vld [vmem:[#allocation14 + $0x384] ss:$16 sps:$4 sm:$0xff]  }
 0x3ae   :  { %6812 = vmatprep.subr.bf16.mxu0 %v8938_v9  ;;  %v9041_v9 = vld [vmem:[#allocation14 + $0x380] ss:$16 sps:$4 sm:$0xff]   ;;  %v9049_v40 = vld [vmem:[#allocation14 + $0x364] ss:$16 sps:$4 sm:$0xff]  }
 0x3b0   :  { %6852 = vmatpush1.bf16.msra.mxu1 %v8981_v25 }
 0x3b1   :  { %6813 = vmatpush1.bf16.msra.mxu0 %v8936_v43  ;;  %6853 = vmatprep.subr.bf16.mxu1 %v8989_v20  ;;  %v9047_v43 = vld [vmem:[#allocation14 + $0x360] ss:$16 sps:$4 sm:$0xff]  }
 0x3b2   :  { %6814 = vmatprep.subr.bf16.mxu0 %v8941_v27 }
 0x3b4   :  { %6854 = vmatpush1.bf16.msra.mxu1 %v8987_v28 }
 0x3b5   :  { %6815 = vmatpush1.bf16.msra.mxu0 %v8939_v60  ;;  %6855 = vmatprep.subr.bf16.mxu1 %v8995_v32 }
 0x3b6   :  { %6816 = vmatprep.subr.bf16.mxu0 %v8944_v61 }
 0x3b8   :  { %6856 = vmatpush1.bf16.msra.mxu1 %v8993_v50 }
 0x3b9   :  { %6817 = vmatpush1.bf16.msra.mxu0 %v8942_v18  ;;  %6857 = vmatprep.subr.bf16.mxu1 %v9001_v3  ;;  %v9067_v3 = vld [vmem:[#allocation14 + $0x304] ss:$16 sps:$4 sm:$0xff]  }
 0x3ba   :  { %6818 = vmatprep.subr.bf16.mxu0 %v8947_v48  ;;  %v9055_v48 = vld [vmem:[#allocation14 + $0x344] ss:$16 sps:$4 sm:$0xff]  }
 0x3bc   :  { %6858 = vmatpush1.bf16.msra.mxu1 %v8999_v6  ;;  %v9921_v6 = vld [vmem:[#allocation13] sm:$0xf] }
 0x3bd   :  { %6819 = vmatpush1.bf16.msra.mxu0 %v8945_v13  ;;  %6859 = vmatprep.subr.bf16.mxu1 %v9007_v47  ;;  %v9053_v13 = vld [vmem:[#allocation14 + $0x340] ss:$16 sps:$4 sm:$0xff]  }
 0x3be   :  { %6820 = vmatprep.subr.bf16.mxu0 %v8950_v23 }
 0x3c0   :  { %6860 = vmatpush1.bf16.msra.mxu1 %v9005_v24 }
 0x3c1   :  { %6821 = vmatpush1.bf16.msra.mxu0 %v8948_v29  ;;  %6861 = vmatprep.subr.bf16.mxu1 %v9013_v34 }
 0x3c2   :  { %6822 = vmatprep.subr.bf16.mxu0 %v8953_v52  ;;  %v9061_v52 = vld [vmem:[#allocation14 + $0x324] ss:$16 sps:$4 sm:$0xff]  }
 0x3c4   :  { %6862 = vmatpush1.bf16.msra.mxu1 %v9011_v15 }
 0x3c5   :  { %6823 = vmatpush2.bf16.msra.mxu0 %v8951_v54  ;;  %6863 = vmatprep.subr.bf16.mxu1 %v9019_v30  ;;  %v9059_v54 = vld [vmem:[#allocation14 + $0x320] ss:$16 sps:$4 sm:$0xff]  }
 0x3c6   :  { %6824 = vmatprep.subr.bf16.mxu0 %v8956_v2  ;;  %v9065_v2 = vld [vmem:[#allocation14 + $0x300] ss:$16 sps:$4 sm:$0xff]  }
 0x3c8   :  { %6864 = vmatpush1.bf16.msra.mxu1 %v9017_v31 }
 0x3c9   :  { %6825 = vmatpush2.bf16.msra.mxu0 %v8954_v44  ;;  %6865 = vmatprep.subr.bf16.mxu1 %v9025_v5  ;;  %v5179_v44 = vrot.slane %v9921_v6, %v9835_v37 }
 0x3ca   :  { %6826 = vmatprep.subr.bf16.mxu0 %v8959_v46 }
 0x3cc   :  { %6866 = vmatpush2.bf16.msra.mxu1 %v9023_v59 }
 0x3cd   :  { %6827 = vmatpush2.bf16.msra.mxu0 %v8957_v39  ;;  %6867 = vmatprep.subr.bf16.mxu1 %v9031_v17 }
 0x3ce   :  { %6828 = vmatprep.subr.bf16.mxu0 %v8962_v12 }
 0x3d0   :  { %6868 = vmatpush2.bf16.msra.mxu1 %v9029_v10 }
 0x3d1   :  { %6829 = vmatpush2.bf16.msra.mxu0 %v8960_v45  ;;  %6869 = vmatprep.subr.bf16.mxu1 %v9037_v58 }
 0x3d2   :  { %6830 = vmatprep.subr.bf16.mxu0 %v8965_v57 }
 0x3d4   :  { %6870 = vmatpush2.bf16.msra.mxu1 %v9035_v63 }
 0x3d5   :  { %6831 = vmatpush2.bf16.msra.mxu0 %v8963_v35  ;;  %6871 = vmatprep.subr.bf16.mxu1 %v9043_v7  ;;  %v8984_v7 = vld [vmem:[#allocation14 + $0xc8] ss:$16 sps:$4 sm:$0xff]  }
 0x3d6   :  { %6832 = vmatprep.subr.bf16.mxu0 %v8968_v0 }
 0x3d8   :  { %6872 = vmatpush2.bf16.msra.mxu1 %v9041_v9  ;;  %v8990_v9 = vld [vmem:[#allocation14 + $0xa8] ss:$16 sps:$4 sm:$0xff]  }
 0x3d9   :  { %6833 = vmatpush2.bf16.msra.mxu0 %v8966_v49  ;;  %6873 = vmatprep.subr.bf16.mxu1 %v9049_v40  ;;  %v8998_v40 = vld [vmem:[#allocation14 + $0x8c] ss:$16 sps:$4 sm:$0xff]  }
 0x3da   :  { %6834 = vmatprep.subr.bf16.mxu0 %v8971_v51 }
 0x3dc   :  { %6874 = vmatpush2.bf16.msra.mxu1 %v9047_v43  ;;  %v8996_v43 = vld [vmem:[#allocation14 + $0x88] ss:$16 sps:$4 sm:$0xff]  }
 0x3dd   :  { %6835 = vmatpush2.bf16.msra.mxu0 %v8969_v53  ;;  %6875 = vmatprep.subr.bf16.mxu1 %v9055_v48  ;;  %v9022_v48 = vld [vmem:[#allocation14 + $0xc] ss:$16 sps:$4 sm:$0xff]  }
 0x3de   :  { %6836 = vmatprep.subr.bf16.mxu0 %v8974_v62  ;;  %v8978_v62 = vld [vmem:[#allocation14 + $0xe8] ss:$16 sps:$4 sm:$0xff]  }
 0x3e0   :  { %6876 = vmatpush2.bf16.msra.mxu1 %v9053_v13  ;;  %v9028_v13 = vld [vmem:[#allocation14 + $0x1ec] ss:$16 sps:$4 sm:$0xff]  }
 0x3e1   :  { %6837 = vmatpush2.bf16.msra.mxu0 %v8972_v41  ;;  %6877 = vmatprep.subr.bf16.mxu1 %v9061_v52  ;;  %v8986_v41 = vld [vmem:[#allocation14 + $0xcc] ss:$16 sps:$4 sm:$0xff]   ;;  %v9038_v52 = vld [vmem:[#allocation14 + $0x1a8] ss:$16 sps:$4 sm:$0xff]  }
 0x3e2   :  { %6892 = vmatprep.subr.bf16.mxu0 %v8980_v38  ;;  %v8992_v38 = vld [vmem:[#allocation14 + $0xac] ss:$16 sps:$4 sm:$0xff]  }
 0x3e4   :  { %v4920_v27 = vpop.f32.mrf.mxu0  ;;  %6878 = vmatpush2.bf16.msra.mxu1 %v9059_v54  ;;  %v9044_v54 = vld [vmem:[#allocation14 + $0x188] ss:$16 sps:$4 sm:$0xff]  }
 0x3e5   :  { %v4921_v60 = vadd.f32 %v4920_v27, %v9889_v26  ;;  %6879 = vmatprep.subr.bf16.mxu1 %v9067_v3  ;;  %v9004_v27 = vld [vmem:[#allocation14 + $0x6c] ss:$16 sps:$4 sm:$0xff]  }
 0x3e6   :  { %v4963_v61 = vpop.f32.mrf.mxu1  ;;  %v4922_v1 = vpop.f32.mrf.mxu0  ;;  %v9052_v3 = vld [vmem:[#allocation14 + $0x16c] ss:$16 sps:$4 sm:$0xff]  }
 0x3e7   :  { %v9910_v16 = vadd.f32 %v4963_v61, %v4921_v60  ;;  %v4923_v18 = vadd.f32 %v4922_v1, %v9895_v21  ;;  %v9002_v60 = vld [vmem:[#allocation14 + $0x68] ss:$16 sps:$4 sm:$0xff]   ;;  %v9010_v61 = vld [vmem:[#allocation14 + $0x4c] ss:$16 sps:$4 sm:$0xff]  }
 0x3e8   :  { %v4965_v19 = vpop.f32.mrf.mxu1  ;;  %v4924_v25 = vpop.f32.mrf.mxu0  ;;  %6880 = vmatpush2.bf16.msra.mxu1 %v9065_v2  ;;  %v9008_v1 = vld [vmem:[#allocation14 + $0x48] ss:$16 sps:$4 sm:$0xff]  }
 0x3e9   :  { %v9913_v20 = vadd.f32 %v4965_v19, %v4923_v18  ;;  %v4925_v23 = vadd.f32 %v4924_v25, %v9901_v42  ;;  %v9073_v42 = vld [vmem:[#allocation14 + $0x2ec] ss:$16 sps:$4 sm:$0xff]   ;;  %v9014_v19 = vld [vmem:[#allocation14 + $0x28] ss:$16 sps:$4 sm:$0xff]  }
 0x3ea   :  { %v4967_v28 = vpop.f32.mrf.mxu1  ;;  %v4926_v29 = vpop.f32.mrf.mxu0  ;;  %6935 = vmatprep.subr.bf16.mxu1 %v9073_v42  ;;  %v9016_v18 = vld [vmem:[#allocation14 + $0x2c] ss:$16 sps:$4 sm:$0xff]   ;;  %v9020_v25 = vld [vmem:[#allocation14 + $0x8] ss:$16 sps:$4 sm:$0xff]  }
 0x3eb   :  { %v9916_v26 = vadd.f32 %v4967_v28, %v4925_v23  ;;  %v4927_v32 = vadd.f32 %v4926_v29, %v9907_v55  ;;  %v5175_v55 = vrot.slane %v9921_v6, %v9808_v22  ;;  %v9026_v23 = vld [vmem:[#allocation14 + $0x1e8] ss:$16 sps:$4 sm:$0xff]   ;;  %v9034_v28 = vld [vmem:[#allocation14 + $0x1cc] ss:$16 sps:$4 sm:$0xff]  }
 0x3ec   :  { %v4969_v50 = vpop.f32.mrf.mxu1  ;;  %v9032_v29 = vld [vmem:[#allocation14 + $0x1c8] ss:$16 sps:$4 sm:$0xff]   ;;  %v9058_v42 = vld [vmem:[#allocation14 + $0x14c] ss:$16 sps:$4 sm:$0xff]  }
 0x3ed   :  { %v9919_v21 = vadd.f32 %v4969_v50, %v4927_v32  ;;  %v9040_v32 = vld [vmem:[#allocation14 + $0x1ac] ss:$16 sps:$4 sm:$0xff]   ;;  %v9050_v2 = vld [vmem:[#allocation14 + $0x168] ss:$16 sps:$4 sm:$0xff]  }
 0x3ee   :  { %v9046_v50 = vld [vmem:[#allocation14 + $0x18c] ss:$16 sps:$4 sm:$0xff]  }
 0x424   :  { %v5866_v47 = vpop.f32.mrf.mxu0 }
 0x425   :  { %v5867_v12 = vadd.f32 %v5866_v47, %v5175_v55 }
 0x426   :  { %v5909_v46 = vpop.f32.mrf.mxu1  ;;  %v5868_v24 = vpop.f32.mrf.mxu0 }
 0x427   :  { %v5869_v39 = vadd.f32 %v5868_v24, %v5179_v44  ;;  %v5910_v0 = vadd.f32 %v5909_v46, %v5867_v12  ;;  %v9056_v24 = vld [vmem:[#allocation14 + $0x148] ss:$16 sps:$4 sm:$0xff]  }
 0x428   :  { %v5911_v34 = vpop.f32.mrf.mxu1  ;;  %v5870_v15 = vpop.f32.mrf.mxu0 }
 0x429   :  { %v5871_v45 = vadd.f32 %v5870_v15, %v5175_v55  ;;  %v5912_v31 = vadd.f32 %v5911_v34, %v5869_v39  ;;  %v6004_v53 = vmax.f32 %v5910_v0, 0.0  ;;  %v5183_v55 = vrot.slane %v9921_v6, %v9842_v14  ;;  %v9064_v34 = vld [vmem:[#allocation14 + $0x12c] ss:$16 sps:$4 sm:$0xff]  }
 0x42a   :  { %v5913_v30 = vpop.f32.mrf.mxu1  ;;  %v5872_v57 = vpop.f32.mrf.mxu0  ;;  %v9070_v0 = vld [vmem:[#allocation14 + $0x10c] ss:$16 sps:$4 sm:$0xff]  }
 0x42b   :  { %v5914_v35 = vadd.f32 %v5913_v30, %v5871_v45  ;;  %v5873_v5 = vadd.f32 %v5872_v57, %v5179_v44  ;;  %v6005_v51 = vmax.f32 %v5912_v31, 0.0  ;;  %v5187_v44 = vrot.slane %v9921_v6, %v9852_v36 }
 0x42c   :  { %v5915_v59 = vpop.f32.mrf.mxu1 }
 0x42d   :  { %v5916_v49 = vadd.f32 %v5915_v59, %v5873_v5  ;;  %v6008_v17 = vmax.f32 %v5914_v35, 0.0  ;;  %v9062_v35 = vld [vmem:[#allocation14 + $0x128] ss:$16 sps:$4 sm:$0xff]  }
 0x42f   :  { %v6009_v10 = vmax.f32 %v5916_v49, 0.0  ;;  %v9927_v63 = vpack.c.bf16 %v6008_v17, %v6004_v53  ;;  %v9068_v53 = vld [vmem:[#allocation14 + $0x108] ss:$16 sps:$4 sm:$0xff]  }
 0x431   :  { %v6013_v58 = vpack.c.bf16 %v6009_v10, %v6005_v51 }
 0x433   :  { %6838 = vmatprep.mubr.bf16.mxu0 %v6013_v58 }
 0x434   :  { %6839 = vmatmul.mubr.bf16.vlgmr.msra.gmra.mxu0 %v9927_v63 }
 0x435   :  { %6893 = vmatpush1.bf16.msra.mxu0 %v8978_v62  ;;  %6924 = vmatprep.mubr.bf16.mxu0 %v6013_v58 }
 0x436   :  { %6894 = vmatprep.subr.bf16.mxu0 %v8986_v41 }
 0x439   :  { %6895 = vmatpush1.bf16.msra.mxu0 %v8984_v7 }
 0x43a   :  { %6896 = vmatprep.subr.bf16.mxu0 %v8992_v38 }
 0x43d   :  { %6897 = vmatpush1.bf16.msra.mxu0 %v8990_v9  ;;  %v9071_v9 = vld [vmem:[#allocation14 + $0x2e8] ss:$16 sps:$4 sm:$0xff]  }
 0x43e   :  { %6898 = vmatprep.subr.bf16.mxu0 %v8998_v40 }
 0x441   :  { %6899 = vmatpush1.bf16.msra.mxu0 %v8996_v43  ;;  %v9076_v43 = vld [vmem:[#allocation14 + $0x2cc] ss:$16 sps:$4 sm:$0xff]  }
 0x442   :  { %6900 = vmatprep.subr.bf16.mxu0 %v9004_v27  ;;  %v9074_v27 = vld [vmem:[#allocation14 + $0x2c8] ss:$16 sps:$4 sm:$0xff]  }
 0x445   :  { %6901 = vmatpush1.bf16.msra.mxu0 %v9002_v60  ;;  %v9079_v60 = vld [vmem:[#allocation14 + $0x2ac] ss:$16 sps:$4 sm:$0xff]  }
 0x446   :  { %6902 = vmatprep.subr.bf16.mxu0 %v9010_v61  ;;  %v9077_v61 = vld [vmem:[#allocation14 + $0x2a8] ss:$16 sps:$4 sm:$0xff]  }
 0x449   :  { %6903 = vmatpush1.bf16.msra.mxu0 %v9008_v1  ;;  %v9082_v1 = vld [vmem:[#allocation14 + $0x28c] ss:$16 sps:$4 sm:$0xff]  }
 0x44a   :  { %6904 = vmatprep.subr.bf16.mxu0 %v9016_v18  ;;  %v9119_v18 = vld [vmem:[#allocation17 + $0x70] ss:$8 sps:$4 sm:$0xff]  }
 0x44d   :  { %6905 = vmatpush1.bf16.msra.mxu0 %v9014_v19  ;;  %v9121_v19 = vld [vmem:[#allocation17 + $0x74] ss:$8 sps:$4 sm:$0xff]  }
 0x44e   :  { %6906 = vmatprep.subr.bf16.mxu0 %v9022_v48  ;;  %v9124_v48 = vld [vmem:[#allocation17 + $0x64] ss:$8 sps:$4 sm:$0xff]  }
 0x451   :  { %6907 = vmatpush1.bf16.msra.mxu0 %v9020_v25  ;;  %v9080_v25 = vld [vmem:[#allocation14 + $0x288] ss:$16 sps:$4 sm:$0xff]  }
 0x452   :  { %6908 = vmatprep.subr.bf16.mxu0 %v9028_v13  ;;  %v9085_v13 = vld [vmem:[#allocation14 + $0x26c] ss:$16 sps:$4 sm:$0xff]  }
 0x455   :  { %6909 = vmatpush2.bf16.msra.mxu0 %v9026_v23  ;;  %v9127_v23 = vld [vmem:[#allocation17 + $0x54] ss:$8 sps:$4 sm:$0xff]  }
 0x456   :  { %6910 = vmatprep.subr.bf16.mxu0 %v9034_v28  ;;  %v9083_v28 = vld [vmem:[#allocation14 + $0x268] ss:$16 sps:$4 sm:$0xff]  }
 0x459   :  { %6911 = vmatpush2.bf16.msra.mxu0 %v9032_v29  ;;  %v9088_v29 = vld [vmem:[#allocation14 + $0x24c] ss:$16 sps:$4 sm:$0xff]  }
 0x45a   :  { %6912 = vmatprep.subr.bf16.mxu0 %v9040_v32  ;;  %v9125_v32 = vld [vmem:[#allocation17 + $0x50] ss:$8 sps:$4 sm:$0xff]  }
 0x45d   :  { %6913 = vmatpush2.bf16.msra.mxu0 %v9038_v52  ;;  %v9130_v52 = vld [vmem:[#allocation17 + $0x44] ss:$8 sps:$4 sm:$0xff]  }
 0x45e   :  { %6914 = vmatprep.subr.bf16.mxu0 %v9046_v50  ;;  %v9086_v50 = vld [vmem:[#allocation14 + $0x248] ss:$16 sps:$4 sm:$0xff]  }
 0x461   :  { %6915 = vmatpush2.bf16.msra.mxu0 %v9044_v54  ;;  %v9091_v54 = vld [vmem:[#allocation14 + $0x22c] ss:$16 sps:$4 sm:$0xff]  }
 0x462   :  { %6916 = vmatprep.subr.bf16.mxu0 %v9052_v3  ;;  %v9128_v3 = vld [vmem:[#allocation17 + $0x40] ss:$8 sps:$4 sm:$0xff]  }
 0x464   :  { %v5952_v47 = vpop.f32.mrf.mxu0 }
 0x465   :  { %6917 = vmatpush2.bf16.msra.mxu0 %v9050_v2  ;;  %v5953_v45 = vadd.f32 %v5952_v47, %v5183_v55  ;;  %v9133_v2 = vld [vmem:[#allocation17 + $0x34] ss:$8 sps:$4 sm:$0xff]   ;;  %v9136_v47 = vld [vmem:[#allocation17 + $0x24] ss:$8 sps:$4 sm:$0xff]  }
 0x466   :  { %v5995_v46 = vpop.f32.mrf.mxu1  ;;  %v5954_v39 = vpop.f32.mrf.mxu0  ;;  %6918 = vmatprep.subr.bf16.mxu0 %v9058_v42  ;;  %v9089_v42 = vld [vmem:[#allocation14 + $0x228] ss:$16 sps:$4 sm:$0xff]  }
 0x467   :  { %v5955_v12 = vadd.f32 %v5954_v39, %v5187_v44  ;;  %v5996_v17 = vadd.f32 %v5995_v46, %v5953_v45  ;;  %v9092_v46 = vld [vmem:[#allocation14 + $0x208] ss:$16 sps:$4 sm:$0xff]   ;;  %v9134_v39 = vld [vmem:[#allocation17 + $0x20] ss:$8 sps:$4 sm:$0xff]   ;;  %v9137_v45 = vld [vmem:[#allocation17 + $0x10] ss:$8 sps:$4 sm:$0xff]  }
 0x468   :  { %v5997_v15 = vpop.f32.mrf.mxu1  ;;  %v5956_v30 = vpop.f32.mrf.mxu0 }
 0x469   :  { %v5957_v57 = vadd.f32 %v5956_v30, %v5183_v55  ;;  %6919 = vmatpush2.bf16.msra.mxu0 %v9056_v24  ;;  %v5998_v59 = vadd.f32 %v5997_v15, %v5955_v12  ;;  %v6006_v7 = vmax.f32 %v5996_v17, 0.0  ;;  %v9131_v55 = vld [vmem:[#allocation17 + $0x30] ss:$8 sps:$4 sm:$0xff]   ;;  %v9095_v12 = vld [vmem:[#allocation14 + $0x3e8] ss:$16 sps:$4 sm:$0xff]  }
 0x46a   :  { %v5999_v31 = vpop.f32.mrf.mxu1  ;;  %v5958_v5 = vpop.f32.mrf.mxu0  ;;  %6920 = vmatprep.subr.bf16.mxu0 %v9064_v34  ;;  %v9097_v24 = vld [vmem:[#allocation14 + $0x3ec] ss:$16 sps:$4 sm:$0xff]   ;;  %v9139_v34 = vld [vmem:[#allocation17 + $0x14] ss:$8 sps:$4 sm:$0xff]   ;;  %v9142_v30 = vld [vmem:[#allocation17 + $0x4] ss:$8 sps:$4 sm:$0xff]  }
 0x46b   :  { %v6000_v6 = vadd.f32 %v5999_v31, %v5957_v57  ;;  %v5959_v49 = vadd.f32 %v5958_v5, %v5187_v44  ;;  %v6007_v62 = vmax.f32 %v5998_v59, 0.0  ;;  %v9094_v44 = vld [vmem:[#allocation14 + $0x20c] ss:$16 sps:$4 sm:$0xff]   ;;  %v9098_v57 = vld [vmem:[#allocation14 + $0x3c8] ss:$16 sps:$4 sm:$0xff]  }
 0x46c   :  { %v6001_v51 = vpop.f32.mrf.mxu1  ;;  %v9100_v15 = vld [vmem:[#allocation14 + $0x3cc] ss:$16 sps:$4 sm:$0xff]   ;;  %v9145_v5 = vld [vmem:[#allocation17 + $0xf4] ss:$8 sps:$4 sm:$0xff]  }
 0x46d   :  { %v6002_v10 = vadd.f32 %v6001_v51, %v5959_v49  ;;  %6921 = vmatpush2.bf16.msra.mxu0 %v9062_v35  ;;  %v6010_v58 = vmax.f32 %v6000_v6, 0.0  ;;  %v9103_v31 = vld [vmem:[#allocation14 + $0x3ac] ss:$16 sps:$4 sm:$0xff]   ;;  %v9148_v49 = vld [vmem:[#allocation17 + $0xe4] ss:$8 sps:$4 sm:$0xff]  }
 0x46e   :  { %6922 = vmatprep.subr.bf16.mxu0 %v9070_v0  ;;  %v9140_v35 = vld [vmem:[#allocation17] ss:$8 sps:$4 sm:$0xff]   ;;  %v9101_v0 = vld [vmem:[#allocation14 + $0x3a8] ss:$16 sps:$4 sm:$0xff]   ;;  %v9143_v6 = vld [vmem:[#allocation17 + $0xf0] ss:$8 sps:$4 sm:$0xff]  }
 0x46f   :  { %v6011_v41 = vmax.f32 %v6002_v10, 0.0  ;;  %v9934_v40 = vpack.c.bf16 %v6010_v58, %v6006_v7  ;;  %v9106_v59 = vld [vmem:[#allocation14 + $0x38c] ss:$16 sps:$4 sm:$0xff]   ;;  %v9104_v17 = vld [vmem:[#allocation14 + $0x388] ss:$16 sps:$4 sm:$0xff]  }
 0x470   :  { %v9109_v51 = vld [vmem:[#allocation14 + $0x36c] ss:$16 sps:$4 sm:$0xff]   ;;  %v9107_v58 = vld [vmem:[#allocation14 + $0x368] ss:$16 sps:$4 sm:$0xff]  }
 0x471   :  { %v6015_v38 = vpack.c.bf16 %v6011_v41, %v6007_v62  ;;  %6923 = vmatpush2.bf16.msra.mxu0 %v9068_v53  ;;  %v9146_v10 = vld [vmem:[#allocation17 + $0xe0] ss:$8 sps:$4 sm:$0xff]   ;;  %v9151_v53 = vld [vmem:[#allocation17 + $0xd4] ss:$8 sps:$4 sm:$0xff]   ;;  %v9149_v41 = vld [vmem:[#allocation17 + $0xd0] ss:$8 sps:$4 sm:$0xff]  }
 0x472   :  { %7394 = vmatprep.subr.bf16.mxu0 %v9121_v19  ;;  %v9112_v62 = vld [vmem:[#allocation14 + $0x34c] ss:$16 sps:$4 sm:$0xff]   ;;  %v9154_v7 = vld [vmem:[#allocation17 + $0xc4] ss:$8 sps:$4 sm:$0xff]  }
 0x473   :  { %6881 = vmatprep.mubr.bf16.mxu1 %v6015_v38  ;;  %v9160_v19 = vld [vmem:[#allocation17 + $0xa4] ss:$8 sps:$4 sm:$0xff]  }
 0x474   :  { %6925 = vmatmul.mubr.bf16.vlgmr.msra.gmra.mxu0 %v9927_v63  ;;  %6882 = vmatmul.mubr.bf16.vlgmr.msra.gmra.mxu1 %v9934_v40  ;;  %v9122_v63 = vld [vmem:[#allocation17 + $0x60] ss:$8 sps:$4 sm:$0xff]  }
 0x475   :  { %6936 = vmatpush1.bf16.msra.mxu1 %v9071_v9  ;;  %6967 = vmatprep.mubr.bf16.mxu1 %v6015_v38  ;;  %v9110_v38 = vld [vmem:[#allocation14 + $0x348] ss:$16 sps:$4 sm:$0xff]   ;;  %v9115_v9 = vld [vmem:[#allocation14 + $0x32c] ss:$16 sps:$4 sm:$0xff]  }
 0x476   :  { %6937 = vmatprep.subr.bf16.mxu1 %v9076_v43  ;;  %7395 = vmatpush1.bf16.msra.mxu0 %v9119_v18  ;;  %v9152_v43 = vld [vmem:[#allocation17 + $0xc0] ss:$8 sps:$4 sm:$0xff]   ;;  %v9155_v18 = vld [vmem:[#allocation17 + $0xb0] ss:$8 sps:$4 sm:$0xff]  }
 0x477   :  { %7396 = vmatprep.subr.bf16.mxu0 %v9124_v48  ;;  %v9158_v48 = vld [vmem:[#allocation17 + $0xa0] ss:$8 sps:$4 sm:$0xff]  }
 0x479   :  { %6938 = vmatpush1.bf16.msra.mxu1 %v9074_v27  ;;  %v9113_v27 = vld [vmem:[#allocation14 + $0x328] ss:$16 sps:$4 sm:$0xff]  }
 0x47a   :  { %6939 = vmatprep.subr.bf16.mxu1 %v9079_v60  ;;  %7397 = vmatpush1.bf16.msra.mxu0 %v9122_v63  ;;  %v9118_v60 = vld [vmem:[#allocation14 + $0x30c] ss:$16 sps:$4 sm:$0xff]  }
 0x47b   :  { %7398 = vmatprep.subr.bf16.mxu0 %v9127_v23  ;;  %v9164_v63 = vld [vmem:[#allocation17 + $0x80] ss:$8 sps:$4 sm:$0xff]   ;;  %v9166_v23 = vld [vmem:[#allocation17 + $0x84] ss:$8 sps:$4 sm:$0xff]  }
 0x47d   :  { %6940 = vmatpush1.bf16.msra.mxu1 %v9077_v61  ;;  %v9116_v61 = vld [vmem:[#allocation14 + $0x308] ss:$16 sps:$4 sm:$0xff]  }
 0x47e   :  { %6941 = vmatprep.subr.bf16.mxu1 %v9082_v1  ;;  %7399 = vmatpush1.bf16.msra.mxu0 %v9125_v32  ;;  %v9157_v1 = vld [vmem:[#allocation17 + $0xb4] ss:$8 sps:$4 sm:$0xff]   ;;  %v9172_v32 = vld [vmem:[#allocation17 + $0x164] ss:$8 sps:$4 sm:$0xff]  }
 0x47f   :  { %7400 = vmatprep.subr.bf16.mxu0 %v9130_v52  ;;  %v9175_v52 = vld [vmem:[#allocation17 + $0x154] ss:$8 sps:$4 sm:$0xff]  }
 0x481   :  { %6942 = vmatpush1.bf16.msra.mxu1 %v9080_v25  ;;  %v9163_v25 = vld [vmem:[#allocation17 + $0x94] ss:$8 sps:$4 sm:$0xff]  }
 0x482   :  { %6943 = vmatprep.subr.bf16.mxu1 %v9085_v13  ;;  %7401 = vmatpush1.bf16.msra.mxu0 %v9128_v3  ;;  %v9161_v13 = vld [vmem:[#allocation17 + $0x90] ss:$8 sps:$4 sm:$0xff]   ;;  %v9176_v3 = vld [vmem:[#allocation17 + $0x140] ss:$8 sps:$4 sm:$0xff]  }
 0x483   :  { %7402 = vmatprep.subr.bf16.mxu0 %v9133_v2  ;;  %v9181_v2 = vld [vmem:[#allocation17 + $0x134] ss:$8 sps:$4 sm:$0xff]  }
 0x485   :  { %6944 = vmatpush1.bf16.msra.mxu1 %v9083_v28  ;;  %v9167_v28 = vld [vmem:[#allocation17 + $0x170] ss:$8 sps:$4 sm:$0xff]  }
 0x486   :  { %6945 = vmatprep.subr.bf16.mxu1 %v9088_v29  ;;  %7403 = vmatpush1.bf16.msra.mxu0 %v9131_v55  ;;  %v9169_v29 = vld [vmem:[#allocation17 + $0x174] ss:$8 sps:$4 sm:$0xff]   ;;  %v9182_v55 = vld [vmem:[#allocation17 + $0x120] ss:$8 sps:$4 sm:$0xff]  }
 0x487   :  { %7404 = vmatprep.subr.bf16.mxu0 %v9136_v47  ;;  %v9187_v47 = vld [vmem:[#allocation17 + $0x114] ss:$8 sps:$4 sm:$0xff]  }
 0x489   :  { %6946 = vmatpush1.bf16.msra.mxu1 %v9086_v50  ;;  %v9173_v50 = vld [vmem:[#allocation17 + $0x150] ss:$8 sps:$4 sm:$0xff]  }
 0x48a   :  { %6947 = vmatprep.subr.bf16.mxu1 %v9091_v54  ;;  %7405 = vmatpush1.bf16.msra.mxu0 %v9134_v39  ;;  %v9178_v54 = vld [vmem:[#allocation17 + $0x144] ss:$8 sps:$4 sm:$0xff]   ;;  %v9188_v39 = vld [vmem:[#allocation17 + $0x100] ss:$8 sps:$4 sm:$0xff]  }
 0x48b   :  { %7406 = vmatprep.subr.bf16.mxu0 %v9139_v34  ;;  %v9193_v34 = vld [vmem:[#allocation17 + $0x1f4] ss:$8 sps:$4 sm:$0xff]  }
 0x48d   :  { %6948 = vmatpush1.bf16.msra.mxu1 %v9089_v42  ;;  %v9179_v42 = vld [vmem:[#allocation17 + $0x130] ss:$8 sps:$4 sm:$0xff]  }
 0x48e   :  { %6949 = vmatprep.subr.bf16.mxu1 %v9094_v44  ;;  %7407 = vmatpush1.bf16.msra.mxu0 %v9137_v45  ;;  %v9184_v44 = vld [vmem:[#allocation17 + $0x124] ss:$8 sps:$4 sm:$0xff]   ;;  %v9194_v45 = vld [vmem:[#allocation17 + $0x1e0] ss:$8 sps:$4 sm:$0xff]  }
 0x48f   :  { %7408 = vmatprep.subr.bf16.mxu0 %v9142_v30  ;;  %v9199_v30 = vld [vmem:[#allocation17 + $0x1d4] ss:$8 sps:$4 sm:$0xff]  }
 0x491   :  { %6950 = vmatpush1.bf16.msra.mxu1 %v9092_v46  ;;  %v9185_v46 = vld [vmem:[#allocation17 + $0x110] ss:$8 sps:$4 sm:$0xff]  }
 0x492   :  { %6951 = vmatprep.subr.bf16.mxu1 %v9097_v24  ;;  %7409 = vmatpush1.bf16.msra.mxu0 %v9140_v35  ;;  %v9190_v24 = vld [vmem:[#allocation17 + $0x104] ss:$8 sps:$4 sm:$0xff]   ;;  %v9200_v35 = vld [vmem:[#allocation17 + $0x1c0] ss:$8 sps:$4 sm:$0xff]  }
 0x493   :  { %7410 = vmatprep.subr.bf16.mxu0 %v9145_v5  ;;  %v9205_v5 = vld [vmem:[#allocation17 + $0x1b4] ss:$8 sps:$4 sm:$0xff]  }
 0x495   :  { %6952 = vmatpush2.bf16.msra.mxu1 %v9095_v12  ;;  %v9191_v12 = vld [vmem:[#allocation17 + $0x1f0] ss:$8 sps:$4 sm:$0xff]  }
 0x496   :  { %6953 = vmatprep.subr.bf16.mxu1 %v9100_v15  ;;  %7411 = vmatpush2.bf16.msra.mxu0 %v9143_v6  ;;  %v9196_v15 = vld [vmem:[#allocation17 + $0x1e4] ss:$8 sps:$4 sm:$0xff]   ;;  %v9206_v6 = vld [vmem:[#allocation17 + $0x1a0] ss:$8 sps:$4 sm:$0xff]  }
 0x497   :  { %7412 = vmatprep.subr.bf16.mxu0 %v9148_v49  ;;  %v9211_v49 = vld [vmem:[#allocation17 + $0x194] ss:$8 sps:$4 sm:$0xff]  }
 0x499   :  { %6954 = vmatpush2.bf16.msra.mxu1 %v9098_v57  ;;  %v9197_v57 = vld [vmem:[#allocation17 + $0x1d0] ss:$8 sps:$4 sm:$0xff]  }
 0x49a   :  { %6955 = vmatprep.subr.bf16.mxu1 %v9103_v31  ;;  %7413 = vmatpush2.bf16.msra.mxu0 %v9146_v10  ;;  %v9202_v31 = vld [vmem:[#allocation17 + $0x1c4] ss:$8 sps:$4 sm:$0xff]  }
 0x49b   :  { %7414 = vmatprep.subr.bf16.mxu0 %v9151_v53  ;;  %v9214_v10 = vld [vmem:[#allocation17 + $0x184] ss:$8 sps:$4 sm:$0xff]  }
 0x49d   :  { %6956 = vmatpush2.bf16.msra.mxu1 %v9101_v0  ;;  %v9203_v0 = vld [vmem:[#allocation17 + $0x1b0] ss:$8 sps:$4 sm:$0xff]  }
 0x49e   :  { %6957 = vmatprep.subr.bf16.mxu1 %v9106_v59  ;;  %7415 = vmatpush2.bf16.msra.mxu0 %v9149_v41  ;;  %v9208_v59 = vld [vmem:[#allocation17 + $0x1a4] ss:$8 sps:$4 sm:$0xff]  }
 0x49f   :  { %7416 = vmatprep.subr.bf16.mxu0 %v9154_v7 }
 0x4a1   :  { %6958 = vmatpush2.bf16.msra.mxu1 %v9104_v17  ;;  %v9209_v17 = vld [vmem:[#allocation17 + $0x190] ss:$8 sps:$4 sm:$0xff]  }
 0x4a2   :  { %6959 = vmatprep.subr.bf16.mxu1 %v9109_v51  ;;  %7417 = vmatpush2.bf16.msra.mxu0 %v9152_v43  ;;  %v9212_v51 = vld [vmem:[#allocation17 + $0x180] ss:$8 sps:$4 sm:$0xff]  }
 0x4a3   :  { %7418 = vmatprep.subr.bf16.mxu0 %v9157_v1 }
 0x4a5   :  { %6960 = vmatpush2.bf16.msra.mxu1 %v9107_v58  ;;  %v6144_v58 = vld [vmem:[#allocation16] sm:$0xf] }
 0x4a6   :  { %6961 = vmatprep.subr.bf16.mxu1 %v9112_v62  ;;  %7419 = vmatpush2.bf16.msra.mxu0 %v9155_v18  ;;  %v6149_v41 = vrot.slane %v6144_v58, %v9808_v22  ;;  %v6153_v7 = vrot.slane %v6144_v58, %v9835_v37  ;;  %v9241_v18 = vld [vmem:[#allocation10] sm:$0xff] }
 0x4a7   :  { %7420 = vmatprep.subr.bf16.mxu0 %v9160_v19 }
 0x4a9   :  { %6962 = vmatpush2.bf16.msra.mxu1 %v9110_v38  ;;  %v4992_v38 = vsub.s32 4, %v9805_v11 }
 0x4aa   :  { %6963 = vmatprep.subr.bf16.mxu1 %v9115_v9  ;;  %7421 = vmatpush2.bf16.msra.mxu0 %v9158_v48 }
 0x4ab   :  { %7422 = vmatprep.subr.bf16.mxu0 %v9163_v25  ;;  %v4993_v19 = vrot.slane %v9241_v18, %v4992_v38 }
 0x4ad   :  { %6964 = vmatpush2.bf16.msra.mxu1 %v9113_v27  ;;  %v4996_v27 = vsub.s32 5, %v9805_v11 }
 0x4ae   :  { %6965 = vmatprep.subr.bf16.mxu1 %v9118_v60  ;;  %7423 = vmatpush2.bf16.msra.mxu0 %v9161_v13 }
 0x4af   :  { %7424 = vmatprep.subr.bf16.mxu0 %v9166_v23  ;;  %v4997_v23 = vrot.slane %v9241_v18, %v4996_v27 }
 0x4b1   :  { %6966 = vmatpush2.bf16.msra.mxu1 %v9116_v61 }
 0x4b2   :  { %7425 = vmatpush2.bf16.msra.mxu0 %v9164_v63  ;;  %7437 = vmatprep.subr.bf16.mxu1 %v9169_v29 }
 0x4b4   :  { %6968 = vmatmul.mubr.bf16.vlgmr.msra.gmra.mxu1 %v9934_v40  ;;  %v9170_v40 = vld [vmem:[#allocation17 + $0x160] ss:$8 sps:$4 sm:$0xff]  }
 0x4b5   :  { %7438 = vmatpush1.bf16.msra.mxu1 %v9167_v28 }
 0x4b6   :  { %7439 = vmatprep.subr.bf16.mxu1 %v9172_v32 }
 0x4b9   :  { %7440 = vmatpush1.bf16.msra.mxu1 %v9170_v40 }
 0x4ba   :  { %7441 = vmatprep.subr.bf16.mxu1 %v9175_v52  ;;  %v5018_v52 = vadd.f32 %v4993_v19, %v9885_v8 }
 0x4bd   :  { %7442 = vmatpush1.bf16.msra.mxu1 %v9173_v50 }
 0x4be   :  { %7443 = vmatprep.subr.bf16.mxu1 %v9178_v54  ;;  %v5026_v54 = vadd.f32 %v4993_v19, %v9898_v4  ;;  %v6157_v4 = vrot.slane %v6144_v58, %v9842_v14 }
 0x4c1   :  { %7444 = vmatpush1.bf16.msra.mxu1 %v9176_v3 }
 0x4c2   :  { %7445 = vmatprep.subr.bf16.mxu1 %v9181_v2 }
 0x4c5   :  { %7446 = vmatpush1.bf16.msra.mxu1 %v9179_v42 }
 0x4c6   :  { %7447 = vmatprep.subr.bf16.mxu1 %v9184_v44  ;;  %v5019_v44 = vadd.f32 %v4997_v23, %v9892_v56 }
 0x4c9   :  { %7448 = vmatpush1.bf16.msra.mxu1 %v9182_v55  ;;  %v5027_v55 = vadd.f32 %v4997_v23, %v9904_v33  ;;  %v5004_v33 = vsub.s32 7, %v9805_v11  ;;  %v9219_v23 = vld [vmem:[#allocation20 + $0x68] sm:$0xff]  }
 0x4ca   :  { %7449 = vmatprep.subr.bf16.mxu1 %v9187_v47 }
 0x4cd   :  { %7450 = vmatpush1.bf16.msra.mxu1 %v9185_v46 }
 0x4ce   :  { %7451 = vmatprep.subr.bf16.mxu1 %v9190_v24 }
 0x4d1   :  { %7452 = vmatpush1.bf16.msra.mxu1 %v9188_v39 }
 0x4d2   :  { %7453 = vmatprep.subr.bf16.mxu1 %v9193_v34 }
 0x4d5   :  { %7454 = vmatpush2.bf16.msra.mxu1 %v9191_v12 }
 0x4d6   :  { %7455 = vmatprep.subr.bf16.mxu1 %v9196_v15 }
 0x4d9   :  { %7456 = vmatpush2.bf16.msra.mxu1 %v9194_v45 }
 0x4da   :  { %7457 = vmatprep.subr.bf16.mxu1 %v9199_v30  ;;  %v6161_v30 = vrot.slane %v6144_v58, %v9852_v36 }
 0x4dd   :  { %7458 = vmatpush2.bf16.msra.mxu1 %v9197_v57  ;;  %v5000_v57 = vsub.s32 6, %v9805_v11 }
 0x4de   :  { %7459 = vmatprep.subr.bf16.mxu1 %v9202_v31 }
 0x4e1   :  { %7460 = vmatpush2.bf16.msra.mxu1 %v9200_v35 }
 0x4e2   :  { %7461 = vmatprep.subr.bf16.mxu1 %v9205_v5 }
 0x4e5   :  { %7462 = vmatpush2.bf16.msra.mxu1 %v9203_v0 }
 0x4e6   :  { %7463 = vmatprep.subr.bf16.mxu1 %v9208_v59  ;;  %v5001_v59 = vrot.slane %v9241_v18, %v5000_v57 }
 0x4e8   :  { %v5020_v36 = vadd.f32 %v5001_v59, %v9910_v16  ;;  %v9215_v16 = vld [vmem:[#allocation20 + $0x78] sm:$0xff]  }
 0x4e9   :  { %7464 = vmatpush2.bf16.msra.mxu1 %v9206_v6  ;;  %8674 = vmatprep.subr.bf16.mxu0 %v9215_v16 }
 0x4ea   :  { %7465 = vmatprep.subr.bf16.mxu1 %v9211_v49 }
 0x4ed   :  { %7466 = vmatpush2.bf16.msra.mxu1 %v9209_v17 }
 0x4ee   :  { %7467 = vmatprep.subr.bf16.mxu1 %v9214_v10  ;;  %v5005_v10 = vrot.slane %v9241_v18, %v5004_v33 }
 0x4f0   :  { %v5029_v27 = vadd.f32 %v5005_v10, %v9919_v21  ;;  %v9221_v21 = vld [vmem:[#allocation20 + $0x60] sm:$0xff]  }
 0x4f1   :  { %7468 = vmatpush2.bf16.msra.mxu1 %v9212_v51 }
 0x4f4   :  { %v6840_v53 = vpop.f32.mrf.mxu0 }
 0x4f5   :  { %v6841_v43 = vadd.f32 %v6840_v53, %v6149_v41 }
 0x4f6   :  { %v6842_v62 = vpop.f32.mrf.mxu0 }
 0x4f7   :  { %v6843_v61 = vadd.f32 %v6842_v62, %v6153_v7 }
 0x4f8   :  { %v6844_v9 = vpop.f32.mrf.mxu0 }
 0x4f9   :  { %v6845_v13 = vadd.f32 %v6844_v9, %v6149_v41 }
 0x4fa   :  { %v6846_v48 = vpop.f32.mrf.mxu0 }
 0x4fb   :  { %v6847_v29 = vadd.f32 %v6846_v48, %v6153_v7  ;;  %v5028_v7 = vadd.f32 %v5001_v59, %v9916_v26  ;;  %v9218_v26 = vld [vmem:[#allocation20 + $0x30] sm:$0xff]  }
 0x534   :  { %v6883_v60 = vpop.f32.mrf.mxu1  ;;  %v6926_v8 = vpop.f32.mrf.mxu0 }
 0x535   :  { %v6884_v1 = vadd.f32 %v6883_v60, %v6841_v43  ;;  %v6927_v31 = vadd.f32 %v6926_v8, %v6157_v4  ;;  %v5021_v43 = vadd.f32 %v5005_v10, %v9913_v20  ;;  %v9220_v20 = vld [vmem:[#allocation20 + $0x28] sm:$0xff]  }
 0x536   :  { %v6885_v25 = vpop.f32.mrf.mxu1  ;;  %v6928_v45 = vpop.f32.mrf.mxu0 }
 0x537   :  { %v6886_v63 = vadd.f32 %v6885_v25, %v6843_v61  ;;  %v6978_v32 = vmax.f32 %v6884_v1, 0.0  ;;  %v6929_v5 = vadd.f32 %v6928_v45, %v6161_v30 }
 0x538   :  { %v6887_v28 = vpop.f32.mrf.mxu1  ;;  %v6930_v56 = vpop.f32.mrf.mxu0 }
 0x539   :  { %v6888_v40 = vadd.f32 %v6887_v28, %v6845_v13  ;;  %v6979_v3 = vmax.f32 %v6886_v63, 0.0  ;;  %v6986_v47 = vadd.f32 %v6978_v32, %v5018_v52  ;;  %v6931_v17 = vadd.f32 %v6930_v56, %v6157_v4  ;;  %v9216_v13 = vld [vmem:[#allocation20 + $0x38] sm:$0xff]   ;;  %v9217_v63 = vld [vmem:[#allocation20 + $0x70] sm:$0xff]   ;;  %v9222_v28 = vld [vmem:[#allocation20 + $0x20] sm:$0xff]  }
 0x53a   :  { %v6889_v50 = vpop.f32.mrf.mxu1  ;;  %v6932_v6 = vpop.f32.mrf.mxu0  ;;  %v9224_v32 = vld [vmem:[#allocation20 + $0x18] sm:$0xff]   ;;  %v9226_v52 = vld [vmem:[#allocation20 + $0x10] sm:$0xff]  }
 0x53b   :  { %v6982_v2 = vmax.f32 %v6888_v40, 0.0  ;;  %v6890_v42 = vadd.f32 %v6889_v50, %v6847_v29  ;;  %v6987_v39 = vadd.f32 %v6979_v3, %v5019_v44  ;;  %v6933_v62 = vadd.f32 %v6932_v6, %v6161_v30  ;;  %v9223_v29 = vld [vmem:[#allocation20 + $0x58] sm:$0xff]   ;;  %v9225_v40 = vld [vmem:[#allocation20 + $0x50] sm:$0xff]   ;;  %v9227_v50 = vld [vmem:[#allocation20 + $0x48] sm:$0xff]  }
 0x53c   :  { %v9229_v3 = vld [vmem:[#allocation20 + $0x40] sm:$0xff]  }
 0x53d   :  { %v6990_v46 = vadd.f32 %v6982_v2, %v5026_v54  ;;  %v6983_v24 = vmax.f32 %v6890_v42, 0.0  ;;  %v9228_v54 = vld [vmem:[#allocation20 + $0x8] sm:$0xff]   ;;  %v9230_v2 = vld [vmem:[#allocation20] sm:$0xff]  }
 0x53f   :  { %v6994_v34 = vpack.c.bf16 %v6990_v46, %v6986_v47  ;;  %v6991_v12 = vadd.f32 %v6983_v24, %v5027_v55  ;;  %v7062_v55 = vld [vmem:[#allocation19] sm:$0x3] }
 0x540   :  { %v7071_v46 = vrot.slane %v7062_v55, %v9835_v37  ;;  %v7067_v24 = vrot.slane %v7062_v55, %v9808_v22 }
 0x541   :  { %v6995_v15 = vpack.c.bf16 %v6991_v12, %v6987_v39 }
 0x543   :  { %7426 = vmatprep.mubr.bf16.mxu0 %v6995_v15 }
 0x544   :  { %7427 = vmatmul.mubr.bf16.vlgmr.msra.gmra.mxu0 %v6994_v34 }
 0x545   :  { %8675 = vmatpush3.bf16.msra.mxu0 %v9216_v13 }
 0x546   :  { %8676 = vmatprep.subr.bf16.mxu0 %v9217_v63 }
 0x549   :  { %8677 = vmatpush3.bf16.msra.mxu0 %v9218_v26 }
 0x54a   :  { %8678 = vmatprep.subr.bf16.mxu0 %v9219_v23 }
 0x54d   :  { %8679 = vmatpush3.bf16.msra.mxu0 %v9220_v20 }
 0x54e   :  { %8680 = vmatprep.subr.bf16.mxu0 %v9221_v21 }
 0x551   :  { %8681 = vmatpush3.bf16.msra.mxu0 %v9222_v28 }
 0x552   :  { %8682 = vmatprep.subr.bf16.mxu0 %v9223_v29 }
 0x555   :  { %8683 = vmatpush3.bf16.msra.mxu0 %v9224_v32 }
 0x556   :  { %8684 = vmatprep.subr.bf16.mxu0 %v9225_v40 }
 0x559   :  { %8685 = vmatpush3.bf16.msra.mxu0 %v9226_v52 }
 0x55a   :  { %8686 = vmatprep.subr.bf16.mxu0 %v9227_v50 }
 0x55d   :  { %8687 = vmatpush3.bf16.msra.mxu0 %v9228_v54 }
 0x55e   :  { %8688 = vmatprep.subr.bf16.mxu0 %v9229_v3 }
 0x561   :  { %8689 = vmatpush3.bf16.msra.mxu0 %v9230_v2 }
 0x574   :  { %v6969_v35 = vpop.f32.mrf.mxu1 }
 0x575   :  { %v6970_v0 = vadd.f32 %v6969_v35, %v6927_v31 }
 0x576   :  { %v6971_v49 = vpop.f32.mrf.mxu1 }
 0x577   :  { %v6972_v51 = vadd.f32 %v6971_v49, %v6929_v5  ;;  %v6980_v14 = vmax.f32 %v6970_v0, 0.0 }
 0x578   :  { %v6973_v53 = vpop.f32.mrf.mxu1 }
 0x579   :  { %v6974_v41 = vadd.f32 %v6973_v53, %v6931_v17  ;;  %v6981_v38 = vmax.f32 %v6972_v51, 0.0  ;;  %v6988_v60 = vadd.f32 %v6980_v14, %v5020_v36  ;;  %v8657_v17 = vld [vmem:[#allocation22] ss:$0 sm:$0xff] }
 0x57a   :  { %v6975_v58 = vpop.f32.mrf.mxu1 }
 0x57b   :  { %v6984_v11 = vmax.f32 %v6974_v41, 0.0  ;;  %v6976_v9 = vadd.f32 %v6975_v58, %v6933_v62  ;;  %v6989_v18 = vadd.f32 %v6981_v38, %v5021_v43 }
 0x57d   :  { %v6992_v61 = vadd.f32 %v6984_v11, %v5028_v7  ;;  %v6985_v1 = vmax.f32 %v6976_v9, 0.0 }
 0x57f   :  { %v6996_v19 = vpack.c.bf16 %v6992_v61, %v6988_v60  ;;  %v6993_v48 = vadd.f32 %v6985_v1, %v5029_v27 }
 0x581   :  { %v6997_v25 = vpack.c.bf16 %v6993_v48, %v6989_v18 }
 0x583   :  { %7469 = vmatprep.mubr.bf16.mxu1 %v6997_v25 }
 0x584   :  { %7470 = vmatmul.mubr.bf16.vlgmr.msra.gmra.mxu1 %v6996_v19 }
 0x604   :  { %v7428_v42 = vpop.f32.mrf.mxu0 }
 0x605   :  { %v7429_v45 = vadd.f32 %v7428_v42, %v7067_v24 }
 0x606   :  { %v7430_v44 = vpop.f32.mrf.mxu0 }
 0x607   :  { %v7431_v15 = vadd.f32 %v7430_v44, %v7071_v46 }
 0x608   :  { %v7432_v47 = vpop.f32.mrf.mxu0 }
 0x609   :  { %v7433_v8 = vadd.f32 %v7432_v47, %v7067_v24 }
 0x60a   :  { %v7434_v34 = vpop.f32.mrf.mxu0 }
 0x60b   :  { %v7435_v30 = vadd.f32 %v7434_v34, %v7071_v46 }
 0x644   :  { %v7471_v39 = vpop.f32.mrf.mxu1 }
 0x645   :  { %v7472_v31 = vadd.f32 %v7471_v39, %v7429_v45 }
 0x646   :  { %v7473_v12 = vpop.f32.mrf.mxu1 }
 0x647   :  { %v7474_v57 = vadd.f32 %v7473_v12, %v7431_v15  ;;  %v7480_v6 = vmax.f32 %v7472_v31, 0.0 }
 0x648   :  { %v7475_v4 = vpop.f32.mrf.mxu1 }
 0x649   :  { %v7476_v56 = vadd.f32 %v7475_v4, %v7433_v8  ;;  %v7481_v0 = vmax.f32 %v7474_v57, 0.0 }
 0x64a   :  { %v7477_v33 = vpop.f32.mrf.mxu1 }
 0x64b   :  { %v7478_v35 = vadd.f32 %v7477_v33, %v7435_v30  ;;  %v7482_v5 = vmax.f32 %v7476_v56, 0.0 }
 0x64d   :  { %v7483_v59 = vmax.f32 %v7478_v35, 0.0  ;;  %v7484_v49 = vpack.c.bf16 %v7482_v5, %v7480_v6 }
 0x64f   :  { %v7485_v37 = vpack.c.bf16 %v7483_v59, %v7481_v0 }
 0x651   :  { %7653 = vmatprep.mubr.bf16.mxu0 %v7485_v37 }
 0x652   :  { %7654 = vmatmul.mubr.bf16.vlgmr.msra.gmra.mxu0 %v7484_v49 }
 0x712   :  { %v8690_v22 = vpop.f32.mrf.mxu0 }
 0x714   :  { %v8691_v51 = vpop.f32.mrf.mxu0 }
 0x715   :  { %v8692_v10 = vadd.f32 %v8691_v51, %v8690_v22 }
 0x716   :  { %v8693_v53 = vpop.f32.mrf.mxu0 }
 0x717   :  { %v7656_v62 = vadd.f32 %v8692_v10, %v8657_v17 }
 0x718   :  { %v8694_v14 = vpop.f32.mrf.mxu0 }
 0x719   :  { %7662 = vst [vmem:[#allocation23] sm:$0xff] %v7656_v62  ;;  %v8695_v41 = vadd.f32 %v8694_v14, %v8693_v53 }
 0x71b   :  { %v7659_v36 = vadd.f32 %v8695_v41, %v8657_v17 }
 0x71d   :  { %7663 = vst [vmem:[#allocation23 + $0x8] sm:$0xff] %v7659_v36 }
 0x71e   :  { %9513 = shalt.err (!%p9510_p13)
}
 0x71f   :  { %7675 = dma.vmem_to_hbm [thread:$0]  %s7670_s12, 256, %s9976_s13, [#allocation4], %s9547_s17, %s9547_s17, %s9548_s18  }
 0x720   :  { %9536 = dma.done.wait [#allocation4], 256  }
 0x721   :  { %9537 = vsyncadd [#allocation4], 4294967040 }
 0x722   :  { %7679 = vsyncpa [#allocation3], 1 }
 0x723   :  { %7680 = vsyncpa [#allocation6], 1 }
 0x724   :  { %7681 = vsyncpa [#allocation9], 1 }
 0x725   :  { %7682 = vsyncpa [#allocation12], 1 }
 0x726   :  { %7683 = vsyncpa [#allocation15], 1 }
 0x727   :  { %7684 = vsyncpa [#allocation18], 1 }
 0x728   :  { %7685 = vsyncpa [#allocation21], 1 }
 0x729   :  { %7686 = vsyncpa [#allocation4], 1 }

// kernel: tpu_custom_call.1
= control target key start
LH: loop header
LB: loop body
LE: loop exit
PB: predicated region body
PF: predicated region fallthrough
CT: control target
= control target key end

     0   :  { %18 = vsyncpa [#allocation3], 0  ;;  %s9963_s0 = inlined_call_operand.hbm [shape: bf16[16,768], index: 0, kind: input, shape index: {}]   ;;  %s9964_s1 = inlined_call_operand.hbm [shape: bf16[16,512], index: 1, kind: input, shape index: {}]   ;;  %s9965_s2 = inlined_call_operand.hbm [shape: bf16[768,1024], index: 2, kind: input, shape index: {}]   ;;  %s9966_s3 = inlined_call_operand.hbm [shape: bf16[512,1024], index: 3, kind: input, shape index: {}]   ;;  %s9967_s4 = inlined_call_operand.hbm [shape: f32[1,1024], index: 4, kind: input, shape index: {}]   ;;  %s9968_s5 = inlined_call_operand.hbm [shape: bf16[512,512], index: 5, kind: input, shape index: {}]   ;;  %s9969_s6 = inlined_call_operand.hbm [shape: f32[1,512], index: 6, kind: input, shape index: {}]   ;;  %s9970_s7 = inlined_call_operand.hbm [shape: bf16[512,512], index: 7, kind: input, shape index: {}]   ;;  %s9971_s8 = inlined_call_operand.hbm [shape: f32[1,512], index: 8, kind: input, shape index: {}]   ;;  %s9972_s9 = inlined_call_operand.hbm [shape: bf16[512,256], index: 9, kind: input, shape index: {}]   ;;  %s9973_s10 = inlined_call_operand.hbm [shape: f32[1,256], index: 10, kind: input, shape index: {}]   ;;  %s9974_s11 = inlined_call_operand.hbm [shape: bf16[256,128], index: 11, kind: input, shape index: {}]   ;;  %s9975_s12 = inlined_call_operand.hbm [shape: f32[1,128], index: 12, kind: input, shape index: {}]   ;;  %s9976_s13 = inlined_call_operand.hbm [shape: f32[16,128], index: 13, kind: output, shape index: {}]  }
   0x1   :  { %19 = vsyncpa [#allocation6], 0 }
   0x2   :  { %20 = vsyncpa [#allocation9], 0 }
   0x3   :  { %21 = vsyncpa [#allocation12], 0 }
   0x4   :  { %22 = vsyncpa [#allocation15], 0 }
   0x5   :  { %23 = vsyncpa [#allocation18], 0 }
   0x6   :  { %24 = vsyncpa [#allocation21], 0 }
   0x7   :  { %25 = vsyncpa [#allocation4], 0  ;;  %s9538_s25 = smov [#allocation5]  }
   0x8   :  { %s43_s26 = sshll.u32 %s9538_s25, 4  ;;  %s44_s26 = int_to_ptr.vmem [resolvable:$true] %s43_s26 }
   0x9   :  { %s9250_s27 = scalar_lea.vmem %s44_s26, 512  ;;  %p9255_p1 = scmp.lt.s32.totalorder %s44_s26, %s44_s26 }
   0xa   :  { %p9251_p0 = scmp.ne.s32.totalorder %s44_s26, %s9250_s27  ;;  %p9256_p2 = scmp.lt.s32.totalorder %s9250_s27, %s9250_s27 }
   0xc   :  { %p9257_p3 = por %p9256_p2, %p9255_p1 }
   0xe   :  { %p9258_p4 = pnand %p9257_p3, %p9251_p0 }
  0x10   :  { %9261 = shalt.err (!%p9258_p4)
}
  0x11   :  { %s9539_s28 = smov 256   ;;  %s9540_s29 = smov 16  }
  0x12   :  { %49 = dma.hbm_to_vmem [thread:$0]  %s9964_s1, 512, %s44_s26, [#allocation6], %s9539_s28, %s9539_s28, %s9540_s29  }
  0x13   :  { %s9541_s15 = smov [#allocation8]   ;;  %s9542_s17 = smov [#allocation11]  }
  0x14   :  { %s67_s16 = sshll.u32 %s9541_s15, 4  ;;  %s89_s18 = sshll.u32 %s9542_s17, 4  ;;  %s68_s16 = int_to_ptr.vmem [resolvable:$true] %s67_s16  ;;  %s90_s18 = int_to_ptr.vmem [resolvable:$true] %s89_s18 }
  0x15   :  { %s9270_s19 = scalar_lea.vmem %s68_s16, 32768  ;;  %p9275_p6 = scmp.lt.s32.totalorder %s68_s16, %s68_s16 }
  0x16   :  { %p9271_p5 = scmp.ne.s32.totalorder %s68_s16, %s9270_s19  ;;  %p9276_p7 = scmp.lt.s32.totalorder %s9270_s19, %s9270_s19 }
  0x18   :  { %p9277_p8 = por %p9276_p7, %p9275_p6 }
  0x1a   :  { %p9278_p9 = pnand %p9277_p8, %p9271_p5 }
  0x1c   :  { %9281 = shalt.err (!%p9278_p9)
}
  0x1d   :  { %s9543_s20 = smov 512   ;;  %s9544_s21 = smov 32  }
  0x1e   :  { %73 = dma.hbm_to_vmem [thread:$0]  %s9966_s3, 32768, %s68_s16, [#allocation9], %s9543_s20, %s9543_s20, %s9544_s21  }
  0x1f   :  { %s9290_s1 = scalar_lea.vmem %s90_s18, 16384  ;;  %p9295_p11 = scmp.lt.s32.totalorder %s90_s18, %s90_s18 }
  0x20   :  { %p9291_p10 = scmp.ne.s32.totalorder %s90_s18, %s9290_s1  ;;  %p9296_p12 = scmp.lt.s32.totalorder %s9290_s1, %s9290_s1 }
  0x22   :  { %p9297_p13 = por %p9296_p12, %p9295_p11 }
  0x24   :  { %p9298_p0 = pnand %p9297_p13, %p9291_p10 }
  0x26   :  { %9301 = shalt.err (!%p9298_p0)
}
  0x27   :  { %95 = dma.hbm_to_vmem [thread:$0]  %s9968_s5, 16384, %s90_s18, [#allocation12], %s9539_s28, %s9539_s28, %s9540_s29  }
  0x28   :  { %s9545_s26 = smov [#allocation14]   ;;  %s9546_s30 = smov [#allocation17]  }
  0x29   :  { %s111_s27 = sshll.u32 %s9545_s26, 4  ;;  %s133_s3 = sshll.u32 %s9546_s30, 4  ;;  %s112_s27 = int_to_ptr.vmem [resolvable:$true] %s111_s27  ;;  %s134_s3 = int_to_ptr.vmem [resolvable:$true] %s133_s3 }
  0x2a   :  { %s9310_s14 = scalar_lea.vmem %s112_s27, 16384  ;;  %p9315_p2 = scmp.lt.s32.totalorder %s112_s27, %s112_s27 }
  0x2b   :  { %p9311_p1 = scmp.ne.s32.totalorder %s112_s27, %s9310_s14  ;;  %p9316_p3 = scmp.lt.s32.totalorder %s9310_s14, %s9310_s14 }
  0x2d   :  { %p9317_p4 = por %p9316_p3, %p9315_p2 }
  0x2f   :  { %p9318_p5 = pnand %p9317_p4, %p9311_p1 }
  0x31   :  { %9321 = shalt.err (!%p9318_p5)
}
  0x32   :  { %117 = dma.hbm_to_vmem [thread:$0]  %s9970_s7, 16384, %s112_s27, [#allocation15], %s9539_s28, %s9539_s28, %s9540_s29  }
  0x33   :  { %s9330_s5 = scalar_lea.vmem %s134_s3, 8192  ;;  %p9335_p7 = scmp.lt.s32.totalorder %s134_s3, %s134_s3 }
  0x34   :  { %p9331_p6 = scmp.ne.s32.totalorder %s134_s3, %s9330_s5  ;;  %p9336_p8 = scmp.lt.s32.totalorder %s9330_s5, %s9330_s5 }
  0x36   :  { %p9337_p9 = por %p9336_p8, %p9335_p7 }
  0x38   :  { %p9338_p10 = pnand %p9337_p9, %p9331_p6 }
  0x3a   :  { %9341 = shalt.err (!%p9338_p10)
}
  0x3b   :  { %s9547_s17 = smov 128   ;;  %s9548_s18 = smov 8  }
  0x3c   :  { %139 = dma.hbm_to_vmem [thread:$0]  %s9972_s9, 8192, %s134_s3, [#allocation18], %s9547_s17, %s9547_s17, %s9548_s18  }
  0x3d   :  { %s9549_s23 = smov [#allocation20]  }
  0x3e   :  { %s155_s1 = sshll.u32 %s9549_s23, 4  ;;  %s156_s1 = int_to_ptr.vmem [resolvable:$true] %s155_s1 }
  0x3f   :  { %s9350_s7 = scalar_lea.vmem %s156_s1, 2048  ;;  %p9355_p12 = scmp.lt.s32.totalorder %s156_s1, %s156_s1 }
  0x40   :  { %p9351_p11 = scmp.ne.s32.totalorder %s156_s1, %s9350_s7  ;;  %p9356_p13 = scmp.lt.s32.totalorder %s9350_s7, %s9350_s7 }
  0x42   :  { %p9357_p0 = por %p9356_p13, %p9355_p12 }
  0x44   :  { %p9358_p1 = pnand %p9357_p0, %p9351_p11 }
  0x46   :  { %9361 = shalt.err (!%p9358_p1)
}
  0x47   :  { %s9550_s28 = smov 64   ;;  %s9551_s29 = smov 4  }
  0x48   :  { %161 = dma.hbm_to_vmem [thread:$0]  %s9974_s11, 2048, %s156_s1, [#allocation21], %s9550_s28, %s9550_s28, %s9551_s29  }
  0x49   :  { %s9552_s26 = smov [#allocation2]  }
  0x4a   :  { %s31_s27 = sshll.u32 %s9552_s26, 4  ;;  %s32_s27 = int_to_ptr.vmem [resolvable:$true] %s31_s27 }
  0x4b   :  { %s9370_s9 = scalar_lea.vmem %s32_s27, 768  ;;  %p9375_p3 = scmp.lt.s32.totalorder %s32_s27, %s32_s27 }
  0x4c   :  { %p9371_p2 = scmp.ne.s32.totalorder %s32_s27, %s9370_s9  ;;  %p9376_p4 = scmp.lt.s32.totalorder %s9370_s9, %s9370_s9 }
  0x4e   :  { %p9377_p5 = por %p9376_p4, %p9375_p3 }
  0x50   :  { %p9378_p6 = pnand %p9377_p5, %p9371_p2 }
  0x52   :  { %9381 = shalt.err (!%p9378_p6)
}
  0x53   :  { %s9553_s30 = smov 384   ;;  %s9554_s3 = smov 24  }
  0x54   :  { %37 = dma.hbm_to_vmem [thread:$0]  %s9963_s0, 768, %s32_s27, [#allocation3], %s9553_s30, %s9553_s30, %s9554_s3  }
  0x55   :  { %s9555_s16 = smov [#allocation7]   ;;  %s9556_s11 = smov [#allocation10]  }
  0x56   :  { %s55_s5 = sshll.u32 %s9555_s16, 4  ;;  %s80_s19 = sshll.u32 %s9556_s11, 4  ;;  %s56_s5 = int_to_ptr.vmem [resolvable:$true] %s55_s5  ;;  %s81_s19 = int_to_ptr.vmem [resolvable:$true] %s80_s19 }
  0x57   :  { %s9390_s22 = scalar_lea.vmem %s56_s5, 49152  ;;  %p9395_p8 = scmp.lt.s32.totalorder %s56_s5, %s56_s5 }
  0x58   :  { %p9391_p7 = scmp.ne.s32.totalorder %s56_s5, %s9390_s22  ;;  %p9396_p9 = scmp.lt.s32.totalorder %s9390_s22, %s9390_s22 }
  0x5a   :  { %p9397_p10 = por %p9396_p9, %p9395_p8 }
  0x5c   :  { %p9398_p11 = pnand %p9397_p10, %p9391_p7 }
  0x5e   :  { %9401 = shalt.err (!%p9398_p11)
}
  0x5f   :  { %61 = dma.hbm_to_vmem [thread:$0]  %s9965_s2, 49152, %s56_s5, [#allocation6], %s9543_s20, %s9543_s20, %s9544_s21  }
  0x60   :  { %s9410_s0 = scalar_lea.vmem %s81_s19, 128  ;;  %p9415_p13 = scmp.lt.s32.totalorder %s81_s19, %s81_s19 }
  0x61   :  { %p9411_p12 = scmp.ne.s32.totalorder %s81_s19, %s9410_s0  ;;  %p9416_p0 = scmp.lt.s32.totalorder %s9410_s0, %s9410_s0 }
  0x63   :  { %p9417_p1 = por %p9416_p0, %p9415_p13 }
  0x65   :  { %p9418_p2 = pnand %p9417_p1, %p9411_p12 }
  0x67   :  { %9421 = shalt.err (!%p9418_p2)
}
  0x68   :  { %83 = dma.hbm_to_vmem [thread:$0]  %s9967_s4, 128, %s81_s19, [#allocation9]  }
  0x69   :  { %s9557_s29 = smov [#allocation13]   ;;  %s9558_s25 = smov [#allocation16]  }
  0x6a   :  { %s102_s24 = sshll.u32 %s9557_s29, 4  ;;  %s124_s26 = sshll.u32 %s9558_s25, 4  ;;  %s103_s24 = int_to_ptr.vmem [resolvable:$true] %s102_s24  ;;  %s125_s26 = int_to_ptr.vmem [resolvable:$true] %s124_s26 }
  0x6b   :  { %s9430_s27 = scalar_lea.vmem %s103_s24, 64  ;;  %p9435_p4 = scmp.lt.s32.totalorder %s103_s24, %s103_s24 }
  0x6c   :  { %p9431_p3 = scmp.ne.s32.totalorder %s103_s24, %s9430_s27  ;;  %p9436_p5 = scmp.lt.s32.totalorder %s9430_s27, %s9430_s27 }
  0x6e   :  { %p9437_p6 = por %p9436_p5, %p9435_p4 }
  0x70   :  { %p9438_p7 = pnand %p9437_p6, %p9431_p3 }
  0x72   :  { %9441 = shalt.err (!%p9438_p7)
}
  0x73   :  { %105 = dma.hbm_to_vmem [thread:$0]  %s9969_s6, 64, %s103_s24, [#allocation12]  }
  0x74   :  { %s9450_s21 = scalar_lea.vmem %s125_s26, 64  ;;  %p9455_p9 = scmp.lt.s32.totalorder %s125_s26, %s125_s26 }
  0x75   :  { %p9451_p8 = scmp.ne.s32.totalorder %s125_s26, %s9450_s21  ;;  %p9456_p10 = scmp.lt.s32.totalorder %s9450_s21, %s9450_s21 }
  0x77   :  { %p9457_p11 = por %p9456_p10, %p9455_p9 }
  0x79   :  { %p9458_p12 = pnand %p9457_p11, %p9451_p8 }
  0x7b   :  { %9461 = shalt.err (!%p9458_p12)
}
  0x7c   :  { %127 = dma.hbm_to_vmem [thread:$0]  %s9971_s8, 64, %s125_s26, [#allocation15]  }
  0x7d   :  { %s9559_s30 = smov [#allocation19]   ;;  %s9560_s14 = smov [#allocation22]  }
  0x7e   :  { %s146_s3 = sshll.u32 %s9559_s30, 4  ;;  %s168_s15 = sshll.u32 %s9560_s14, 4  ;;  %s147_s3 = int_to_ptr.vmem [resolvable:$true] %s146_s3  ;;  %s169_s15 = int_to_ptr.vmem [resolvable:$true] %s168_s15 }
  0x7f   :  { %s9470_s16 = scalar_lea.vmem %s147_s3, 32  ;;  %p9475_p0 = scmp.lt.s32.totalorder %s147_s3, %s147_s3 }
  0x80   :  { %p9471_p13 = scmp.ne.s32.totalorder %s147_s3, %s9470_s16  ;;  %p9476_p1 = scmp.lt.s32.totalorder %s9470_s16, %s9470_s16 }
  0x82   :  { %p9477_p2 = por %p9476_p1, %p9475_p0 }
  0x84   :  { %p9478_p3 = pnand %p9477_p2, %p9471_p13 }
  0x86   :  { %9481 = shalt.err (!%p9478_p3)
}
  0x87   :  { %149 = dma.hbm_to_vmem [thread:$0]  %s9973_s10, 32, %s147_s3, [#allocation18]  }
  0x88   :  { %s9490_s11 = scalar_lea.vmem %s169_s15, 16  ;;  %s9494_s8 = scalar_lea.vmem %s169_s15, 32 }
  0x89   :  { %p9491_p4 = scmp.ne.s32.totalorder %s169_s15, %s9490_s11  ;;  %p9495_p5 = scmp.lt.s32.totalorder %s169_s15, %s169_s15 }
  0x8a   :  { %p9496_p6 = scmp.lt.s32.totalorder %s9494_s8, %s9490_s11 }
  0x8c   :  { %p9497_p7 = por %p9496_p6, %p9495_p5 }
  0x8e   :  { %p9498_p8 = pnand %p9497_p7, %p9491_p4 }
  0x90   :  { %9501 = shalt.err (!%p9498_p8)
}
  0x91   :  { %171 = dma.hbm_to_vmem [thread:$0]  %s9975_s12, 16, %s169_s15, [#allocation21]  }
  0x92   :  { %9522 = dma.done.wait [#allocation3], 768  }
  0x93   :  { %9523 = vsyncadd [#allocation3], 4294966528 }
  0x94   :  { %9524 = dma.done.wait [#allocation6], 49664  }
  0x95   :  { %9525 = vsyncadd [#allocation6], 4294917632 }
  0x96   :  { %9526 = dma.done.wait [#allocation9], 32896  }
  0x97   :  { %9527 = vsyncadd [#allocation9], 4294934400 }
  0x98   :  { %9528 = dma.done.wait [#allocation12], 16448  }
  0x99   :  { %9529 = vsyncadd [#allocation12], 4294950848 }
  0x9a   :  { %9530 = dma.done.wait [#allocation15], 16448  }
  0x9b   :  { %9531 = vsyncadd [#allocation15], 4294950848 }
  0x9c   :  { %9532 = dma.done.wait [#allocation18], 8224  }
  0x9d   :  { %9533 = vsyncadd [#allocation18], 4294959072 }
  0x9e   :  { %9534 = dma.done.wait [#allocation21], 2064  }
  0x9f   :  { %9535 = vsyncadd [#allocation21], 4294965232  ;;  %v662_v0 = vld [vmem:[#allocation8 + $0x1c0] sm:$0xff]  ;;  %v9691_v59 = vld [vmem:[#allocation5 + $0xc] ss:$16 sps:$4 sm:$0xff]   ;;  %s9561_s10 = smov [#allocation23]  }
  0xa0   :  { %v666_v1 = vld [vmem:[#allocation8 + $0x1e0] sm:$0xff]  ;;  %2237 = vmatprep.mubr.bf16.mxu1 %v9691_v59  ;;  %s7669_s12 = sshll.u32 %s9561_s10, 4  ;;  %s7670_s12 = int_to_ptr.vmem [resolvable:$true] %s7669_s12 }
  0xa1   :  { %v790_v2 = vld [vmem:[#allocation8 + $0x5c0] sm:$0xff]  ;;  %v7748_v3 = vcombine.high %v662_v0, %v666_v1  ;;  %v7747_v5 = vcombine.low %v662_v0, %v666_v1  ;;  %s9502_s23 = scalar_lea.vmem %s7670_s12, 256  ;;  %p9507_p10 = scmp.lt.s32.totalorder %s7670_s12, %s7670_s12 }
  0xa2   :  { %v794_v4 = vld [vmem:[#allocation8 + $0x5e0] sm:$0xff]  ;;  %p9503_p9 = scmp.ne.s32.totalorder %s7670_s12, %s9502_s23  ;;  %p9508_p11 = scmp.lt.s32.totalorder %s9502_s23, %s9502_s23 }
  0xa3   :  { %v654_v6 = vld [vmem:[#allocation8 + $0x180] sm:$0xff]  ;;  %v7876_v8 = vcombine.high %v790_v2, %v794_v4  ;;  %v7875_v9 = vcombine.low %v790_v2, %v794_v4  ;;  %2162 = vmatprep.subr.bf16.mxu0 %v7748_v3 }
  0xa4   :  { %v658_v7 = vld [vmem:[#allocation8 + $0x1a0] sm:$0xff]  ;;  %2163 = vmatpush1.bf16.msra.mxu0 %v7747_v5  ;;  %p9509_p12 = por %p9508_p11, %p9507_p10 }
  0xa5   :  { %v7740_v10 = vcombine.high %v654_v6, %v658_v7  ;;  %v782_v11 = vld [vmem:[#allocation8 + $0x580] sm:$0xff]  ;;  %2205 = vmatprep.subr.bf16.mxu1 %v7876_v8  ;;  %v7739_v18 = vcombine.low %v654_v6, %v658_v7 }
  0xa6   :  { %v786_v12 = vld [vmem:[#allocation8 + $0x5a0] sm:$0xff]  ;;  %2206 = vmatpush1.bf16.msra.mxu1 %v7875_v9  ;;  %p9510_p13 = pnand %p9509_p12, %p9503_p9 }
  0xa7   :  { %v646_v13 = vld [vmem:[#allocation8 + $0x140] sm:$0xff]  ;;  %v7868_v14 = vcombine.high %v782_v11, %v786_v12  ;;  %2164 = vmatprep.subr.bf16.mxu0 %v7740_v10  ;;  %v7867_v19 = vcombine.low %v782_v11, %v786_v12 }
  0xa8   :  { %v650_v15 = vld [vmem:[#allocation8 + $0x160] sm:$0xff]  ;;  %2165 = vmatpush1.bf16.msra.mxu0 %v7739_v18 }
  0xa9   :  { %v774_v16 = vld [vmem:[#allocation8 + $0x540] sm:$0xff]  ;;  %v7732_v20 = vcombine.high %v646_v13, %v650_v15  ;;  %2207 = vmatprep.subr.bf16.mxu1 %v7868_v14  ;;  %v7731_v26 = vcombine.low %v646_v13, %v650_v15 }
  0xaa   :  { %v778_v17 = vld [vmem:[#allocation8 + $0x560] sm:$0xff]  ;;  %2208 = vmatpush1.bf16.msra.mxu1 %v7867_v19 }
  0xab   :  { %v7860_v21 = vcombine.high %v774_v16, %v778_v17  ;;  %v638_v22 = vld [vmem:[#allocation8 + $0x100] sm:$0xff]  ;;  %2166 = vmatprep.subr.bf16.mxu0 %v7732_v20  ;;  %v7859_v27 = vcombine.low %v774_v16, %v778_v17 }
  0xac   :  { %v642_v23 = vld [vmem:[#allocation8 + $0x120] sm:$0xff]  ;;  %2167 = vmatpush1.bf16.msra.mxu0 %v7731_v26 }
  0xad   :  { %v766_v24 = vld [vmem:[#allocation8 + $0x500] sm:$0xff]  ;;  %v7724_v28 = vcombine.high %v638_v22, %v642_v23  ;;  %2209 = vmatprep.subr.bf16.mxu1 %v7860_v21  ;;  %v7723_v34 = vcombine.low %v638_v22, %v642_v23 }
  0xae   :  { %v770_v25 = vld [vmem:[#allocation8 + $0x520] sm:$0xff]  ;;  %2210 = vmatpush1.bf16.msra.mxu1 %v7859_v27 }
  0xaf   :  { %v7852_v29 = vcombine.high %v766_v24, %v770_v25  ;;  %v630_v30 = vld [vmem:[#allocation8 + $0xc0] sm:$0xff]  ;;  %2168 = vmatprep.subr.bf16.mxu0 %v7724_v28  ;;  %v7851_v35 = vcombine.low %v766_v24, %v770_v25 }
  0xb0   :  { %v634_v31 = vld [vmem:[#allocation8 + $0xe0] sm:$0xff]  ;;  %2169 = vmatpush1.bf16.msra.mxu0 %v7723_v34 }
  0xb1   :  { %v758_v32 = vld [vmem:[#allocation8 + $0x4c0] sm:$0xff]  ;;  %v7716_v36 = vcombine.high %v630_v30, %v634_v31  ;;  %2211 = vmatprep.subr.bf16.mxu1 %v7852_v29  ;;  %v7715_v42 = vcombine.low %v630_v30, %v634_v31 }
  0xb2   :  { %v762_v33 = vld [vmem:[#allocation8 + $0x4e0] sm:$0xff]  ;;  %2212 = vmatpush1.bf16.msra.mxu1 %v7851_v35 }
  0xb3   :  { %v7844_v37 = vcombine.high %v758_v32, %v762_v33  ;;  %v622_v38 = vld [vmem:[#allocation8 + $0x80] sm:$0xff]  ;;  %2170 = vmatprep.subr.bf16.mxu0 %v7716_v36  ;;  %v7843_v43 = vcombine.low %v758_v32, %v762_v33 }
  0xb4   :  { %v626_v39 = vld [vmem:[#allocation8 + $0xa0] sm:$0xff]  ;;  %2171 = vmatpush1.bf16.msra.mxu0 %v7715_v42 }
  0xb5   :  { %v750_v40 = vld [vmem:[#allocation8 + $0x480] sm:$0xff]  ;;  %v7708_v44 = vcombine.high %v622_v38, %v626_v39  ;;  %2213 = vmatprep.subr.bf16.mxu1 %v7844_v37  ;;  %v7707_v50 = vcombine.low %v622_v38, %v626_v39 }
  0xb6   :  { %v754_v41 = vld [vmem:[#allocation8 + $0x4a0] sm:$0xff]  ;;  %2214 = vmatpush1.bf16.msra.mxu1 %v7843_v43 }
  0xb7   :  { %v7836_v45 = vcombine.high %v750_v40, %v754_v41  ;;  %v614_v46 = vld [vmem:[#allocation8 + $0x40] sm:$0xff]  ;;  %2172 = vmatprep.subr.bf16.mxu0 %v7708_v44  ;;  %v7835_v52 = vcombine.low %v750_v40, %v754_v41 }
  0xb8   :  { %v618_v47 = vld [vmem:[#allocation8 + $0x60] sm:$0xff]  ;;  %2173 = vmatpush1.bf16.msra.mxu0 %v7707_v50 }
  0xb9   :  { %v742_v48 = vld [vmem:[#allocation8 + $0x440] sm:$0xff]  ;;  %v7700_v53 = vcombine.high %v614_v46, %v618_v47  ;;  %2215 = vmatprep.subr.bf16.mxu1 %v7836_v45  ;;  %v7699_v60 = vcombine.low %v614_v46, %v618_v47 }
  0xba   :  { %v746_v49 = vld [vmem:[#allocation8 + $0x460] sm:$0xff]  ;;  %2216 = vmatpush1.bf16.msra.mxu1 %v7835_v52 }
  0xbb   :  { %v606_v51 = vld [vmem:[#allocation8] sm:$0xff]  ;;  %v7828_v55 = vcombine.high %v742_v48, %v746_v49  ;;  %2174 = vmatprep.subr.bf16.mxu0 %v7700_v53  ;;  %v7827_v61 = vcombine.low %v742_v48, %v746_v49 }
  0xbc   :  { %v610_v54 = vld [vmem:[#allocation8 + $0x20] sm:$0xff]  ;;  %2175 = vmatpush1.bf16.msra.mxu0 %v7699_v60 }
  0xbd   :  { %v9689_v56 = vld [vmem:[#allocation5 + $0x4] ss:$16 sps:$4 sm:$0xff]   ;;  %v7692_v62 = vcombine.high %v606_v51, %v610_v54  ;;  %2217 = vmatprep.subr.bf16.mxu1 %v7828_v55  ;;  %v7691_v4 = vcombine.low %v606_v51, %v610_v54 }
  0xbe   :  { %v734_v57 = vld [vmem:[#allocation8 + $0x400] sm:$0xff]  ;;  %2194 = vmatprep.mubr.bf16.mxu0 %v9689_v56  ;;  %2218 = vmatpush1.bf16.msra.mxu1 %v7827_v61 }
  0xbf   :  { %v738_v58 = vld [vmem:[#allocation8 + $0x420] sm:$0xff]  ;;  %2176 = vmatprep.subr.bf16.mxu0 %v7692_v62 }
  0xc0   :  { %v7820_v63 = vcombine.high %v734_v57, %v738_v58  ;;  %v726_v0 = vld [vmem:[#allocation8 + $0x3c0] sm:$0xff]  ;;  %v7819_v5 = vcombine.low %v734_v57, %v738_v58  ;;  %2177 = vmatpush1.bf16.msra.mxu0 %v7691_v4  ;;  %v791_v4 = vld [vmem:[#allocation8 + $0x5c8] sm:$0xff] }
  0xc1   :  { %v730_v1 = vld [vmem:[#allocation8 + $0x3e0] sm:$0xff] }
  0xc2   :  { %v854_v2 = vld [vmem:[#allocation8 + $0x7c0] sm:$0xff]  ;;  %v7812_v6 = vcombine.high %v726_v0, %v730_v1  ;;  %2219 = vmatprep.subr.bf16.mxu1 %v7820_v63  ;;  %v7811_v12 = vcombine.low %v726_v0, %v730_v1 }
  0xc3   :  { %v858_v3 = vld [vmem:[#allocation8 + $0x7e0] sm:$0xff]  ;;  %2220 = vmatpush1.bf16.msra.mxu1 %v7819_v5  ;;  %v795_v5 = vld [vmem:[#allocation8 + $0x5e8] sm:$0xff] }
  0xc4   :  { %v7940_v7 = vcombine.high %v854_v2, %v858_v3  ;;  %v718_v8 = vld [vmem:[#allocation8 + $0x380] sm:$0xff]  ;;  %2178 = vmatprep.subr.bf16.mxu0 %v7812_v6  ;;  %v7939_v13 = vcombine.low %v854_v2, %v858_v3  ;;  %v663_v2 = vld [vmem:[#allocation8 + $0x1c8] sm:$0xff] }
  0xc5   :  { %v722_v9 = vld [vmem:[#allocation8 + $0x3a0] sm:$0xff]  ;;  %2179 = vmatpush2.bf16.msra.mxu0 %v7811_v12  ;;  %v667_v3 = vld [vmem:[#allocation8 + $0x1e8] sm:$0xff] }
  0xc6   :  { %v846_v10 = vld [vmem:[#allocation8 + $0x780] sm:$0xff]  ;;  %v7804_v14 = vcombine.high %v718_v8, %v722_v9  ;;  %2221 = vmatprep.subr.bf16.mxu1 %v7940_v7  ;;  %v7803_v20 = vcombine.low %v718_v8, %v722_v9  ;;  %v7750_v8 = vcombine.high %v663_v2, %v667_v3  ;;  %v7878_v9 = vcombine.high %v791_v4, %v795_v5 }
  0xc7   :  { %v850_v11 = vld [vmem:[#allocation8 + $0x7a0] sm:$0xff]  ;;  %2222 = vmatpush2.bf16.msra.mxu1 %v7939_v13  ;;  %v783_v13 = vld [vmem:[#allocation8 + $0x588] sm:$0xff] }
  0xc8   :  { %v7932_v15 = vcombine.high %v846_v10, %v850_v11  ;;  %v710_v16 = vld [vmem:[#allocation8 + $0x340] sm:$0xff]  ;;  %2180 = vmatprep.subr.bf16.mxu0 %v7804_v14  ;;  %v7931_v21 = vcombine.low %v846_v10, %v850_v11  ;;  %v655_v10 = vld [vmem:[#allocation8 + $0x188] sm:$0xff] }
  0xc9   :  { %v714_v17 = vld [vmem:[#allocation8 + $0x360] sm:$0xff]  ;;  %2181 = vmatpush2.bf16.msra.mxu0 %v7803_v20  ;;  %v659_v11 = vld [vmem:[#allocation8 + $0x1a8] sm:$0xff] }
  0xca   :  { %v838_v18 = vld [vmem:[#allocation8 + $0x740] sm:$0xff]  ;;  %v7796_v22 = vcombine.high %v710_v16, %v714_v17  ;;  %2223 = vmatprep.subr.bf16.mxu1 %v7932_v15  ;;  %v7795_v28 = vcombine.low %v710_v16, %v714_v17  ;;  %v787_v14 = vld [vmem:[#allocation8 + $0x5a8] sm:$0xff]  ;;  %v7749_v16 = vcombine.low %v663_v2, %v667_v3  ;;  %v7877_v17 = vcombine.low %v791_v4, %v795_v5 }
  0xcb   :  { %v842_v19 = vld [vmem:[#allocation8 + $0x760] sm:$0xff]  ;;  %2224 = vmatpush2.bf16.msra.mxu1 %v7931_v21  ;;  %v9697_v15 = vld [vmem:[#allocation5 + $0x8] ss:$16 sps:$4 sm:$0xff]  }
  0xcc   :  { %v7924_v23 = vcombine.high %v838_v18, %v842_v19  ;;  %v702_v24 = vld [vmem:[#allocation8 + $0x300] sm:$0xff]  ;;  %2182 = vmatprep.subr.bf16.mxu0 %v7796_v22  ;;  %v7923_v29 = vcombine.low %v838_v18, %v842_v19  ;;  %v7742_v18 = vcombine.high %v655_v10, %v659_v11  ;;  %v7870_v19 = vcombine.high %v783_v13, %v787_v14  ;;  %v647_v20 = vld [vmem:[#allocation8 + $0x148] sm:$0xff] }
  0xcd   :  { %v706_v25 = vld [vmem:[#allocation8 + $0x320] sm:$0xff]  ;;  %2183 = vmatpush2.bf16.msra.mxu0 %v7795_v28  ;;  %v651_v21 = vld [vmem:[#allocation8 + $0x168] sm:$0xff] }
  0xce   :  { %v830_v26 = vld [vmem:[#allocation8 + $0x700] sm:$0xff]  ;;  %v7788_v30 = vcombine.high %v702_v24, %v706_v25  ;;  %2225 = vmatprep.subr.bf16.mxu1 %v7924_v23  ;;  %v7787_v36 = vcombine.low %v702_v24, %v706_v25  ;;  %v775_v22 = vld [vmem:[#allocation8 + $0x548] sm:$0xff]  ;;  %v7741_v24 = vcombine.low %v655_v10, %v659_v11  ;;  %v7869_v25 = vcombine.low %v783_v13, %v787_v14 }
  0xcf   :  { %v834_v27 = vld [vmem:[#allocation8 + $0x720] sm:$0xff]  ;;  %2226 = vmatpush2.bf16.msra.mxu1 %v7923_v29  ;;  %v779_v23 = vld [vmem:[#allocation8 + $0x568] sm:$0xff] }
  0xd0   :  { %v7916_v31 = vcombine.high %v830_v26, %v834_v27  ;;  %v694_v32 = vld [vmem:[#allocation8 + $0x2c0] sm:$0xff]  ;;  %2184 = vmatprep.subr.bf16.mxu0 %v7788_v30  ;;  %v7915_v37 = vcombine.low %v830_v26, %v834_v27  ;;  %v7734_v26 = vcombine.high %v647_v20, %v651_v21  ;;  %v639_v27 = vld [vmem:[#allocation8 + $0x108] sm:$0xff]  ;;  %v7862_v30 = vcombine.high %v775_v22, %v779_v23 }
  0xd1   :  { %v698_v33 = vld [vmem:[#allocation8 + $0x2e0] sm:$0xff]  ;;  %2185 = vmatpush2.bf16.msra.mxu0 %v7787_v36  ;;  %v643_v28 = vld [vmem:[#allocation8 + $0x128] sm:$0xff] }
  0xd2   :  { %v822_v34 = vld [vmem:[#allocation8 + $0x6c0] sm:$0xff]  ;;  %v7780_v38 = vcombine.high %v694_v32, %v698_v33  ;;  %2227 = vmatprep.subr.bf16.mxu1 %v7916_v31  ;;  %v7779_v44 = vcombine.low %v694_v32, %v698_v33  ;;  %v767_v29 = vld [vmem:[#allocation8 + $0x508] sm:$0xff]  ;;  %v7733_v32 = vcombine.low %v647_v20, %v651_v21  ;;  %v7861_v33 = vcombine.low %v775_v22, %v779_v23 }
  0xd3   :  { %v826_v35 = vld [vmem:[#allocation8 + $0x6e0] sm:$0xff]  ;;  %2228 = vmatpush2.bf16.msra.mxu1 %v7915_v37  ;;  %v771_v31 = vld [vmem:[#allocation8 + $0x528] sm:$0xff] }
  0xd4   :  { %v7908_v39 = vcombine.high %v822_v34, %v826_v35  ;;  %v686_v40 = vld [vmem:[#allocation8 + $0x280] sm:$0xff]  ;;  %2186 = vmatprep.subr.bf16.mxu0 %v7780_v38  ;;  %v7907_v45 = vcombine.low %v822_v34, %v826_v35  ;;  %v7726_v34 = vcombine.high %v639_v27, %v643_v28  ;;  %v631_v35 = vld [vmem:[#allocation8 + $0xc8] sm:$0xff]  ;;  %v7854_v38 = vcombine.high %v767_v29, %v771_v31 }
  0xd5   :  { %v690_v41 = vld [vmem:[#allocation8 + $0x2a0] sm:$0xff]  ;;  %2187 = vmatpush2.bf16.msra.mxu0 %v7779_v44  ;;  %v635_v36 = vld [vmem:[#allocation8 + $0xe8] sm:$0xff] }
  0xd6   :  { %v814_v42 = vld [vmem:[#allocation8 + $0x680] sm:$0xff]  ;;  %v7772_v46 = vcombine.high %v686_v40, %v690_v41  ;;  %2229 = vmatprep.subr.bf16.mxu1 %v7908_v39  ;;  %v7771_v52 = vcombine.low %v686_v40, %v690_v41  ;;  %v759_v37 = vld [vmem:[#allocation8 + $0x4c8] sm:$0xff]  ;;  %v7725_v40 = vcombine.low %v639_v27, %v643_v28  ;;  %v7853_v41 = vcombine.low %v767_v29, %v771_v31 }
  0xd7   :  { %v818_v43 = vld [vmem:[#allocation8 + $0x6a0] sm:$0xff]  ;;  %2230 = vmatpush2.bf16.msra.mxu1 %v7907_v45  ;;  %v763_v39 = vld [vmem:[#allocation8 + $0x4e8] sm:$0xff] }
  0xd8   :  { %v7900_v47 = vcombine.high %v814_v42, %v818_v43  ;;  %v678_v48 = vld [vmem:[#allocation8 + $0x240] sm:$0xff]  ;;  %2188 = vmatprep.subr.bf16.mxu0 %v7772_v46  ;;  %v7899_v53 = vcombine.low %v814_v42, %v818_v43  ;;  %v7718_v42 = vcombine.high %v631_v35, %v635_v36  ;;  %v623_v43 = vld [vmem:[#allocation8 + $0x88] sm:$0xff]  ;;  %v7846_v46 = vcombine.high %v759_v37, %v763_v39 }
  0xd9   :  { %v682_v49 = vld [vmem:[#allocation8 + $0x260] sm:$0xff]  ;;  %2189 = vmatpush2.bf16.msra.mxu0 %v7771_v52  ;;  %v627_v44 = vld [vmem:[#allocation8 + $0xa8] sm:$0xff] }
  0xda   :  { %v806_v50 = vld [vmem:[#allocation8 + $0x640] sm:$0xff]  ;;  %v7764_v54 = vcombine.high %v678_v48, %v682_v49  ;;  %2231 = vmatprep.subr.bf16.mxu1 %v7900_v47  ;;  %v7763_v62 = vcombine.low %v678_v48, %v682_v49  ;;  %v751_v45 = vld [vmem:[#allocation8 + $0x488] sm:$0xff]  ;;  %v7717_v48 = vcombine.low %v631_v35, %v635_v36  ;;  %v7845_v49 = vcombine.low %v759_v37, %v763_v39 }
  0xdb   :  { %v810_v51 = vld [vmem:[#allocation8 + $0x660] sm:$0xff]  ;;  %2232 = vmatpush2.bf16.msra.mxu1 %v7899_v53  ;;  %v755_v47 = vld [vmem:[#allocation8 + $0x4a8] sm:$0xff] }
  0xdc   :  { %v7892_v55 = vcombine.high %v806_v50, %v810_v51  ;;  %v670_v57 = vld [vmem:[#allocation8 + $0x200] sm:$0xff]  ;;  %2190 = vmatprep.subr.bf16.mxu0 %v7764_v54  ;;  %v7891_v63 = vcombine.low %v806_v50, %v810_v51  ;;  %v7710_v50 = vcombine.high %v623_v43, %v627_v44  ;;  %v615_v51 = vld [vmem:[#allocation8 + $0x48] sm:$0xff]  ;;  %v7838_v54 = vcombine.high %v751_v45, %v755_v47 }
  0xdd   :  { %v674_v58 = vld [vmem:[#allocation8 + $0x220] sm:$0xff]  ;;  %2191 = vmatpush2.bf16.msra.mxu0 %v7763_v62  ;;  %v619_v52 = vld [vmem:[#allocation8 + $0x68] sm:$0xff] }
  0xde   :  { %v798_v60 = vld [vmem:[#allocation8 + $0x600] sm:$0xff]  ;;  %v7756_v0 = vcombine.high %v670_v57, %v674_v58  ;;  %2233 = vmatprep.subr.bf16.mxu1 %v7892_v55  ;;  %v7755_v6 = vcombine.low %v670_v57, %v674_v58  ;;  %v743_v53 = vld [vmem:[#allocation8 + $0x448] sm:$0xff]  ;;  %v7709_v57 = vcombine.low %v623_v43, %v627_v44  ;;  %v7837_v58 = vcombine.low %v751_v45, %v755_v47 }
  0xdf   :  { %v802_v61 = vld [vmem:[#allocation8 + $0x620] sm:$0xff]  ;;  %2234 = vmatpush2.bf16.msra.mxu1 %v7891_v63  ;;  %v747_v55 = vld [vmem:[#allocation8 + $0x468] sm:$0xff]  ;;  %v7701_v2 = vcombine.low %v615_v51, %v619_v52 }
  0xe0   :  { %v7884_v1 = vcombine.high %v798_v60, %v802_v61  ;;  %2192 = vmatprep.subr.bf16.mxu0 %v7756_v0  ;;  %v7883_v7 = vcombine.low %v798_v60, %v802_v61  ;;  %v9695_v12 = vld [vmem:[#allocation5] ss:$16 sps:$4 sm:$0xff]   ;;  %v7702_v60 = vcombine.high %v615_v51, %v619_v52  ;;  %v607_v61 = vld [vmem:[#allocation8 + $0x8] sm:$0xff]  ;;  %v7830_v0 = vcombine.high %v743_v53, %v747_v55 }
  0xe1   :  { %2193 = vmatpush2.bf16.msra.mxu0 %v7755_v6  ;;  %v611_v62 = vld [vmem:[#allocation8 + $0x28] sm:$0xff]  ;;  %v7829_v3 = vcombine.low %v743_v53, %v747_v55 }
  0xe2   :  { %2235 = vmatprep.subr.bf16.mxu1 %v7884_v1  ;;  %2248 = vmatprep.subr.bf16.mxu0 %v7750_v8  ;;  %v735_v63 = vld [vmem:[#allocation8 + $0x408] sm:$0xff]  ;;  %v7694_v4 = vcombine.high %v607_v61, %v611_v62  ;;  %v7693_v10 = vcombine.low %v607_v61, %v611_v62 }
  0xe3   :  { %2236 = vmatpush2.bf16.msra.mxu1 %v7883_v7  ;;  %v739_v1 = vld [vmem:[#allocation8 + $0x428] sm:$0xff] }
  0xe4   :  { %2291 = vmatprep.subr.bf16.mxu1 %v7878_v9  ;;  %2195 = vmatmul.mubr.bf16.vlgmr.msra.gmra.mxu0 %v9695_v12  ;;  %v727_v5 = vld [vmem:[#allocation8 + $0x3c8] sm:$0xff]  ;;  %v7822_v8 = vcombine.high %v735_v63, %v739_v1  ;;  %v7821_v11 = vcombine.low %v735_v63, %v739_v1 }
  0xe5   :  { %2249 = vmatpush1.bf16.msra.mxu0 %v7749_v16  ;;  %2280 = vmatprep.mubr.bf16.mxu0 %v9689_v56  ;;  %v731_v6 = vld [vmem:[#allocation8 + $0x3e8] sm:$0xff] }
  0xe6   :  { %2238 = vmatmul.mubr.bf16.vlgmr.msra.gmra.mxu1 %v9697_v15  ;;  %2250 = vmatprep.subr.bf16.mxu0 %v7742_v18  ;;  %v855_v7 = vld [vmem:[#allocation8 + $0x7c8] sm:$0xff]  ;;  %v7814_v13 = vcombine.high %v727_v5, %v731_v6  ;;  %v7813_v20 = vcombine.low %v727_v5, %v731_v6 }
  0xe7   :  { %2292 = vmatpush1.bf16.msra.mxu1 %v7877_v17  ;;  %2323 = vmatprep.mubr.bf16.mxu1 %v9691_v59  ;;  %v859_v9 = vld [vmem:[#allocation8 + $0x7e8] sm:$0xff] }
  0xe8   :  { %2293 = vmatprep.subr.bf16.mxu1 %v7870_v19  ;;  %v719_v14 = vld [vmem:[#allocation8 + $0x388] sm:$0xff]  ;;  %v7942_v18 = vcombine.high %v855_v7, %v859_v9  ;;  %v7941_v21 = vcombine.low %v855_v7, %v859_v9  ;;  %v664_v9 = vld [vmem:[#allocation8 + $0x1d0] sm:$0xff] }
  0xe9   :  { %2251 = vmatpush1.bf16.msra.mxu0 %v7741_v24  ;;  %v723_v16 = vld [vmem:[#allocation8 + $0x3a8] sm:$0xff] }
  0xea   :  { %2252 = vmatprep.subr.bf16.mxu0 %v7734_v26  ;;  %v847_v17 = vld [vmem:[#allocation8 + $0x788] sm:$0xff]  ;;  %v7806_v22 = vcombine.high %v719_v14, %v723_v16  ;;  %v7805_v28 = vcombine.low %v719_v14, %v723_v16  ;;  %v796_v14 = vld [vmem:[#allocation8 + $0x5f0] sm:$0xff] }
  0xeb   :  { %2294 = vmatpush1.bf16.msra.mxu1 %v7869_v25  ;;  %v851_v19 = vld [vmem:[#allocation8 + $0x7a8] sm:$0xff] }
  0xec   :  { %2295 = vmatprep.subr.bf16.mxu1 %v7862_v30  ;;  %v711_v23 = vld [vmem:[#allocation8 + $0x348] sm:$0xff]  ;;  %v7934_v26 = vcombine.high %v847_v17, %v851_v19  ;;  %v7933_v29 = vcombine.low %v847_v17, %v851_v19  ;;  %v656_v19 = vld [vmem:[#allocation8 + $0x190] sm:$0xff] }
  0xed   :  { %2253 = vmatpush1.bf16.msra.mxu0 %v7733_v32  ;;  %v715_v24 = vld [vmem:[#allocation8 + $0x368] sm:$0xff] }
  0xee   :  { %2254 = vmatprep.subr.bf16.mxu0 %v7726_v34  ;;  %v839_v25 = vld [vmem:[#allocation8 + $0x748] sm:$0xff]  ;;  %v7798_v30 = vcombine.high %v711_v23, %v715_v24  ;;  %v7797_v36 = vcombine.low %v711_v23, %v715_v24  ;;  %v788_v23 = vld [vmem:[#allocation8 + $0x5b0] sm:$0xff] }
  0xef   :  { %2296 = vmatpush1.bf16.msra.mxu1 %v7861_v33  ;;  %v843_v27 = vld [vmem:[#allocation8 + $0x768] sm:$0xff] }
  0xf0   :  { %2297 = vmatprep.subr.bf16.mxu1 %v7854_v38  ;;  %v703_v31 = vld [vmem:[#allocation8 + $0x308] sm:$0xff]  ;;  %v7926_v34 = vcombine.high %v839_v25, %v843_v27  ;;  %v7925_v37 = vcombine.low %v839_v25, %v843_v27  ;;  %v648_v27 = vld [vmem:[#allocation8 + $0x150] sm:$0xff] }
  0xf1   :  { %2255 = vmatpush1.bf16.msra.mxu0 %v7725_v40  ;;  %v707_v32 = vld [vmem:[#allocation8 + $0x328] sm:$0xff] }
  0xf2   :  { %2256 = vmatprep.subr.bf16.mxu0 %v7718_v42  ;;  %v831_v33 = vld [vmem:[#allocation8 + $0x708] sm:$0xff]  ;;  %v7790_v38 = vcombine.high %v703_v31, %v707_v32  ;;  %v7789_v44 = vcombine.low %v703_v31, %v707_v32  ;;  %v780_v31 = vld [vmem:[#allocation8 + $0x570] sm:$0xff] }
  0xf3   :  { %2298 = vmatpush1.bf16.msra.mxu1 %v7853_v41  ;;  %v835_v35 = vld [vmem:[#allocation8 + $0x728] sm:$0xff] }
  0xf4   :  { %2299 = vmatprep.subr.bf16.mxu1 %v7846_v46  ;;  %v695_v39 = vld [vmem:[#allocation8 + $0x2c8] sm:$0xff]  ;;  %v7918_v42 = vcombine.high %v831_v33, %v835_v35  ;;  %v7917_v45 = vcombine.low %v831_v33, %v835_v35  ;;  %v640_v35 = vld [vmem:[#allocation8 + $0x110] sm:$0xff] }
  0xf5   :  { %2257 = vmatpush1.bf16.msra.mxu0 %v7717_v48  ;;  %v699_v40 = vld [vmem:[#allocation8 + $0x2e8] sm:$0xff] }
  0xf6   :  { %2258 = vmatprep.subr.bf16.mxu0 %v7710_v50  ;;  %v823_v41 = vld [vmem:[#allocation8 + $0x6c8] sm:$0xff]  ;;  %v7782_v46 = vcombine.high %v695_v39, %v699_v40  ;;  %v7781_v52 = vcombine.low %v695_v39, %v699_v40  ;;  %v772_v39 = vld [vmem:[#allocation8 + $0x530] sm:$0xff] }
  0xf7   :  { %2300 = vmatpush1.bf16.msra.mxu1 %v7845_v49  ;;  %v827_v43 = vld [vmem:[#allocation8 + $0x6e8] sm:$0xff] }
  0xf8   :  { %2301 = vmatprep.subr.bf16.mxu1 %v7838_v54  ;;  %v687_v47 = vld [vmem:[#allocation8 + $0x288] sm:$0xff]  ;;  %v7910_v50 = vcombine.high %v823_v41, %v827_v43  ;;  %v7909_v53 = vcombine.low %v823_v41, %v827_v43  ;;  %v632_v41 = vld [vmem:[#allocation8 + $0xd0] sm:$0xff] }
  0xf9   :  { %2259 = vmatpush1.bf16.msra.mxu0 %v7709_v57  ;;  %v691_v48 = vld [vmem:[#allocation8 + $0x2a8] sm:$0xff]  ;;  %v760_v43 = vld [vmem:[#allocation8 + $0x4d0] sm:$0xff] }
  0xfa   :  { %2260 = vmatprep.subr.bf16.mxu0 %v7702_v60  ;;  %v815_v49 = vld [vmem:[#allocation8 + $0x688] sm:$0xff]  ;;  %v7774_v54 = vcombine.high %v687_v47, %v691_v48  ;;  %v7773_v62 = vcombine.low %v687_v47, %v691_v48  ;;  %v624_v48 = vld [vmem:[#allocation8 + $0x90] sm:$0xff] }
  0xfb   :  { %2302 = vmatpush1.bf16.msra.mxu1 %v7837_v58  ;;  %v819_v51 = vld [vmem:[#allocation8 + $0x6a8] sm:$0xff] }
  0xfc   :  { %2303 = vmatprep.subr.bf16.mxu1 %v7830_v0  ;;  %v679_v55 = vld [vmem:[#allocation8 + $0x248] sm:$0xff]  ;;  %v7902_v60 = vcombine.high %v815_v49, %v819_v51  ;;  %v7901_v63 = vcombine.low %v815_v49, %v819_v51  ;;  %v752_v49 = vld [vmem:[#allocation8 + $0x490] sm:$0xff] }
  0xfd   :  { %2261 = vmatpush1.bf16.msra.mxu0 %v7701_v2  ;;  %v683_v57 = vld [vmem:[#allocation8 + $0x268] sm:$0xff]  ;;  %v756_v51 = vld [vmem:[#allocation8 + $0x4b0] sm:$0xff] }
  0xfe   :  { %2262 = vmatprep.subr.bf16.mxu0 %v7694_v4  ;;  %v807_v58 = vld [vmem:[#allocation8 + $0x648] sm:$0xff]  ;;  %v7766_v0 = vcombine.high %v679_v55, %v683_v57  ;;  %v7765_v6 = vcombine.low %v679_v55, %v683_v57  ;;  %v616_v55 = vld [vmem:[#allocation8 + $0x50] sm:$0xff] }
  0xff   :  { %2304 = vmatpush1.bf16.msra.mxu1 %v7829_v3  ;;  %v811_v61 = vld [vmem:[#allocation8 + $0x668] sm:$0xff]  ;;  %v620_v57 = vld [vmem:[#allocation8 + $0x70] sm:$0xff] }
 0x100   :  { %2305 = vmatprep.subr.bf16.mxu1 %v7822_v8  ;;  %v671_v1 = vld [vmem:[#allocation8 + $0x208] sm:$0xff]  ;;  %v7894_v4 = vcombine.high %v807_v58, %v811_v61  ;;  %v7893_v7 = vcombine.low %v807_v58, %v811_v61  ;;  %v744_v58 = vld [vmem:[#allocation8 + $0x450] sm:$0xff] }
 0x101   :  { %2263 = vmatpush1.bf16.msra.mxu0 %v7693_v10  ;;  %v675_v2 = vld [vmem:[#allocation8 + $0x228] sm:$0xff]  ;;  %v668_v10 = vld [vmem:[#allocation8 + $0x1f0] sm:$0xff] }
 0x102   :  { %2264 = vmatprep.subr.bf16.mxu0 %v7814_v13  ;;  %v799_v3 = vld [vmem:[#allocation8 + $0x608] sm:$0xff]  ;;  %v7758_v8 = vcombine.high %v671_v1, %v675_v2  ;;  %v7757_v16 = vcombine.low %v671_v1, %v675_v2  ;;  %v7751_v24 = vcombine.low %v664_v9, %v668_v10  ;;  %v748_v61 = vld [vmem:[#allocation8 + $0x470] sm:$0xff] }
 0x103   :  { %2306 = vmatpush1.bf16.msra.mxu1 %v7821_v11  ;;  %v803_v5 = vld [vmem:[#allocation8 + $0x628] sm:$0xff]  ;;  %v792_v11 = vld [vmem:[#allocation8 + $0x5d0] sm:$0xff] }
 0x104   :  { %2307 = vmatprep.subr.bf16.mxu1 %v7942_v18  ;;  %v7886_v13 = vcombine.high %v799_v3, %v803_v5  ;;  %v7885_v17 = vcombine.low %v799_v3, %v803_v5  ;;  %v7752_v18 = vcombine.high %v664_v9, %v668_v10  ;;  %v7879_v25 = vcombine.low %v792_v11, %v796_v14  ;;  %v608_v1 = vld [vmem:[#allocation8 + $0x10] sm:$0xff] }
 0x105   :  { %2265 = vmatpush2.bf16.msra.mxu0 %v7813_v20  ;;  %v660_v20 = vld [vmem:[#allocation8 + $0x1b0] sm:$0xff] }
 0x106   :  { %2266 = vmatprep.subr.bf16.mxu0 %v7806_v22  ;;  %v7880_v22 = vcombine.high %v792_v11, %v796_v14  ;;  %v7743_v32 = vcombine.low %v656_v19, %v660_v20  ;;  %v612_v2 = vld [vmem:[#allocation8 + $0x30] sm:$0xff] }
 0x107   :  { %2308 = vmatpush2.bf16.msra.mxu1 %v7941_v21  ;;  %v784_v21 = vld [vmem:[#allocation8 + $0x590] sm:$0xff] }
 0x108   :  { %2309 = vmatprep.subr.bf16.mxu1 %v7934_v26  ;;  %v7744_v26 = vcombine.high %v656_v19, %v660_v20  ;;  %v7871_v33 = vcombine.low %v784_v21, %v788_v23  ;;  %v736_v3 = vld [vmem:[#allocation8 + $0x410] sm:$0xff] }
 0x109   :  { %2267 = vmatpush2.bf16.msra.mxu0 %v7805_v28  ;;  %v652_v28 = vld [vmem:[#allocation8 + $0x170] sm:$0xff] }
 0x10a   :  { %2268 = vmatprep.subr.bf16.mxu0 %v7798_v30  ;;  %v7872_v30 = vcombine.high %v784_v21, %v788_v23  ;;  %v740_v5 = vld [vmem:[#allocation8 + $0x430] sm:$0xff] }
 0x10b   :  { %2310 = vmatpush2.bf16.msra.mxu1 %v7933_v29  ;;  %v776_v29 = vld [vmem:[#allocation8 + $0x550] sm:$0xff] }
 0x10c   :  { %2311 = vmatprep.subr.bf16.mxu1 %v7926_v34  ;;  %v7736_v34 = vcombine.high %v648_v27, %v652_v28  ;;  %v728_v9 = vld [vmem:[#allocation8 + $0x3d0] sm:$0xff] }
 0x10d   :  { %2269 = vmatpush2.bf16.msra.mxu0 %v7797_v36  ;;  %v644_v36 = vld [vmem:[#allocation8 + $0x130] sm:$0xff] }
 0x10e   :  { %2270 = vmatprep.subr.bf16.mxu0 %v7790_v38  ;;  %v7864_v38 = vcombine.high %v776_v29, %v780_v31  ;;  %v7728_v40 = vcombine.high %v640_v35, %v644_v36  ;;  %v732_v10 = vld [vmem:[#allocation8 + $0x3f0] sm:$0xff] }
 0x10f   :  { %2312 = vmatpush2.bf16.msra.mxu1 %v7925_v37  ;;  %v768_v37 = vld [vmem:[#allocation8 + $0x510] sm:$0xff] }
 0x110   :  { %2313 = vmatprep.subr.bf16.mxu1 %v7918_v42  ;;  %v636_v42 = vld [vmem:[#allocation8 + $0xf0] sm:$0xff]  ;;  %v7855_v47 = vcombine.low %v768_v37, %v772_v39 }
 0x111   :  { %2271 = vmatpush2.bf16.msra.mxu0 %v7789_v44  ;;  %v7856_v44 = vcombine.high %v768_v37, %v772_v39  ;;  %v856_v11 = vld [vmem:[#allocation8 + $0x7d0] sm:$0xff] }
 0x112   :  { %2272 = vmatprep.subr.bf16.mxu0 %v7782_v46  ;;  %v7727_v46 = vcombine.low %v640_v35, %v644_v36  ;;  %v860_v14 = vld [vmem:[#allocation8 + $0x7f0] sm:$0xff] }
 0x113   :  { %2314 = vmatpush2.bf16.msra.mxu1 %v7917_v45  ;;  %v764_v45 = vld [vmem:[#allocation8 + $0x4f0] sm:$0xff] }
 0x114   :  { %2315 = vmatprep.subr.bf16.mxu1 %v7910_v50  ;;  %v7848_v50 = vcombine.high %v760_v43, %v764_v45  ;;  %v720_v19 = vld [vmem:[#allocation8 + $0x390] sm:$0xff] }
 0x115   :  { %2273 = vmatpush2.bf16.msra.mxu0 %v7781_v52  ;;  %v7719_v52 = vcombine.low %v632_v41, %v636_v42  ;;  %v724_v20 = vld [vmem:[#allocation8 + $0x3b0] sm:$0xff] }
 0x116   :  { %2274 = vmatprep.subr.bf16.mxu0 %v7774_v54  ;;  %v848_v21 = vld [vmem:[#allocation8 + $0x790] sm:$0xff] }
 0x117   :  { %2316 = vmatpush2.bf16.msra.mxu1 %v7909_v53  ;;  %v7847_v53 = vcombine.low %v760_v43, %v764_v45  ;;  %v852_v23 = vld [vmem:[#allocation8 + $0x7b0] sm:$0xff] }
 0x118   :  { %2317 = vmatprep.subr.bf16.mxu1 %v7902_v60  ;;  %v7840_v60 = vcombine.high %v752_v49, %v756_v51  ;;  %v704_v35 = vld [vmem:[#allocation8 + $0x310] sm:$0xff] }
 0x119   :  { %2275 = vmatpush2.bf16.msra.mxu0 %v7773_v62  ;;  %v708_v36 = vld [vmem:[#allocation8 + $0x330] sm:$0xff] }
 0x11a   :  { %2276 = vmatprep.subr.bf16.mxu0 %v7766_v0  ;;  %v7704_v0 = vcombine.high %v616_v55, %v620_v57  ;;  %v832_v37 = vld [vmem:[#allocation8 + $0x710] sm:$0xff] }
 0x11b   :  { %2318 = vmatpush2.bf16.msra.mxu1 %v7901_v63  ;;  %v7839_v63 = vcombine.low %v752_v49, %v756_v51  ;;  %v836_v39 = vld [vmem:[#allocation8 + $0x730] sm:$0xff] }
 0x11c   :  { %2319 = vmatprep.subr.bf16.mxu1 %v7894_v4  ;;  %v7832_v4 = vcombine.high %v744_v58, %v748_v61  ;;  %v824_v43 = vld [vmem:[#allocation8 + $0x6d0] sm:$0xff] }
 0x11d   :  { %2277 = vmatpush2.bf16.msra.mxu0 %v7765_v6  ;;  %v7703_v6 = vcombine.low %v616_v55, %v620_v57  ;;  %v828_v45 = vld [vmem:[#allocation8 + $0x6f0] sm:$0xff] }
 0x11e   :  { %2278 = vmatprep.subr.bf16.mxu0 %v7758_v8  ;;  %v7696_v8 = vcombine.high %v608_v1, %v612_v2  ;;  %v816_v49 = vld [vmem:[#allocation8 + $0x690] sm:$0xff] }
 0x11f   :  { %2320 = vmatpush2.bf16.msra.mxu1 %v7893_v7  ;;  %v7831_v7 = vcombine.low %v744_v58, %v748_v61  ;;  %v820_v51 = vld [vmem:[#allocation8 + $0x6b0] sm:$0xff] }
 0x120   :  { %2321 = vmatprep.subr.bf16.mxu1 %v7886_v13  ;;  %v7824_v13 = vcombine.high %v736_v3, %v740_v5  ;;  %v680_v55 = vld [vmem:[#allocation8 + $0x250] sm:$0xff] }
 0x121   :  { %2279 = vmatpush2.bf16.msra.mxu0 %v7757_v16  ;;  %v7695_v16 = vcombine.low %v608_v1, %v612_v2  ;;  %v684_v57 = vld [vmem:[#allocation8 + $0x270] sm:$0xff] }
 0x122   :  { %2334 = vmatprep.subr.bf16.mxu0 %v7752_v18  ;;  %v7816_v18 = vcombine.high %v728_v9, %v732_v10  ;;  %v808_v58 = vld [vmem:[#allocation8 + $0x650] sm:$0xff] }
 0x123   :  { %2322 = vmatpush2.bf16.msra.mxu1 %v7885_v17  ;;  %v7823_v17 = vcombine.low %v736_v3, %v740_v5  ;;  %v812_v61 = vld [vmem:[#allocation8 + $0x670] sm:$0xff] }
 0x124   :  { %2377 = vmatprep.subr.bf16.mxu1 %v7880_v22  ;;  %2281 = vmatmul.mubr.bf16.vlgmr.msra.gmra.mxu0 %v9695_v12  ;;  %v7735_v12 = vcombine.low %v648_v27, %v652_v28  ;;  %v7944_v22 = vcombine.high %v856_v11, %v860_v14  ;;  %v712_v27 = vld [vmem:[#allocation8 + $0x350] sm:$0xff] }
 0x125   :  { %2335 = vmatpush1.bf16.msra.mxu0 %v7751_v24  ;;  %2366 = vmatprep.mubr.bf16.mxu0 %v9689_v56  ;;  %v7720_v56 = vcombine.high %v632_v41, %v636_v42  ;;  %v7815_v24 = vcombine.low %v728_v9, %v732_v10  ;;  %v716_v28 = vld [vmem:[#allocation8 + $0x370] sm:$0xff]  ;;  %v665_v9 = vld [vmem:[#allocation8 + $0x1d8] sm:$0xff] }
 0x126   :  { %2324 = vmatmul.mubr.bf16.vlgmr.msra.gmra.mxu1 %v9697_v15  ;;  %2336 = vmatprep.subr.bf16.mxu0 %v7744_v26  ;;  %v7863_v15 = vcombine.low %v776_v29, %v780_v31  ;;  %v7808_v26 = vcombine.high %v720_v19, %v724_v20  ;;  %v840_v29 = vld [vmem:[#allocation8 + $0x750] sm:$0xff]  ;;  %v669_v10 = vld [vmem:[#allocation8 + $0x1f8] sm:$0xff] }
 0x127   :  { %2378 = vmatpush1.bf16.msra.mxu1 %v7879_v25  ;;  %2409 = vmatprep.mubr.bf16.mxu1 %v9691_v59  ;;  %v628_v59 = vld [vmem:[#allocation8 + $0xb0] sm:$0xff]  ;;  %v7943_v25 = vcombine.low %v856_v11, %v860_v14  ;;  %v793_v11 = vld [vmem:[#allocation8 + $0x5d8] sm:$0xff] }
 0x128   :  { %2379 = vmatprep.subr.bf16.mxu1 %v7872_v30  ;;  %v7712_v54 = vcombine.high %v624_v48, %v628_v59  ;;  %v7711_v62 = vcombine.low %v624_v48, %v628_v59  ;;  %v7936_v30 = vcombine.high %v848_v21, %v852_v23  ;;  %v844_v31 = vld [vmem:[#allocation8 + $0x770] sm:$0xff]  ;;  %v797_v14 = vld [vmem:[#allocation8 + $0x5f8] sm:$0xff] }
 0x129   :  { %2337 = vmatpush1.bf16.msra.mxu0 %v7743_v32  ;;  %v7807_v32 = vcombine.low %v720_v19, %v724_v20  ;;  %v696_v41 = vld [vmem:[#allocation8 + $0x2d0] sm:$0xff]  ;;  %v657_v19 = vld [vmem:[#allocation8 + $0x198] sm:$0xff] }
 0x12a   :  { %2338 = vmatprep.subr.bf16.mxu0 %v7736_v34  ;;  %v7800_v34 = vcombine.high %v712_v27, %v716_v28  ;;  %v700_v42 = vld [vmem:[#allocation8 + $0x2f0] sm:$0xff]  ;;  %v661_v20 = vld [vmem:[#allocation8 + $0x1b8] sm:$0xff] }
 0x12b   :  { %2380 = vmatpush1.bf16.msra.mxu1 %v7871_v33  ;;  %v7935_v33 = vcombine.low %v848_v21, %v852_v23  ;;  %v688_v48 = vld [vmem:[#allocation8 + $0x290] sm:$0xff]  ;;  %v785_v21 = vld [vmem:[#allocation8 + $0x598] sm:$0xff] }
 0x12c   :  { %2381 = vmatprep.subr.bf16.mxu1 %v7864_v38  ;;  %v7928_v38 = vcombine.high %v840_v29, %v844_v31  ;;  %v692_v59 = vld [vmem:[#allocation8 + $0x2b0] sm:$0xff]  ;;  %v789_v23 = vld [vmem:[#allocation8 + $0x5b8] sm:$0xff] }
 0x12d   :  { %2339 = vmatpush1.bf16.msra.mxu0 %v7735_v12  ;;  %v7799_v12 = vcombine.low %v712_v27, %v716_v28  ;;  %v672_v1 = vld [vmem:[#allocation8 + $0x210] sm:$0xff]  ;;  %v7874_v27 = vcombine.high %v785_v21, %v789_v23  ;;  %v649_v28 = vld [vmem:[#allocation8 + $0x158] sm:$0xff] }
 0x12e   :  { %2340 = vmatprep.subr.bf16.mxu0 %v7728_v40  ;;  %v7792_v40 = vcombine.high %v704_v35, %v708_v36  ;;  %v676_v2 = vld [vmem:[#allocation8 + $0x230] sm:$0xff] }
 0x12f   :  { %2382 = vmatpush1.bf16.msra.mxu1 %v7863_v15  ;;  %v7927_v15 = vcombine.low %v840_v29, %v844_v31  ;;  %v800_v3 = vld [vmem:[#allocation8 + $0x610] sm:$0xff]  ;;  %v653_v29 = vld [vmem:[#allocation8 + $0x178] sm:$0xff] }
 0x130   :  { %2383 = vmatprep.subr.bf16.mxu1 %v7856_v44  ;;  %v7920_v44 = vcombine.high %v832_v37, %v836_v39  ;;  %v804_v5 = vld [vmem:[#allocation8 + $0x630] sm:$0xff]  ;;  %v777_v31 = vld [vmem:[#allocation8 + $0x558] sm:$0xff] }
 0x131   :  { %2341 = vmatpush1.bf16.msra.mxu0 %v7727_v46  ;;  %v7791_v46 = vcombine.low %v704_v35, %v708_v36  ;;  %v7873_v35 = vcombine.low %v785_v21, %v789_v23  ;;  %v7738_v36 = vcombine.high %v649_v28, %v653_v29  ;;  %v721_v23 = vld [vmem:[#allocation8 + $0x398] sm:$0xff] }
 0x132   :  { %2342 = vmatprep.subr.bf16.mxu0 %v7720_v56  ;;  %v7784_v56 = vcombine.high %v696_v41, %v700_v42 }
 0x133   :  { %2384 = vmatpush1.bf16.msra.mxu1 %v7855_v47  ;;  %v7919_v47 = vcombine.low %v832_v37, %v836_v39  ;;  %v641_v37 = vld [vmem:[#allocation8 + $0x118] sm:$0xff] }
 0x134   :  { %2385 = vmatprep.subr.bf16.mxu1 %v7848_v50  ;;  %v7912_v50 = vcombine.high %v824_v43, %v828_v45  ;;  %v769_v39 = vld [vmem:[#allocation8 + $0x518] sm:$0xff] }
 0x135   :  { %2343 = vmatpush1.bf16.msra.mxu0 %v7719_v52  ;;  %v7783_v52 = vcombine.low %v696_v41, %v700_v42  ;;  %v9234_v41 = vld [vmem:[#allocation5 + $0xc] ss:$16 sps:$4 sm:$0xff]   ;;  %v7737_v42 = vcombine.low %v649_v28, %v653_v29 }
 0x136   :  { %2344 = vmatprep.subr.bf16.mxu0 %v7712_v54  ;;  %v7776_v54 = vcombine.high %v688_v48, %v692_v59 }
 0x137   :  { %2386 = vmatpush1.bf16.msra.mxu1 %v7847_v53  ;;  %v7911_v53 = vcombine.low %v824_v43, %v828_v45  ;;  %v633_v45 = vld [vmem:[#allocation8 + $0xd8] sm:$0xff] }
 0x138   :  { %2387 = vmatprep.subr.bf16.mxu1 %v7840_v60  ;;  %v7904_v60 = vcombine.high %v816_v49, %v820_v51 }
 0x139   :  { %2345 = vmatpush1.bf16.msra.mxu0 %v7711_v62  ;;  %v7775_v62 = vcombine.low %v688_v48, %v692_v59  ;;  %v765_v48 = vld [vmem:[#allocation8 + $0x4f8] sm:$0xff] }
 0x13a   :  { %2346 = vmatprep.subr.bf16.mxu0 %v7704_v0  ;;  %v7768_v0 = vcombine.high %v680_v55, %v684_v57 }
 0x13b   :  { %2388 = vmatpush1.bf16.msra.mxu1 %v7839_v63  ;;  %v7903_v63 = vcombine.low %v816_v49, %v820_v51  ;;  %v625_v51 = vld [vmem:[#allocation8 + $0x98] sm:$0xff] }
 0x13c   :  { %2389 = vmatprep.subr.bf16.mxu1 %v7832_v4  ;;  %v7896_v4 = vcombine.high %v808_v58, %v812_v61 }
 0x13d   :  { %2347 = vmatpush1.bf16.msra.mxu0 %v7703_v6  ;;  %v7767_v6 = vcombine.low %v680_v55, %v684_v57  ;;  %v757_v55 = vld [vmem:[#allocation8 + $0x4b8] sm:$0xff] }
 0x13e   :  { %2348 = vmatprep.subr.bf16.mxu0 %v7696_v8  ;;  %v7760_v8 = vcombine.high %v672_v1, %v676_v2 }
 0x13f   :  { %2390 = vmatpush1.bf16.msra.mxu1 %v7831_v7  ;;  %v7895_v7 = vcombine.low %v808_v58, %v812_v61  ;;  %v617_v61 = vld [vmem:[#allocation8 + $0x58] sm:$0xff] }
 0x140   :  { %2391 = vmatprep.subr.bf16.mxu1 %v7824_v13  ;;  %v7888_v13 = vcombine.high %v800_v3, %v804_v5 }
 0x141   :  { %2349 = vmatpush1.bf16.msra.mxu0 %v7695_v16  ;;  %v7759_v16 = vcombine.low %v672_v1, %v676_v2  ;;  %v749_v1 = vld [vmem:[#allocation8 + $0x478] sm:$0xff] }
 0x142   :  { %2350 = vmatprep.subr.bf16.mxu0 %v7816_v18  ;;  %v7754_v18 = vcombine.high %v665_v9, %v669_v10 }
 0x143   :  { %2392 = vmatpush1.bf16.msra.mxu1 %v7823_v17  ;;  %v7887_v17 = vcombine.low %v800_v3, %v804_v5  ;;  %v609_v5 = vld [vmem:[#allocation8 + $0x18] sm:$0xff] }
 0x144   :  { %2393 = vmatprep.subr.bf16.mxu1 %v7944_v22  ;;  %v7882_v22 = vcombine.high %v793_v11, %v797_v14 }
 0x145   :  { %2351 = vmatpush2.bf16.msra.mxu0 %v7815_v24  ;;  %v7753_v24 = vcombine.low %v665_v9, %v669_v10  ;;  %v741_v9 = vld [vmem:[#allocation8 + $0x438] sm:$0xff] }
 0x146   :  { %2352 = vmatprep.subr.bf16.mxu0 %v7808_v26  ;;  %v7746_v26 = vcombine.high %v657_v19, %v661_v20 }
 0x147   :  { %2394 = vmatpush2.bf16.msra.mxu1 %v7943_v25  ;;  %v7881_v25 = vcombine.low %v793_v11, %v797_v14  ;;  %v729_v14 = vld [vmem:[#allocation8 + $0x3d8] sm:$0xff] }
 0x148   :  { %2395 = vmatprep.subr.bf16.mxu1 %v7936_v30  ;;  %v9707_v30 = vld [vmem:[#allocation5] ss:$16 sps:$4 sm:$0xff]  }
 0x149   :  { %2353 = vmatpush2.bf16.msra.mxu0 %v7807_v32  ;;  %v781_v32 = vld [vmem:[#allocation8 + $0x578] sm:$0xff] }
 0x14a   :  { %2354 = vmatprep.subr.bf16.mxu0 %v7800_v34  ;;  %v7745_v34 = vcombine.low %v657_v19, %v661_v20  ;;  %v7865_v43 = vcombine.low %v777_v31, %v781_v32  ;;  %v861_v19 = vld [vmem:[#allocation8 + $0x7f8] sm:$0xff] }
 0x14b   :  { %2396 = vmatpush2.bf16.msra.mxu1 %v7935_v33  ;;  %v9710_v33 = vld [vmem:[#allocation5 + $0x8] ss:$16 sps:$4 sm:$0xff]  }
 0x14c   :  { %2397 = vmatprep.subr.bf16.mxu1 %v7928_v38  ;;  %v645_v38 = vld [vmem:[#allocation8 + $0x138] sm:$0xff] }
 0x14d   :  { %2355 = vmatpush2.bf16.msra.mxu0 %v7799_v12  ;;  %v7866_v12 = vcombine.high %v777_v31, %v781_v32  ;;  %v7729_v59 = vcombine.low %v641_v37, %v645_v38  ;;  %v713_v32 = vld [vmem:[#allocation8 + $0x358] sm:$0xff] }
 0x14e   :  { %2356 = vmatprep.subr.bf16.mxu0 %v7792_v40  ;;  %v9233_v40 = vld [vmem:[#allocation5 + $0x4] ss:$16 sps:$4 sm:$0xff]  }
 0x14f   :  { %2398 = vmatpush2.bf16.msra.mxu1 %v7927_v15  ;;  %v773_v15 = vld [vmem:[#allocation8 + $0x538] sm:$0xff] }
 0x150   :  { %2399 = vmatprep.subr.bf16.mxu1 %v7920_v44  ;;  %v7730_v44 = vcombine.high %v641_v37, %v645_v38  ;;  %v7857_v49 = vcombine.low %v769_v39, %v773_v15  ;;  %v845_v37 = vld [vmem:[#allocation8 + $0x778] sm:$0xff] }
 0x151   :  { %2357 = vmatpush2.bf16.msra.mxu0 %v7791_v46  ;;  %v637_v46 = vld [vmem:[#allocation8 + $0xf8] sm:$0xff] }
 0x152   :  { %2358 = vmatprep.subr.bf16.mxu0 %v7784_v56  ;;  %v7858_v56 = vcombine.high %v769_v39, %v773_v15  ;;  %v7721_v57 = vcombine.low %v633_v45, %v637_v46  ;;  %v705_v15 = vld [vmem:[#allocation8 + $0x318] sm:$0xff] }
 0x153   :  { %2400 = vmatpush2.bf16.msra.mxu1 %v7919_v47  ;;  %v761_v47 = vld [vmem:[#allocation8 + $0x4d8] sm:$0xff] }
 0x154   :  { %2401 = vmatprep.subr.bf16.mxu1 %v7912_v50  ;;  %v7722_v50 = vcombine.high %v633_v45, %v637_v46  ;;  %v7849_v58 = vcombine.low %v761_v47, %v765_v48 }
 0x155   :  { %2359 = vmatpush2.bf16.msra.mxu0 %v7783_v52  ;;  %v629_v52 = vld [vmem:[#allocation8 + $0xb8] sm:$0xff] }
 0x156   :  { %2360 = vmatprep.subr.bf16.mxu0 %v7776_v54  ;;  %v7850_v54 = vcombine.high %v761_v47, %v765_v48  ;;  %v7713_v2 = vcombine.low %v625_v51, %v629_v52  ;;  %v697_v47 = vld [vmem:[#allocation8 + $0x2d8] sm:$0xff] }
 0x157   :  { %2402 = vmatpush2.bf16.msra.mxu1 %v7911_v53  ;;  %v753_v53 = vld [vmem:[#allocation8 + $0x498] sm:$0xff] }
 0x158   :  { %2403 = vmatprep.subr.bf16.mxu1 %v7904_v60  ;;  %v7714_v60 = vcombine.high %v625_v51, %v629_v52  ;;  %v7841_v3 = vcombine.low %v753_v53, %v757_v55  ;;  %v825_v48 = vld [vmem:[#allocation8 + $0x6d8] sm:$0xff] }
 0x159   :  { %2361 = vmatpush2.bf16.msra.mxu0 %v7775_v62  ;;  %v621_v62 = vld [vmem:[#allocation8 + $0x78] sm:$0xff] }
 0x15a   :  { %2362 = vmatprep.subr.bf16.mxu0 %v7768_v0  ;;  %v7842_v0 = vcombine.high %v753_v53, %v757_v55  ;;  %v7705_v10 = vcombine.low %v617_v61, %v621_v62  ;;  %v689_v53 = vld [vmem:[#allocation8 + $0x298] sm:$0xff] }
 0x15b   :  { %2404 = vmatpush2.bf16.msra.mxu1 %v7903_v63  ;;  %v745_v63 = vld [vmem:[#allocation8 + $0x458] sm:$0xff] }
 0x15c   :  { %2405 = vmatprep.subr.bf16.mxu1 %v7896_v4  ;;  %v7706_v4 = vcombine.high %v617_v61, %v621_v62  ;;  %v7833_v11 = vcombine.low %v745_v63, %v749_v1  ;;  %v817_v55 = vld [vmem:[#allocation8 + $0x698] sm:$0xff] }
 0x15d   :  { %2363 = vmatpush2.bf16.msra.mxu0 %v7767_v6  ;;  %v613_v6 = vld [vmem:[#allocation8 + $0x38] sm:$0xff] }
 0x15e   :  { %2364 = vmatprep.subr.bf16.mxu0 %v7760_v8  ;;  %v7834_v8 = vcombine.high %v745_v63, %v749_v1  ;;  %v7697_v20 = vcombine.low %v609_v5, %v613_v6  ;;  %v681_v63 = vld [vmem:[#allocation8 + $0x258] sm:$0xff] }
 0x15f   :  { %2406 = vmatpush2.bf16.msra.mxu1 %v7895_v7  ;;  %v737_v7 = vld [vmem:[#allocation8 + $0x418] sm:$0xff] }
 0x160   :  { %2407 = vmatprep.subr.bf16.mxu1 %v7888_v13  ;;  %v7698_v13 = vcombine.high %v609_v5, %v613_v6  ;;  %v7825_v21 = vcombine.low %v737_v7, %v741_v9  ;;  %v809_v1 = vld [vmem:[#allocation8 + $0x658] sm:$0xff] }
 0x161   :  { %2365 = vmatpush2.bf16.msra.mxu0 %v7759_v16  ;;  %v733_v16 = vld [vmem:[#allocation8 + $0x3f8] sm:$0xff] }
 0x162   :  { %2420 = vmatprep.subr.bf16.mxu0 %v7754_v18  ;;  %v7826_v18 = vcombine.high %v737_v7, %v741_v9  ;;  %v7817_v28 = vcombine.low %v729_v14, %v733_v16  ;;  %v673_v7 = vld [vmem:[#allocation8 + $0x218] sm:$0xff] }
 0x163   :  { %2408 = vmatpush2.bf16.msra.mxu1 %v7887_v17  ;;  %v857_v17 = vld [vmem:[#allocation8 + $0x7d8] sm:$0xff] }
 0x164   :  { %2463 = vmatprep.subr.bf16.mxu1 %v7882_v22  ;;  %2367 = vmatmul.mubr.bf16.vlgmr.msra.gmra.mxu0 %v9707_v30  ;;  %v7818_v22 = vcombine.high %v729_v14, %v733_v16  ;;  %v7945_v29 = vcombine.low %v857_v17, %v861_v19  ;;  %v801_v9 = vld [vmem:[#allocation8 + $0x618] sm:$0xff] }
 0x165   :  { %2421 = vmatpush1.bf16.msra.mxu0 %v7753_v24  ;;  %2452 = vmatprep.mubr.bf16.mxu0 %v9233_v40  ;;  %v725_v24 = vld [vmem:[#allocation8 + $0x3b8] sm:$0xff] }
 0x166   :  { %2410 = vmatmul.mubr.bf16.vlgmr.msra.gmra.mxu1 %v9710_v33  ;;  %2422 = vmatprep.subr.bf16.mxu0 %v7746_v26  ;;  %v7946_v26 = vcombine.high %v857_v17, %v861_v19  ;;  %v7810_v31 = vcombine.high %v721_v23, %v725_v24  ;;  %v7809_v38 = vcombine.low %v721_v23, %v725_v24  ;;  %v709_v40 = vld [vmem:[#allocation8 + $0x338] sm:$0xff]  ;;  %v282_v19 = vld [vmem:[#allocation7 + $0x1e0] sm:$0xff] }
 0x167   :  { %2464 = vmatpush1.bf16.msra.mxu1 %v7881_v25  ;;  %2495 = vmatprep.mubr.bf16.mxu1 %v9234_v41  ;;  %v849_v25 = vld [vmem:[#allocation8 + $0x798] sm:$0xff]  ;;  %v7794_v46 = vcombine.high %v705_v15, %v709_v40 }
 0x168   :  { %2465 = vmatprep.subr.bf16.mxu1 %v7874_v27  ;;  %v853_v27 = vld [vmem:[#allocation8 + $0x7b8] sm:$0xff] }
 0x169   :  { %2423 = vmatpush1.bf16.msra.mxu0 %v7745_v34  ;;  %v717_v34 = vld [vmem:[#allocation8 + $0x378] sm:$0xff]  ;;  %v7937_v39 = vcombine.low %v849_v25, %v853_v27 }
 0x16a   :  { %2424 = vmatprep.subr.bf16.mxu0 %v7738_v36  ;;  %v7938_v36 = vcombine.high %v849_v25, %v853_v27  ;;  %v833_v41 = vld [vmem:[#allocation8 + $0x718] sm:$0xff]  ;;  %v274_v27 = vld [vmem:[#allocation7 + $0x1a0] sm:$0xff] }
 0x16b   :  { %2466 = vmatpush1.bf16.msra.mxu1 %v7873_v35  ;;  %v841_v35 = vld [vmem:[#allocation8 + $0x758] sm:$0xff] }
 0x16c   :  { %2467 = vmatprep.subr.bf16.mxu1 %v7866_v12  ;;  %v7802_v12 = vcombine.high %v713_v32, %v717_v34  ;;  %v7929_v45 = vcombine.low %v841_v35, %v845_v37 }
 0x16d   :  { %2425 = vmatpush1.bf16.msra.mxu0 %v7737_v42  ;;  %v7930_v42 = vcombine.high %v841_v35, %v845_v37  ;;  %v266_v37 = vld [vmem:[#allocation7 + $0x160] sm:$0xff] }
 0x16e   :  { %2426 = vmatprep.subr.bf16.mxu0 %v7730_v44  ;;  %v7801_v44 = vcombine.low %v713_v32, %v717_v34 }
 0x16f   :  { %2468 = vmatpush1.bf16.msra.mxu1 %v7865_v43  ;;  %v837_v43 = vld [vmem:[#allocation8 + $0x738] sm:$0xff] }
 0x170   :  { %2469 = vmatprep.subr.bf16.mxu1 %v7858_v56  ;;  %v701_v56 = vld [vmem:[#allocation8 + $0x2f8] sm:$0xff]  ;;  %v7921_v51 = vcombine.low %v833_v41, %v837_v43 }
 0x171   :  { %2427 = vmatpush1.bf16.msra.mxu0 %v7729_v59  ;;  %v7922_v59 = vcombine.high %v833_v41, %v837_v43  ;;  %v7786_v52 = vcombine.high %v697_v47, %v701_v56 }
 0x172   :  { %2428 = vmatprep.subr.bf16.mxu0 %v7722_v50  ;;  %v7793_v50 = vcombine.low %v705_v15, %v709_v40  ;;  %v394_v15 = vld [vmem:[#allocation7 + $0x560] sm:$0xff]  ;;  %v9716_v40 = vld [vmem:[#allocation2 + $0xc] ss:$24 sps:$4 sm:$0xff]  }
 0x173   :  { %2470 = vmatpush1.bf16.msra.mxu1 %v7857_v49  ;;  %v829_v49 = vld [vmem:[#allocation8 + $0x6f8] sm:$0xff] }
 0x174   :  { %2471 = vmatprep.subr.bf16.mxu1 %v7850_v54  ;;  %v693_v54 = vld [vmem:[#allocation8 + $0x2b8] sm:$0xff]  ;;  %v7913_v61 = vcombine.low %v825_v48, %v829_v49 }
 0x175   :  { %2429 = vmatpush1.bf16.msra.mxu0 %v7721_v57  ;;  %v7914_v57 = vcombine.high %v825_v48, %v829_v49  ;;  %v7778_v62 = vcombine.high %v689_v53, %v693_v54  ;;  %v258_v48 = vld [vmem:[#allocation7 + $0x120] sm:$0xff] }
 0x176   :  { %2430 = vmatprep.subr.bf16.mxu0 %v7714_v60  ;;  %v7785_v60 = vcombine.low %v697_v47, %v701_v56  ;;  %v254_v56 = vld [vmem:[#allocation7 + $0x100] sm:$0xff] }
 0x177   :  { %2472 = vmatpush1.bf16.msra.mxu1 %v7849_v58  ;;  %v821_v58 = vld [vmem:[#allocation8 + $0x6b8] sm:$0xff]  ;;  %v386_v49 = vld [vmem:[#allocation7 + $0x520] sm:$0xff] }
 0x178   :  { %2473 = vmatprep.subr.bf16.mxu1 %v7842_v0  ;;  %v685_v0 = vld [vmem:[#allocation8 + $0x278] sm:$0xff]  ;;  %v7905_v5 = vcombine.low %v817_v55, %v821_v58 }
 0x179   :  { %2431 = vmatpush1.bf16.msra.mxu0 %v7713_v2  ;;  %v7906_v2 = vcombine.high %v817_v55, %v821_v58  ;;  %v7770_v6 = vcombine.high %v681_v63, %v685_v0  ;;  %v250_v58 = vld [vmem:[#allocation7 + $0xe0] sm:$0xff] }
 0x17a   :  { %2432 = vmatprep.subr.bf16.mxu0 %v7706_v4  ;;  %v7777_v4 = vcombine.low %v689_v53, %v693_v54  ;;  %v7986_v54 = vcombine.high %v254_v56, %v258_v48 }
 0x17b   :  { %2474 = vmatpush1.bf16.msra.mxu1 %v7841_v3  ;;  %v813_v3 = vld [vmem:[#allocation8 + $0x678] sm:$0xff] }
 0x17c   :  { %2475 = vmatprep.subr.bf16.mxu1 %v7834_v8  ;;  %v677_v8 = vld [vmem:[#allocation8 + $0x238] sm:$0xff]  ;;  %v7897_v14 = vcombine.low %v809_v1, %v813_v3 }
 0x17d   :  { %2433 = vmatpush1.bf16.msra.mxu0 %v7705_v10  ;;  %v7898_v10 = vcombine.high %v809_v1, %v813_v3  ;;  %v7762_v16 = vcombine.high %v673_v7, %v677_v8  ;;  %v242_v3 = vld [vmem:[#allocation7 + $0xa0] sm:$0xff] }
 0x17e   :  { %2434 = vmatprep.subr.bf16.mxu0 %v7698_v13  ;;  %v7769_v13 = vcombine.low %v681_v63, %v685_v0 }
 0x17f   :  { %2476 = vmatpush1.bf16.msra.mxu1 %v7833_v11  ;;  %v805_v11 = vld [vmem:[#allocation8 + $0x638] sm:$0xff] }
 0x180   :  { %2477 = vmatprep.subr.bf16.mxu1 %v7826_v18  ;;  %v7890_v17 = vcombine.high %v801_v9, %v805_v11  ;;  %v278_v18 = vld [vmem:[#allocation7 + $0x1c0] sm:$0xff]  ;;  %v7889_v23 = vcombine.low %v801_v9, %v805_v11 }
 0x181   :  { %2435 = vmatpush1.bf16.msra.mxu0 %v7697_v20  ;;  %v406_v20 = vld [vmem:[#allocation7 + $0x5c0] sm:$0xff]  ;;  %v8010_v24 = vcombine.high %v278_v18, %v282_v19 }
 0x182   :  { %2436 = vmatprep.subr.bf16.mxu0 %v7818_v22  ;;  %v7761_v22 = vcombine.low %v673_v7, %v677_v8  ;;  %v234_v11 = vld [vmem:[#allocation7 + $0x60] sm:$0xff] }
 0x183   :  { %2478 = vmatpush1.bf16.msra.mxu1 %v7825_v21  ;;  %v410_v21 = vld [vmem:[#allocation7 + $0x5e0] sm:$0xff] }
 0x184   :  { %2479 = vmatprep.subr.bf16.mxu1 %v7946_v26  ;;  %v8138_v25 = vcombine.high %v406_v20, %v410_v21  ;;  %v270_v26 = vld [vmem:[#allocation7 + $0x180] sm:$0xff]  ;;  %v8137_v32 = vcombine.low %v406_v20, %v410_v21 }
 0x185   :  { %2437 = vmatpush2.bf16.msra.mxu0 %v7817_v28  ;;  %v398_v28 = vld [vmem:[#allocation7 + $0x580] sm:$0xff]  ;;  %v8002_v34 = vcombine.high %v270_v26, %v274_v27 }
 0x186   :  { %2438 = vmatprep.subr.bf16.mxu0 %v7810_v31  ;;  %v8009_v31 = vcombine.low %v278_v18, %v282_v19  ;;  %v222_v20 = vld [vmem:[#allocation7] sm:$0xff] }
 0x187   :  { %2480 = vmatpush2.bf16.msra.mxu1 %v7945_v29  ;;  %v402_v29 = vld [vmem:[#allocation7 + $0x5a0] sm:$0xff] }
 0x188   :  { %2481 = vmatprep.subr.bf16.mxu1 %v7938_v36  ;;  %v8130_v35 = vcombine.high %v398_v28, %v402_v29  ;;  %v262_v36 = vld [vmem:[#allocation7 + $0x140] sm:$0xff] }
 0x189   :  { %2439 = vmatpush2.bf16.msra.mxu0 %v7809_v38  ;;  %v9713_v38 = vld [vmem:[#allocation2 + $0x4] ss:$24 sps:$4 sm:$0xff]   ;;  %v226_v21 = vld [vmem:[#allocation7 + $0x20] sm:$0xff] }
 0x18a   :  { %2440 = vmatprep.subr.bf16.mxu0 %v7802_v12  ;;  %v390_v12 = vld [vmem:[#allocation7 + $0x540] sm:$0xff] }
 0x18b   :  { %2482 = vmatpush2.bf16.msra.mxu1 %v7937_v39  ;;  %v8121_v53 = vcombine.low %v390_v12, %v394_v15 }
 0x18c   :  { %2483 = vmatprep.subr.bf16.mxu1 %v7930_v42  ;;  %v8001_v42 = vcombine.low %v270_v26, %v274_v27  ;;  %v7954_v26 = vcombine.high %v222_v20, %v226_v21 }
 0x18d   :  { %2441 = vmatpush2.bf16.msra.mxu0 %v7801_v44 }
 0x18e   :  { %2442 = vmatprep.subr.bf16.mxu0 %v7794_v46  ;;  %v7994_v46 = vcombine.high %v262_v36, %v266_v37 }
 0x18f   :  { %2484 = vmatpush2.bf16.msra.mxu1 %v7929_v45  ;;  %v8129_v45 = vcombine.low %v398_v28, %v402_v29  ;;  %v342_v28 = vld [vmem:[#allocation7 + $0x3c0] sm:$0xff] }
 0x190   :  { %2485 = vmatprep.subr.bf16.mxu1 %v7922_v59  ;;  %v346_v29 = vld [vmem:[#allocation7 + $0x3e0] sm:$0xff] }
 0x191   :  { %2443 = vmatpush2.bf16.msra.mxu0 %v7793_v50 }
 0x192   :  { %2444 = vmatprep.subr.bf16.mxu0 %v7786_v52 }
 0x193   :  { %2486 = vmatpush2.bf16.msra.mxu1 %v7921_v51  ;;  %v7993_v51 = vcombine.low %v262_v36, %v266_v37  ;;  %v8074_v36 = vcombine.high %v342_v28, %v346_v29 }
 0x194   :  { %2487 = vmatprep.subr.bf16.mxu1 %v7914_v57  ;;  %v246_v57 = vld [vmem:[#allocation7 + $0xc0] sm:$0xff] }
 0x195   :  { %2445 = vmatpush2.bf16.msra.mxu0 %v7785_v60  ;;  %v374_v60 = vld [vmem:[#allocation7 + $0x4c0] sm:$0xff]  ;;  %v7978_v0 = vcombine.high %v246_v57, %v250_v58 }
 0x196   :  { %2446 = vmatprep.subr.bf16.mxu0 %v7778_v62  ;;  %v7985_v62 = vcombine.low %v254_v56, %v258_v48  ;;  %v326_v56 = vld [vmem:[#allocation7 + $0x340] sm:$0xff] }
 0x197   :  { %2488 = vmatpush2.bf16.msra.mxu1 %v7913_v61  ;;  %v378_v61 = vld [vmem:[#allocation7 + $0x4e0] sm:$0xff] }
 0x198   :  { %2489 = vmatprep.subr.bf16.mxu1 %v7906_v2  ;;  %v8106_v1 = vcombine.high %v374_v60, %v378_v61  ;;  %v238_v2 = vld [vmem:[#allocation7 + $0x80] sm:$0xff]  ;;  %v8105_v7 = vcombine.low %v374_v60, %v378_v61 }
 0x199   :  { %2447 = vmatpush2.bf16.msra.mxu0 %v7777_v4  ;;  %v366_v4 = vld [vmem:[#allocation7 + $0x480] sm:$0xff]  ;;  %v7970_v8 = vcombine.high %v238_v2, %v242_v3 }
 0x19a   :  { %2448 = vmatprep.subr.bf16.mxu0 %v7770_v6  ;;  %v7977_v6 = vcombine.low %v246_v57, %v250_v58  ;;  %v330_v48 = vld [vmem:[#allocation7 + $0x360] sm:$0xff] }
 0x19b   :  { %2490 = vmatpush2.bf16.msra.mxu1 %v7905_v5  ;;  %v370_v5 = vld [vmem:[#allocation7 + $0x4a0] sm:$0xff]  ;;  %v8057_v60 = vcombine.low %v326_v56, %v330_v48 }
 0x19c   :  { %2491 = vmatprep.subr.bf16.mxu1 %v7898_v10  ;;  %v8098_v9 = vcombine.high %v366_v4, %v370_v5  ;;  %v230_v10 = vld [vmem:[#allocation7 + $0x40] sm:$0xff] }
 0x19d   :  { %2449 = vmatpush2.bf16.msra.mxu0 %v7769_v13  ;;  %v358_v13 = vld [vmem:[#allocation7 + $0x440] sm:$0xff]  ;;  %v7962_v18 = vcombine.high %v230_v10, %v234_v11 }
 0x19e   :  { %2450 = vmatprep.subr.bf16.mxu0 %v7762_v16  ;;  %v7969_v16 = vcombine.low %v238_v2, %v242_v3  ;;  %v446_v57 = vld [vmem:[#allocation7 + $0x700] sm:$0xff] }
 0x19f   :  { %2492 = vmatpush2.bf16.msra.mxu1 %v7897_v14  ;;  %v362_v14 = vld [vmem:[#allocation7 + $0x460] sm:$0xff] }
 0x1a0   :  { %2493 = vmatprep.subr.bf16.mxu1 %v7890_v17  ;;  %v8097_v17 = vcombine.low %v366_v4, %v370_v5  ;;  %v8090_v19 = vcombine.high %v358_v13, %v362_v14  ;;  %v450_v58 = vld [vmem:[#allocation7 + $0x720] sm:$0xff] }
 0x1a1   :  { %2451 = vmatpush2.bf16.msra.mxu0 %v7761_v22  ;;  %v350_v22 = vld [vmem:[#allocation7 + $0x400] sm:$0xff]  ;;  %v8177_v5 = vcombine.low %v446_v57, %v450_v58 }
 0x1a2   :  { %4456 = vmatprep.subr.bf16.mxu0 %v8010_v24  ;;  %v7961_v24 = vcombine.low %v230_v10, %v234_v11  ;;  %v438_v2 = vld [vmem:[#allocation7 + $0x6c0] sm:$0xff] }
 0x1a3   :  { %2494 = vmatpush2.bf16.msra.mxu1 %v7889_v23  ;;  %v354_v23 = vld [vmem:[#allocation7 + $0x420] sm:$0xff] }
 0x1a4   :  { %4499 = vmatprep.subr.bf16.mxu1 %v8138_v25  ;;  %v2196_v39 = vpop.f32.mrf.mxu0  ;;  %2453 = vmatmul.mubr.bf16.vlgmr.msra.gmra.mxu0 %v9707_v30  ;;  %v8122_v30 = vcombine.high %v390_v12, %v394_v15  ;;  %v8089_v25 = vcombine.low %v358_v13, %v362_v14  ;;  %v8082_v27 = vcombine.high %v350_v22, %v354_v23  ;;  %v338_v12 = vld [vmem:[#allocation7 + $0x3a0] sm:$0xff] }
 0x1a5   :  { %4457 = vmatpush1.bf16.msra.mxu0 %v8009_v31  ;;  %4488 = vmatprep.mubr.bf16.mxu0 %v9713_v38  ;;  %v470_v31 = vld [vmem:[#allocation7 + $0x7c0] sm:$0xff] }
 0x1a6   :  { %v2239_v41 = vpop.f32.mrf.mxu1  ;;  %2496 = vmatmul.mubr.bf16.vlgmr.msra.gmra.mxu1 %v9710_v33  ;;  %v9721_v44 = vpop.f32.mrf.mxu0  ;;  %4458 = vmatprep.subr.bf16.mxu0 %v8002_v34  ;;  %v382_v33 = vld [vmem:[#allocation7 + $0x500] sm:$0xff]  ;;  %v7953_v34 = vcombine.low %v222_v20, %v226_v21 }
 0x1a7   :  { %v9719_v43 = vadd.f32 %v2239_v41, %v2196_v39  ;;  %4500 = vmatpush1.bf16.msra.mxu1 %v8137_v32  ;;  %4531 = vmatprep.mubr.bf16.mxu1 %v9716_v40  ;;  %v8114_v55 = vcombine.high %v382_v33, %v386_v49  ;;  %v8113_v63 = vcombine.low %v382_v33, %v386_v49  ;;  %v474_v32 = vld [vmem:[#allocation7 + $0x7e0] sm:$0xff] }
 0x1a8   :  { %v9723_v47 = vpop.f32.mrf.mxu1  ;;  %4501 = vmatprep.subr.bf16.mxu1 %v8130_v35  ;;  %v2200_v59 = vpop.f32.mrf.mxu0  ;;  %v8081_v35 = vcombine.low %v350_v22, %v354_v23  ;;  %v8202_v37 = vcombine.high %v470_v31, %v474_v32  ;;  %v334_v39 = vld [vmem:[#allocation7 + $0x380] sm:$0xff] }
 0x1a9   :  { %4459 = vmatpush1.bf16.msra.mxu0 %v8001_v42  ;;  %v462_v15 = vld [vmem:[#allocation7 + $0x780] sm:$0xff]  ;;  %v8073_v42 = vcombine.low %v342_v28, %v346_v29  ;;  %v8065_v49 = vcombine.low %v334_v39, %v338_v12 }
 0x1aa   :  { %v2243_v50 = vpop.f32.mrf.mxu1  ;;  %4460 = vmatprep.subr.bf16.mxu0 %v7994_v46  ;;  %v466_v41 = vld [vmem:[#allocation7 + $0x7a0] sm:$0xff]  ;;  %v8066_v46 = vcombine.high %v334_v39, %v338_v12  ;;  %v279_v39 = vld [vmem:[#allocation7 + $0x1c8] sm:$0xff] }
 0x1ab   :  { %v9727_v52 = vadd.f32 %v2243_v50, %v2200_v59  ;;  %4502 = vmatpush1.bf16.msra.mxu1 %v8129_v45  ;;  %v8201_v45 = vcombine.low %v470_v31, %v474_v32  ;;  %v454_v59 = vld [vmem:[#allocation7 + $0x740] sm:$0xff]  ;;  %v8193_v50 = vcombine.low %v462_v15, %v466_v41  ;;  %v283_v12 = vld [vmem:[#allocation7 + $0x1e8] sm:$0xff] }
 0x1ac   :  { %4503 = vmatprep.subr.bf16.mxu1 %v8122_v30  ;;  %v8194_v30 = vcombine.high %v462_v15, %v466_v41  ;;  %v458_v33 = vld [vmem:[#allocation7 + $0x760] sm:$0xff] }
 0x1ad   :  { %4461 = vmatpush1.bf16.msra.mxu0 %v7993_v51  ;;  %v8058_v51 = vcombine.high %v326_v56, %v330_v48  ;;  %v8185_v61 = vcombine.low %v454_v59, %v458_v33  ;;  %v442_v3 = vld [vmem:[#allocation7 + $0x6e0] sm:$0xff]  ;;  %v9729_v56 = vld [vmem:[#allocation2] ss:$24 sps:$4 sm:$0xff]  }
 0x1ae   :  { %4462 = vmatprep.subr.bf16.mxu0 %v7986_v54  ;;  %v318_v54 = vld [vmem:[#allocation7 + $0x300] sm:$0xff]  ;;  %v8169_v14 = vcombine.low %v438_v2, %v442_v3  ;;  %v271_v48 = vld [vmem:[#allocation7 + $0x188] sm:$0xff] }
 0x1af   :  { %4504 = vmatpush1.bf16.msra.mxu1 %v8121_v53  ;;  %v8186_v53 = vcombine.high %v454_v59, %v458_v33  ;;  %v430_v10 = vld [vmem:[#allocation7 + $0x680] sm:$0xff]  ;;  %v275_v59 = vld [vmem:[#allocation7 + $0x1a8] sm:$0xff]  ;;  %v9731_v33 = vld [vmem:[#allocation2 + $0x8] ss:$24 sps:$4 sm:$0xff]  }
 0x1b0   :  { %4505 = vmatprep.subr.bf16.mxu1 %v8114_v55  ;;  %v322_v55 = vld [vmem:[#allocation7 + $0x320] sm:$0xff] }
 0x1b1   :  { %4463 = vmatpush1.bf16.msra.mxu0 %v7985_v62  ;;  %v8050_v62 = vcombine.high %v318_v54, %v322_v55  ;;  %v8049_v4 = vcombine.low %v318_v54, %v322_v55  ;;  %v434_v11 = vld [vmem:[#allocation7 + $0x6a0] sm:$0xff]  ;;  %v9735_v54 = vpop.f32.mrf.mxu1  ;;  %v8004_v55 = vcombine.high %v271_v48, %v275_v59 }
 0x1b2   :  { %4464 = vmatprep.subr.bf16.mxu0 %v7978_v0  ;;  %v310_v0 = vld [vmem:[#allocation7 + $0x2c0] sm:$0xff]  ;;  %v8161_v23 = vcombine.low %v430_v10, %v434_v11 }
 0x1b3   :  { %4506 = vmatpush1.bf16.msra.mxu1 %v8113_v63  ;;  %v8178_v63 = vcombine.high %v446_v57, %v450_v58  ;;  %v422_v20 = vld [vmem:[#allocation7 + $0x640] sm:$0xff] }
 0x1b4   :  { %4507 = vmatprep.subr.bf16.mxu1 %v8106_v1  ;;  %v314_v1 = vld [vmem:[#allocation7 + $0x2e0] sm:$0xff] }
 0x1b5   :  { %4465 = vmatpush1.bf16.msra.mxu0 %v7977_v6  ;;  %v8042_v6 = vcombine.high %v310_v0, %v314_v1  ;;  %v8041_v13 = vcombine.low %v310_v0, %v314_v1  ;;  %v426_v21 = vld [vmem:[#allocation7 + $0x660] sm:$0xff] }
 0x1b6   :  { %4466 = vmatprep.subr.bf16.mxu0 %v7970_v8  ;;  %v302_v8 = vld [vmem:[#allocation7 + $0x280] sm:$0xff]  ;;  %v8153_v32 = vcombine.low %v422_v20, %v426_v21 }
 0x1b7   :  { %4508 = vmatpush1.bf16.msra.mxu1 %v8105_v7  ;;  %v8170_v7 = vcombine.high %v438_v2, %v442_v3  ;;  %v414_v28 = vld [vmem:[#allocation7 + $0x600] sm:$0xff] }
 0x1b8   :  { %4509 = vmatprep.subr.bf16.mxu1 %v8098_v9  ;;  %v306_v9 = vld [vmem:[#allocation7 + $0x2a0] sm:$0xff] }
 0x1b9   :  { %4467 = vmatpush1.bf16.msra.mxu0 %v7969_v16  ;;  %v8034_v16 = vcombine.high %v302_v8, %v306_v9  ;;  %v8033_v22 = vcombine.low %v302_v8, %v306_v9  ;;  %v418_v29 = vld [vmem:[#allocation7 + $0x620] sm:$0xff] }
 0x1ba   :  { %4468 = vmatprep.subr.bf16.mxu0 %v7962_v18  ;;  %v294_v18 = vld [vmem:[#allocation7 + $0x240] sm:$0xff]  ;;  %v8145_v41 = vcombine.low %v414_v28, %v418_v29 }
 0x1bb   :  { %4510 = vmatpush1.bf16.msra.mxu1 %v8097_v17  ;;  %v8162_v17 = vcombine.high %v430_v10, %v434_v11  ;;  %v518_v57 = vld [vmem:[#allocation7 + $0x940] sm:$0xff]  ;;  %v255_v11 = vld [vmem:[#allocation7 + $0x108] sm:$0xff] }
 0x1bc   :  { %4511 = vmatprep.subr.bf16.mxu1 %v8090_v19  ;;  %v298_v19 = vld [vmem:[#allocation7 + $0x260] sm:$0xff] }
 0x1bd   :  { %4469 = vmatpush1.bf16.msra.mxu0 %v7961_v24  ;;  %v8026_v24 = vcombine.high %v294_v18, %v298_v19  ;;  %v8025_v31 = vcombine.low %v294_v18, %v298_v19  ;;  %v522_v58 = vld [vmem:[#allocation7 + $0x960] sm:$0xff] }
 0x1be   :  { %4470 = vmatprep.subr.bf16.mxu0 %v7954_v26  ;;  %v286_v26 = vld [vmem:[#allocation7 + $0x200] sm:$0xff] }
 0x1bf   :  { %4512 = vmatpush1.bf16.msra.mxu1 %v8089_v25  ;;  %v8154_v25 = vcombine.high %v422_v20, %v426_v21  ;;  %v510_v8 = vld [vmem:[#allocation7 + $0x900] sm:$0xff] }
 0x1c0   :  { %4513 = vmatprep.subr.bf16.mxu1 %v8082_v27  ;;  %v290_v27 = vld [vmem:[#allocation7 + $0x220] sm:$0xff] }
 0x1c1   :  { %4471 = vmatpush1.bf16.msra.mxu0 %v7953_v34  ;;  %v8018_v34 = vcombine.high %v286_v26, %v290_v27  ;;  %v8017_v15 = vcombine.low %v286_v26, %v290_v27  ;;  %v514_v9 = vld [vmem:[#allocation7 + $0x920] sm:$0xff] }
 0x1c2   :  { %4472 = vmatprep.subr.bf16.mxu0 %v8074_v36  ;;  %v534_v36 = vld [vmem:[#allocation7 + $0x9c0] sm:$0xff]  ;;  %v8242_v19 = vcombine.high %v510_v8, %v514_v9 }
 0x1c3   :  { %4514 = vmatpush1.bf16.msra.mxu1 %v8081_v35  ;;  %v8146_v35 = vcombine.high %v414_v28, %v418_v29  ;;  %v502_v21 = vld [vmem:[#allocation7 + $0x8c0] sm:$0xff] }
 0x1c4   :  { %4515 = vmatprep.subr.bf16.mxu1 %v8202_v37  ;;  %v538_v37 = vld [vmem:[#allocation7 + $0x9e0] sm:$0xff] }
 0x1c5   :  { %4473 = vmatpush2.bf16.msra.mxu0 %v8073_v42  ;;  %v8266_v42 = vcombine.high %v534_v36, %v538_v37  ;;  %v494_v28 = vld [vmem:[#allocation7 + $0x880] sm:$0xff] }
 0x1c6   :  { %4474 = vmatprep.subr.bf16.mxu0 %v8066_v46  ;;  %v526_v46 = vld [vmem:[#allocation7 + $0x980] sm:$0xff] }
 0x1c7   :  { %4516 = vmatpush2.bf16.msra.mxu1 %v8201_v45  ;;  %v8012_v45 = vcombine.high %v279_v39, %v283_v12  ;;  %v498_v29 = vld [vmem:[#allocation7 + $0x8a0] sm:$0xff] }
 0x1c8   :  { %4517 = vmatprep.subr.bf16.mxu1 %v8194_v30  ;;  %v530_v30 = vld [vmem:[#allocation7 + $0x9a0] sm:$0xff] }
 0x1c9   :  { %4475 = vmatpush2.bf16.msra.mxu0 %v8065_v49  ;;  %v8265_v49 = vcombine.low %v534_v36, %v538_v37  ;;  %v8257_v1 = vcombine.low %v526_v46, %v530_v30  ;;  %v8226_v36 = vcombine.high %v494_v28, %v498_v29 }
 0x1ca   :  { %4476 = vmatprep.subr.bf16.mxu0 %v8058_v51  ;;  %v8011_v51 = vcombine.low %v279_v39, %v283_v12  ;;  %v486_v39 = vld [vmem:[#allocation7 + $0x840] sm:$0xff] }
 0x1cb   :  { %4518 = vmatpush2.bf16.msra.mxu1 %v8193_v50  ;;  %v9733_v50 = vpop.f32.mrf.mxu0  ;;  %v490_v12 = vld [vmem:[#allocation7 + $0x860] sm:$0xff] }
 0x1cc   :  { %4519 = vmatprep.subr.bf16.mxu1 %v8186_v53  ;;  %v8258_v53 = vcombine.high %v526_v46, %v530_v30  ;;  %v8218_v46 = vcombine.high %v486_v39, %v490_v12 }
 0x1cd   :  { %4477 = vmatpush2.bf16.msra.mxu0 %v8057_v60  ;;  %v9737_v60 = vld [vmem:[#allocation2 + $0x14] ss:$24 sps:$4 sm:$0xff]  }
 0x1ce   :  { %4478 = vmatprep.subr.bf16.mxu0 %v8050_v62  ;;  %v263_v62 = vld [vmem:[#allocation7 + $0x148] sm:$0xff] }
 0x1cf   :  { %4520 = vmatpush2.bf16.msra.mxu1 %v8185_v61 }
 0x1d0   :  { %4521 = vmatprep.subr.bf16.mxu1 %v8178_v63  ;;  %v267_v63 = vld [vmem:[#allocation7 + $0x168] sm:$0xff] }
 0x1d1   :  { %4479 = vmatpush2.bf16.msra.mxu0 %v8049_v4  ;;  %v8003_v4 = vcombine.low %v271_v48, %v275_v59  ;;  %v7995_v18 = vcombine.low %v263_v62, %v267_v63  ;;  %v478_v48 = vld [vmem:[#allocation7 + $0x800] sm:$0xff] }
 0x1d2   :  { %4480 = vmatprep.subr.bf16.mxu0 %v8042_v6  ;;  %v482_v59 = vld [vmem:[#allocation7 + $0x820] sm:$0xff] }
 0x1d3   :  { %4522 = vmatpush2.bf16.msra.mxu1 %v8177_v5  ;;  %v8250_v5 = vcombine.high %v518_v57, %v522_v58 }
 0x1d4   :  { %4523 = vmatprep.subr.bf16.mxu1 %v8170_v7  ;;  %v7996_v7 = vcombine.high %v263_v62, %v267_v63  ;;  %v602_v62 = vld [vmem:[#allocation7 + $0xbe0] sm:$0xff]  ;;  %v343_v63 = vld [vmem:[#allocation7 + $0x3c8] sm:$0xff] }
 0x1d5   :  { %4481 = vmatpush2.bf16.msra.mxu0 %v8041_v13  ;;  %v259_v13 = vld [vmem:[#allocation7 + $0x128] sm:$0xff] }
 0x1d6   :  { %4482 = vmatprep.subr.bf16.mxu0 %v8034_v16  ;;  %v8249_v16 = vcombine.low %v518_v57, %v522_v58  ;;  %v7988_v20 = vcombine.high %v255_v11, %v259_v13  ;;  %v8210_v57 = vcombine.high %v478_v48, %v482_v59 }
 0x1d7   :  { %4524 = vmatpush2.bf16.msra.mxu1 %v8169_v14 }
 0x1d8   :  { %4525 = vmatprep.subr.bf16.mxu1 %v8162_v17 }
 0x1d9   :  { %4483 = vmatpush2.bf16.msra.mxu0 %v8033_v22  ;;  %v506_v22 = vld [vmem:[#allocation7 + $0x8e0] sm:$0xff] }
 0x1da   :  { %4484 = vmatprep.subr.bf16.mxu0 %v8026_v24  ;;  %v251_v24 = vld [vmem:[#allocation7 + $0xe8] sm:$0xff]  ;;  %v8234_v26 = vcombine.high %v502_v21, %v506_v22 }
 0x1db   :  { %4526 = vmatpush2.bf16.msra.mxu1 %v8161_v23  ;;  %v247_v23 = vld [vmem:[#allocation7 + $0xc8] sm:$0xff] }
 0x1dc   :  { %4527 = vmatprep.subr.bf16.mxu1 %v8154_v25  ;;  %v8241_v25 = vcombine.low %v510_v8, %v514_v9  ;;  %v7980_v27 = vcombine.high %v247_v23, %v251_v24  ;;  %v590_v8 = vld [vmem:[#allocation7 + $0xb80] sm:$0xff] }
 0x1dd   :  { %4485 = vmatpush2.bf16.msra.mxu0 %v8025_v31  ;;  %v239_v31 = vld [vmem:[#allocation7 + $0x88] sm:$0xff]  ;;  %v594_v9 = vld [vmem:[#allocation7 + $0xba0] sm:$0xff] }
 0x1de   :  { %4486 = vmatprep.subr.bf16.mxu0 %v8018_v34  ;;  %v8233_v34 = vcombine.low %v502_v21, %v506_v22  ;;  %v327_v21 = vld [vmem:[#allocation7 + $0x348] sm:$0xff] }
 0x1df   :  { %4528 = vmatpush2.bf16.msra.mxu1 %v8153_v32  ;;  %v243_v32 = vld [vmem:[#allocation7 + $0xa8] sm:$0xff] }
 0x1e0   :  { %4529 = vmatprep.subr.bf16.mxu1 %v8146_v35  ;;  %v7979_v35 = vcombine.low %v247_v23, %v251_v24  ;;  %v7972_v37 = vcombine.high %v239_v31, %v243_v32  ;;  %v331_v22 = vld [vmem:[#allocation7 + $0x368] sm:$0xff]  ;;  %v8321_v23 = vcombine.low %v590_v8, %v594_v9 }
 0x1e1   :  { %4487 = vmatpush2.bf16.msra.mxu0 %v8017_v15  ;;  %v231_v15 = vld [vmem:[#allocation7 + $0x48] sm:$0xff] }
 0x1e2   :  { %4542 = vmatprep.subr.bf16.mxu0 %v8266_v42  ;;  %v8225_v42 = vcombine.low %v494_v28, %v498_v29  ;;  %v319_v28 = vld [vmem:[#allocation7 + $0x308] sm:$0xff] }
 0x1e3   :  { %4530 = vmatpush2.bf16.msra.mxu1 %v8145_v41  ;;  %v235_v41 = vld [vmem:[#allocation7 + $0x68] sm:$0xff] }
 0x1e4   :  { %4585 = vmatprep.subr.bf16.mxu1 %v8012_v45  ;;  %v2282_v61 = vpop.f32.mrf.mxu0  ;;  %4489 = vmatmul.mubr.bf16.vlgmr.msra.gmra.mxu0 %v9729_v56  ;;  %v7971_v45 = vcombine.low %v239_v31, %v243_v32  ;;  %v7964_v30 = vcombine.high %v231_v15, %v235_v41  ;;  %v323_v29 = vld [vmem:[#allocation7 + $0x328] sm:$0xff]  ;;  %v8059_v32 = vcombine.low %v327_v21, %v331_v22 }
 0x1e5   :  { %4543 = vmatpush1.bf16.msra.mxu0 %v8265_v49  ;;  %4574 = vmatprep.mubr.bf16.mxu0 %v9737_v60  ;;  %v223_v49 = vld [vmem:[#allocation7 + $0x8] sm:$0xff] }
 0x1e6   :  { %v2325_v0 = vpop.f32.mrf.mxu1  ;;  %4532 = vmatmul.mubr.bf16.vlgmr.msra.gmra.mxu1 %v9731_v33  ;;  %v9743_v3 = vpop.f32.mrf.mxu0  ;;  %4544 = vmatprep.subr.bf16.mxu0 %v8258_v53  ;;  %v8217_v53 = vcombine.low %v486_v39, %v490_v12  ;;  %v311_v39 = vld [vmem:[#allocation7 + $0x2c8] sm:$0xff] }
 0x1e7   :  { %v9741_v2 = vadd.f32 %v2325_v0, %v2282_v61  ;;  %4586 = vmatpush1.bf16.msra.mxu1 %v8011_v51  ;;  %4617 = vmatprep.mubr.bf16.mxu1 %v9713_v38  ;;  %v7987_v38 = vcombine.low %v255_v11, %v259_v13  ;;  %v227_v51 = vld [vmem:[#allocation7 + $0x28] sm:$0xff]  ;;  %v598_v61 = vld [vmem:[#allocation7 + $0xbc0] sm:$0xff] }
 0x1e8   :  { %v9745_v6 = vpop.f32.mrf.mxu1  ;;  %4587 = vmatprep.subr.bf16.mxu1 %v8004_v55  ;;  %v2286_v10 = vpop.f32.mrf.mxu0  ;;  %v7963_v55 = vcombine.low %v231_v15, %v235_v41  ;;  %v7956_v58 = vcombine.high %v223_v49, %v227_v51  ;;  %v347_v0 = vld [vmem:[#allocation7 + $0x3e8] sm:$0xff]  ;;  %v8329_v13 = vcombine.low %v598_v61, %v602_v62  ;;  %v8051_v41 = vcombine.low %v319_v28, %v323_v29 }
 0x1e9   :  { %4545 = vmatpush1.bf16.msra.mxu0 %v8257_v1  ;;  %v8209_v1 = vcombine.low %v478_v48, %v482_v59  ;;  %v339_v11 = vld [vmem:[#allocation7 + $0x3a8] sm:$0xff] }
 0x1ea   :  { %v2329_v14 = vpop.f32.mrf.mxu1  ;;  %4546 = vmatprep.subr.bf16.mxu0 %v8250_v5  ;;  %v8330_v5 = vcombine.high %v598_v61, %v602_v62  ;;  %v315_v12 = vld [vmem:[#allocation7 + $0x2e8] sm:$0xff] }
 0x1eb   :  { %v9749_v17 = vadd.f32 %v2329_v14, %v2286_v10  ;;  %4588 = vmatpush1.bf16.msra.mxu1 %v8003_v4  ;;  %v7955_v4 = vcombine.low %v223_v49, %v227_v51  ;;  %v335_v10 = vld [vmem:[#allocation7 + $0x388] sm:$0xff]  ;;  %v8075_v14 = vcombine.low %v343_v63, %v347_v0  ;;  %v8043_v51 = vcombine.low %v311_v39, %v315_v12 }
 0x1ec   :  { %4589 = vmatprep.subr.bf16.mxu1 %v7996_v7  ;;  %v8076_v7 = vcombine.high %v343_v63, %v347_v0  ;;  %v8067_v24 = vcombine.low %v335_v10, %v339_v11  ;;  %v303_v48 = vld [vmem:[#allocation7 + $0x288] sm:$0xff] }
 0x1ed   :  { %4547 = vmatpush1.bf16.msra.mxu0 %v8249_v16  ;;  %v8322_v16 = vcombine.high %v590_v8, %v594_v9  ;;  %v307_v59 = vld [vmem:[#allocation7 + $0x2a8] sm:$0xff] }
 0x1ee   :  { %4548 = vmatprep.subr.bf16.mxu0 %v8242_v19  ;;  %v582_v19 = vld [vmem:[#allocation7 + $0xb40] sm:$0xff]  ;;  %v295_v61 = vld [vmem:[#allocation7 + $0x248] sm:$0xff]  ;;  %v8035_v0 = vcombine.low %v303_v48, %v307_v59 }
 0x1ef   :  { %4590 = vmatpush1.bf16.msra.mxu1 %v7995_v18  ;;  %v8068_v18 = vcombine.high %v335_v10, %v339_v11  ;;  %v299_v62 = vld [vmem:[#allocation7 + $0x268] sm:$0xff] }
 0x1f0   :  { %4591 = vmatprep.subr.bf16.mxu1 %v7988_v20  ;;  %v586_v20 = vld [vmem:[#allocation7 + $0xb60] sm:$0xff]  ;;  %v287_v8 = vld [vmem:[#allocation7 + $0x208] sm:$0xff]  ;;  %v8027_v11 = vcombine.low %v295_v61, %v299_v62 }
 0x1f1   :  { %4549 = vmatpush1.bf16.msra.mxu0 %v8241_v25  ;;  %v8314_v25 = vcombine.high %v582_v19, %v586_v20  ;;  %v8313_v31 = vcombine.low %v582_v19, %v586_v20  ;;  %v291_v9 = vld [vmem:[#allocation7 + $0x228] sm:$0xff] }
 0x1f2   :  { %4550 = vmatprep.subr.bf16.mxu0 %v8234_v26  ;;  %v574_v26 = vld [vmem:[#allocation7 + $0xb00] sm:$0xff]  ;;  %v535_v19 = vld [vmem:[#allocation7 + $0x9c8] sm:$0xff] }
 0x1f3   :  { %4592 = vmatpush1.bf16.msra.mxu1 %v7987_v38  ;;  %v8060_v38 = vcombine.high %v327_v21, %v331_v22  ;;  %v539_v20 = vld [vmem:[#allocation7 + $0x9e8] sm:$0xff]  ;;  %v8019_v22 = vcombine.low %v287_v8, %v291_v9 }
 0x1f4   :  { %4593 = vmatprep.subr.bf16.mxu1 %v7980_v27  ;;  %v578_v27 = vld [vmem:[#allocation7 + $0xb20] sm:$0xff] }
 0x1f5   :  { %4551 = vmatpush1.bf16.msra.mxu0 %v8233_v34  ;;  %v8306_v34 = vcombine.high %v574_v26, %v578_v27  ;;  %v8305_v15 = vcombine.low %v574_v26, %v578_v27  ;;  %v9751_v26 = vld [vmem:[#allocation2 + $0x10] ss:$24 sps:$4 sm:$0xff]   ;;  %v527_v27 = vld [vmem:[#allocation7 + $0x988] sm:$0xff] }
 0x1f6   :  { %4552 = vmatprep.subr.bf16.mxu0 %v8226_v36  ;;  %v566_v36 = vld [vmem:[#allocation7 + $0xac0] sm:$0xff] }
 0x1f7   :  { %4594 = vmatpush1.bf16.msra.mxu1 %v7979_v35  ;;  %v8052_v35 = vcombine.high %v319_v28, %v323_v29  ;;  %v531_v28 = vld [vmem:[#allocation7 + $0x9a8] sm:$0xff] }
 0x1f8   :  { %4595 = vmatprep.subr.bf16.mxu1 %v7972_v37  ;;  %v570_v37 = vld [vmem:[#allocation7 + $0xae0] sm:$0xff] }
 0x1f9   :  { %4553 = vmatpush1.bf16.msra.mxu0 %v8225_v42  ;;  %v8298_v42 = vcombine.high %v566_v36, %v570_v37  ;;  %v8297_v49 = vcombine.low %v566_v36, %v570_v37  ;;  %v8260_v36 = vcombine.high %v527_v27, %v531_v28  ;;  %v391_v37 = vld [vmem:[#allocation7 + $0x548] sm:$0xff] }
 0x1fa   :  { %4554 = vmatprep.subr.bf16.mxu0 %v8218_v46  ;;  %v558_v46 = vld [vmem:[#allocation7 + $0xa80] sm:$0xff] }
 0x1fb   :  { %4596 = vmatpush1.bf16.msra.mxu1 %v7971_v45  ;;  %v8044_v45 = vcombine.high %v311_v39, %v315_v12  ;;  %v395_v39 = vld [vmem:[#allocation7 + $0x568] sm:$0xff] }
 0x1fc   :  { %4597 = vmatprep.subr.bf16.mxu1 %v7964_v30  ;;  %v562_v30 = vld [vmem:[#allocation7 + $0xaa0] sm:$0xff] }
 0x1fd   :  { %4555 = vmatpush1.bf16.msra.mxu0 %v8217_v53  ;;  %v8290_v53 = vcombine.high %v558_v46, %v562_v30  ;;  %v8289_v63 = vcombine.low %v558_v46, %v562_v30 }
 0x1fe   :  { %4556 = vmatprep.subr.bf16.mxu0 %v8210_v57  ;;  %v550_v57 = vld [vmem:[#allocation7 + $0xa40] sm:$0xff] }
 0x1ff   :  { %4598 = vmatpush1.bf16.msra.mxu1 %v7963_v55  ;;  %v8036_v55 = vcombine.high %v303_v48, %v307_v59  ;;  %v8259_v48 = vcombine.low %v527_v27, %v531_v28  ;;  %v8124_v59 = vcombine.high %v391_v37, %v395_v39  ;;  %v359_v27 = vld [vmem:[#allocation7 + $0x448] sm:$0xff] }
 0x200   :  { %4599 = vmatprep.subr.bf16.mxu1 %v7956_v58  ;;  %v554_v58 = vld [vmem:[#allocation7 + $0xa60] sm:$0xff]  ;;  %v363_v28 = vld [vmem:[#allocation7 + $0x468] sm:$0xff] }
 0x201   :  { %4557 = vmatpush1.bf16.msra.mxu0 %v8209_v1  ;;  %v8282_v1 = vcombine.high %v550_v57, %v554_v58  ;;  %v8281_v10 = vcombine.low %v550_v57, %v554_v58 }
 0x202   :  { %4558 = vmatprep.subr.bf16.mxu0 %v8330_v5  ;;  %v542_v5 = vld [vmem:[#allocation7 + $0xa00] sm:$0xff] }
 0x203   :  { %4600 = vmatpush1.bf16.msra.mxu1 %v7955_v4  ;;  %v8028_v4 = vcombine.high %v295_v61, %v299_v62  ;;  %v515_v61 = vld [vmem:[#allocation7 + $0x928] sm:$0xff] }
 0x204   :  { %4601 = vmatprep.subr.bf16.mxu1 %v8076_v7  ;;  %v546_v7 = vld [vmem:[#allocation7 + $0xa20] sm:$0xff] }
 0x205   :  { %4559 = vmatpush2.bf16.msra.mxu0 %v8329_v13  ;;  %v8274_v13 = vcombine.high %v542_v5, %v546_v7  ;;  %v8273_v21 = vcombine.low %v542_v5, %v546_v7 }
 0x206   :  { %4560 = vmatprep.subr.bf16.mxu0 %v8322_v16  ;;  %v407_v16 = vld [vmem:[#allocation7 + $0x5c8] sm:$0xff] }
 0x207   :  { %4602 = vmatpush2.bf16.msra.mxu1 %v8075_v14  ;;  %v8020_v14 = vcombine.high %v287_v8, %v291_v9  ;;  %v375_v8 = vld [vmem:[#allocation7 + $0x4c8] sm:$0xff] }
 0x208   :  { %4603 = vmatprep.subr.bf16.mxu1 %v8068_v18  ;;  %v411_v18 = vld [vmem:[#allocation7 + $0x5e8] sm:$0xff] }
 0x209   :  { %4561 = vmatpush2.bf16.msra.mxu0 %v8321_v23  ;;  %v8140_v23 = vcombine.high %v407_v16, %v411_v18  ;;  %v8139_v29 = vcombine.low %v407_v16, %v411_v18  ;;  %v379_v9 = vld [vmem:[#allocation7 + $0x4e8] sm:$0xff] }
 0x20a   :  { %4562 = vmatprep.subr.bf16.mxu0 %v8314_v25  ;;  %v399_v25 = vld [vmem:[#allocation7 + $0x588] sm:$0xff]  ;;  %v8108_v16 = vcombine.high %v375_v8, %v379_v9 }
 0x20b   :  { %4604 = vmatpush2.bf16.msra.mxu1 %v8067_v24  ;;  %v8268_v24 = vcombine.high %v535_v19, %v539_v20 }
 0x20c   :  { %4605 = vmatprep.subr.bf16.mxu1 %v8060_v38  ;;  %v403_v38 = vld [vmem:[#allocation7 + $0x5a8] sm:$0xff] }
 0x20d   :  { %4563 = vmatpush2.bf16.msra.mxu0 %v8313_v31  ;;  %v9753_v31 = vpop.f32.mrf.mxu0 }
 0x20e   :  { %4564 = vmatprep.subr.bf16.mxu0 %v8306_v34  ;;  %v8132_v34 = vcombine.high %v399_v25, %v403_v38 }
 0x20f   :  { %4606 = vmatpush2.bf16.msra.mxu1 %v8059_v32  ;;  %v8267_v32 = vcombine.low %v535_v19, %v539_v20  ;;  %v367_v19 = vld [vmem:[#allocation7 + $0x488] sm:$0xff] }
 0x210   :  { %4607 = vmatprep.subr.bf16.mxu1 %v8052_v35  ;;  %v9755_v35 = vpop.f32.mrf.mxu1  ;;  %v371_v20 = vld [vmem:[#allocation7 + $0x4a8] sm:$0xff] }
 0x211   :  { %4565 = vmatpush2.bf16.msra.mxu0 %v8305_v15  ;;  %v519_v15 = vld [vmem:[#allocation7 + $0x948] sm:$0xff] }
 0x212   :  { %4566 = vmatprep.subr.bf16.mxu0 %v8298_v42 }
 0x213   :  { %4608 = vmatpush2.bf16.msra.mxu1 %v8051_v41  ;;  %v523_v41 = vld [vmem:[#allocation7 + $0x968] sm:$0xff] }
 0x214   :  { %4609 = vmatprep.subr.bf16.mxu1 %v8044_v45  ;;  %v8131_v45 = vcombine.low %v399_v25, %v403_v38  ;;  %v8100_v25 = vcombine.high %v367_v19, %v371_v20 }
 0x215   :  { %4567 = vmatpush2.bf16.msra.mxu0 %v8297_v49 }
 0x216   :  { %4568 = vmatprep.subr.bf16.mxu0 %v8290_v53  ;;  %v383_v53 = vld [vmem:[#allocation7 + $0x508] sm:$0xff] }
 0x217   :  { %4610 = vmatpush2.bf16.msra.mxu1 %v8043_v51  ;;  %v8252_v51 = vcombine.high %v519_v15, %v523_v41 }
 0x218   :  { %4611 = vmatprep.subr.bf16.mxu1 %v8036_v55  ;;  %v387_v55 = vld [vmem:[#allocation7 + $0x528] sm:$0xff] }
 0x219   :  { %4569 = vmatpush2.bf16.msra.mxu0 %v8289_v63  ;;  %v8123_v63 = vcombine.low %v391_v37, %v395_v39  ;;  %v8116_v5 = vcombine.high %v383_v53, %v387_v55  ;;  %v8092_v37 = vcombine.high %v359_v27, %v363_v28 }
 0x21a   :  { %4570 = vmatprep.subr.bf16.mxu0 %v8282_v1 }
 0x21b   :  { %4612 = vmatpush2.bf16.msra.mxu1 %v8035_v0 }
 0x21c   :  { %4613 = vmatprep.subr.bf16.mxu1 %v8028_v4  ;;  %v8251_v4 = vcombine.low %v519_v15, %v523_v41  ;;  %v355_v15 = vld [vmem:[#allocation7 + $0x428] sm:$0xff] }
 0x21d   :  { %4571 = vmatpush2.bf16.msra.mxu0 %v8281_v10  ;;  %v479_v41 = vld [vmem:[#allocation7 + $0x808] sm:$0xff] }
 0x21e   :  { %4572 = vmatprep.subr.bf16.mxu0 %v8274_v13  ;;  %v507_v13 = vld [vmem:[#allocation7 + $0x8e8] sm:$0xff] }
 0x21f   :  { %4614 = vmatpush2.bf16.msra.mxu1 %v8027_v11  ;;  %v503_v11 = vld [vmem:[#allocation7 + $0x8c8] sm:$0xff] }
 0x220   :  { %4615 = vmatprep.subr.bf16.mxu1 %v8020_v14  ;;  %v8236_v18 = vcombine.high %v503_v11, %v507_v13 }
 0x221   :  { %4573 = vmatpush2.bf16.msra.mxu0 %v8273_v21  ;;  %v495_v21 = vld [vmem:[#allocation7 + $0x888] sm:$0xff] }
 0x222   :  { %4628 = vmatprep.subr.bf16.mxu0 %v8140_v23  ;;  %v8107_v23 = vcombine.low %v375_v8, %v379_v9 }
 0x223   :  { %4616 = vmatpush2.bf16.msra.mxu1 %v8019_v22  ;;  %v499_v22 = vld [vmem:[#allocation7 + $0x8a8] sm:$0xff] }
 0x224   :  { %4671 = vmatprep.subr.bf16.mxu1 %v8268_v24  ;;  %v2368_v12 = vpop.f32.mrf.mxu0  ;;  %4575 = vmatmul.mubr.bf16.vlgmr.msra.gmra.mxu0 %v9751_v26  ;;  %v8235_v24 = vcombine.low %v503_v11, %v507_v13  ;;  %v8228_v38 = vcombine.high %v495_v21, %v499_v22  ;;  %v455_v11 = vld [vmem:[#allocation7 + $0x748] sm:$0xff] }
 0x225   :  { %4629 = vmatpush1.bf16.msra.mxu0 %v8139_v29  ;;  %4660 = vmatprep.mubr.bf16.mxu0 %v9716_v40  ;;  %v487_v29 = vld [vmem:[#allocation7 + $0x848] sm:$0xff] }
 0x226   :  { %v2411_v42 = vpop.f32.mrf.mxu1  ;;  %4618 = vmatmul.mubr.bf16.vlgmr.msra.gmra.mxu1 %v9729_v56  ;;  %v2370_v30 = vpop.f32.mrf.mxu0  ;;  %4630 = vmatprep.subr.bf16.mxu0 %v8132_v34  ;;  %v511_v56 = vld [vmem:[#allocation7 + $0x908] sm:$0xff]  ;;  %v8099_v34 = vcombine.low %v367_v19, %v371_v20 }
 0x227   :  { %v9759_v46 = vadd.f32 %v2411_v42, %v2368_v12  ;;  %4672 = vmatpush1.bf16.msra.mxu1 %v8267_v32  ;;  %4703 = vmatprep.mubr.bf16.mxu1 %v9737_v60  ;;  %v8244_v40 = vcombine.high %v511_v56, %v515_v61  ;;  %v8115_v60 = vcombine.low %v383_v53, %v387_v55  ;;  %v491_v32 = vld [vmem:[#allocation7 + $0x868] sm:$0xff] }
 0x228   :  { %v2413_v49 = vpop.f32.mrf.mxu1  ;;  %4673 = vmatprep.subr.bf16.mxu1 %v8260_v36  ;;  %v2372_v58 = vpop.f32.mrf.mxu0  ;;  %v8243_v14 = vcombine.low %v511_v56, %v515_v61  ;;  %v8227_v36 = vcombine.low %v495_v21, %v499_v22  ;;  %v8220_v39 = vcombine.high %v487_v29, %v491_v32  ;;  %v351_v12 = vld [vmem:[#allocation7 + $0x408] sm:$0xff] }
 0x229   :  { %v9762_v57 = vadd.f32 %v2413_v49, %v2370_v30  ;;  %4631 = vmatpush1.bf16.msra.mxu0 %v8131_v45  ;;  %v483_v42 = vld [vmem:[#allocation7 + $0x828] sm:$0xff]  ;;  %v8091_v45 = vcombine.low %v359_v27, %v363_v28  ;;  %v8219_v30 = vcombine.low %v487_v29, %v491_v32 }
 0x22a   :  { %v2415_v62 = vpop.f32.mrf.mxu1  ;;  %v2374_v1 = vpop.f32.mrf.mxu0  ;;  %4632 = vmatprep.subr.bf16.mxu0 %v8124_v59  ;;  %v8212_v59 = vcombine.high %v479_v41, %v483_v42  ;;  %v471_v49 = vld [vmem:[#allocation7 + $0x7c8] sm:$0xff]  ;;  %v8211_v56 = vcombine.low %v479_v41, %v483_v42 }
 0x22b   :  { %v9765_v0 = vadd.f32 %v2415_v62, %v2372_v58  ;;  %4674 = vmatpush1.bf16.msra.mxu1 %v8259_v48  ;;  %v8084_v48 = vcombine.high %v351_v12, %v355_v15  ;;  %v599_v53 = vld [vmem:[#allocation7 + $0xbc8] sm:$0xff]  ;;  %v8083_v58 = vcombine.low %v351_v12, %v355_v15 }
 0x22c   :  { %v2417_v7 = vpop.f32.mrf.mxu1  ;;  %4675 = vmatprep.subr.bf16.mxu1 %v8252_v51  ;;  %v475_v51 = vld [vmem:[#allocation7 + $0x7e8] sm:$0xff] }
 0x22d   :  { %v9767_v10 = vadd.f32 %v2417_v7, %v2374_v1  ;;  %4633 = vmatpush1.bf16.msra.mxu0 %v8123_v63  ;;  %v603_v55 = vld [vmem:[#allocation7 + $0xbe8] sm:$0xff]  ;;  %v8204_v61 = vcombine.high %v471_v49, %v475_v51  ;;  %v8203_v7 = vcombine.low %v471_v49, %v475_v51 }
 0x22e   :  { %4634 = vmatprep.subr.bf16.mxu0 %v8116_v5  ;;  %v8332_v62 = vcombine.high %v599_v53, %v603_v55  ;;  %v463_v63 = vld [vmem:[#allocation7 + $0x788] sm:$0xff] }
 0x22f   :  { %4676 = vmatpush1.bf16.msra.mxu1 %v8251_v4  ;;  %v467_v1 = vld [vmem:[#allocation7 + $0x7a8] sm:$0xff] }
 0x230   :  { %4677 = vmatprep.subr.bf16.mxu1 %v8244_v40  ;;  %v591_v4 = vld [vmem:[#allocation7 + $0xb88] sm:$0xff]  ;;  %v8331_v40 = vcombine.low %v599_v53, %v603_v55  ;;  %v8196_v8 = vcombine.high %v463_v63, %v467_v1 }
 0x231   :  { %4635 = vmatpush1.bf16.msra.mxu0 %v8115_v60  ;;  %v595_v5 = vld [vmem:[#allocation7 + $0xba8] sm:$0xff] }
 0x232   :  { %4636 = vmatprep.subr.bf16.mxu0 %v8108_v16  ;;  %v8324_v9 = vcombine.high %v591_v4, %v595_v5  ;;  %v459_v13 = vld [vmem:[#allocation7 + $0x768] sm:$0xff]  ;;  %v8195_v16 = vcombine.low %v463_v63, %v467_v1 }
 0x233   :  { %4678 = vmatpush1.bf16.msra.mxu1 %v8243_v14  ;;  %v583_v60 = vld [vmem:[#allocation7 + $0xb48] sm:$0xff]  ;;  %v8188_v19 = vcombine.high %v455_v11, %v459_v13 }
 0x234   :  { %4679 = vmatprep.subr.bf16.mxu1 %v8236_v18  ;;  %v587_v14 = vld [vmem:[#allocation7 + $0xb68] sm:$0xff]  ;;  %v8323_v18 = vcombine.low %v591_v4, %v595_v5 }
 0x235   :  { %4637 = vmatpush1.bf16.msra.mxu0 %v8107_v23  ;;  %v8316_v20 = vcombine.high %v583_v60, %v587_v14  ;;  %v447_v21 = vld [vmem:[#allocation7 + $0x708] sm:$0xff] }
 0x236   :  { %4638 = vmatprep.subr.bf16.mxu0 %v8100_v25  ;;  %v451_v22 = vld [vmem:[#allocation7 + $0x728] sm:$0xff]  ;;  %v8187_v25 = vcombine.low %v455_v11, %v459_v13 }
 0x237   :  { %4680 = vmatpush1.bf16.msra.mxu1 %v8235_v24  ;;  %v575_v23 = vld [vmem:[#allocation7 + $0xb08] sm:$0xff]  ;;  %v8180_v27 = vcombine.high %v447_v21, %v451_v22 }
 0x238   :  { %4681 = vmatprep.subr.bf16.mxu1 %v8228_v38  ;;  %v579_v24 = vld [vmem:[#allocation7 + $0xb28] sm:$0xff]  ;;  %v8315_v38 = vcombine.low %v583_v60, %v587_v14  ;;  %v280_v60 = vld [vmem:[#allocation7 + $0x1d0] sm:$0xff] }
 0x239   :  { %4639 = vmatpush1.bf16.msra.mxu0 %v8099_v34  ;;  %v8308_v28 = vcombine.high %v575_v23, %v579_v24  ;;  %v439_v29 = vld [vmem:[#allocation7 + $0x6c8] sm:$0xff]  ;;  %v284_v14 = vld [vmem:[#allocation7 + $0x1f0] sm:$0xff] }
 0x23a   :  { %4640 = vmatprep.subr.bf16.mxu0 %v8092_v37  ;;  %v443_v32 = vld [vmem:[#allocation7 + $0x6e8] sm:$0xff]  ;;  %v8179_v37 = vcombine.low %v447_v21, %v451_v22  ;;  %v8014_v21 = vcombine.high %v280_v60, %v284_v14 }
 0x23b   :  { %4682 = vmatpush1.bf16.msra.mxu1 %v8227_v36  ;;  %v567_v34 = vld [vmem:[#allocation7 + $0xac8] sm:$0xff]  ;;  %v8172_v12 = vcombine.high %v439_v29, %v443_v32 }
 0x23c   :  { %4683 = vmatprep.subr.bf16.mxu1 %v8220_v39  ;;  %v571_v36 = vld [vmem:[#allocation7 + $0xae8] sm:$0xff]  ;;  %v8307_v39 = vcombine.low %v575_v23, %v579_v24  ;;  %v272_v23 = vld [vmem:[#allocation7 + $0x190] sm:$0xff] }
 0x23d   :  { %4641 = vmatpush1.bf16.msra.mxu0 %v8091_v45  ;;  %v8300_v15 = vcombine.high %v567_v34, %v571_v36  ;;  %v431_v41 = vld [vmem:[#allocation7 + $0x688] sm:$0xff]  ;;  %v276_v24 = vld [vmem:[#allocation7 + $0x1b0] sm:$0xff] }
 0x23e   :  { %4642 = vmatprep.subr.bf16.mxu0 %v8084_v48  ;;  %v435_v42 = vld [vmem:[#allocation7 + $0x6a8] sm:$0xff]  ;;  %v8171_v48 = vcombine.low %v439_v29, %v443_v32  ;;  %v8006_v29 = vcombine.high %v272_v23, %v276_v24 }
 0x23f   :  { %4684 = vmatpush1.bf16.msra.mxu1 %v8219_v30  ;;  %v559_v45 = vld [vmem:[#allocation7 + $0xa88] sm:$0xff]  ;;  %v8164_v49 = vcombine.high %v431_v41, %v435_v42 }
 0x240   :  { %4685 = vmatprep.subr.bf16.mxu1 %v8212_v59  ;;  %v563_v30 = vld [vmem:[#allocation7 + $0xaa8] sm:$0xff]  ;;  %v8299_v59 = vcombine.low %v567_v34, %v571_v36  ;;  %v264_v34 = vld [vmem:[#allocation7 + $0x150] sm:$0xff] }
 0x241   :  { %4643 = vmatpush1.bf16.msra.mxu0 %v8083_v58  ;;  %v8292_v51 = vcombine.high %v559_v45, %v563_v30  ;;  %v423_v53 = vld [vmem:[#allocation7 + $0x648] sm:$0xff]  ;;  %v268_v36 = vld [vmem:[#allocation7 + $0x170] sm:$0xff] }
 0x242   :  { %4644 = vmatprep.subr.bf16.mxu0 %v8204_v61  ;;  %v427_v55 = vld [vmem:[#allocation7 + $0x668] sm:$0xff]  ;;  %v8163_v61 = vcombine.low %v431_v41, %v435_v42  ;;  %v8005_v41 = vcombine.low %v272_v23, %v276_v24  ;;  %v368_v23 = vld [vmem:[#allocation7 + $0x490] sm:$0xff] }
 0x243   :  { %4686 = vmatpush1.bf16.msra.mxu1 %v8211_v56  ;;  %v551_v58 = vld [vmem:[#allocation7 + $0xa48] sm:$0xff]  ;;  %v8156_v63 = vcombine.high %v423_v53, %v427_v55  ;;  %v372_v24 = vld [vmem:[#allocation7 + $0x4b0] sm:$0xff] }
 0x244   :  { %4687 = vmatprep.subr.bf16.mxu1 %v8332_v62  ;;  %v555_v56 = vld [vmem:[#allocation7 + $0xa68] sm:$0xff]  ;;  %v8291_v62 = vcombine.low %v559_v45, %v563_v30 }
 0x245   :  { %4645 = vmatpush2.bf16.msra.mxu0 %v8203_v7  ;;  %v8284_v1 = vcombine.high %v551_v58, %v555_v56  ;;  %v415_v4 = vld [vmem:[#allocation7 + $0x608] sm:$0xff] }
 0x246   :  { %4646 = vmatprep.subr.bf16.mxu0 %v8196_v8  ;;  %v419_v5 = vld [vmem:[#allocation7 + $0x628] sm:$0xff]  ;;  %v8155_v8 = vcombine.low %v423_v53, %v427_v55  ;;  %v260_v53 = vld [vmem:[#allocation7 + $0x130] sm:$0xff] }
 0x247   :  { %4688 = vmatpush2.bf16.msra.mxu1 %v8331_v40  ;;  %v543_v7 = vld [vmem:[#allocation7 + $0xa08] sm:$0xff]  ;;  %v8148_v11 = vcombine.high %v415_v4, %v419_v5 }
 0x248   :  { %4689 = vmatprep.subr.bf16.mxu1 %v8324_v9  ;;  %v547_v40 = vld [vmem:[#allocation7 + $0xa28] sm:$0xff]  ;;  %v8283_v9 = vcombine.low %v551_v58, %v555_v56  ;;  %v384_v58 = vld [vmem:[#allocation7 + $0x510] sm:$0xff] }
 0x249   :  { %4647 = vmatpush2.bf16.msra.mxu0 %v8195_v16  ;;  %v8276_v13 = vcombine.high %v543_v7, %v547_v40  ;;  %v408_v16 = vld [vmem:[#allocation7 + $0x5d0] sm:$0xff] }
 0x24a   :  { %4648 = vmatprep.subr.bf16.mxu0 %v8188_v19  ;;  %v8147_v19 = vcombine.low %v415_v4, %v419_v5  ;;  %v388_v56 = vld [vmem:[#allocation7 + $0x530] sm:$0xff] }
 0x24b   :  { %4690 = vmatpush2.bf16.msra.mxu1 %v8323_v18  ;;  %v412_v18 = vld [vmem:[#allocation7 + $0x5f0] sm:$0xff] }
 0x24c   :  { %4691 = vmatprep.subr.bf16.mxu1 %v8316_v20  ;;  %v8275_v20 = vcombine.low %v543_v7, %v547_v40  ;;  %v8142_v22 = vcombine.high %v408_v16, %v412_v18 }
 0x24d   :  { %4649 = vmatpush2.bf16.msra.mxu0 %v8187_v25  ;;  %v400_v25 = vld [vmem:[#allocation7 + $0x590] sm:$0xff] }
 0x24e   :  { %4650 = vmatprep.subr.bf16.mxu0 %v8180_v27  ;;  %v8013_v27 = vcombine.low %v280_v60, %v284_v14  ;;  %v376_v60 = vld [vmem:[#allocation7 + $0x4d0] sm:$0xff] }
 0x24f   :  { %4692 = vmatpush2.bf16.msra.mxu1 %v8315_v38  ;;  %v404_v38 = vld [vmem:[#allocation7 + $0x5b0] sm:$0xff] }
 0x250   :  { %4693 = vmatprep.subr.bf16.mxu1 %v8308_v28  ;;  %v8141_v28 = vcombine.low %v408_v16, %v412_v18  ;;  %v8134_v32 = vcombine.high %v400_v25, %v404_v38  ;;  %v8133_v30 = vcombine.low %v400_v25, %v404_v38  ;;  %v380_v14 = vld [vmem:[#allocation7 + $0x4f0] sm:$0xff]  ;;  %v8117_v18 = vcombine.low %v384_v58, %v388_v56 }
 0x251   :  { %4651 = vmatpush2.bf16.msra.mxu0 %v8179_v37  ;;  %v8109_v38 = vcombine.low %v376_v60, %v380_v14 }
 0x252   :  { %4652 = vmatprep.subr.bf16.mxu0 %v8172_v12  ;;  %v396_v12 = vld [vmem:[#allocation7 + $0x570] sm:$0xff] }
 0x253   :  { %4694 = vmatpush2.bf16.msra.mxu1 %v8307_v39  ;;  %v392_v39 = vld [vmem:[#allocation7 + $0x550] sm:$0xff] }
 0x254   :  { %4695 = vmatprep.subr.bf16.mxu1 %v8300_v15  ;;  %v8125_v5 = vcombine.low %v392_v39, %v396_v12 }
 0x255   :  { %4653 = vmatpush2.bf16.msra.mxu0 %v8171_v48  ;;  %v7998_v48 = vcombine.high %v264_v34, %v268_v36 }
 0x256   :  { %4654 = vmatprep.subr.bf16.mxu0 %v8164_v49  ;;  %v8126_v49 = vcombine.high %v392_v39, %v396_v12  ;;  %v8101_v39 = vcombine.low %v368_v23, %v372_v24 }
 0x257   :  { %4696 = vmatpush2.bf16.msra.mxu1 %v8299_v59 }
 0x258   :  { %4697 = vmatprep.subr.bf16.mxu1 %v8292_v51  ;;  %v256_v51 = vld [vmem:[#allocation7 + $0x110] sm:$0xff] }
 0x259   :  { %4655 = vmatpush2.bf16.msra.mxu0 %v8163_v61  ;;  %v9778_v61 = vld [vmem:[#allocation2 + $0xc] ss:$24 sps:$4 sm:$0xff]   ;;  %v7990_v7 = vcombine.high %v256_v51, %v260_v53  ;;  %v7989_v16 = vcombine.low %v256_v51, %v260_v53 }
 0x25a   :  { %4656 = vmatprep.subr.bf16.mxu0 %v8156_v63  ;;  %v7997_v63 = vcombine.low %v264_v34, %v268_v36  ;;  %v360_v34 = vld [vmem:[#allocation7 + $0x450] sm:$0xff] }
 0x25b   :  { %4698 = vmatpush2.bf16.msra.mxu1 %v8291_v62  ;;  %v364_v36 = vld [vmem:[#allocation7 + $0x470] sm:$0xff] }
 0x25c   :  { %4699 = vmatprep.subr.bf16.mxu1 %v8284_v1 }
 0x25d   :  { %4657 = vmatpush2.bf16.msra.mxu0 %v8155_v8  ;;  %v8118_v8 = vcombine.high %v384_v58, %v388_v56  ;;  %v348_v58 = vld [vmem:[#allocation7 + $0x3f0] sm:$0xff] }
 0x25e   :  { %4658 = vmatprep.subr.bf16.mxu0 %v8148_v11  ;;  %v252_v11 = vld [vmem:[#allocation7 + $0xf0] sm:$0xff] }
 0x25f   :  { %4700 = vmatpush2.bf16.msra.mxu1 %v8283_v9  ;;  %v248_v9 = vld [vmem:[#allocation7 + $0xd0] sm:$0xff] }
 0x260   :  { %4701 = vmatprep.subr.bf16.mxu1 %v8276_v13  ;;  %v7981_v25 = vcombine.low %v248_v9, %v252_v11  ;;  %v472_v56 = vld [vmem:[#allocation7 + $0x7d0] sm:$0xff] }
 0x261   :  { %4659 = vmatpush2.bf16.msra.mxu0 %v8147_v19  ;;  %v7982_v19 = vcombine.high %v248_v9, %v252_v11  ;;  %v464_v9 = vld [vmem:[#allocation7 + $0x790] sm:$0xff] }
 0x262   :  { %4714 = vmatprep.subr.bf16.mxu0 %v8014_v21  ;;  %v240_v21 = vld [vmem:[#allocation7 + $0x90] sm:$0xff] }
 0x263   :  { %4702 = vmatpush2.bf16.msra.mxu1 %v8275_v20  ;;  %v8110_v20 = vcombine.high %v376_v60, %v380_v14  ;;  %v468_v11 = vld [vmem:[#allocation7 + $0x7b0] sm:$0xff] }
 0x264   :  { %4757 = vmatprep.subr.bf16.mxu1 %v8142_v22  ;;  %v2454_v37 = vpop.f32.mrf.mxu0  ;;  %4661 = vmatmul.mubr.bf16.vlgmr.msra.gmra.mxu0 %v9731_v33  ;;  %v9773_v33 = vld [vmem:[#allocation2 + $0x4] ss:$24 sps:$4 sm:$0xff]  }
 0x265   :  { %4715 = vmatpush1.bf16.msra.mxu0 %v8013_v27  ;;  %4746 = vmatprep.mubr.bf16.mxu0 %v9773_v33  ;;  %v244_v22 = vld [vmem:[#allocation7 + $0xb0] sm:$0xff] }
 0x266   :  { %v2497_v15 = vpop.f32.mrf.mxu1  ;;  %4704 = vmatmul.mubr.bf16.vlgmr.msra.gmra.mxu1 %v9751_v26  ;;  %v2456_v45 = vpop.f32.mrf.mxu0  ;;  %4716 = vmatprep.subr.bf16.mxu0 %v8006_v29  ;;  %v7974_v27 = vcombine.high %v240_v21, %v244_v22  ;;  %v232_v29 = vld [vmem:[#allocation7 + $0x50] sm:$0xff] }
 0x267   :  { %v9771_v42 = vadd.f32 %v2497_v15, %v2454_v37  ;;  %4758 = vmatpush1.bf16.msra.mxu1 %v8141_v28  ;;  %4789 = vmatprep.mubr.bf16.mxu1 %v9778_v61  ;;  %v8102_v28 = vcombine.high %v368_v23, %v372_v24  ;;  %v7973_v37 = vcombine.low %v240_v21, %v244_v22  ;;  %v456_v21 = vld [vmem:[#allocation7 + $0x750] sm:$0xff] }
 0x268   :  { %v2499_v59 = vpop.f32.mrf.mxu1  ;;  %4759 = vmatprep.subr.bf16.mxu1 %v8134_v32  ;;  %v2458_v26 = vpop.f32.mrf.mxu0  ;;  %v236_v32 = vld [vmem:[#allocation7 + $0x70] sm:$0xff]  ;;  %v8094_v15 = vcombine.high %v360_v34, %v364_v36  ;;  %v8197_v24 = vcombine.low %v464_v9, %v468_v11 }
 0x269   :  { %v9776_v55 = vadd.f32 %v2499_v59, %v2456_v45  ;;  %4717 = vmatpush1.bf16.msra.mxu0 %v8005_v41  ;;  %v7966_v12 = vcombine.high %v232_v29, %v236_v32  ;;  %v224_v41 = vld [vmem:[#allocation7 + $0x10] sm:$0xff]  ;;  %v7965_v59 = vcombine.low %v232_v29, %v236_v32 }
 0x26a   :  { %v2501_v62 = vpop.f32.mrf.mxu1  ;;  %v2460_v4 = vpop.f32.mrf.mxu0  ;;  %4718 = vmatprep.subr.bf16.mxu0 %v7998_v48  ;;  %v228_v45 = vld [vmem:[#allocation7 + $0x30] sm:$0xff] }
 0x26b   :  { %v9781_v1 = vadd.f32 %v2501_v62, %v2458_v26  ;;  %4760 = vmatpush1.bf16.msra.mxu1 %v8133_v30  ;;  %v352_v30 = vld [vmem:[#allocation7 + $0x410] sm:$0xff]  ;;  %v7958_v51 = vcombine.high %v224_v41, %v228_v45 }
 0x26c   :  { %v2503_v40 = vpop.f32.mrf.mxu1  ;;  %4761 = vmatprep.subr.bf16.mxu1 %v8126_v49  ;;  %v356_v48 = vld [vmem:[#allocation7 + $0x430] sm:$0xff]  ;;  %v8093_v49 = vcombine.low %v360_v34, %v364_v36 }
 0x26d   :  { %v9783_v13 = vadd.f32 %v2503_v40, %v2460_v4  ;;  %4719 = vmatpush1.bf16.msra.mxu0 %v7997_v63  ;;  %v8086_v53 = vcombine.high %v352_v30, %v356_v48  ;;  %v344_v26 = vld [vmem:[#allocation7 + $0x3d0] sm:$0xff]  ;;  %v7957_v63 = vcombine.low %v224_v41, %v228_v45  ;;  %v8085_v4 = vcombine.low %v352_v30, %v356_v48 }
 0x26e   :  { %4720 = vmatprep.subr.bf16.mxu0 %v7990_v7  ;;  %v476_v62 = vld [vmem:[#allocation7 + $0x7f0] sm:$0xff]  ;;  %v8077_v60 = vcombine.low %v344_v26, %v348_v58 }
 0x26f   :  { %4762 = vmatpush1.bf16.msra.mxu1 %v8125_v5  ;;  %v8078_v5 = vcombine.high %v344_v26, %v348_v58  ;;  %v8206_v7 = vcombine.high %v472_v56, %v476_v62  ;;  %v336_v40 = vld [vmem:[#allocation7 + $0x390] sm:$0xff]  ;;  %v8205_v14 = vcombine.low %v472_v56, %v476_v62 }
 0x270   :  { %4763 = vmatprep.subr.bf16.mxu1 %v8118_v8  ;;  %v340_v8 = vld [vmem:[#allocation7 + $0x3b0] sm:$0xff] }
 0x271   :  { %4721 = vmatpush1.bf16.msra.mxu0 %v7989_v16  ;;  %v8070_v16 = vcombine.high %v336_v40, %v340_v8  ;;  %v460_v22 = vld [vmem:[#allocation7 + $0x770] sm:$0xff]  ;;  %v8069_v23 = vcombine.low %v336_v40, %v340_v8 }
 0x272   :  { %4722 = vmatprep.subr.bf16.mxu0 %v7982_v19  ;;  %v328_v19 = vld [vmem:[#allocation7 + $0x350] sm:$0xff]  ;;  %v8189_v36 = vcombine.low %v456_v21, %v460_v22 }
 0x273   :  { %4764 = vmatpush1.bf16.msra.mxu1 %v8117_v18  ;;  %v8198_v18 = vcombine.high %v464_v9, %v468_v11  ;;  %v448_v29 = vld [vmem:[#allocation7 + $0x710] sm:$0xff] }
 0x274   :  { %4765 = vmatprep.subr.bf16.mxu1 %v8110_v20  ;;  %v332_v20 = vld [vmem:[#allocation7 + $0x370] sm:$0xff] }
 0x275   :  { %4723 = vmatpush1.bf16.msra.mxu0 %v7981_v25  ;;  %v8062_v25 = vcombine.high %v328_v19, %v332_v20  ;;  %v452_v32 = vld [vmem:[#allocation7 + $0x730] sm:$0xff]  ;;  %v8061_v34 = vcombine.low %v328_v19, %v332_v20 }
 0x276   :  { %4724 = vmatprep.subr.bf16.mxu0 %v7974_v27  ;;  %v320_v27 = vld [vmem:[#allocation7 + $0x310] sm:$0xff]  ;;  %v8181_v48 = vcombine.low %v448_v29, %v452_v32 }
 0x277   :  { %4766 = vmatpush1.bf16.msra.mxu1 %v8109_v38  ;;  %v8190_v38 = vcombine.high %v456_v21, %v460_v22  ;;  %v440_v41 = vld [vmem:[#allocation7 + $0x6d0] sm:$0xff] }
 0x278   :  { %4767 = vmatprep.subr.bf16.mxu1 %v8102_v28  ;;  %v324_v28 = vld [vmem:[#allocation7 + $0x330] sm:$0xff] }
 0x279   :  { %4725 = vmatpush1.bf16.msra.mxu0 %v7973_v37  ;;  %v8054_v37 = vcombine.high %v320_v27, %v324_v28  ;;  %v444_v45 = vld [vmem:[#allocation7 + $0x6f0] sm:$0xff]  ;;  %v8053_v30 = vcombine.low %v320_v27, %v324_v28  ;;  %v281_v27 = vld [vmem:[#allocation7 + $0x1d8] sm:$0xff] }
 0x27a   :  { %4726 = vmatprep.subr.bf16.mxu0 %v7966_v12  ;;  %v312_v12 = vld [vmem:[#allocation7 + $0x2d0] sm:$0xff]  ;;  %v8173_v62 = vcombine.low %v440_v41, %v444_v45  ;;  %v285_v28 = vld [vmem:[#allocation7 + $0x1f8] sm:$0xff] }
 0x27b   :  { %4768 = vmatpush1.bf16.msra.mxu1 %v8101_v39  ;;  %v8182_v39 = vcombine.high %v448_v29, %v452_v32  ;;  %v432_v26 = vld [vmem:[#allocation7 + $0x690] sm:$0xff] }
 0x27c   :  { %4769 = vmatprep.subr.bf16.mxu1 %v8094_v15  ;;  %v316_v15 = vld [vmem:[#allocation7 + $0x2f0] sm:$0xff] }
 0x27d   :  { %4727 = vmatpush1.bf16.msra.mxu0 %v7965_v59  ;;  %v8046_v59 = vcombine.high %v312_v12, %v316_v15  ;;  %v436_v58 = vld [vmem:[#allocation7 + $0x6b0] sm:$0xff]  ;;  %v8045_v56 = vcombine.low %v312_v12, %v316_v15  ;;  %v273_v12 = vld [vmem:[#allocation7 + $0x198] sm:$0xff] }
 0x27e   :  { %4728 = vmatprep.subr.bf16.mxu0 %v7958_v51  ;;  %v304_v51 = vld [vmem:[#allocation7 + $0x290] sm:$0xff]  ;;  %v8165_v11 = vcombine.low %v432_v26, %v436_v58  ;;  %v277_v15 = vld [vmem:[#allocation7 + $0x1b8] sm:$0xff] }
 0x27f   :  { %4770 = vmatpush1.bf16.msra.mxu1 %v8093_v49  ;;  %v8174_v49 = vcombine.high %v440_v41, %v444_v45  ;;  %v424_v40 = vld [vmem:[#allocation7 + $0x650] sm:$0xff]  ;;  %v8015_v45 = vcombine.low %v281_v27, %v285_v28 }
 0x280   :  { %4771 = vmatprep.subr.bf16.mxu1 %v8086_v53  ;;  %v308_v53 = vld [vmem:[#allocation7 + $0x2b0] sm:$0xff] }
 0x281   :  { %4729 = vmatpush1.bf16.msra.mxu0 %v7957_v63  ;;  %v8038_v63 = vcombine.high %v304_v51, %v308_v53  ;;  %v428_v8 = vld [vmem:[#allocation7 + $0x670] sm:$0xff]  ;;  %v8037_v9 = vcombine.low %v304_v51, %v308_v53 }
 0x282   :  { %4730 = vmatprep.subr.bf16.mxu0 %v8078_v5  ;;  %v296_v5 = vld [vmem:[#allocation7 + $0x250] sm:$0xff]  ;;  %v8157_v22 = vcombine.low %v424_v40, %v428_v8 }
 0x283   :  { %4772 = vmatpush1.bf16.msra.mxu1 %v8085_v4  ;;  %v8166_v4 = vcombine.high %v432_v26, %v436_v58  ;;  %v416_v19 = vld [vmem:[#allocation7 + $0x610] sm:$0xff]  ;;  %v265_v26 = vld [vmem:[#allocation7 + $0x158] sm:$0xff] }
 0x284   :  { %4773 = vmatprep.subr.bf16.mxu1 %v8206_v7  ;;  %v300_v7 = vld [vmem:[#allocation7 + $0x270] sm:$0xff]  ;;  %v269_v58 = vld [vmem:[#allocation7 + $0x178] sm:$0xff] }
 0x285   :  { %4731 = vmatpush2.bf16.msra.mxu0 %v8077_v60  ;;  %v8030_v60 = vcombine.high %v296_v5, %v300_v7  ;;  %v420_v20 = vld [vmem:[#allocation7 + $0x630] sm:$0xff]  ;;  %v8029_v21 = vcombine.low %v296_v5, %v300_v7  ;;  %v8007_v7 = vcombine.low %v273_v12, %v277_v15 }
 0x286   :  { %4732 = vmatprep.subr.bf16.mxu0 %v8070_v16  ;;  %v288_v16 = vld [vmem:[#allocation7 + $0x210] sm:$0xff]  ;;  %v8149_v32 = vcombine.low %v416_v19, %v420_v20 }
 0x287   :  { %4774 = vmatpush2.bf16.msra.mxu1 %v8205_v14  ;;  %v8158_v14 = vcombine.high %v424_v40, %v428_v8  ;;  %v9785_v53 = vld [vmem:[#allocation2] ss:$24 sps:$4 sm:$0xff]  }
 0x288   :  { %4775 = vmatprep.subr.bf16.mxu1 %v8198_v18  ;;  %v292_v18 = vld [vmem:[#allocation7 + $0x230] sm:$0xff] }
 0x289   :  { %4733 = vmatpush2.bf16.msra.mxu0 %v8069_v23  ;;  %v8022_v23 = vcombine.high %v288_v16, %v292_v18  ;;  %v8021_v29 = vcombine.low %v288_v16, %v292_v18  ;;  %v257_v18 = vld [vmem:[#allocation7 + $0x118] sm:$0xff] }
 0x28a   :  { %4734 = vmatprep.subr.bf16.mxu0 %v8062_v25  ;;  %v536_v25 = vld [vmem:[#allocation7 + $0x9d0] sm:$0xff] }
 0x28b   :  { %4776 = vmatpush2.bf16.msra.mxu1 %v8197_v24  ;;  %v8150_v24 = vcombine.high %v416_v19, %v420_v20  ;;  %v261_v19 = vld [vmem:[#allocation7 + $0x138] sm:$0xff] }
 0x28c   :  { %4777 = vmatprep.subr.bf16.mxu1 %v8190_v38  ;;  %v540_v38 = vld [vmem:[#allocation7 + $0x9f0] sm:$0xff] }
 0x28d   :  { %4735 = vmatpush2.bf16.msra.mxu0 %v8061_v34  ;;  %v8270_v34 = vcombine.high %v536_v25, %v540_v38  ;;  %v8269_v41 = vcombine.low %v536_v25, %v540_v38  ;;  %v7992_v38 = vcombine.high %v257_v18, %v261_v19 }
 0x28e   :  { %4736 = vmatprep.subr.bf16.mxu0 %v8054_v37  ;;  %v528_v37 = vld [vmem:[#allocation7 + $0x990] sm:$0xff] }
 0x28f   :  { %4778 = vmatpush2.bf16.msra.mxu1 %v8189_v36  ;;  %v8016_v36 = vcombine.high %v281_v27, %v285_v28  ;;  %v504_v27 = vld [vmem:[#allocation7 + $0x8d0] sm:$0xff] }
 0x290   :  { %4779 = vmatprep.subr.bf16.mxu1 %v8182_v39  ;;  %v532_v39 = vld [vmem:[#allocation7 + $0x9b0] sm:$0xff] }
 0x291   :  { %4737 = vmatpush2.bf16.msra.mxu0 %v8053_v30  ;;  %v8262_v30 = vcombine.high %v528_v37, %v532_v39  ;;  %v508_v28 = vld [vmem:[#allocation7 + $0x8f0] sm:$0xff] }
 0x292   :  { %4738 = vmatprep.subr.bf16.mxu0 %v8046_v59  ;;  %v520_v59 = vld [vmem:[#allocation7 + $0x950] sm:$0xff] }
 0x293   :  { %4780 = vmatpush2.bf16.msra.mxu1 %v8181_v48  ;;  %v8008_v48 = vcombine.high %v273_v12, %v277_v15  ;;  %v241_v12 = vld [vmem:[#allocation7 + $0x98] sm:$0xff] }
 0x294   :  { %4781 = vmatprep.subr.bf16.mxu1 %v8174_v49  ;;  %v524_v49 = vld [vmem:[#allocation7 + $0x970] sm:$0xff]  ;;  %v245_v15 = vld [vmem:[#allocation7 + $0xb8] sm:$0xff] }
 0x295   :  { %4739 = vmatpush2.bf16.msra.mxu0 %v8045_v56  ;;  %v8254_v40 = vcombine.high %v520_v59, %v524_v49 }
 0x296   :  { %4740 = vmatprep.subr.bf16.mxu0 %v8038_v63  ;;  %v9789_v63 = vld [vmem:[#allocation2 + $0x8] ss:$24 sps:$4 sm:$0xff]  }
 0x297   :  { %4782 = vmatpush2.bf16.msra.mxu1 %v8173_v62 }
 0x298   :  { %4783 = vmatprep.subr.bf16.mxu1 %v8166_v4  ;;  %v8261_v4 = vcombine.low %v528_v37, %v532_v39  ;;  %v496_v37 = vld [vmem:[#allocation7 + $0x890] sm:$0xff] }
 0x299   :  { %4741 = vmatpush2.bf16.msra.mxu0 %v8037_v9  ;;  %v500_v39 = vld [vmem:[#allocation7 + $0x8b0] sm:$0xff] }
 0x29a   :  { %4742 = vmatprep.subr.bf16.mxu0 %v8030_v60  ;;  %v516_v60 = vld [vmem:[#allocation7 + $0x930] sm:$0xff] }
 0x29b   :  { %4784 = vmatpush2.bf16.msra.mxu1 %v8165_v11  ;;  %v8000_v11 = vcombine.high %v265_v26, %v269_v58 }
 0x29c   :  { %4785 = vmatprep.subr.bf16.mxu1 %v8158_v14  ;;  %v9798_v14 = vld [vmem:[#allocation2 + $0x14] ss:$24 sps:$4 sm:$0xff]  }
 0x29d   :  { %4743 = vmatpush2.bf16.msra.mxu0 %v8029_v21  ;;  %v8253_v21 = vcombine.low %v520_v59, %v524_v49  ;;  %v488_v59 = vld [vmem:[#allocation7 + $0x850] sm:$0xff] }
 0x29e   :  { %4744 = vmatprep.subr.bf16.mxu0 %v8022_v23  ;;  %v7999_v23 = vcombine.low %v265_v26, %v269_v58  ;;  %v492_v49 = vld [vmem:[#allocation7 + $0x870] sm:$0xff]  ;;  %v237_v26 = vld [vmem:[#allocation7 + $0x78] sm:$0xff]  ;;  %v8229_v58 = vcombine.low %v496_v37, %v500_v39 }
 0x29f   :  { %4786 = vmatpush2.bf16.msra.mxu1 %v8157_v22 }
 0x2a0   :  { %4787 = vmatprep.subr.bf16.mxu1 %v8150_v24 }
 0x2a1   :  { %4745 = vmatpush2.bf16.msra.mxu0 %v8021_v29  ;;  %v249_v29 = vld [vmem:[#allocation7 + $0xd8] sm:$0xff] }
 0x2a2   :  { %4800 = vmatprep.subr.bf16.mxu0 %v8270_v34 }
 0x2a3   :  { %4788 = vmatpush2.bf16.msra.mxu1 %v8149_v32  ;;  %v253_v32 = vld [vmem:[#allocation7 + $0xf8] sm:$0xff] }
 0x2a4   :  { %4843 = vmatprep.subr.bf16.mxu1 %v8016_v36  ;;  %v4490_v51 = vpop.f32.mrf.mxu0  ;;  %4747 = vmatmul.mubr.bf16.vlgmr.msra.gmra.mxu0 %v9785_v53  ;;  %v7984_v36 = vcombine.high %v249_v29, %v253_v32 }
 0x2a5   :  { %v4491_v56 = vadd.f32 %v4490_v51, %v9719_v43  ;;  %4801 = vmatpush1.bf16.msra.mxu0 %v8269_v41  ;;  %v512_v43 = vld [vmem:[#allocation7 + $0x910] sm:$0xff]  ;;  %4832 = vmatprep.mubr.bf16.mxu0 %v9798_v14  ;;  %v8237_v41 = vcombine.low %v504_v27, %v508_v28  ;;  %v233_v51 = vld [vmem:[#allocation7 + $0x58] sm:$0xff] }
 0x2a6   :  { %v4533_v62 = vpop.f32.mrf.mxu1  ;;  %4790 = vmatmul.mubr.bf16.vlgmr.msra.gmra.mxu1 %v9789_v63  ;;  %v9792_v5 = vpop.f32.mrf.mxu0  ;;  %4802 = vmatprep.subr.bf16.mxu0 %v8262_v30  ;;  %v8246_v24 = vcombine.high %v512_v43, %v516_v60  ;;  %v8245_v34 = vcombine.low %v512_v43, %v516_v60  ;;  %v8230_v30 = vcombine.high %v496_v37, %v500_v39  ;;  %v229_v43 = vld [vmem:[#allocation7 + $0x38] sm:$0xff] }
 0x2a7   :  { %4844 = vmatpush1.bf16.msra.mxu1 %v8015_v45  ;;  %v9794_v8 = vadd.f32 %v4533_v62, %v4491_v56  ;;  %4875 = vmatprep.mubr.bf16.mxu1 %v9773_v33  ;;  %v8238_v33 = vcombine.high %v504_v27, %v508_v28  ;;  %v7983_v45 = vcombine.low %v249_v29, %v253_v32  ;;  %v592_v29 = vld [vmem:[#allocation7 + $0xb90] sm:$0xff] }
 0x2a8   :  { %v9796_v9 = vpop.f32.mrf.mxu1  ;;  %4845 = vmatprep.subr.bf16.mxu1 %v8008_v48  ;;  %v4494_v16 = vpop.f32.mrf.mxu0  ;;  %v7976_v48 = vcombine.high %v241_v12, %v245_v15  ;;  %v7975_v56 = vcombine.low %v241_v12, %v245_v15  ;;  %v8222_v62 = vcombine.high %v488_v59, %v492_v49  ;;  %v8221_v60 = vcombine.low %v488_v59, %v492_v49  ;;  %v596_v32 = vld [vmem:[#allocation7 + $0xbb0] sm:$0xff] }
 0x2a9   :  { %v4495_v20 = vadd.f32 %v4494_v16, %v9727_v52  ;;  %4803 = vmatpush1.bf16.msra.mxu0 %v8261_v4  ;;  %v7991_v52 = vcombine.low %v257_v18, %v261_v19  ;;  %v7968_v4 = vcombine.high %v233_v51, %v237_v26  ;;  %v7967_v16 = vcombine.low %v233_v51, %v237_v26  ;;  %v584_v12 = vld [vmem:[#allocation7 + $0xb50] sm:$0xff] }
 0x2aa   :  { %v4537_v22 = vpop.f32.mrf.mxu1  ;;  %4804 = vmatprep.subr.bf16.mxu0 %v8254_v40  ;;  %v484_v40 = vld [vmem:[#allocation7 + $0x830] sm:$0xff]  ;;  %v8326_v37 = vcombine.high %v592_v29, %v596_v32 }
 0x2ab   :  { %4846 = vmatpush1.bf16.msra.mxu1 %v8007_v7  ;;  %v9803_v25 = vadd.f32 %v4537_v22, %v4495_v20  ;;  %v480_v7 = vld [vmem:[#allocation7 + $0x810] sm:$0xff]  ;;  %v345_v22 = vld [vmem:[#allocation7 + $0x3d8] sm:$0xff] }
 0x2ac   :  { %4847 = vmatprep.subr.bf16.mxu1 %v8000_v11  ;;  %v225_v11 = vld [vmem:[#allocation7 + $0x18] sm:$0xff]  ;;  %v8214_v18 = vcombine.high %v480_v7, %v484_v40  ;;  %v600_v20 = vld [vmem:[#allocation7 + $0xbd0] sm:$0xff] }
 0x2ad   :  { %4805 = vmatpush1.bf16.msra.mxu0 %v8253_v21  ;;  %v7960_v19 = vcombine.high %v225_v11, %v229_v43  ;;  %v604_v21 = vld [vmem:[#allocation7 + $0xbf0] sm:$0xff] }
 0x2ae   :  { %4806 = vmatprep.subr.bf16.mxu0 %v8246_v24  ;;  %v8213_v24 = vcombine.low %v480_v7, %v484_v40  ;;  %v8334_v27 = vcombine.high %v600_v20, %v604_v21  ;;  %v588_v15 = vld [vmem:[#allocation7 + $0xb70] sm:$0xff] }
 0x2af   :  { %4848 = vmatpush1.bf16.msra.mxu1 %v7999_v23  ;;  %v349_v23 = vld [vmem:[#allocation7 + $0x3f8] sm:$0xff]  ;;  %v8318_v59 = vcombine.high %v584_v12, %v588_v15  ;;  %v576_v51 = vld [vmem:[#allocation7 + $0xb10] sm:$0xff] }
 0x2b0   :  { %4849 = vmatprep.subr.bf16.mxu1 %v7992_v38  ;;  %v7959_v38 = vcombine.low %v225_v11, %v229_v43  ;;  %v8080_v28 = vcombine.high %v345_v22, %v349_v23  ;;  %v580_v26 = vld [vmem:[#allocation7 + $0xb30] sm:$0xff] }
 0x2b1   :  { %4807 = vmatpush1.bf16.msra.mxu0 %v8245_v34  ;;  %v337_v34 = vld [vmem:[#allocation7 + $0x398] sm:$0xff]  ;;  %v8310_v7 = vcombine.high %v576_v51, %v580_v26  ;;  %v568_v11 = vld [vmem:[#allocation7 + $0xad0] sm:$0xff] }
 0x2b2   :  { %4808 = vmatprep.subr.bf16.mxu0 %v8238_v33  ;;  %v8333_v33 = vcombine.low %v600_v20, %v604_v21  ;;  %v572_v43 = vld [vmem:[#allocation7 + $0xaf0] sm:$0xff] }
 0x2b3   :  { %4850 = vmatpush1.bf16.msra.mxu1 %v7991_v52  ;;  %v341_v52 = vld [vmem:[#allocation7 + $0x3b8] sm:$0xff]  ;;  %v8302_v20 = vcombine.high %v568_v11, %v572_v43 }
 0x2b4   :  { %4851 = vmatprep.subr.bf16.mxu1 %v7984_v36  ;;  %v8079_v36 = vcombine.low %v345_v22, %v349_v23  ;;  %v8072_v39 = vcombine.high %v337_v34, %v341_v52  ;;  %v560_v22 = vld [vmem:[#allocation7 + $0xa90] sm:$0xff] }
 0x2b5   :  { %4809 = vmatpush1.bf16.msra.mxu0 %v8237_v41  ;;  %v329_v41 = vld [vmem:[#allocation7 + $0x358] sm:$0xff]  ;;  %v564_v23 = vld [vmem:[#allocation7 + $0xab0] sm:$0xff] }
 0x2b6   :  { %4810 = vmatprep.subr.bf16.mxu0 %v8230_v30  ;;  %v8325_v30 = vcombine.low %v592_v29, %v596_v32  ;;  %v8294_v29 = vcombine.high %v560_v22, %v564_v23 }
 0x2b7   :  { %4852 = vmatpush1.bf16.msra.mxu1 %v7983_v45  ;;  %v333_v45 = vld [vmem:[#allocation7 + $0x378] sm:$0xff] }
 0x2b8   :  { %4853 = vmatprep.subr.bf16.mxu1 %v7976_v48  ;;  %v8071_v48 = vcombine.low %v337_v34, %v341_v52  ;;  %v8064_v49 = vcombine.high %v329_v41, %v333_v45  ;;  %v552_v34 = vld [vmem:[#allocation7 + $0xa50] sm:$0xff] }
 0x2b9   :  { %4811 = vmatpush1.bf16.msra.mxu0 %v8229_v58  ;;  %v321_v58 = vld [vmem:[#allocation7 + $0x318] sm:$0xff]  ;;  %v556_v52 = vld [vmem:[#allocation7 + $0xa70] sm:$0xff] }
 0x2ba   :  { %4812 = vmatprep.subr.bf16.mxu0 %v8222_v62  ;;  %v8317_v62 = vcombine.low %v584_v12, %v588_v15  ;;  %v8286_v12 = vcombine.high %v552_v34, %v556_v52 }
 0x2bb   :  { %4854 = vmatpush1.bf16.msra.mxu1 %v7975_v56  ;;  %v325_v56 = vld [vmem:[#allocation7 + $0x338] sm:$0xff] }
 0x2bc   :  { %4855 = vmatprep.subr.bf16.mxu1 %v7968_v4  ;;  %v8063_v4 = vcombine.low %v329_v41, %v333_v45  ;;  %v8056_v40 = vcombine.high %v321_v58, %v325_v56  ;;  %v544_v41 = vld [vmem:[#allocation7 + $0xa10] sm:$0xff] }
 0x2bd   :  { %4813 = vmatpush1.bf16.msra.mxu0 %v8221_v60  ;;  %v313_v60 = vld [vmem:[#allocation7 + $0x2d8] sm:$0xff]  ;;  %v548_v45 = vld [vmem:[#allocation7 + $0xa30] sm:$0xff] }
 0x2be   :  { %4814 = vmatprep.subr.bf16.mxu0 %v8214_v18  ;;  %v8309_v18 = vcombine.low %v576_v51, %v580_v26  ;;  %v8278_v26 = vcombine.high %v544_v41, %v548_v45 }
 0x2bf   :  { %4856 = vmatpush1.bf16.msra.mxu1 %v7967_v16  ;;  %v317_v16 = vld [vmem:[#allocation7 + $0x2f8] sm:$0xff] }
 0x2c0   :  { %4857 = vmatprep.subr.bf16.mxu1 %v7960_v19  ;;  %v8055_v19 = vcombine.low %v321_v58, %v325_v56  ;;  %v8048_v21 = vcombine.high %v313_v60, %v317_v16  ;;  %v409_v56 = vld [vmem:[#allocation7 + $0x5d8] sm:$0xff] }
 0x2c1   :  { %4815 = vmatpush1.bf16.msra.mxu0 %v8213_v24  ;;  %v305_v24 = vld [vmem:[#allocation7 + $0x298] sm:$0xff] }
 0x2c2   :  { %4816 = vmatprep.subr.bf16.mxu0 %v8334_v27  ;;  %v8301_v27 = vcombine.low %v568_v11, %v572_v43 }
 0x2c3   :  { %4858 = vmatpush1.bf16.msra.mxu1 %v7959_v38  ;;  %v309_v38 = vld [vmem:[#allocation7 + $0x2b8] sm:$0xff] }
 0x2c4   :  { %4859 = vmatprep.subr.bf16.mxu1 %v8080_v28  ;;  %v8047_v28 = vcombine.low %v313_v60, %v317_v16  ;;  %v8040_v32 = vcombine.high %v305_v24, %v309_v38 }
 0x2c5   :  { %4817 = vmatpush2.bf16.msra.mxu0 %v8333_v33  ;;  %v297_v33 = vld [vmem:[#allocation7 + $0x258] sm:$0xff] }
 0x2c6   :  { %4818 = vmatprep.subr.bf16.mxu0 %v8326_v37  ;;  %v8293_v37 = vcombine.low %v560_v22, %v564_v23 }
 0x2c7   :  { %4860 = vmatpush2.bf16.msra.mxu1 %v8079_v36  ;;  %v301_v36 = vld [vmem:[#allocation7 + $0x278] sm:$0xff] }
 0x2c8   :  { %4861 = vmatprep.subr.bf16.mxu1 %v8072_v39  ;;  %v8039_v39 = vcombine.low %v305_v24, %v309_v38  ;;  %v8032_v15 = vcombine.high %v297_v33, %v301_v36  ;;  %v8031_v51 = vcombine.low %v297_v33, %v301_v36  ;;  %v9810_v24 = vpop.f32.mrf.mxu0  ;;  %v9812_v38 = vld [vmem:[#allocation10] sm:$0xff]  ;;  %v521_v36 = vld [vmem:[#allocation7 + $0x958] sm:$0xff] }
 0x2c9   :  { %4819 = vmatpush2.bf16.msra.mxu0 %v8325_v30  ;;  %v289_v30 = vld [vmem:[#allocation7 + $0x218] sm:$0xff] }
 0x2ca   :  { %4820 = vmatprep.subr.bf16.mxu0 %v8318_v59  ;;  %v8285_v59 = vcombine.low %v552_v34, %v556_v52  ;;  %v397_v34 = vld [vmem:[#allocation7 + $0x578] sm:$0xff] }
 0x2cb   :  { %4862 = vmatpush2.bf16.msra.mxu1 %v8071_v48  ;;  %v293_v48 = vld [vmem:[#allocation7 + $0x238] sm:$0xff] }
 0x2cc   :  { %4863 = vmatprep.subr.bf16.mxu1 %v8064_v49  ;;  %v4974_v49 = vlaneseq  ;;  %v8024_v58 = vcombine.high %v289_v30, %v293_v48  ;;  %v8023_v43 = vcombine.low %v289_v30, %v293_v48  ;;  %v9814_v33 = vld [vmem:[#allocation2 + $0x10] ss:$24 sps:$4 sm:$0xff]  }
 0x2cd   :  { %4821 = vmatpush2.bf16.msra.mxu0 %v8317_v62  ;;  %v413_v62 = vld [vmem:[#allocation7 + $0x5f8] sm:$0xff] }
 0x2ce   :  { %4822 = vmatprep.subr.bf16.mxu0 %v8310_v7  ;;  %v541_v7 = vld [vmem:[#allocation7 + $0x9f8] sm:$0xff]  ;;  %v9805_v11 = vshrl.u32 %v4974_v49, 7  ;;  %v8144_v60 = vcombine.high %v409_v56, %v413_v62  ;;  %v8143_v23 = vcombine.low %v409_v56, %v413_v62 }
 0x2cf   :  { %4864 = vmatpush2.bf16.msra.mxu1 %v8063_v4  ;;  %v537_v4 = vld [vmem:[#allocation7 + $0x9d8] sm:$0xff] }
 0x2d0   :  { %4865 = vmatprep.subr.bf16.mxu1 %v8056_v40  ;;  %v8277_v40 = vcombine.low %v544_v41, %v548_v45  ;;  %v8272_v16 = vcombine.high %v537_v4, %v541_v7  ;;  %v9808_v22 = vsub.s32 0, %v9805_v11  ;;  %v389_v49 = vld [vmem:[#allocation7 + $0x538] sm:$0xff] }
 0x2d1   :  { %4823 = vmatpush2.bf16.msra.mxu0 %v8309_v18  ;;  %v401_v18 = vld [vmem:[#allocation7 + $0x598] sm:$0xff] }
 0x2d2   :  { %4824 = vmatprep.subr.bf16.mxu0 %v8302_v20  ;;  %v529_v20 = vld [vmem:[#allocation7 + $0x998] sm:$0xff] }
 0x2d3   :  { %4866 = vmatpush2.bf16.msra.mxu1 %v8055_v19  ;;  %v405_v19 = vld [vmem:[#allocation7 + $0x5b8] sm:$0xff] }
 0x2d4   :  { %4867 = vmatprep.subr.bf16.mxu1 %v8048_v21  ;;  %v533_v21 = vld [vmem:[#allocation7 + $0x9b8] sm:$0xff] }
 0x2d5   :  { %4825 = vmatpush2.bf16.msra.mxu0 %v8301_v27  ;;  %v8271_v27 = vcombine.low %v537_v4, %v541_v7  ;;  %v8263_v45 = vcombine.low %v529_v20, %v533_v21 }
 0x2d6   :  { %4826 = vmatprep.subr.bf16.mxu0 %v8294_v29  ;;  %v8264_v29 = vcombine.high %v529_v20, %v533_v21 }
 0x2d7   :  { %4868 = vmatpush2.bf16.msra.mxu1 %v8047_v28  ;;  %v8136_v28 = vcombine.high %v401_v18, %v405_v19 }
 0x2d8   :  { %4869 = vmatprep.subr.bf16.mxu1 %v8040_v32  ;;  %v393_v32 = vld [vmem:[#allocation7 + $0x558] sm:$0xff] }
 0x2d9   :  { %4827 = vmatpush2.bf16.msra.mxu0 %v8293_v37  ;;  %v525_v37 = vld [vmem:[#allocation7 + $0x978] sm:$0xff]  ;;  %v8128_v30 = vcombine.high %v393_v32, %v397_v34  ;;  %v8127_v56 = vcombine.low %v393_v32, %v397_v34 }
 0x2da   :  { %4828 = vmatprep.subr.bf16.mxu0 %v8286_v12  ;;  %v4977_v12 = vrot.slane %v9812_v38, %v9808_v22  ;;  %v8256_v48 = vcombine.high %v521_v36, %v525_v37  ;;  %v8255_v62 = vcombine.low %v521_v36, %v525_v37  ;;  %v501_v32 = vld [vmem:[#allocation7 + $0x8b8] sm:$0xff] }
 0x2db   :  { %4870 = vmatpush2.bf16.msra.mxu1 %v8039_v39 }
 0x2dc   :  { %4871 = vmatprep.subr.bf16.mxu1 %v8032_v15  ;;  %v8135_v15 = vcombine.low %v401_v18, %v405_v19 }
 0x2dd   :  { %4829 = vmatpush2.bf16.msra.mxu0 %v8285_v59  ;;  %v385_v59 = vld [vmem:[#allocation7 + $0x518] sm:$0xff] }
 0x2de   :  { %4830 = vmatprep.subr.bf16.mxu0 %v8278_v26  ;;  %v517_v26 = vld [vmem:[#allocation7 + $0x938] sm:$0xff]  ;;  %v8120_v4 = vcombine.high %v385_v59, %v389_v49 }
 0x2df   :  { %4872 = vmatpush2.bf16.msra.mxu1 %v8031_v51  ;;  %v513_v51 = vld [vmem:[#allocation7 + $0x918] sm:$0xff] }
 0x2e0   :  { %4873 = vmatprep.subr.bf16.mxu1 %v8024_v58 }
 0x2e1   :  { %4831 = vmatpush2.bf16.msra.mxu0 %v8277_v40  ;;  %v8248_v40 = vcombine.high %v513_v51, %v517_v26 }
 0x2e2   :  { %4886 = vmatprep.subr.bf16.mxu0 %v8144_v60  ;;  %v381_v60 = vld [vmem:[#allocation7 + $0x4f8] sm:$0xff] }
 0x2e3   :  { %4874 = vmatpush2.bf16.msra.mxu1 %v8023_v43  ;;  %v377_v43 = vld [vmem:[#allocation7 + $0x4d8] sm:$0xff] }
 0x2e4   :  { %4929 = vmatprep.subr.bf16.mxu1 %v8272_v16  ;;  %v4576_v52 = vpop.f32.mrf.mxu0  ;;  %4833 = vmatmul.mubr.bf16.vlgmr.msra.gmra.mxu0 %v9814_v33  ;;  %v509_v16 = vld [vmem:[#allocation7 + $0x8f8] sm:$0xff]  ;;  %v8112_v20 = vcombine.high %v377_v43, %v381_v60  ;;  %v8111_v34 = vcombine.low %v377_v43, %v381_v60 }
 0x2e5   :  { %v4577_v39 = vadd.f32 %v4576_v52, %v9794_v8  ;;  %4887 = vmatpush1.bf16.msra.mxu0 %v8143_v23  ;;  %4918 = vmatprep.mubr.bf16.mxu0 %v9778_v61  ;;  %v505_v61 = vld [vmem:[#allocation7 + $0x8d8] sm:$0xff] }
 0x2e6   :  { %4876 = vmatmul.mubr.bf16.vlgmr.msra.gmra.mxu1 %v9785_v53  ;;  %v9821_v41 = vpop.f32.mrf.mxu0  ;;  %4888 = vmatprep.subr.bf16.mxu0 %v8136_v28  ;;  %v8240_v23 = vcombine.high %v505_v61, %v509_v16  ;;  %v373_v28 = vld [vmem:[#allocation7 + $0x4b8] sm:$0xff]  ;;  %v8239_v52 = vcombine.low %v505_v61, %v509_v16 }
 0x2e7   :  { %4930 = vmatpush1.bf16.msra.mxu1 %v8271_v27  ;;  %4961 = vmatprep.mubr.bf16.mxu1 %v9798_v14  ;;  %v5014_v53 = vadd.f32 %v4977_v12, %v4577_v39  ;;  %v8119_v14 = vcombine.low %v385_v59, %v389_v49  ;;  %v369_v27 = vld [vmem:[#allocation7 + $0x498] sm:$0xff] }
 0x2e8   :  { %4931 = vmatprep.subr.bf16.mxu1 %v8264_v29  ;;  %v4580_v8 = vpop.f32.mrf.mxu0  ;;  %v497_v29 = vld [vmem:[#allocation7 + $0x898] sm:$0xff]  ;;  %v8104_v36 = vcombine.high %v369_v27, %v373_v28 }
 0x2e9   :  { %v4581_v58 = vadd.f32 %v4580_v8, %v9803_v25  ;;  %4889 = vmatpush1.bf16.msra.mxu0 %v8135_v15  ;;  %v5030_v18 = vmax.f32 %v5014_v53, 0.0  ;;  %v8247_v25 = vcombine.low %v513_v51, %v517_v26  ;;  %v8232_v37 = vcombine.high %v497_v29, %v501_v32  ;;  %v361_v39 = vld [vmem:[#allocation7 + $0x458] sm:$0xff] }
 0x2ea   :  { %4890 = vmatprep.subr.bf16.mxu0 %v8128_v30  ;;  %v489_v15 = vld [vmem:[#allocation7 + $0x858] sm:$0xff]  ;;  %v8103_v30 = vcombine.low %v369_v27, %v373_v28 }
 0x2eb   :  { %4932 = vmatpush1.bf16.msra.mxu1 %v8263_v45  ;;  %v5022_v7 = vadd.f32 %v4977_v12, %v4581_v58  ;;  %v365_v12 = vld [vmem:[#allocation7 + $0x478] sm:$0xff] }
 0x2ec   :  { %4933 = vmatprep.subr.bf16.mxu1 %v8256_v48  ;;  %v493_v45 = vld [vmem:[#allocation7 + $0x878] sm:$0xff]  ;;  %v8231_v48 = vcombine.low %v497_v29, %v501_v32  ;;  %v8096_v59 = vcombine.high %v361_v39, %v365_v12  ;;  %v8095_v58 = vcombine.low %v361_v39, %v365_v12 }
 0x2ed   :  { %v5034_v19 = vmax.f32 %v5022_v7, 0.0  ;;  %4891 = vmatpush1.bf16.msra.mxu0 %v8127_v56  ;;  %v8224_v49 = vcombine.high %v489_v15, %v493_v45  ;;  %v353_v8 = vld [vmem:[#allocation7 + $0x418] sm:$0xff]  ;;  %v8223_v56 = vcombine.low %v489_v15, %v493_v45 }
 0x2ee   :  { %4892 = vmatprep.subr.bf16.mxu0 %v8120_v4  ;;  %v357_v51 = vld [vmem:[#allocation7 + $0x438] sm:$0xff] }
 0x2ef   :  { %4934 = vmatpush1.bf16.msra.mxu1 %v8255_v62  ;;  %v9826_v21 = vpack.c.bf16 %v5034_v19, %v5030_v18  ;;  %v481_v26 = vld [vmem:[#allocation7 + $0x818] sm:$0xff]  ;;  %v8088_v62 = vcombine.high %v353_v8, %v357_v51  ;;  %v8087_v61 = vcombine.low %v353_v8, %v357_v51 }
 0x2f0   :  { %4935 = vmatprep.subr.bf16.mxu1 %v8248_v40  ;;  %v485_v53 = vld [vmem:[#allocation7 + $0x838] sm:$0xff] }
 0x2f1   :  { %4893 = vmatpush1.bf16.msra.mxu0 %v8119_v14  ;;  %v8216_v4 = vcombine.high %v481_v26, %v485_v53  ;;  %v473_v7 = vld [vmem:[#allocation7 + $0x7d8] sm:$0xff]  ;;  %v8215_v16 = vcombine.low %v481_v26, %v485_v53 }
 0x2f2   :  { %4894 = vmatprep.subr.bf16.mxu0 %v8112_v20  ;;  %v477_v40 = vld [vmem:[#allocation7 + $0x7f8] sm:$0xff] }
 0x2f3   :  { %4936 = vmatpush1.bf16.msra.mxu1 %v8247_v25  ;;  %v601_v43 = vld [vmem:[#allocation7 + $0xbd8] sm:$0xff]  ;;  %v8208_v18 = vcombine.high %v473_v7, %v477_v40  ;;  %v8207_v27 = vcombine.low %v473_v7, %v477_v40 }
 0x2f4   :  { %4937 = vmatprep.subr.bf16.mxu1 %v8240_v23  ;;  %v605_v60 = vld [vmem:[#allocation7 + $0xbf8] sm:$0xff] }
 0x2f5   :  { %4895 = vmatpush1.bf16.msra.mxu0 %v8111_v34  ;;  %v8336_v19 = vcombine.high %v601_v43, %v605_v60  ;;  %v465_v14 = vld [vmem:[#allocation7 + $0x798] sm:$0xff]  ;;  %v8335_v28 = vcombine.low %v601_v43, %v605_v60 }
 0x2f6   :  { %4896 = vmatprep.subr.bf16.mxu0 %v8104_v36  ;;  %v469_v25 = vld [vmem:[#allocation7 + $0x7b8] sm:$0xff] }
 0x2f7   :  { %4938 = vmatpush1.bf16.msra.mxu1 %v8239_v52  ;;  %v593_v20 = vld [vmem:[#allocation7 + $0xb98] sm:$0xff]  ;;  %v8200_v29 = vcombine.high %v465_v14, %v469_v25  ;;  %v8199_v39 = vcombine.low %v465_v14, %v469_v25  ;;  %v2242_v25 = vadd.f32 %v9723_v47, %v9721_v44  ;;  %v4582_v44 = vpop.f32.mrf.mxu0 }
 0x2f8   :  { %4939 = vmatprep.subr.bf16.mxu1 %v8232_v37  ;;  %v597_v23 = vld [vmem:[#allocation7 + $0xbb8] sm:$0xff] }
 0x2f9   :  { %4897 = vmatpush1.bf16.msra.mxu0 %v8103_v30  ;;  %v8328_v32 = vcombine.high %v593_v20, %v597_v23  ;;  %v457_v34 = vld [vmem:[#allocation7 + $0x758] sm:$0xff]  ;;  %v8327_v12 = vcombine.low %v593_v20, %v597_v23 }
 0x2fa   :  { %4898 = vmatprep.subr.bf16.mxu0 %v8096_v59  ;;  %v461_v52 = vld [vmem:[#allocation7 + $0x778] sm:$0xff] }
 0x2fb   :  { %4940 = vmatpush1.bf16.msra.mxu1 %v8231_v48  ;;  %v585_v36 = vld [vmem:[#allocation7 + $0xb58] sm:$0xff]  ;;  %v8192_v15 = vcombine.high %v457_v34, %v461_v52  ;;  %v8191_v8 = vcombine.low %v457_v34, %v461_v52  ;;  %v4493_v52 = vadd.f32 %v9792_v5, %v2242_v25 }
 0x2fc   :  { %4941 = vmatprep.subr.bf16.mxu1 %v8224_v49  ;;  %v589_v37 = vld [vmem:[#allocation7 + $0xb78] sm:$0xff] }
 0x2fd   :  { %4899 = vmatpush1.bf16.msra.mxu0 %v8095_v58  ;;  %v8320_v45 = vcombine.high %v585_v36, %v589_v37  ;;  %v449_v30 = vld [vmem:[#allocation7 + $0x718] sm:$0xff]  ;;  %v8319_v51 = vcombine.low %v585_v36, %v589_v37  ;;  %v4539_v36 = vpop.f32.mrf.mxu1  ;;  %v9835_v37 = vsub.s32 1, %v9805_v11  ;;  %v4536_v5 = vadd.f32 %v9796_v9, %v4493_v52 }
 0x2fe   :  { %4900 = vmatprep.subr.bf16.mxu0 %v8088_v62  ;;  %v453_v48 = vld [vmem:[#allocation7 + $0x738] sm:$0xff] }
 0x2ff   :  { %4942 = vmatpush1.bf16.msra.mxu1 %v8223_v56  ;;  %v577_v59 = vld [vmem:[#allocation7 + $0xb18] sm:$0xff]  ;;  %v8184_v26 = vcombine.high %v449_v30, %v453_v48  ;;  %v8183_v7 = vcombine.low %v449_v30, %v453_v48 }
 0x300   :  { %4943 = vmatprep.subr.bf16.mxu1 %v8216_v4  ;;  %v581_v49 = vld [vmem:[#allocation7 + $0xb38] sm:$0xff] }
 0x301   :  { %4901 = vmatpush1.bf16.msra.mxu0 %v8087_v61  ;;  %v8312_v53 = vcombine.high %v577_v59, %v581_v49  ;;  %v441_v58 = vld [vmem:[#allocation7 + $0x6d8] sm:$0xff]  ;;  %v8311_v40 = vcombine.low %v577_v59, %v581_v49 }
 0x302   :  { %4902 = vmatprep.subr.bf16.mxu0 %v8208_v18  ;;  %v445_v56 = vld [vmem:[#allocation7 + $0x6f8] sm:$0xff]  ;;  %v2246_v18 = vadd.f32 %v9735_v54, %v9733_v50 }
 0x303   :  { %4944 = vmatpush1.bf16.msra.mxu1 %v8215_v16  ;;  %v569_v62 = vld [vmem:[#allocation7 + $0xad8] sm:$0xff]  ;;  %v8176_v43 = vcombine.high %v441_v58, %v445_v56  ;;  %v8175_v20 = vcombine.low %v441_v58, %v445_v56 }
 0x304   :  { %4945 = vmatprep.subr.bf16.mxu1 %v8336_v19  ;;  %v573_v4 = vld [vmem:[#allocation7 + $0xaf8] sm:$0xff]  ;;  %v4497_v23 = vadd.f32 %v9810_v24, %v2246_v18 }
 0x305   :  { %4903 = vmatpush2.bf16.msra.mxu0 %v8207_v27  ;;  %v8304_v60 = vcombine.high %v569_v62, %v573_v4  ;;  %v433_v61 = vld [vmem:[#allocation7 + $0x698] sm:$0xff]  ;;  %v8303_v27 = vcombine.low %v569_v62, %v573_v4 }
 0x306   :  { %4904 = vmatprep.subr.bf16.mxu0 %v8200_v29  ;;  %v437_v16 = vld [vmem:[#allocation7 + $0x6b8] sm:$0xff]  ;;  %v4540_v24 = vadd.f32 %v4539_v36, %v4497_v23  ;;  %v9852_v36 = vsub.s32 3, %v9805_v11 }
 0x307   :  { %4946 = vmatpush2.bf16.msra.mxu1 %v8335_v28  ;;  %v561_v19 = vld [vmem:[#allocation7 + $0xa98] sm:$0xff]  ;;  %v8168_v28 = vcombine.high %v433_v61, %v437_v16  ;;  %v8167_v47 = vcombine.low %v433_v61, %v437_v16 }
 0x308   :  { %4947 = vmatprep.subr.bf16.mxu1 %v8328_v32  ;;  %v565_v14 = vld [vmem:[#allocation7 + $0xab8] sm:$0xff]  ;;  %v4583_v59 = vadd.f32 %v4582_v44, %v4540_v24 }
 0x309   :  { %4905 = vmatpush2.bf16.msra.mxu0 %v8199_v39  ;;  %v8296_v29 = vcombine.high %v561_v19, %v565_v14  ;;  %v425_v32 = vld [vmem:[#allocation7 + $0x658] sm:$0xff]  ;;  %v8295_v39 = vcombine.low %v561_v19, %v565_v14  ;;  %v9842_v14 = vsub.s32 2, %v9805_v11 }
 0x30a   :  { %4906 = vmatprep.subr.bf16.mxu0 %v8192_v15  ;;  %v429_v34 = vld [vmem:[#allocation7 + $0x678] sm:$0xff]  ;;  %v4619_v15 = vpop.f32.mrf.mxu1 }
 0x30b   :  { %4948 = vmatpush2.bf16.msra.mxu1 %v8327_v12  ;;  %v553_v50 = vld [vmem:[#allocation7 + $0xa58] sm:$0xff]  ;;  %v8160_v12 = vcombine.high %v425_v32, %v429_v34  ;;  %v4620_v23 = vadd.f32 %v4619_v15, %v9741_v2  ;;  %v2332_v2 = vadd.f32 %v9755_v35, %v9753_v31  ;;  %v4989_v35 = vrot.slane %v9812_v38, %v9852_v36 }
 0x30c   :  { %4949 = vmatprep.subr.bf16.mxu1 %v8320_v45  ;;  %v557_v54 = vld [vmem:[#allocation7 + $0xa78] sm:$0xff]  ;;  %v4621_v62 = vpop.f32.mrf.mxu1 }
 0x30d   :  { %4907 = vmatpush2.bf16.msra.mxu0 %v8191_v8  ;;  %v8288_v45 = vcombine.high %v553_v50, %v557_v54  ;;  %v417_v30 = vld [vmem:[#allocation7 + $0x618] sm:$0xff]  ;;  %v8287_v58 = vcombine.low %v553_v50, %v557_v54 }
 0x30e   :  { %4908 = vmatprep.subr.bf16.mxu0 %v8184_v26  ;;  %v421_v48 = vld [vmem:[#allocation7 + $0x638] sm:$0xff]  ;;  %v8159_v26 = vcombine.low %v425_v32, %v429_v34  ;;  %v4623_v61 = vpop.f32.mrf.mxu1 }
 0x30f   :  { %4950 = vmatpush2.bf16.msra.mxu1 %v8319_v51  ;;  %v545_v49 = vld [vmem:[#allocation7 + $0xa18] sm:$0xff]  ;;  %v4981_v51 = vrot.slane %v9812_v38, %v9835_v37  ;;  %v8152_v56 = vcombine.high %v417_v30, %v421_v48  ;;  %v8151_v9 = vcombine.low %v417_v30, %v421_v48  ;;  %v4624_v24 = vadd.f32 %v4623_v61, %v9749_v17 }
 0x310   :  { %4951 = vmatprep.subr.bf16.mxu1 %v8312_v53  ;;  %v549_v8 = vld [vmem:[#allocation7 + $0xa38] sm:$0xff]  ;;  %v4579_v53 = vadd.f32 %v9821_v41, %v4536_v5 }
 0x311   :  { %4909 = vmatpush2.bf16.msra.mxu0 %v8183_v7  ;;  %v8280_v4 = vcombine.high %v545_v49, %v549_v8  ;;  %v5023_v7 = vadd.f32 %v4981_v51, %v4583_v59  ;;  %v8740_v16 = vld [vmem:[#allocation11 + $0x2e4] ss:$16 sps:$4 sm:$0xff]   ;;  %v8735_v41 = vld [vmem:[#allocation11 + $0xe0] ss:$16 sps:$4 sm:$0xff]  }
 0x312   :  { %4910 = vmatprep.subr.bf16.mxu0 %v8176_v43  ;;  %v8279_v43 = vcombine.low %v545_v49, %v549_v8  ;;  %v8738_v25 = vld [vmem:[#allocation11 + $0x2e0] ss:$16 sps:$4 sm:$0xff]   ;;  %v8752_v15 = vld [vmem:[#allocation11 + $0x2a4] ss:$16 sps:$4 sm:$0xff]  }
 0x313   :  { %4952 = vmatpush2.bf16.msra.mxu1 %v8311_v40  ;;  %v5015_v40 = vadd.f32 %v4981_v51, %v4579_v53  ;;  %v5035_v18 = vmax.f32 %v5023_v7, 0.0  ;;  %v8744_v44 = vld [vmem:[#allocation11 + $0x2c0] ss:$16 sps:$4 sm:$0xff]   ;;  %v8755_v8 = vld [vmem:[#allocation11 + $0x84] ss:$16 sps:$4 sm:$0xff]  }
 0x314   :  { %4953 = vmatprep.subr.bf16.mxu1 %v8304_v60  ;;  %v8737_v60 = vld [vmem:[#allocation11 + $0xe4] ss:$16 sps:$4 sm:$0xff]   ;;  %v8747_v59 = vld [vmem:[#allocation11 + $0xa0] ss:$16 sps:$4 sm:$0xff]  }
 0x315   :  { %4911 = vmatpush2.bf16.msra.mxu0 %v8175_v20  ;;  %v5031_v19 = vmax.f32 %v5015_v40, 0.0  ;;  %v2328_v20 = vadd.f32 %v9745_v6, %v9743_v3  ;;  %v8741_v3 = vld [vmem:[#allocation11 + $0xc0] ss:$16 sps:$4 sm:$0xff]   ;;  %v4985_v6 = vrot.slane %v9812_v38, %v9842_v14  ;;  %v8761_v40 = vld [vmem:[#allocation11 + $0x64] ss:$16 sps:$4 sm:$0xff]  }
 0x316   :  { %4912 = vmatprep.subr.bf16.mxu0 %v8168_v28  ;;  %v8743_v28 = vld [vmem:[#allocation11 + $0xc4] ss:$16 sps:$4 sm:$0xff]   ;;  %v8750_v17 = vld [vmem:[#allocation11 + $0x2a0] ss:$16 sps:$4 sm:$0xff]  }
 0x317   :  { %4954 = vmatpush2.bf16.msra.mxu1 %v8303_v27  ;;  %v4625_v27 = vpop.f32.mrf.mxu1  ;;  %v9848_v34 = vpack.c.bf16 %v5035_v18, %v5031_v19  ;;  %v4622_v52 = vadd.f32 %v4621_v62, %v2328_v20  ;;  %v8753_v38 = vld [vmem:[#allocation11 + $0x80] ss:$16 sps:$4 sm:$0xff]  }
 0x318   :  { %4955 = vmatprep.subr.bf16.mxu1 %v8296_v29  ;;  %v8746_v29 = vld [vmem:[#allocation11 + $0x2c4] ss:$16 sps:$4 sm:$0xff]   ;;  %v4626_v30 = vadd.f32 %v4625_v27, %v2332_v2  ;;  %v8762_v20 = vld [vmem:[#allocation11 + $0x260] ss:$16 sps:$4 sm:$0xff]  }
 0x319   :  { %4913 = vmatpush2.bf16.msra.mxu0 %v8167_v47  ;;  %v8749_v47 = vld [vmem:[#allocation11 + $0xa4] ss:$16 sps:$4 sm:$0xff]  }
 0x31a   :  { %4914 = vmatprep.subr.bf16.mxu0 %v8160_v12  ;;  %v8779_v2 = vld [vmem:[#allocation11 + $0x4] ss:$16 sps:$4 sm:$0xff]  }
 0x31b   :  { %4956 = vmatpush2.bf16.msra.mxu1 %v8295_v39 }
 0x31c   :  { %4957 = vmatprep.subr.bf16.mxu1 %v8288_v45 }
 0x31d   :  { %4915 = vmatpush2.bf16.msra.mxu0 %v8159_v26 }
 0x31e   :  { %4916 = vmatprep.subr.bf16.mxu0 %v8152_v56 }
 0x31f   :  { %4958 = vmatpush2.bf16.msra.mxu1 %v8287_v58  ;;  %v8758_v58 = vld [vmem:[#allocation11 + $0x284] ss:$16 sps:$4 sm:$0xff]  }
 0x320   :  { %4959 = vmatprep.subr.bf16.mxu1 %v8280_v4 }
 0x321   :  { %4917 = vmatpush2.bf16.msra.mxu0 %v8151_v9  ;;  %v8756_v9 = vld [vmem:[#allocation11 + $0x280] ss:$16 sps:$4 sm:$0xff]  }
 0x322   :  { %5832 = vmatprep.subr.bf16.mxu0 %v8737_v60 }
 0x323   :  { %4960 = vmatpush2.bf16.msra.mxu1 %v8279_v43 }
 0x324   :  { %5875 = vmatprep.subr.bf16.mxu1 %v8740_v16  ;;  %v4662_v32 = vpop.f32.mrf.mxu0  ;;  %4919 = vmatmul.mubr.bf16.vlgmr.msra.gmra.mxu0 %v9789_v63  ;;  %v8764_v16 = vld [vmem:[#allocation11 + $0x264] ss:$16 sps:$4 sm:$0xff]  }
 0x325   :  { %v4663_v50 = vadd.f32 %v4662_v32, %v4620_v23  ;;  %5833 = vmatpush1.bf16.msra.mxu0 %v8735_v41  ;;  %5864 = vmatprep.mubr.bf16.mxu0 %v9848_v34  ;;  %v8767_v23 = vld [vmem:[#allocation11 + $0x44] ss:$16 sps:$4 sm:$0xff]   ;;  %v8768_v32 = vld [vmem:[#allocation11 + $0x240] ss:$16 sps:$4 sm:$0xff]  }
 0x326   :  { %v4705_v54 = vpop.f32.mrf.mxu1  ;;  %4962 = vmatmul.mubr.bf16.vlgmr.msra.gmra.mxu1 %v9814_v33  ;;  %v4664_v63 = vpop.f32.mrf.mxu0  ;;  %5834 = vmatprep.subr.bf16.mxu0 %v8743_v28  ;;  %v8770_v28 = vld [vmem:[#allocation11 + $0x244] ss:$16 sps:$4 sm:$0xff]  }
 0x327   :  { %5876 = vmatpush1.bf16.msra.mxu1 %v8738_v25  ;;  %v4706_v33 = vadd.f32 %v4705_v54, %v4663_v50  ;;  %v4665_v39 = vadd.f32 %v4664_v63, %v4622_v52  ;;  %v8759_v25 = vld [vmem:[#allocation11 + $0x60] ss:$16 sps:$4 sm:$0xff]   ;;  %v8773_v52 = vld [vmem:[#allocation11 + $0x24] ss:$16 sps:$4 sm:$0xff]  }
 0x328   :  { %v4707_v12 = vpop.f32.mrf.mxu1  ;;  %5877 = vmatprep.subr.bf16.mxu1 %v8746_v29  ;;  %v4666_v45 = vpop.f32.mrf.mxu0  ;;  %v8765_v29 = vld [vmem:[#allocation11 + $0x40] ss:$16 sps:$4 sm:$0xff]   ;;  %v8776_v50 = vld [vmem:[#allocation11 + $0x224] ss:$16 sps:$4 sm:$0xff]  }
 0x329   :  { %v4708_v31 = vadd.f32 %v4707_v12, %v4665_v39  ;;  %v4667_v48 = vadd.f32 %v4666_v45, %v4624_v24  ;;  %5835 = vmatpush1.bf16.msra.mxu0 %v8741_v3  ;;  %v5016_v51 = vadd.f32 %v4985_v6, %v4706_v33  ;;  %v8771_v54 = vld [vmem:[#allocation11 + $0x20] ss:$16 sps:$4 sm:$0xff]   ;;  %v8788_v24 = vld [vmem:[#allocation11 + $0x3e4] ss:$16 sps:$4 sm:$0xff]  }
 0x32a   :  { %v4709_v5 = vpop.f32.mrf.mxu1  ;;  %v4668_v49 = vpop.f32.mrf.mxu0  ;;  %5836 = vmatprep.subr.bf16.mxu0 %v8749_v47  ;;  %v8774_v3 = vld [vmem:[#allocation11 + $0x220] ss:$16 sps:$4 sm:$0xff]   ;;  %v8785_v47 = vld [vmem:[#allocation11 + $0x1e4] ss:$16 sps:$4 sm:$0xff]  }
 0x32b   :  { %5878 = vmatpush1.bf16.msra.mxu1 %v8744_v44  ;;  %v4710_v26 = vadd.f32 %v4709_v5, %v4667_v48  ;;  %v4669_v53 = vadd.f32 %v4668_v49, %v4626_v30  ;;  %v5017_v62 = vadd.f32 %v4989_v35, %v4708_v31  ;;  %v5032_v43 = vmax.f32 %v5016_v51, 0.0  ;;  %v8777_v63 = vld [vmem:[#allocation11] ss:$16 sps:$4 sm:$0xff]   ;;  %v8791_v12 = vld [vmem:[#allocation11 + $0x1c4] ss:$16 sps:$4 sm:$0xff]  }
 0x32c   :  { %5879 = vmatprep.subr.bf16.mxu1 %v8752_v15  ;;  %v4711_v56 = vpop.f32.mrf.mxu1  ;;  %v8780_v44 = vld [vmem:[#allocation11 + $0x200] ss:$16 sps:$4 sm:$0xff]   ;;  %v8794_v15 = vld [vmem:[#allocation11 + $0x3c4] ss:$16 sps:$4 sm:$0xff]  }
 0x32d   :  { %v5024_v4 = vadd.f32 %v4985_v6, %v4710_v26  ;;  %v4712_v7 = vadd.f32 %v4711_v56, %v4669_v53  ;;  %5837 = vmatpush1.bf16.msra.mxu0 %v8747_v59  ;;  %v5033_v18 = vmax.f32 %v5017_v62, 0.0  ;;  %v8782_v6 = vld [vmem:[#allocation11 + $0x204] ss:$16 sps:$4 sm:$0xff]   ;;  %v8783_v33 = vld [vmem:[#allocation11 + $0x1e0] ss:$16 sps:$4 sm:$0xff]  }
 0x32e   :  { %5838 = vmatprep.subr.bf16.mxu0 %v8755_v8  ;;  %v8786_v39 = vld [vmem:[#allocation11 + $0x3e0] ss:$16 sps:$4 sm:$0xff]   ;;  %v8797_v31 = vld [vmem:[#allocation11 + $0x1a4] ss:$16 sps:$4 sm:$0xff]  }
 0x32f   :  { %5880 = vmatpush1.bf16.msra.mxu1 %v8750_v17  ;;  %v5036_v60 = vmax.f32 %v5024_v4, 0.0  ;;  %v5025_v61 = vadd.f32 %v4989_v35, %v4712_v7  ;;  %v8789_v45 = vld [vmem:[#allocation11 + $0x1c0] ss:$16 sps:$4 sm:$0xff]   ;;  %v8800_v35 = vld [vmem:[#allocation11 + $0x3a4] ss:$16 sps:$4 sm:$0xff]  }
 0x330   :  { %5881 = vmatprep.subr.bf16.mxu1 %v8758_v58  ;;  %v8792_v30 = vld [vmem:[#allocation11 + $0x3c0] ss:$16 sps:$4 sm:$0xff]   ;;  %v8803_v59 = vld [vmem:[#allocation11 + $0x184] ss:$16 sps:$4 sm:$0xff]  }
 0x331   :  { %v9862_v41 = vpack.c.bf16 %v5036_v60, %v5032_v43  ;;  %v5037_v19 = vmax.f32 %v5025_v61, 0.0  ;;  %5839 = vmatpush1.bf16.msra.mxu0 %v8753_v38  ;;  %v8795_v48 = vld [vmem:[#allocation11 + $0x1a0] ss:$16 sps:$4 sm:$0xff]   ;;  %v8806_v49 = vld [vmem:[#allocation11 + $0x384] ss:$16 sps:$4 sm:$0xff]  }
 0x332   :  { %5840 = vmatprep.subr.bf16.mxu0 %v8761_v40  ;;  %v8798_v5 = vld [vmem:[#allocation11 + $0x3a0] ss:$16 sps:$4 sm:$0xff]   ;;  %v8809_v51 = vld [vmem:[#allocation11 + $0x164] ss:$16 sps:$4 sm:$0xff]  }
 0x333   :  { %5882 = vmatpush1.bf16.msra.mxu1 %v8756_v9  ;;  %v9864_v27 = vpack.c.bf16 %v5037_v19, %v5033_v18  ;;  %v8801_v17 = vld [vmem:[#allocation11 + $0x180] ss:$16 sps:$4 sm:$0xff]   ;;  %v8812_v26 = vld [vmem:[#allocation11 + $0x364] ss:$16 sps:$4 sm:$0xff]   ;;  %v8833_v19 = vld [vmem:[#allocation11 + $0xec] ss:$16 sps:$4 sm:$0xff]  }
 0x334   :  { %5883 = vmatprep.subr.bf16.mxu1 %v8764_v16  ;;  %v8804_v8 = vld [vmem:[#allocation11 + $0x380] ss:$16 sps:$4 sm:$0xff]   ;;  %v8815_v56 = vld [vmem:[#allocation11 + $0x144] ss:$16 sps:$4 sm:$0xff]  }
 0x335   :  { %5841 = vmatpush1.bf16.msra.mxu0 %v8759_v25  ;;  %5907 = vmatprep.mubr.bf16.mxu1 %v9864_v27  ;;  %v8807_v53 = vld [vmem:[#allocation11 + $0x160] ss:$16 sps:$4 sm:$0xff]   ;;  %v8818_v62 = vld [vmem:[#allocation11 + $0x344] ss:$16 sps:$4 sm:$0xff]   ;;  %v8836_v25 = vld [vmem:[#allocation11 + $0x2ec] ss:$16 sps:$4 sm:$0xff]  }
 0x336   :  { %5842 = vmatprep.subr.bf16.mxu0 %v8767_v23  ;;  %v8810_v58 = vld [vmem:[#allocation11 + $0x360] ss:$16 sps:$4 sm:$0xff]   ;;  %v8821_v38 = vld [vmem:[#allocation11 + $0x124] ss:$16 sps:$4 sm:$0xff]   ;;  %v8834_v23 = vld [vmem:[#allocation11 + $0x2e8] ss:$16 sps:$4 sm:$0xff]  }
 0x337   :  { %5884 = vmatpush1.bf16.msra.mxu1 %v8762_v20  ;;  %v8813_v4 = vld [vmem:[#allocation11 + $0x140] ss:$16 sps:$4 sm:$0xff]   ;;  %v8824_v9 = vld [vmem:[#allocation11 + $0x324] ss:$16 sps:$4 sm:$0xff]   ;;  %v8831_v20 = vld [vmem:[#allocation11 + $0xe8] ss:$16 sps:$4 sm:$0xff]  }
 0x338   :  { %5885 = vmatprep.subr.bf16.mxu1 %v8770_v28  ;;  %v8816_v7 = vld [vmem:[#allocation11 + $0x340] ss:$16 sps:$4 sm:$0xff]   ;;  %v8827_v60 = vld [vmem:[#allocation11 + $0x104] ss:$16 sps:$4 sm:$0xff]   ;;  %v8839_v28 = vld [vmem:[#allocation11 + $0xcc] ss:$16 sps:$4 sm:$0xff]  }
 0x339   :  { %5843 = vmatpush1.bf16.msra.mxu0 %v8765_v29  ;;  %v8819_v40 = vld [vmem:[#allocation11 + $0x120] ss:$16 sps:$4 sm:$0xff]   ;;  %v8830_v61 = vld [vmem:[#allocation11 + $0x304] ss:$16 sps:$4 sm:$0xff]  }
 0x33a   :  { %5844 = vmatprep.subr.bf16.mxu0 %v8773_v52  ;;  %v8822_v43 = vld [vmem:[#allocation11 + $0x320] ss:$16 sps:$4 sm:$0xff]  }
 0x33b   :  { %5886 = vmatpush1.bf16.msra.mxu1 %v8768_v32  ;;  %v8825_v16 = vld [vmem:[#allocation11 + $0x100] ss:$16 sps:$4 sm:$0xff]   ;;  %v8842_v32 = vld [vmem:[#allocation11 + $0x2cc] ss:$16 sps:$4 sm:$0xff]  }
 0x33c   :  { %5887 = vmatprep.subr.bf16.mxu1 %v8776_v50  ;;  %v8828_v18 = vld [vmem:[#allocation11 + $0x300] ss:$16 sps:$4 sm:$0xff]  }
 0x33d   :  { %5845 = vmatpush1.bf16.msra.mxu0 %v8771_v54  ;;  %v8837_v54 = vld [vmem:[#allocation11 + $0xc8] ss:$16 sps:$4 sm:$0xff]  }
 0x33e   :  { %5846 = vmatprep.subr.bf16.mxu0 %v8779_v2  ;;  %v8840_v2 = vld [vmem:[#allocation11 + $0x2c8] ss:$16 sps:$4 sm:$0xff]  }
 0x33f   :  { %5888 = vmatpush1.bf16.msra.mxu1 %v8774_v3 }
 0x340   :  { %5889 = vmatprep.subr.bf16.mxu1 %v8782_v6  ;;  %v8845_v6 = vld [vmem:[#allocation11 + $0xac] ss:$16 sps:$4 sm:$0xff]  }
 0x341   :  { %5847 = vmatpush1.bf16.msra.mxu0 %v8777_v63 }
 0x342   :  { %5848 = vmatprep.subr.bf16.mxu0 %v8785_v47 }
 0x343   :  { %5890 = vmatpush1.bf16.msra.mxu1 %v8780_v44 }
 0x344   :  { %5891 = vmatprep.subr.bf16.mxu1 %v8788_v24 }
 0x345   :  { %5849 = vmatpush2.bf16.msra.mxu0 %v8783_v33 }
 0x346   :  { %5850 = vmatprep.subr.bf16.mxu0 %v8791_v12  ;;  %v8843_v12 = vld [vmem:[#allocation11 + $0xa8] ss:$16 sps:$4 sm:$0xff]  }
 0x347   :  { %5892 = vmatpush2.bf16.msra.mxu1 %v8786_v39 }
 0x348   :  { %5893 = vmatprep.subr.bf16.mxu1 %v8794_v15 }
 0x349   :  { %5851 = vmatpush2.bf16.msra.mxu0 %v8789_v45  ;;  %v8846_v45 = vld [vmem:[#allocation11 + $0x2a8] ss:$16 sps:$4 sm:$0xff]  }
 0x34a   :  { %5852 = vmatprep.subr.bf16.mxu0 %v8797_v31  ;;  %v8854_v31 = vld [vmem:[#allocation11 + $0x28c] ss:$16 sps:$4 sm:$0xff]  }
 0x34b   :  { %5894 = vmatpush2.bf16.msra.mxu1 %v8792_v30  ;;  %v8851_v30 = vld [vmem:[#allocation11 + $0x8c] ss:$16 sps:$4 sm:$0xff]  }
 0x34c   :  { %5895 = vmatprep.subr.bf16.mxu1 %v8800_v35 }
 0x34d   :  { %5853 = vmatpush2.bf16.msra.mxu0 %v8795_v48 }
 0x34e   :  { %5854 = vmatprep.subr.bf16.mxu0 %v8803_v59  ;;  %v8857_v59 = vld [vmem:[#allocation11 + $0x6c] ss:$16 sps:$4 sm:$0xff]  }
 0x34f   :  { %5896 = vmatpush2.bf16.msra.mxu1 %v8798_v5  ;;  %v8849_v5 = vld [vmem:[#allocation11 + $0x88] ss:$16 sps:$4 sm:$0xff]  }
 0x350   :  { %5897 = vmatprep.subr.bf16.mxu1 %v8806_v49  ;;  %v8860_v49 = vld [vmem:[#allocation11 + $0x26c] ss:$16 sps:$4 sm:$0xff]  }
 0x351   :  { %5855 = vmatpush2.bf16.msra.mxu0 %v8801_v17  ;;  %v8855_v17 = vld [vmem:[#allocation11 + $0x68] ss:$16 sps:$4 sm:$0xff]  }
 0x352   :  { %5856 = vmatprep.subr.bf16.mxu0 %v8809_v51  ;;  %v8863_v51 = vld [vmem:[#allocation11 + $0x4c] ss:$16 sps:$4 sm:$0xff]  }
 0x353   :  { %5898 = vmatpush2.bf16.msra.mxu1 %v8804_v8  ;;  %v8858_v8 = vld [vmem:[#allocation11 + $0x268] ss:$16 sps:$4 sm:$0xff]  }
 0x354   :  { %5899 = vmatprep.subr.bf16.mxu1 %v8812_v26  ;;  %v8861_v26 = vld [vmem:[#allocation11 + $0x48] ss:$16 sps:$4 sm:$0xff]  }
 0x355   :  { %5857 = vmatpush2.bf16.msra.mxu0 %v8807_v53  ;;  %v8864_v53 = vld [vmem:[#allocation11 + $0x248] ss:$16 sps:$4 sm:$0xff]  }
 0x356   :  { %5858 = vmatprep.subr.bf16.mxu0 %v8815_v56  ;;  %v8872_v56 = vld [vmem:[#allocation11 + $0x22c] ss:$16 sps:$4 sm:$0xff]  }
 0x357   :  { %5900 = vmatpush2.bf16.msra.mxu1 %v8810_v58  ;;  %v8869_v58 = vld [vmem:[#allocation11 + $0x2c] ss:$16 sps:$4 sm:$0xff]  }
 0x358   :  { %5901 = vmatprep.subr.bf16.mxu1 %v8818_v62  ;;  %v8867_v62 = vld [vmem:[#allocation11 + $0x28] ss:$16 sps:$4 sm:$0xff]  }
 0x359   :  { %5859 = vmatpush2.bf16.msra.mxu0 %v8813_v4  ;;  %v8870_v4 = vld [vmem:[#allocation11 + $0x228] ss:$16 sps:$4 sm:$0xff]  }
 0x35a   :  { %5860 = vmatprep.subr.bf16.mxu0 %v8821_v38  ;;  %v8878_v38 = vld [vmem:[#allocation11 + $0x20c] ss:$16 sps:$4 sm:$0xff]  }
 0x35b   :  { %5902 = vmatpush2.bf16.msra.mxu1 %v8816_v7  ;;  %v8875_v7 = vld [vmem:[#allocation11 + $0xc] ss:$16 sps:$4 sm:$0xff]  }
 0x35c   :  { %5903 = vmatprep.subr.bf16.mxu1 %v8824_v9  ;;  %v8873_v9 = vld [vmem:[#allocation11 + $0x8] ss:$16 sps:$4 sm:$0xff]  }
 0x35d   :  { %5861 = vmatpush2.bf16.msra.mxu0 %v8819_v40  ;;  %v8876_v40 = vld [vmem:[#allocation11 + $0x208] ss:$16 sps:$4 sm:$0xff]  }
 0x35e   :  { %5862 = vmatprep.subr.bf16.mxu0 %v8827_v60  ;;  %v8884_v60 = vld [vmem:[#allocation11 + $0x3ec] ss:$16 sps:$4 sm:$0xff]  }
 0x35f   :  { %5904 = vmatpush2.bf16.msra.mxu1 %v8822_v43  ;;  %v8881_v43 = vld [vmem:[#allocation11 + $0x1ec] ss:$16 sps:$4 sm:$0xff]  }
 0x360   :  { %5905 = vmatprep.subr.bf16.mxu1 %v8830_v61  ;;  %v8879_v61 = vld [vmem:[#allocation11 + $0x1e8] ss:$16 sps:$4 sm:$0xff]  }
 0x361   :  { %5863 = vmatpush2.bf16.msra.mxu0 %v8825_v16  ;;  %v8882_v16 = vld [vmem:[#allocation11 + $0x3e8] ss:$16 sps:$4 sm:$0xff]  }
 0x362   :  { %5918 = vmatprep.subr.bf16.mxu0 %v8833_v19  ;;  %v8890_v19 = vld [vmem:[#allocation11 + $0x3cc] ss:$16 sps:$4 sm:$0xff]  }
 0x363   :  { %5906 = vmatpush2.bf16.msra.mxu1 %v8828_v18  ;;  %v8887_v18 = vld [vmem:[#allocation11 + $0x1cc] ss:$16 sps:$4 sm:$0xff]  }
 0x364   :  { %5961 = vmatprep.subr.bf16.mxu1 %v8836_v25  ;;  %v4748_v29 = vpop.f32.mrf.mxu0  ;;  %5865 = vmatmul.mubr.bf16.vlgmr.msra.gmra.mxu0 %v9826_v21  ;;  %v8885_v25 = vld [vmem:[#allocation11 + $0x1c8] ss:$16 sps:$4 sm:$0xff]  }
 0x365   :  { %v4749_v52 = vadd.f32 %v4748_v29, %v9759_v46  ;;  %5919 = vmatpush1.bf16.msra.mxu0 %v8831_v20  ;;  %5950 = vmatprep.mubr.bf16.mxu0 %v9848_v34  ;;  %v8848_v46 = vld [vmem:[#allocation11 + $0x2ac] ss:$16 sps:$4 sm:$0xff]   ;;  %v8888_v20 = vld [vmem:[#allocation11 + $0x3c8] ss:$16 sps:$4 sm:$0xff]  }
 0x366   :  { %v4791_v50 = vpop.f32.mrf.mxu1  ;;  %5908 = vmatmul.mubr.bf16.vlgmr.msra.gmra.mxu1 %v9862_v41  ;;  %v4750_v3 = vpop.f32.mrf.mxu0  ;;  %5920 = vmatprep.subr.bf16.mxu0 %v8839_v28  ;;  %v8896_v28 = vld [vmem:[#allocation11 + $0x3ac] ss:$16 sps:$4 sm:$0xff]   ;;  %v8891_v29 = vld [vmem:[#allocation11 + $0x1a8] ss:$16 sps:$4 sm:$0xff]  }
 0x367   :  { %5962 = vmatpush1.bf16.msra.mxu1 %v8834_v23  ;;  %v9871_v63 = vadd.f32 %v4791_v50, %v4749_v52  ;;  %5993 = vmatprep.mubr.bf16.mxu1 %v9864_v27  ;;  %v4751_v44 = vadd.f32 %v4750_v3, %v9762_v57  ;;  %v8893_v23 = vld [vmem:[#allocation11 + $0x1ac] ss:$16 sps:$4 sm:$0xff]   ;;  %v8900_v3 = vld [vmem:[#allocation11 + $0x388] ss:$16 sps:$4 sm:$0xff]  }
 0x368   :  { %v4793_v47 = vpop.f32.mrf.mxu1  ;;  %v4752_v24 = vpop.f32.mrf.mxu0  ;;  %5963 = vmatprep.subr.bf16.mxu1 %v8842_v32  ;;  %v8894_v32 = vld [vmem:[#allocation11 + $0x3a8] ss:$16 sps:$4 sm:$0xff]   ;;  %v8899_v52 = vld [vmem:[#allocation11 + $0x18c] ss:$16 sps:$4 sm:$0xff]  }
 0x369   :  { %v9875_v33 = vadd.f32 %v4793_v47, %v4751_v44  ;;  %v4753_v39 = vadd.f32 %v4752_v24, %v9765_v0  ;;  %5921 = vmatpush1.bf16.msra.mxu0 %v8837_v54  ;;  %v8852_v0 = vld [vmem:[#allocation11 + $0x288] ss:$16 sps:$4 sm:$0xff]   ;;  %v8902_v50 = vld [vmem:[#allocation11 + $0x38c] ss:$16 sps:$4 sm:$0xff]  }
 0x36a   :  { %v4795_v34 = vpop.f32.mrf.mxu1  ;;  %v4754_v15 = vpop.f32.mrf.mxu0  ;;  %5922 = vmatprep.subr.bf16.mxu0 %v8845_v6  ;;  %v8897_v54 = vld [vmem:[#allocation11 + $0x188] ss:$16 sps:$4 sm:$0xff]   ;;  %v8908_v6 = vld [vmem:[#allocation11 + $0x36c] ss:$16 sps:$4 sm:$0xff]  }
 0x36b   :  { %5964 = vmatpush1.bf16.msra.mxu1 %v8840_v2  ;;  %v9878_v27 = vadd.f32 %v4795_v34, %v4753_v39  ;;  %v4755_v57 = vadd.f32 %v4754_v15, %v9767_v10  ;;  %v8866_v10 = vld [vmem:[#allocation11 + $0x24c] ss:$16 sps:$4 sm:$0xff]   ;;  %v8903_v44 = vld [vmem:[#allocation11 + $0x168] ss:$16 sps:$4 sm:$0xff]  }
 0x36c   :  { %5965 = vmatprep.subr.bf16.mxu1 %v8848_v46  ;;  %v4797_v35 = vpop.f32.mrf.mxu1  ;;  %v8905_v2 = vld [vmem:[#allocation11 + $0x16c] ss:$16 sps:$4 sm:$0xff]   ;;  %v8906_v47 = vld [vmem:[#allocation11 + $0x368] ss:$16 sps:$4 sm:$0xff]  }
 0x36d   :  { %v9881_v48 = vadd.f32 %v4797_v35, %v4755_v57  ;;  %5923 = vmatpush1.bf16.msra.mxu0 %v8843_v12  ;;  %v8911_v46 = vld [vmem:[#allocation11 + $0x14c] ss:$16 sps:$4 sm:$0xff]   ;;  %v8909_v39 = vld [vmem:[#allocation11 + $0x148] ss:$16 sps:$4 sm:$0xff]  }
 0x36e   :  { %5924 = vmatprep.subr.bf16.mxu0 %v8851_v30  ;;  %v8914_v24 = vld [vmem:[#allocation11 + $0x34c] ss:$16 sps:$4 sm:$0xff]   ;;  %v8912_v34 = vld [vmem:[#allocation11 + $0x348] ss:$16 sps:$4 sm:$0xff]  }
 0x36f   :  { %5966 = vmatpush1.bf16.msra.mxu1 %v8846_v45  ;;  %v8917_v12 = vld [vmem:[#allocation11 + $0x12c] ss:$16 sps:$4 sm:$0xff]   ;;  %v8915_v45 = vld [vmem:[#allocation11 + $0x128] ss:$16 sps:$4 sm:$0xff]  }
 0x370   :  { %5967 = vmatprep.subr.bf16.mxu1 %v8854_v31  ;;  %v8920_v15 = vld [vmem:[#allocation11 + $0x32c] ss:$16 sps:$4 sm:$0xff]   ;;  %v8918_v30 = vld [vmem:[#allocation11 + $0x328] ss:$16 sps:$4 sm:$0xff]  }
 0x371   :  { %5925 = vmatpush1.bf16.msra.mxu0 %v8849_v5  ;;  %v8923_v57 = vld [vmem:[#allocation11 + $0x10c] ss:$16 sps:$4 sm:$0xff]   ;;  %v8921_v35 = vld [vmem:[#allocation11 + $0x108] ss:$16 sps:$4 sm:$0xff]  }
 0x372   :  { %5926 = vmatprep.subr.bf16.mxu0 %v8857_v59  ;;  %v8926_v31 = vld [vmem:[#allocation11 + $0x30c] ss:$16 sps:$4 sm:$0xff]   ;;  %v8924_v5 = vld [vmem:[#allocation11 + $0x308] ss:$16 sps:$4 sm:$0xff]   ;;  %v8927_v59 = vld [vmem:[#allocation14 + $0xe0] ss:$16 sps:$4 sm:$0xff]  }
 0x373   :  { %5968 = vmatpush1.bf16.msra.mxu1 %v8852_v0  ;;  %v8929_v0 = vld [vmem:[#allocation14 + $0xe4] ss:$16 sps:$4 sm:$0xff]  }
 0x374   :  { %5969 = vmatprep.subr.bf16.mxu1 %v8860_v49  ;;  %v8932_v49 = vld [vmem:[#allocation14 + $0xc4] ss:$16 sps:$4 sm:$0xff]  }
 0x375   :  { %5927 = vmatpush1.bf16.msra.mxu0 %v8855_v17 }
 0x376   :  { %5928 = vmatprep.subr.bf16.mxu0 %v8863_v51 }
 0x377   :  { %5970 = vmatpush1.bf16.msra.mxu1 %v8858_v8 }
 0x378   :  { %5971 = vmatprep.subr.bf16.mxu1 %v8866_v10  ;;  %v8930_v10 = vld [vmem:[#allocation14 + $0xc0] ss:$16 sps:$4 sm:$0xff]  }
 0x379   :  { %5929 = vmatpush1.bf16.msra.mxu0 %v8861_v26 }
 0x37a   :  { %5930 = vmatprep.subr.bf16.mxu0 %v8869_v58  ;;  %v8935_v58 = vld [vmem:[#allocation14 + $0xa4] ss:$16 sps:$4 sm:$0xff]  }
 0x37b   :  { %5972 = vmatpush1.bf16.msra.mxu1 %v8864_v53 }
 0x37c   :  { %5973 = vmatprep.subr.bf16.mxu1 %v8872_v56 }
 0x37d   :  { %5931 = vmatpush1.bf16.msra.mxu0 %v8867_v62 }
 0x37e   :  { %5932 = vmatprep.subr.bf16.mxu0 %v8875_v7  ;;  %v8933_v7 = vld [vmem:[#allocation14 + $0xa0] ss:$16 sps:$4 sm:$0xff]  }
 0x37f   :  { %5974 = vmatpush1.bf16.msra.mxu1 %v8870_v4 }
 0x380   :  { %5975 = vmatprep.subr.bf16.mxu1 %v8878_v38 }
 0x381   :  { %5933 = vmatpush1.bf16.msra.mxu0 %v8873_v9  ;;  %v8938_v9 = vld [vmem:[#allocation14 + $0x84] ss:$16 sps:$4 sm:$0xff]  }
 0x382   :  { %5934 = vmatprep.subr.bf16.mxu0 %v8881_v43  ;;  %v8936_v43 = vld [vmem:[#allocation14 + $0x80] ss:$16 sps:$4 sm:$0xff]  }
 0x383   :  { %5976 = vmatpush1.bf16.msra.mxu1 %v8876_v40 }
 0x384   :  { %5977 = vmatprep.subr.bf16.mxu1 %v8884_v60  ;;  %v8939_v60 = vld [vmem:[#allocation14 + $0x60] ss:$16 sps:$4 sm:$0xff]  }
 0x385   :  { %5935 = vmatpush2.bf16.msra.mxu0 %v8879_v61  ;;  %v8944_v61 = vld [vmem:[#allocation14 + $0x44] ss:$16 sps:$4 sm:$0xff]  }
 0x386   :  { %5936 = vmatprep.subr.bf16.mxu0 %v8887_v18  ;;  %v8942_v18 = vld [vmem:[#allocation14 + $0x40] ss:$16 sps:$4 sm:$0xff]  }
 0x387   :  { %5978 = vmatpush2.bf16.msra.mxu1 %v8882_v16  ;;  %v8977_v16 = vld [vmem:[#allocation14 + $0x2e4] ss:$16 sps:$4 sm:$0xff]  }
 0x388   :  { %5979 = vmatprep.subr.bf16.mxu1 %v8890_v19  ;;  %v8983_v19 = vld [vmem:[#allocation14 + $0x2c4] ss:$16 sps:$4 sm:$0xff]  }
 0x389   :  { %5937 = vmatpush2.bf16.msra.mxu0 %v8885_v25  ;;  %v8981_v25 = vld [vmem:[#allocation14 + $0x2c0] ss:$16 sps:$4 sm:$0xff]  }
 0x38a   :  { %5938 = vmatprep.subr.bf16.mxu0 %v8893_v23  ;;  %v8950_v23 = vld [vmem:[#allocation14 + $0x4] ss:$16 sps:$4 sm:$0xff]  }
 0x38b   :  { %5980 = vmatpush2.bf16.msra.mxu1 %v8888_v20  ;;  %v8989_v20 = vld [vmem:[#allocation14 + $0x2a4] ss:$16 sps:$4 sm:$0xff]  }
 0x38c   :  { %5981 = vmatprep.subr.bf16.mxu1 %v8896_v28  ;;  %v8987_v28 = vld [vmem:[#allocation14 + $0x2a0] ss:$16 sps:$4 sm:$0xff]  }
 0x38d   :  { %5939 = vmatpush2.bf16.msra.mxu0 %v8891_v29  ;;  %v8948_v29 = vld [vmem:[#allocation14] ss:$16 sps:$4 sm:$0xff]  }
 0x38e   :  { %5940 = vmatprep.subr.bf16.mxu0 %v8899_v52  ;;  %v8953_v52 = vld [vmem:[#allocation14 + $0x1e4] ss:$16 sps:$4 sm:$0xff]  }
 0x38f   :  { %5982 = vmatpush2.bf16.msra.mxu1 %v8894_v32  ;;  %v8995_v32 = vld [vmem:[#allocation14 + $0x284] ss:$16 sps:$4 sm:$0xff]  }
 0x390   :  { %5983 = vmatprep.subr.bf16.mxu1 %v8902_v50  ;;  %v8993_v50 = vld [vmem:[#allocation14 + $0x280] ss:$16 sps:$4 sm:$0xff]  }
 0x391   :  { %5941 = vmatpush2.bf16.msra.mxu0 %v8897_v54  ;;  %v8951_v54 = vld [vmem:[#allocation14 + $0x1e0] ss:$16 sps:$4 sm:$0xff]  }
 0x392   :  { %5942 = vmatprep.subr.bf16.mxu0 %v8905_v2  ;;  %v8956_v2 = vld [vmem:[#allocation14 + $0x1c4] ss:$16 sps:$4 sm:$0xff]  }
 0x393   :  { %5984 = vmatpush2.bf16.msra.mxu1 %v8900_v3  ;;  %v9001_v3 = vld [vmem:[#allocation14 + $0x264] ss:$16 sps:$4 sm:$0xff]  }
 0x394   :  { %5985 = vmatprep.subr.bf16.mxu1 %v8908_v6  ;;  %v8999_v6 = vld [vmem:[#allocation14 + $0x260] ss:$16 sps:$4 sm:$0xff]  }
 0x395   :  { %5943 = vmatpush2.bf16.msra.mxu0 %v8903_v44  ;;  %v8954_v44 = vld [vmem:[#allocation14 + $0x1c0] ss:$16 sps:$4 sm:$0xff]  }
 0x396   :  { %5944 = vmatprep.subr.bf16.mxu0 %v8911_v46  ;;  %v8959_v46 = vld [vmem:[#allocation14 + $0x1a4] ss:$16 sps:$4 sm:$0xff]  }
 0x397   :  { %5986 = vmatpush2.bf16.msra.mxu1 %v8906_v47  ;;  %v9007_v47 = vld [vmem:[#allocation14 + $0x244] ss:$16 sps:$4 sm:$0xff]  }
 0x398   :  { %5987 = vmatprep.subr.bf16.mxu1 %v8914_v24  ;;  %v9005_v24 = vld [vmem:[#allocation14 + $0x240] ss:$16 sps:$4 sm:$0xff]  }
 0x399   :  { %5945 = vmatpush2.bf16.msra.mxu0 %v8909_v39  ;;  %v8957_v39 = vld [vmem:[#allocation14 + $0x1a0] ss:$16 sps:$4 sm:$0xff]  }
 0x39a   :  { %5946 = vmatprep.subr.bf16.mxu0 %v8917_v12  ;;  %v8962_v12 = vld [vmem:[#allocation14 + $0x184] ss:$16 sps:$4 sm:$0xff]  }
 0x39b   :  { %5988 = vmatpush2.bf16.msra.mxu1 %v8912_v34  ;;  %v9013_v34 = vld [vmem:[#allocation14 + $0x224] ss:$16 sps:$4 sm:$0xff]  }
 0x39c   :  { %5989 = vmatprep.subr.bf16.mxu1 %v8920_v15  ;;  %v9011_v15 = vld [vmem:[#allocation14 + $0x220] ss:$16 sps:$4 sm:$0xff]  }
 0x39d   :  { %5947 = vmatpush2.bf16.msra.mxu0 %v8915_v45  ;;  %v8960_v45 = vld [vmem:[#allocation14 + $0x180] ss:$16 sps:$4 sm:$0xff]  }
 0x39e   :  { %5948 = vmatprep.subr.bf16.mxu0 %v8923_v57  ;;  %v8965_v57 = vld [vmem:[#allocation14 + $0x164] ss:$16 sps:$4 sm:$0xff]  }
 0x39f   :  { %5990 = vmatpush2.bf16.msra.mxu1 %v8918_v30  ;;  %v9019_v30 = vld [vmem:[#allocation14 + $0x204] ss:$16 sps:$4 sm:$0xff]  }
 0x3a0   :  { %5991 = vmatprep.subr.bf16.mxu1 %v8926_v31  ;;  %v9017_v31 = vld [vmem:[#allocation14 + $0x200] ss:$16 sps:$4 sm:$0xff]  }
 0x3a1   :  { %5949 = vmatpush2.bf16.msra.mxu0 %v8921_v35  ;;  %v8963_v35 = vld [vmem:[#allocation14 + $0x160] ss:$16 sps:$4 sm:$0xff]  }
 0x3a2   :  { %6806 = vmatprep.subr.bf16.mxu0 %v8929_v0  ;;  %v8968_v0 = vld [vmem:[#allocation14 + $0x144] ss:$16 sps:$4 sm:$0xff]  }
 0x3a3   :  { %5992 = vmatpush2.bf16.msra.mxu1 %v8924_v5  ;;  %v9025_v5 = vld [vmem:[#allocation14 + $0x3e4] ss:$16 sps:$4 sm:$0xff]  }
 0x3a4   :  { %v4834_v17 = vpop.f32.mrf.mxu0  ;;  %5951 = vmatmul.mubr.bf16.vlgmr.msra.gmra.mxu0 %v9826_v21  ;;  %6849 = vmatprep.subr.bf16.mxu1 %v8977_v16 }
 0x3a5   :  { %v9885_v8 = vadd.f32 %v4834_v17, %v9871_v63  ;;  %6807 = vmatpush1.bf16.msra.mxu0 %v8927_v59  ;;  %v9023_v59 = vld [vmem:[#allocation14 + $0x3e0] ss:$16 sps:$4 sm:$0xff]   ;;  %v9031_v17 = vld [vmem:[#allocation14 + $0x3c4] ss:$16 sps:$4 sm:$0xff]  }
 0x3a6   :  { %v4877_v51 = vpop.f32.mrf.mxu1  ;;  %5994 = vmatmul.mubr.bf16.vlgmr.msra.gmra.mxu1 %v9862_v41  ;;  %v4836_v53 = vpop.f32.mrf.mxu0  ;;  %6808 = vmatprep.subr.bf16.mxu0 %v8932_v49  ;;  %v8966_v49 = vld [vmem:[#allocation14 + $0x140] ss:$16 sps:$4 sm:$0xff]  }
 0x3a7   :  { %v9889_v26 = vadd.f32 %v4877_v51, %v9771_v42  ;;  %v9892_v56 = vadd.f32 %v4836_v53, %v9875_v33  ;;  %v8971_v51 = vld [vmem:[#allocation14 + $0x124] ss:$16 sps:$4 sm:$0xff]   ;;  %v8969_v53 = vld [vmem:[#allocation14 + $0x120] ss:$16 sps:$4 sm:$0xff]  }
 0x3a8   :  { %v4879_v62 = vpop.f32.mrf.mxu1  ;;  %v4838_v63 = vpop.f32.mrf.mxu0 }
 0x3a9   :  { %v9895_v21 = vadd.f32 %v4879_v62, %v9776_v55  ;;  %v9898_v4 = vadd.f32 %v4838_v63, %v9878_v27  ;;  %6809 = vmatpush1.bf16.msra.mxu0 %v8930_v10  ;;  %v8941_v27 = vld [vmem:[#allocation14 + $0x64] ss:$16 sps:$4 sm:$0xff]   ;;  %v9029_v10 = vld [vmem:[#allocation14 + $0x3c0] ss:$16 sps:$4 sm:$0xff]  }
 0x3aa   :  { %v4881_v41 = vpop.f32.mrf.mxu1  ;;  %v4840_v38 = vpop.f32.mrf.mxu0  ;;  %6810 = vmatprep.subr.bf16.mxu0 %v8935_v58  ;;  %v9037_v58 = vld [vmem:[#allocation14 + $0x3a4] ss:$16 sps:$4 sm:$0xff]   ;;  %v9035_v63 = vld [vmem:[#allocation14 + $0x3a0] ss:$16 sps:$4 sm:$0xff]  }
 0x3ab   :  { %v9901_v42 = vadd.f32 %v4881_v41, %v9781_v1  ;;  %v9904_v33 = vadd.f32 %v4840_v38, %v9881_v48  ;;  %v8975_v1 = vld [vmem:[#allocation14 + $0x2e0] ss:$16 sps:$4 sm:$0xff]   ;;  %v8947_v48 = vld [vmem:[#allocation14 + $0x24] ss:$16 sps:$4 sm:$0xff]   ;;  %v8980_v38 = vld [vmem:[#allocation14 + $0xec] ss:$16 sps:$4 sm:$0xff]  }
 0x3ac   :  { %v4883_v40 = vpop.f32.mrf.mxu1  ;;  %6850 = vmatpush1.bf16.msra.mxu1 %v8975_v1  ;;  %v8974_v62 = vld [vmem:[#allocation14 + $0x104] ss:$16 sps:$4 sm:$0xff]   ;;  %v8972_v41 = vld [vmem:[#allocation14 + $0x100] ss:$16 sps:$4 sm:$0xff]  }
 0x3ad   :  { %v9907_v55 = vadd.f32 %v4883_v40, %v9783_v13  ;;  %6811 = vmatpush1.bf16.msra.mxu0 %v8933_v7  ;;  %6851 = vmatprep.subr.bf16.mxu1 %v8983_v19  ;;  %v8945_v13 = vld [vmem:[#allocation14 + $0x20] ss:$16 sps:$4 sm:$0xff]   ;;  %v9043_v7 = vld [vmem:[#allocation14 + $0x384] ss:$16 sps:$4 sm:$0xff]  }
 0x3ae   :  { %6812 = vmatprep.subr.bf16.mxu0 %v8938_v9  ;;  %v9041_v9 = vld [vmem:[#allocation14 + $0x380] ss:$16 sps:$4 sm:$0xff]   ;;  %v9049_v40 = vld [vmem:[#allocation14 + $0x364] ss:$16 sps:$4 sm:$0xff]  }
 0x3b0   :  { %6852 = vmatpush1.bf16.msra.mxu1 %v8981_v25 }
 0x3b1   :  { %6813 = vmatpush1.bf16.msra.mxu0 %v8936_v43  ;;  %6853 = vmatprep.subr.bf16.mxu1 %v8989_v20  ;;  %v9047_v43 = vld [vmem:[#allocation14 + $0x360] ss:$16 sps:$4 sm:$0xff]  }
 0x3b2   :  { %6814 = vmatprep.subr.bf16.mxu0 %v8941_v27 }
 0x3b4   :  { %6854 = vmatpush1.bf16.msra.mxu1 %v8987_v28 }
 0x3b5   :  { %6815 = vmatpush1.bf16.msra.mxu0 %v8939_v60  ;;  %6855 = vmatprep.subr.bf16.mxu1 %v8995_v32 }
 0x3b6   :  { %6816 = vmatprep.subr.bf16.mxu0 %v8944_v61 }
 0x3b8   :  { %6856 = vmatpush1.bf16.msra.mxu1 %v8993_v50 }
 0x3b9   :  { %6817 = vmatpush1.bf16.msra.mxu0 %v8942_v18  ;;  %6857 = vmatprep.subr.bf16.mxu1 %v9001_v3  ;;  %v9067_v3 = vld [vmem:[#allocation14 + $0x304] ss:$16 sps:$4 sm:$0xff]  }
 0x3ba   :  { %6818 = vmatprep.subr.bf16.mxu0 %v8947_v48  ;;  %v9055_v48 = vld [vmem:[#allocation14 + $0x344] ss:$16 sps:$4 sm:$0xff]  }
 0x3bc   :  { %6858 = vmatpush1.bf16.msra.mxu1 %v8999_v6  ;;  %v9921_v6 = vld [vmem:[#allocation13] sm:$0xf] }
 0x3bd   :  { %6819 = vmatpush1.bf16.msra.mxu0 %v8945_v13  ;;  %6859 = vmatprep.subr.bf16.mxu1 %v9007_v47  ;;  %v9053_v13 = vld [vmem:[#allocation14 + $0x340] ss:$16 sps:$4 sm:$0xff]  }
 0x3be   :  { %6820 = vmatprep.subr.bf16.mxu0 %v8950_v23 }
 0x3c0   :  { %6860 = vmatpush1.bf16.msra.mxu1 %v9005_v24 }
 0x3c1   :  { %6821 = vmatpush1.bf16.msra.mxu0 %v8948_v29  ;;  %6861 = vmatprep.subr.bf16.mxu1 %v9013_v34 }
 0x3c2   :  { %6822 = vmatprep.subr.bf16.mxu0 %v8953_v52  ;;  %v9061_v52 = vld [vmem:[#allocation14 + $0x324] ss:$16 sps:$4 sm:$0xff]  }
 0x3c4   :  { %6862 = vmatpush1.bf16.msra.mxu1 %v9011_v15 }
 0x3c5   :  { %6823 = vmatpush2.bf16.msra.mxu0 %v8951_v54  ;;  %6863 = vmatprep.subr.bf16.mxu1 %v9019_v30  ;;  %v9059_v54 = vld [vmem:[#allocation14 + $0x320] ss:$16 sps:$4 sm:$0xff]  }
 0x3c6   :  { %6824 = vmatprep.subr.bf16.mxu0 %v8956_v2  ;;  %v9065_v2 = vld [vmem:[#allocation14 + $0x300] ss:$16 sps:$4 sm:$0xff]  }
 0x3c8   :  { %6864 = vmatpush1.bf16.msra.mxu1 %v9017_v31 }
 0x3c9   :  { %6825 = vmatpush2.bf16.msra.mxu0 %v8954_v44  ;;  %6865 = vmatprep.subr.bf16.mxu1 %v9025_v5  ;;  %v5179_v44 = vrot.slane %v9921_v6, %v9835_v37 }
 0x3ca   :  { %6826 = vmatprep.subr.bf16.mxu0 %v8959_v46 }
 0x3cc   :  { %6866 = vmatpush2.bf16.msra.mxu1 %v9023_v59 }
 0x3cd   :  { %6827 = vmatpush2.bf16.msra.mxu0 %v8957_v39  ;;  %6867 = vmatprep.subr.bf16.mxu1 %v9031_v17 }
 0x3ce   :  { %6828 = vmatprep.subr.bf16.mxu0 %v8962_v12 }
 0x3d0   :  { %6868 = vmatpush2.bf16.msra.mxu1 %v9029_v10 }
 0x3d1   :  { %6829 = vmatpush2.bf16.msra.mxu0 %v8960_v45  ;;  %6869 = vmatprep.subr.bf16.mxu1 %v9037_v58 }
 0x3d2   :  { %6830 = vmatprep.subr.bf16.mxu0 %v8965_v57 }
 0x3d4   :  { %6870 = vmatpush2.bf16.msra.mxu1 %v9035_v63 }
 0x3d5   :  { %6831 = vmatpush2.bf16.msra.mxu0 %v8963_v35  ;;  %6871 = vmatprep.subr.bf16.mxu1 %v9043_v7  ;;  %v8984_v7 = vld [vmem:[#allocation14 + $0xc8] ss:$16 sps:$4 sm:$0xff]  }
 0x3d6   :  { %6832 = vmatprep.subr.bf16.mxu0 %v8968_v0 }
 0x3d8   :  { %6872 = vmatpush2.bf16.msra.mxu1 %v9041_v9  ;;  %v8990_v9 = vld [vmem:[#allocation14 + $0xa8] ss:$16 sps:$4 sm:$0xff]  }
 0x3d9   :  { %6833 = vmatpush2.bf16.msra.mxu0 %v8966_v49  ;;  %6873 = vmatprep.subr.bf16.mxu1 %v9049_v40  ;;  %v8998_v40 = vld [vmem:[#allocation14 + $0x8c] ss:$16 sps:$4 sm:$0xff]  }
 0x3da   :  { %6834 = vmatprep.subr.bf16.mxu0 %v8971_v51 }
 0x3dc   :  { %6874 = vmatpush2.bf16.msra.mxu1 %v9047_v43  ;;  %v8996_v43 = vld [vmem:[#allocation14 + $0x88] ss:$16 sps:$4 sm:$0xff]  }
 0x3dd   :  { %6835 = vmatpush2.bf16.msra.mxu0 %v8969_v53  ;;  %6875 = vmatprep.subr.bf16.mxu1 %v9055_v48  ;;  %v9022_v48 = vld [vmem:[#allocation14 + $0xc] ss:$16 sps:$4 sm:$0xff]  }
 0x3de   :  { %6836 = vmatprep.subr.bf16.mxu0 %v8974_v62  ;;  %v8978_v62 = vld [vmem:[#allocation14 + $0xe8] ss:$16 sps:$4 sm:$0xff]  }
 0x3e0   :  { %6876 = vmatpush2.bf16.msra.mxu1 %v9053_v13  ;;  %v9028_v13 = vld [vmem:[#allocation14 + $0x1ec] ss:$16 sps:$4 sm:$0xff]  }
 0x3e1   :  { %6837 = vmatpush2.bf16.msra.mxu0 %v8972_v41  ;;  %6877 = vmatprep.subr.bf16.mxu1 %v9061_v52  ;;  %v8986_v41 = vld [vmem:[#allocation14 + $0xcc] ss:$16 sps:$4 sm:$0xff]   ;;  %v9038_v52 = vld [vmem:[#allocation14 + $0x1a8] ss:$16 sps:$4 sm:$0xff]  }
 0x3e2   :  { %6892 = vmatprep.subr.bf16.mxu0 %v8980_v38  ;;  %v8992_v38 = vld [vmem:[#allocation14 + $0xac] ss:$16 sps:$4 sm:$0xff]  }
 0x3e4   :  { %v4920_v27 = vpop.f32.mrf.mxu0  ;;  %6878 = vmatpush2.bf16.msra.mxu1 %v9059_v54  ;;  %v9044_v54 = vld [vmem:[#allocation14 + $0x188] ss:$16 sps:$4 sm:$0xff]  }
 0x3e5   :  { %v4921_v60 = vadd.f32 %v4920_v27, %v9889_v26  ;;  %6879 = vmatprep.subr.bf16.mxu1 %v9067_v3  ;;  %v9004_v27 = vld [vmem:[#allocation14 + $0x6c] ss:$16 sps:$4 sm:$0xff]  }
 0x3e6   :  { %v4963_v61 = vpop.f32.mrf.mxu1  ;;  %v4922_v1 = vpop.f32.mrf.mxu0  ;;  %v9052_v3 = vld [vmem:[#allocation14 + $0x16c] ss:$16 sps:$4 sm:$0xff]  }
 0x3e7   :  { %v9910_v16 = vadd.f32 %v4963_v61, %v4921_v60  ;;  %v4923_v18 = vadd.f32 %v4922_v1, %v9895_v21  ;;  %v9002_v60 = vld [vmem:[#allocation14 + $0x68] ss:$16 sps:$4 sm:$0xff]   ;;  %v9010_v61 = vld [vmem:[#allocation14 + $0x4c] ss:$16 sps:$4 sm:$0xff]  }
 0x3e8   :  { %v4965_v19 = vpop.f32.mrf.mxu1  ;;  %v4924_v25 = vpop.f32.mrf.mxu0  ;;  %6880 = vmatpush2.bf16.msra.mxu1 %v9065_v2  ;;  %v9008_v1 = vld [vmem:[#allocation14 + $0x48] ss:$16 sps:$4 sm:$0xff]  }
 0x3e9   :  { %v9913_v20 = vadd.f32 %v4965_v19, %v4923_v18  ;;  %v4925_v23 = vadd.f32 %v4924_v25, %v9901_v42  ;;  %v9073_v42 = vld [vmem:[#allocation14 + $0x2ec] ss:$16 sps:$4 sm:$0xff]   ;;  %v9014_v19 = vld [vmem:[#allocation14 + $0x28] ss:$16 sps:$4 sm:$0xff]  }
 0x3ea   :  { %v4967_v28 = vpop.f32.mrf.mxu1  ;;  %v4926_v29 = vpop.f32.mrf.mxu0  ;;  %6935 = vmatprep.subr.bf16.mxu1 %v9073_v42  ;;  %v9016_v18 = vld [vmem:[#allocation14 + $0x2c] ss:$16 sps:$4 sm:$0xff]   ;;  %v9020_v25 = vld [vmem:[#allocation14 + $0x8] ss:$16 sps:$4 sm:$0xff]  }
 0x3eb   :  { %v9916_v26 = vadd.f32 %v4967_v28, %v4925_v23  ;;  %v4927_v32 = vadd.f32 %v4926_v29, %v9907_v55  ;;  %v5175_v55 = vrot.slane %v9921_v6, %v9808_v22  ;;  %v9026_v23 = vld [vmem:[#allocation14 + $0x1e8] ss:$16 sps:$4 sm:$0xff]   ;;  %v9034_v28 = vld [vmem:[#allocation14 + $0x1cc] ss:$16 sps:$4 sm:$0xff]  }
 0x3ec   :  { %v4969_v50 = vpop.f32.mrf.mxu1  ;;  %v9032_v29 = vld [vmem:[#allocation14 + $0x1c8] ss:$16 sps:$4 sm:$0xff]   ;;  %v9058_v42 = vld [vmem:[#allocation14 + $0x14c] ss:$16 sps:$4 sm:$0xff]  }
 0x3ed   :  { %v9919_v21 = vadd.f32 %v4969_v50, %v4927_v32  ;;  %v9040_v32 = vld [vmem:[#allocation14 + $0x1ac] ss:$16 sps:$4 sm:$0xff]   ;;  %v9050_v2 = vld [vmem:[#allocation14 + $0x168] ss:$16 sps:$4 sm:$0xff]  }
 0x3ee   :  { %v9046_v50 = vld [vmem:[#allocation14 + $0x18c] ss:$16 sps:$4 sm:$0xff]  }
 0x424   :  { %v5866_v47 = vpop.f32.mrf.mxu0 }
 0x425   :  { %v5867_v12 = vadd.f32 %v5866_v47, %v5175_v55 }
 0x426   :  { %v5909_v46 = vpop.f32.mrf.mxu1  ;;  %v5868_v24 = vpop.f32.mrf.mxu0 }
 0x427   :  { %v5869_v39 = vadd.f32 %v5868_v24, %v5179_v44  ;;  %v5910_v0 = vadd.f32 %v5909_v46, %v5867_v12  ;;  %v9056_v24 = vld [vmem:[#allocation14 + $0x148] ss:$16 sps:$4 sm:$0xff]  }
 0x428   :  { %v5911_v34 = vpop.f32.mrf.mxu1  ;;  %v5870_v15 = vpop.f32.mrf.mxu0 }
 0x429   :  { %v5871_v45 = vadd.f32 %v5870_v15, %v5175_v55  ;;  %v5912_v31 = vadd.f32 %v5911_v34, %v5869_v39  ;;  %v6004_v53 = vmax.f32 %v5910_v0, 0.0  ;;  %v5183_v55 = vrot.slane %v9921_v6, %v9842_v14  ;;  %v9064_v34 = vld [vmem:[#allocation14 + $0x12c] ss:$16 sps:$4 sm:$0xff]  }
 0x42a   :  { %v5913_v30 = vpop.f32.mrf.mxu1  ;;  %v5872_v57 = vpop.f32.mrf.mxu0  ;;  %v9070_v0 = vld [vmem:[#allocation14 + $0x10c] ss:$16 sps:$4 sm:$0xff]  }
 0x42b   :  { %v5914_v35 = vadd.f32 %v5913_v30, %v5871_v45  ;;  %v5873_v5 = vadd.f32 %v5872_v57, %v5179_v44  ;;  %v6005_v51 = vmax.f32 %v5912_v31, 0.0  ;;  %v5187_v44 = vrot.slane %v9921_v6, %v9852_v36 }
 0x42c   :  { %v5915_v59 = vpop.f32.mrf.mxu1 }
 0x42d   :  { %v5916_v49 = vadd.f32 %v5915_v59, %v5873_v5  ;;  %v6008_v17 = vmax.f32 %v5914_v35, 0.0  ;;  %v9062_v35 = vld [vmem:[#allocation14 + $0x128] ss:$16 sps:$4 sm:$0xff]  }
 0x42f   :  { %v6009_v10 = vmax.f32 %v5916_v49, 0.0  ;;  %v9927_v63 = vpack.c.bf16 %v6008_v17, %v6004_v53  ;;  %v9068_v53 = vld [vmem:[#allocation14 + $0x108] ss:$16 sps:$4 sm:$0xff]  }
 0x431   :  { %v6013_v58 = vpack.c.bf16 %v6009_v10, %v6005_v51 }
 0x433   :  { %6838 = vmatprep.mubr.bf16.mxu0 %v6013_v58 }
 0x434   :  { %6839 = vmatmul.mubr.bf16.vlgmr.msra.gmra.mxu0 %v9927_v63 }
 0x435   :  { %6893 = vmatpush1.bf16.msra.mxu0 %v8978_v62  ;;  %6924 = vmatprep.mubr.bf16.mxu0 %v6013_v58 }
 0x436   :  { %6894 = vmatprep.subr.bf16.mxu0 %v8986_v41 }
 0x439   :  { %6895 = vmatpush1.bf16.msra.mxu0 %v8984_v7 }
 0x43a   :  { %6896 = vmatprep.subr.bf16.mxu0 %v8992_v38 }
 0x43d   :  { %6897 = vmatpush1.bf16.msra.mxu0 %v8990_v9  ;;  %v9071_v9 = vld [vmem:[#allocation14 + $0x2e8] ss:$16 sps:$4 sm:$0xff]  }
 0x43e   :  { %6898 = vmatprep.subr.bf16.mxu0 %v8998_v40 }
 0x441   :  { %6899 = vmatpush1.bf16.msra.mxu0 %v8996_v43  ;;  %v9076_v43 = vld [vmem:[#allocation14 + $0x2cc] ss:$16 sps:$4 sm:$0xff]  }
 0x442   :  { %6900 = vmatprep.subr.bf16.mxu0 %v9004_v27  ;;  %v9074_v27 = vld [vmem:[#allocation14 + $0x2c8] ss:$16 sps:$4 sm:$0xff]  }
 0x445   :  { %6901 = vmatpush1.bf16.msra.mxu0 %v9002_v60  ;;  %v9079_v60 = vld [vmem:[#allocation14 + $0x2ac] ss:$16 sps:$4 sm:$0xff]  }
 0x446   :  { %6902 = vmatprep.subr.bf16.mxu0 %v9010_v61  ;;  %v9077_v61 = vld [vmem:[#allocation14 + $0x2a8] ss:$16 sps:$4 sm:$0xff]  }
 0x449   :  { %6903 = vmatpush1.bf16.msra.mxu0 %v9008_v1  ;;  %v9082_v1 = vld [vmem:[#allocation14 + $0x28c] ss:$16 sps:$4 sm:$0xff]  }
 0x44a   :  { %6904 = vmatprep.subr.bf16.mxu0 %v9016_v18  ;;  %v9119_v18 = vld [vmem:[#allocation17 + $0x70] ss:$8 sps:$4 sm:$0xff]  }
 0x44d   :  { %6905 = vmatpush1.bf16.msra.mxu0 %v9014_v19  ;;  %v9121_v19 = vld [vmem:[#allocation17 + $0x74] ss:$8 sps:$4 sm:$0xff]  }
 0x44e   :  { %6906 = vmatprep.subr.bf16.mxu0 %v9022_v48  ;;  %v9124_v48 = vld [vmem:[#allocation17 + $0x64] ss:$8 sps:$4 sm:$0xff]  }
 0x451   :  { %6907 = vmatpush1.bf16.msra.mxu0 %v9020_v25  ;;  %v9080_v25 = vld [vmem:[#allocation14 + $0x288] ss:$16 sps:$4 sm:$0xff]  }
 0x452   :  { %6908 = vmatprep.subr.bf16.mxu0 %v9028_v13  ;;  %v9085_v13 = vld [vmem:[#allocation14 + $0x26c] ss:$16 sps:$4 sm:$0xff]  }
 0x455   :  { %6909 = vmatpush2.bf16.msra.mxu0 %v9026_v23  ;;  %v9127_v23 = vld [vmem:[#allocation17 + $0x54] ss:$8 sps:$4 sm:$0xff]  }
 0x456   :  { %6910 = vmatprep.subr.bf16.mxu0 %v9034_v28  ;;  %v9083_v28 = vld [vmem:[#allocation14 + $0x268] ss:$16 sps:$4 sm:$0xff]  }
 0x459   :  { %6911 = vmatpush2.bf16.msra.mxu0 %v9032_v29  ;;  %v9088_v29 = vld [vmem:[#allocation14 + $0x24c] ss:$16 sps:$4 sm:$0xff]  }
 0x45a   :  { %6912 = vmatprep.subr.bf16.mxu0 %v9040_v32  ;;  %v9125_v32 = vld [vmem:[#allocation17 + $0x50] ss:$8 sps:$4 sm:$0xff]  }
 0x45d   :  { %6913 = vmatpush2.bf16.msra.mxu0 %v9038_v52  ;;  %v9130_v52 = vld [vmem:[#allocation17 + $0x44] ss:$8 sps:$4 sm:$0xff]  }
 0x45e   :  { %6914 = vmatprep.subr.bf16.mxu0 %v9046_v50  ;;  %v9086_v50 = vld [vmem:[#allocation14 + $0x248] ss:$16 sps:$4 sm:$0xff]  }
 0x461   :  { %6915 = vmatpush2.bf16.msra.mxu0 %v9044_v54  ;;  %v9091_v54 = vld [vmem:[#allocation14 + $0x22c] ss:$16 sps:$4 sm:$0xff]  }
 0x462   :  { %6916 = vmatprep.subr.bf16.mxu0 %v9052_v3  ;;  %v9128_v3 = vld [vmem:[#allocation17 + $0x40] ss:$8 sps:$4 sm:$0xff]  }
 0x464   :  { %v5952_v47 = vpop.f32.mrf.mxu0 }
 0x465   :  { %6917 = vmatpush2.bf16.msra.mxu0 %v9050_v2  ;;  %v5953_v45 = vadd.f32 %v5952_v47, %v5183_v55  ;;  %v9133_v2 = vld [vmem:[#allocation17 + $0x34] ss:$8 sps:$4 sm:$0xff]   ;;  %v9136_v47 = vld [vmem:[#allocation17 + $0x24] ss:$8 sps:$4 sm:$0xff]  }
 0x466   :  { %v5995_v46 = vpop.f32.mrf.mxu1  ;;  %v5954_v39 = vpop.f32.mrf.mxu0  ;;  %6918 = vmatprep.subr.bf16.mxu0 %v9058_v42  ;;  %v9089_v42 = vld [vmem:[#allocation14 + $0x228] ss:$16 sps:$4 sm:$0xff]  }
 0x467   :  { %v5955_v12 = vadd.f32 %v5954_v39, %v5187_v44  ;;  %v5996_v17 = vadd.f32 %v5995_v46, %v5953_v45  ;;  %v9092_v46 = vld [vmem:[#allocation14 + $0x208] ss:$16 sps:$4 sm:$0xff]   ;;  %v9134_v39 = vld [vmem:[#allocation17 + $0x20] ss:$8 sps:$4 sm:$0xff]   ;;  %v9137_v45 = vld [vmem:[#allocation17 + $0x10] ss:$8 sps:$4 sm:$0xff]  }
 0x468   :  { %v5997_v15 = vpop.f32.mrf.mxu1  ;;  %v5956_v30 = vpop.f32.mrf.mxu0 }
 0x469   :  { %v5957_v57 = vadd.f32 %v5956_v30, %v5183_v55  ;;  %6919 = vmatpush2.bf16.msra.mxu0 %v9056_v24  ;;  %v5998_v59 = vadd.f32 %v5997_v15, %v5955_v12  ;;  %v6006_v7 = vmax.f32 %v5996_v17, 0.0  ;;  %v9131_v55 = vld [vmem:[#allocation17 + $0x30] ss:$8 sps:$4 sm:$0xff]   ;;  %v9095_v12 = vld [vmem:[#allocation14 + $0x3e8] ss:$16 sps:$4 sm:$0xff]  }
 0x46a   :  { %v5999_v31 = vpop.f32.mrf.mxu1  ;;  %v5958_v5 = vpop.f32.mrf.mxu0  ;;  %6920 = vmatprep.subr.bf16.mxu0 %v9064_v34  ;;  %v9097_v24 = vld [vmem:[#allocation14 + $0x3ec] ss:$16 sps:$4 sm:$0xff]   ;;  %v9139_v34 = vld [vmem:[#allocation17 + $0x14] ss:$8 sps:$4 sm:$0xff]   ;;  %v9142_v30 = vld [vmem:[#allocation17 + $0x4] ss:$8 sps:$4 sm:$0xff]  }
 0x46b   :  { %v6000_v6 = vadd.f32 %v5999_v31, %v5957_v57  ;;  %v5959_v49 = vadd.f32 %v5958_v5, %v5187_v44  ;;  %v6007_v62 = vmax.f32 %v5998_v59, 0.0  ;;  %v9094_v44 = vld [vmem:[#allocation14 + $0x20c] ss:$16 sps:$4 sm:$0xff]   ;;  %v9098_v57 = vld [vmem:[#allocation14 + $0x3c8] ss:$16 sps:$4 sm:$0xff]  }
 0x46c   :  { %v6001_v51 = vpop.f32.mrf.mxu1  ;;  %v9100_v15 = vld [vmem:[#allocation14 + $0x3cc] ss:$16 sps:$4 sm:$0xff]   ;;  %v9145_v5 = vld [vmem:[#allocation17 + $0xf4] ss:$8 sps:$4 sm:$0xff]  }
 0x46d   :  { %v6002_v10 = vadd.f32 %v6001_v51, %v5959_v49  ;;  %6921 = vmatpush2.bf16.msra.mxu0 %v9062_v35  ;;  %v6010_v58 = vmax.f32 %v6000_v6, 0.0  ;;  %v9103_v31 = vld [vmem:[#allocation14 + $0x3ac] ss:$16 sps:$4 sm:$0xff]   ;;  %v9148_v49 = vld [vmem:[#allocation17 + $0xe4] ss:$8 sps:$4 sm:$0xff]  }
 0x46e   :  { %6922 = vmatprep.subr.bf16.mxu0 %v9070_v0  ;;  %v9140_v35 = vld [vmem:[#allocation17] ss:$8 sps:$4 sm:$0xff]   ;;  %v9101_v0 = vld [vmem:[#allocation14 + $0x3a8] ss:$16 sps:$4 sm:$0xff]   ;;  %v9143_v6 = vld [vmem:[#allocation17 + $0xf0] ss:$8 sps:$4 sm:$0xff]  }
 0x46f   :  { %v6011_v41 = vmax.f32 %v6002_v10, 0.0  ;;  %v9934_v40 = vpack.c.bf16 %v6010_v58, %v6006_v7  ;;  %v9106_v59 = vld [vmem:[#allocation14 + $0x38c] ss:$16 sps:$4 sm:$0xff]   ;;  %v9104_v17 = vld [vmem:[#allocation14 + $0x388] ss:$16 sps:$4 sm:$0xff]  }
 0x470   :  { %v9109_v51 = vld [vmem:[#allocation14 + $0x36c] ss:$16 sps:$4 sm:$0xff]   ;;  %v9107_v58 = vld [vmem:[#allocation14 + $0x368] ss:$16 sps:$4 sm:$0xff]  }
 0x471   :  { %v6015_v38 = vpack.c.bf16 %v6011_v41, %v6007_v62  ;;  %6923 = vmatpush2.bf16.msra.mxu0 %v9068_v53  ;;  %v9146_v10 = vld [vmem:[#allocation17 + $0xe0] ss:$8 sps:$4 sm:$0xff]   ;;  %v9151_v53 = vld [vmem:[#allocation17 + $0xd4] ss:$8 sps:$4 sm:$0xff]   ;;  %v9149_v41 = vld [vmem:[#allocation17 + $0xd0] ss:$8 sps:$4 sm:$0xff]  }
 0x472   :  { %7394 = vmatprep.subr.bf16.mxu0 %v9121_v19  ;;  %v9112_v62 = vld [vmem:[#allocation14 + $0x34c] ss:$16 sps:$4 sm:$0xff]   ;;  %v9154_v7 = vld [vmem:[#allocation17 + $0xc4] ss:$8 sps:$4 sm:$0xff]  }
 0x473   :  { %6881 = vmatprep.mubr.bf16.mxu1 %v6015_v38  ;;  %v9160_v19 = vld [vmem:[#allocation17 + $0xa4] ss:$8 sps:$4 sm:$0xff]  }
 0x474   :  { %6925 = vmatmul.mubr.bf16.vlgmr.msra.gmra.mxu0 %v9927_v63  ;;  %6882 = vmatmul.mubr.bf16.vlgmr.msra.gmra.mxu1 %v9934_v40  ;;  %v9122_v63 = vld [vmem:[#allocation17 + $0x60] ss:$8 sps:$4 sm:$0xff]  }
 0x475   :  { %6936 = vmatpush1.bf16.msra.mxu1 %v9071_v9  ;;  %6967 = vmatprep.mubr.bf16.mxu1 %v6015_v38  ;;  %v9110_v38 = vld [vmem:[#allocation14 + $0x348] ss:$16 sps:$4 sm:$0xff]   ;;  %v9115_v9 = vld [vmem:[#allocation14 + $0x32c] ss:$16 sps:$4 sm:$0xff]  }
 0x476   :  { %6937 = vmatprep.subr.bf16.mxu1 %v9076_v43  ;;  %7395 = vmatpush1.bf16.msra.mxu0 %v9119_v18  ;;  %v9152_v43 = vld [vmem:[#allocation17 + $0xc0] ss:$8 sps:$4 sm:$0xff]   ;;  %v9155_v18 = vld [vmem:[#allocation17 + $0xb0] ss:$8 sps:$4 sm:$0xff]  }
 0x477   :  { %7396 = vmatprep.subr.bf16.mxu0 %v9124_v48  ;;  %v9158_v48 = vld [vmem:[#allocation17 + $0xa0] ss:$8 sps:$4 sm:$0xff]  }
 0x479   :  { %6938 = vmatpush1.bf16.msra.mxu1 %v9074_v27  ;;  %v9113_v27 = vld [vmem:[#allocation14 + $0x328] ss:$16 sps:$4 sm:$0xff]  }
 0x47a   :  { %6939 = vmatprep.subr.bf16.mxu1 %v9079_v60  ;;  %7397 = vmatpush1.bf16.msra.mxu0 %v9122_v63  ;;  %v9118_v60 = vld [vmem:[#allocation14 + $0x30c] ss:$16 sps:$4 sm:$0xff]  }
 0x47b   :  { %7398 = vmatprep.subr.bf16.mxu0 %v9127_v23  ;;  %v9164_v63 = vld [vmem:[#allocation17 + $0x80] ss:$8 sps:$4 sm:$0xff]   ;;  %v9166_v23 = vld [vmem:[#allocation17 + $0x84] ss:$8 sps:$4 sm:$0xff]  }
 0x47d   :  { %6940 = vmatpush1.bf16.msra.mxu1 %v9077_v61  ;;  %v9116_v61 = vld [vmem:[#allocation14 + $0x308] ss:$16 sps:$4 sm:$0xff]  }
 0x47e   :  { %6941 = vmatprep.subr.bf16.mxu1 %v9082_v1  ;;  %7399 = vmatpush1.bf16.msra.mxu0 %v9125_v32  ;;  %v9157_v1 = vld [vmem:[#allocation17 + $0xb4] ss:$8 sps:$4 sm:$0xff]   ;;  %v9172_v32 = vld [vmem:[#allocation17 + $0x164] ss:$8 sps:$4 sm:$0xff]  }
 0x47f   :  { %7400 = vmatprep.subr.bf16.mxu0 %v9130_v52  ;;  %v9175_v52 = vld [vmem:[#allocation17 + $0x154] ss:$8 sps:$4 sm:$0xff]  }
 0x481   :  { %6942 = vmatpush1.bf16.msra.mxu1 %v9080_v25  ;;  %v9163_v25 = vld [vmem:[#allocation17 + $0x94] ss:$8 sps:$4 sm:$0xff]  }
 0x482   :  { %6943 = vmatprep.subr.bf16.mxu1 %v9085_v13  ;;  %7401 = vmatpush1.bf16.msra.mxu0 %v9128_v3  ;;  %v9161_v13 = vld [vmem:[#allocation17 + $0x90] ss:$8 sps:$4 sm:$0xff]   ;;  %v9176_v3 = vld [vmem:[#allocation17 + $0x140] ss:$8 sps:$4 sm:$0xff]  }
 0x483   :  { %7402 = vmatprep.subr.bf16.mxu0 %v9133_v2  ;;  %v9181_v2 = vld [vmem:[#allocation17 + $0x134] ss:$8 sps:$4 sm:$0xff]  }
 0x485   :  { %6944 = vmatpush1.bf16.msra.mxu1 %v9083_v28  ;;  %v9167_v28 = vld [vmem:[#allocation17 + $0x170] ss:$8 sps:$4 sm:$0xff]  }
 0x486   :  { %6945 = vmatprep.subr.bf16.mxu1 %v9088_v29  ;;  %7403 = vmatpush1.bf16.msra.mxu0 %v9131_v55  ;;  %v9169_v29 = vld [vmem:[#allocation17 + $0x174] ss:$8 sps:$4 sm:$0xff]   ;;  %v9182_v55 = vld [vmem:[#allocation17 + $0x120] ss:$8 sps:$4 sm:$0xff]  }
 0x487   :  { %7404 = vmatprep.subr.bf16.mxu0 %v9136_v47  ;;  %v9187_v47 = vld [vmem:[#allocation17 + $0x114] ss:$8 sps:$4 sm:$0xff]  }
 0x489   :  { %6946 = vmatpush1.bf16.msra.mxu1 %v9086_v50  ;;  %v9173_v50 = vld [vmem:[#allocation17 + $0x150] ss:$8 sps:$4 sm:$0xff]  }
 0x48a   :  { %6947 = vmatprep.subr.bf16.mxu1 %v9091_v54  ;;  %7405 = vmatpush1.bf16.msra.mxu0 %v9134_v39  ;;  %v9178_v54 = vld [vmem:[#allocation17 + $0x144] ss:$8 sps:$4 sm:$0xff]   ;;  %v9188_v39 = vld [vmem:[#allocation17 + $0x100] ss:$8 sps:$4 sm:$0xff]  }
 0x48b   :  { %7406 = vmatprep.subr.bf16.mxu0 %v9139_v34  ;;  %v9193_v34 = vld [vmem:[#allocation17 + $0x1f4] ss:$8 sps:$4 sm:$0xff]  }
 0x48d   :  { %6948 = vmatpush1.bf16.msra.mxu1 %v9089_v42  ;;  %v9179_v42 = vld [vmem:[#allocation17 + $0x130] ss:$8 sps:$4 sm:$0xff]  }
 0x48e   :  { %6949 = vmatprep.subr.bf16.mxu1 %v9094_v44  ;;  %7407 = vmatpush1.bf16.msra.mxu0 %v9137_v45  ;;  %v9184_v44 = vld [vmem:[#allocation17 + $0x124] ss:$8 sps:$4 sm:$0xff]   ;;  %v9194_v45 = vld [vmem:[#allocation17 + $0x1e0] ss:$8 sps:$4 sm:$0xff]  }
 0x48f   :  { %7408 = vmatprep.subr.bf16.mxu0 %v9142_v30  ;;  %v9199_v30 = vld [vmem:[#allocation17 + $0x1d4] ss:$8 sps:$4 sm:$0xff]  }
 0x491   :  { %6950 = vmatpush1.bf16.msra.mxu1 %v9092_v46  ;;  %v9185_v46 = vld [vmem:[#allocation17 + $0x110] ss:$8 sps:$4 sm:$0xff]  }
 0x492   :  { %6951 = vmatprep.subr.bf16.mxu1 %v9097_v24  ;;  %7409 = vmatpush1.bf16.msra.mxu0 %v9140_v35  ;;  %v9190_v24 = vld [vmem:[#allocation17 + $0x104] ss:$8 sps:$4 sm:$0xff]   ;;  %v9200_v35 = vld [vmem:[#allocation17 + $0x1c0] ss:$8 sps:$4 sm:$0xff]  }
 0x493   :  { %7410 = vmatprep.subr.bf16.mxu0 %v9145_v5  ;;  %v9205_v5 = vld [vmem:[#allocation17 + $0x1b4] ss:$8 sps:$4 sm:$0xff]  }
 0x495   :  { %6952 = vmatpush2.bf16.msra.mxu1 %v9095_v12  ;;  %v9191_v12 = vld [vmem:[#allocation17 + $0x1f0] ss:$8 sps:$4 sm:$0xff]  }
 0x496   :  { %6953 = vmatprep.subr.bf16.mxu1 %v9100_v15  ;;  %7411 = vmatpush2.bf16.msra.mxu0 %v9143_v6  ;;  %v9196_v15 = vld [vmem:[#allocation17 + $0x1e4] ss:$8 sps:$4 sm:$0xff]   ;;  %v9206_v6 = vld [vmem:[#allocation17 + $0x1a0] ss:$8 sps:$4 sm:$0xff]  }
 0x497   :  { %7412 = vmatprep.subr.bf16.mxu0 %v9148_v49  ;;  %v9211_v49 = vld [vmem:[#allocation17 + $0x194] ss:$8 sps:$4 sm:$0xff]  }
 0x499   :  { %6954 = vmatpush2.bf16.msra.mxu1 %v9098_v57  ;;  %v9197_v57 = vld [vmem:[#allocation17 + $0x1d0] ss:$8 sps:$4 sm:$0xff]  }
 0x49a   :  { %6955 = vmatprep.subr.bf16.mxu1 %v9103_v31  ;;  %7413 = vmatpush2.bf16.msra.mxu0 %v9146_v10  ;;  %v9202_v31 = vld [vmem:[#allocation17 + $0x1c4] ss:$8 sps:$4 sm:$0xff]  }
 0x49b   :  { %7414 = vmatprep.subr.bf16.mxu0 %v9151_v53  ;;  %v9214_v10 = vld [vmem:[#allocation17 + $0x184] ss:$8 sps:$4 sm:$0xff]  }
 0x49d   :  { %6956 = vmatpush2.bf16.msra.mxu1 %v9101_v0  ;;  %v9203_v0 = vld [vmem:[#allocation17 + $0x1b0] ss:$8 sps:$4 sm:$0xff]  }
 0x49e   :  { %6957 = vmatprep.subr.bf16.mxu1 %v9106_v59  ;;  %7415 = vmatpush2.bf16.msra.mxu0 %v9149_v41  ;;  %v9208_v59 = vld [vmem:[#allocation17 + $0x1a4] ss:$8 sps:$4 sm:$0xff]  }
 0x49f   :  { %7416 = vmatprep.subr.bf16.mxu0 %v9154_v7 }
 0x4a1   :  { %6958 = vmatpush2.bf16.msra.mxu1 %v9104_v17  ;;  %v9209_v17 = vld [vmem:[#allocation17 + $0x190] ss:$8 sps:$4 sm:$0xff]  }
 0x4a2   :  { %6959 = vmatprep.subr.bf16.mxu1 %v9109_v51  ;;  %7417 = vmatpush2.bf16.msra.mxu0 %v9152_v43  ;;  %v9212_v51 = vld [vmem:[#allocation17 + $0x180] ss:$8 sps:$4 sm:$0xff]  }
 0x4a3   :  { %7418 = vmatprep.subr.bf16.mxu0 %v9157_v1 }
 0x4a5   :  { %6960 = vmatpush2.bf16.msra.mxu1 %v9107_v58  ;;  %v6144_v58 = vld [vmem:[#allocation16] sm:$0xf] }
 0x4a6   :  { %6961 = vmatprep.subr.bf16.mxu1 %v9112_v62  ;;  %7419 = vmatpush2.bf16.msra.mxu0 %v9155_v18  ;;  %v6149_v41 = vrot.slane %v6144_v58, %v9808_v22  ;;  %v6153_v7 = vrot.slane %v6144_v58, %v9835_v37  ;;  %v9241_v18 = vld [vmem:[#allocation10] sm:$0xff] }
 0x4a7   :  { %7420 = vmatprep.subr.bf16.mxu0 %v9160_v19 }
 0x4a9   :  { %6962 = vmatpush2.bf16.msra.mxu1 %v9110_v38  ;;  %v4992_v38 = vsub.s32 4, %v9805_v11 }
 0x4aa   :  { %6963 = vmatprep.subr.bf16.mxu1 %v9115_v9  ;;  %7421 = vmatpush2.bf16.msra.mxu0 %v9158_v48 }
 0x4ab   :  { %7422 = vmatprep.subr.bf16.mxu0 %v9163_v25  ;;  %v4993_v19 = vrot.slane %v9241_v18, %v4992_v38 }
 0x4ad   :  { %6964 = vmatpush2.bf16.msra.mxu1 %v9113_v27  ;;  %v4996_v27 = vsub.s32 5, %v9805_v11 }
 0x4ae   :  { %6965 = vmatprep.subr.bf16.mxu1 %v9118_v60  ;;  %7423 = vmatpush2.bf16.msra.mxu0 %v9161_v13 }
 0x4af   :  { %7424 = vmatprep.subr.bf16.mxu0 %v9166_v23  ;;  %v4997_v23 = vrot.slane %v9241_v18, %v4996_v27 }
 0x4b1   :  { %6966 = vmatpush2.bf16.msra.mxu1 %v9116_v61 }
 0x4b2   :  { %7425 = vmatpush2.bf16.msra.mxu0 %v9164_v63  ;;  %7437 = vmatprep.subr.bf16.mxu1 %v9169_v29 }
 0x4b4   :  { %6968 = vmatmul.mubr.bf16.vlgmr.msra.gmra.mxu1 %v9934_v40  ;;  %v9170_v40 = vld [vmem:[#allocation17 + $0x160] ss:$8 sps:$4 sm:$0xff]  }
 0x4b5   :  { %7438 = vmatpush1.bf16.msra.mxu1 %v9167_v28 }
 0x4b6   :  { %7439 = vmatprep.subr.bf16.mxu1 %v9172_v32 }
 0x4b9   :  { %7440 = vmatpush1.bf16.msra.mxu1 %v9170_v40 }
 0x4ba   :  { %7441 = vmatprep.subr.bf16.mxu1 %v9175_v52  ;;  %v5018_v52 = vadd.f32 %v4993_v19, %v9885_v8 }
 0x4bd   :  { %7442 = vmatpush1.bf16.msra.mxu1 %v9173_v50 }
 0x4be   :  { %7443 = vmatprep.subr.bf16.mxu1 %v9178_v54  ;;  %v5026_v54 = vadd.f32 %v4993_v19, %v9898_v4  ;;  %v6157_v4 = vrot.slane %v6144_v58, %v9842_v14 }
 0x4c1   :  { %7444 = vmatpush1.bf16.msra.mxu1 %v9176_v3 }
 0x4c2   :  { %7445 = vmatprep.subr.bf16.mxu1 %v9181_v2 }
 0x4c5   :  { %7446 = vmatpush1.bf16.msra.mxu1 %v9179_v42 }
 0x4c6   :  { %7447 = vmatprep.subr.bf16.mxu1 %v9184_v44  ;;  %v5019_v44 = vadd.f32 %v4997_v23, %v9892_v56 }
 0x4c9   :  { %7448 = vmatpush1.bf16.msra.mxu1 %v9182_v55  ;;  %v5027_v55 = vadd.f32 %v4997_v23, %v9904_v33  ;;  %v5004_v33 = vsub.s32 7, %v9805_v11  ;;  %v9219_v23 = vld [vmem:[#allocation20 + $0x68] sm:$0xff]  }
 0x4ca   :  { %7449 = vmatprep.subr.bf16.mxu1 %v9187_v47 }
 0x4cd   :  { %7450 = vmatpush1.bf16.msra.mxu1 %v9185_v46 }
 0x4ce   :  { %7451 = vmatprep.subr.bf16.mxu1 %v9190_v24 }
 0x4d1   :  { %7452 = vmatpush1.bf16.msra.mxu1 %v9188_v39 }
 0x4d2   :  { %7453 = vmatprep.subr.bf16.mxu1 %v9193_v34 }
 0x4d5   :  { %7454 = vmatpush2.bf16.msra.mxu1 %v9191_v12 }
 0x4d6   :  { %7455 = vmatprep.subr.bf16.mxu1 %v9196_v15 }
 0x4d9   :  { %7456 = vmatpush2.bf16.msra.mxu1 %v9194_v45 }
 0x4da   :  { %7457 = vmatprep.subr.bf16.mxu1 %v9199_v30  ;;  %v6161_v30 = vrot.slane %v6144_v58, %v9852_v36 }
 0x4dd   :  { %7458 = vmatpush2.bf16.msra.mxu1 %v9197_v57  ;;  %v5000_v57 = vsub.s32 6, %v9805_v11 }
 0x4de   :  { %7459 = vmatprep.subr.bf16.mxu1 %v9202_v31 }
 0x4e1   :  { %7460 = vmatpush2.bf16.msra.mxu1 %v9200_v35 }
 0x4e2   :  { %7461 = vmatprep.subr.bf16.mxu1 %v9205_v5 }
 0x4e5   :  { %7462 = vmatpush2.bf16.msra.mxu1 %v9203_v0 }
 0x4e6   :  { %7463 = vmatprep.subr.bf16.mxu1 %v9208_v59  ;;  %v5001_v59 = vrot.slane %v9241_v18, %v5000_v57 }
 0x4e8   :  { %v5020_v36 = vadd.f32 %v5001_v59, %v9910_v16  ;;  %v9215_v16 = vld [vmem:[#allocation20 + $0x78] sm:$0xff]  }
 0x4e9   :  { %7464 = vmatpush2.bf16.msra.mxu1 %v9206_v6  ;;  %8674 = vmatprep.subr.bf16.mxu0 %v9215_v16 }
 0x4ea   :  { %7465 = vmatprep.subr.bf16.mxu1 %v9211_v49 }
 0x4ed   :  { %7466 = vmatpush2.bf16.msra.mxu1 %v9209_v17 }
 0x4ee   :  { %7467 = vmatprep.subr.bf16.mxu1 %v9214_v10  ;;  %v5005_v10 = vrot.slane %v9241_v18, %v5004_v33 }
 0x4f0   :  { %v5029_v27 = vadd.f32 %v5005_v10, %v9919_v21  ;;  %v9221_v21 = vld [vmem:[#allocation20 + $0x60] sm:$0xff]  }
 0x4f1   :  { %7468 = vmatpush2.bf16.msra.mxu1 %v9212_v51 }
 0x4f4   :  { %v6840_v53 = vpop.f32.mrf.mxu0 }
 0x4f5   :  { %v6841_v43 = vadd.f32 %v6840_v53, %v6149_v41 }
 0x4f6   :  { %v6842_v62 = vpop.f32.mrf.mxu0 }
 0x4f7   :  { %v6843_v61 = vadd.f32 %v6842_v62, %v6153_v7 }
 0x4f8   :  { %v6844_v9 = vpop.f32.mrf.mxu0 }
 0x4f9   :  { %v6845_v13 = vadd.f32 %v6844_v9, %v6149_v41 }
 0x4fa   :  { %v6846_v48 = vpop.f32.mrf.mxu0 }
 0x4fb   :  { %v6847_v29 = vadd.f32 %v6846_v48, %v6153_v7  ;;  %v5028_v7 = vadd.f32 %v5001_v59, %v9916_v26  ;;  %v9218_v26 = vld [vmem:[#allocation20 + $0x30] sm:$0xff]  }
 0x534   :  { %v6883_v60 = vpop.f32.mrf.mxu1  ;;  %v6926_v8 = vpop.f32.mrf.mxu0 }
 0x535   :  { %v6884_v1 = vadd.f32 %v6883_v60, %v6841_v43  ;;  %v6927_v31 = vadd.f32 %v6926_v8, %v6157_v4  ;;  %v5021_v43 = vadd.f32 %v5005_v10, %v9913_v20  ;;  %v9220_v20 = vld [vmem:[#allocation20 + $0x28] sm:$0xff]  }
 0x536   :  { %v6885_v25 = vpop.f32.mrf.mxu1  ;;  %v6928_v45 = vpop.f32.mrf.mxu0 }
 0x537   :  { %v6886_v63 = vadd.f32 %v6885_v25, %v6843_v61  ;;  %v6978_v32 = vmax.f32 %v6884_v1, 0.0  ;;  %v6929_v5 = vadd.f32 %v6928_v45, %v6161_v30 }
 0x538   :  { %v6887_v28 = vpop.f32.mrf.mxu1  ;;  %v6930_v56 = vpop.f32.mrf.mxu0 }
 0x539   :  { %v6888_v40 = vadd.f32 %v6887_v28, %v6845_v13  ;;  %v6979_v3 = vmax.f32 %v6886_v63, 0.0  ;;  %v6986_v47 = vadd.f32 %v6978_v32, %v5018_v52  ;;  %v6931_v17 = vadd.f32 %v6930_v56, %v6157_v4  ;;  %v9216_v13 = vld [vmem:[#allocation20 + $0x38] sm:$0xff]   ;;  %v9217_v63 = vld [vmem:[#allocation20 + $0x70] sm:$0xff]   ;;  %v9222_v28 = vld [vmem:[#allocation20 + $0x20] sm:$0xff]  }
 0x53a   :  { %v6889_v50 = vpop.f32.mrf.mxu1  ;;  %v6932_v6 = vpop.f32.mrf.mxu0  ;;  %v9224_v32 = vld [vmem:[#allocation20 + $0x18] sm:$0xff]   ;;  %v9226_v52 = vld [vmem:[#allocation20 + $0x10] sm:$0xff]  }
 0x53b   :  { %v6982_v2 = vmax.f32 %v6888_v40, 0.0  ;;  %v6890_v42 = vadd.f32 %v6889_v50, %v6847_v29  ;;  %v6987_v39 = vadd.f32 %v6979_v3, %v5019_v44  ;;  %v6933_v62 = vadd.f32 %v6932_v6, %v6161_v30  ;;  %v9223_v29 = vld [vmem:[#allocation20 + $0x58] sm:$0xff]   ;;  %v9225_v40 = vld [vmem:[#allocation20 + $0x50] sm:$0xff]   ;;  %v9227_v50 = vld [vmem:[#allocation20 + $0x48] sm:$0xff]  }
 0x53c   :  { %v9229_v3 = vld [vmem:[#allocation20 + $0x40] sm:$0xff]  }
 0x53d   :  { %v6990_v46 = vadd.f32 %v6982_v2, %v5026_v54  ;;  %v6983_v24 = vmax.f32 %v6890_v42, 0.0  ;;  %v9228_v54 = vld [vmem:[#allocation20 + $0x8] sm:$0xff]   ;;  %v9230_v2 = vld [vmem:[#allocation20] sm:$0xff]  }
 0x53f   :  { %v6994_v34 = vpack.c.bf16 %v6990_v46, %v6986_v47  ;;  %v6991_v12 = vadd.f32 %v6983_v24, %v5027_v55  ;;  %v7062_v55 = vld [vmem:[#allocation19] sm:$0x3] }
 0x540   :  { %v7071_v46 = vrot.slane %v7062_v55, %v9835_v37  ;;  %v7067_v24 = vrot.slane %v7062_v55, %v9808_v22 }
 0x541   :  { %v6995_v15 = vpack.c.bf16 %v6991_v12, %v6987_v39 }
 0x543   :  { %7426 = vmatprep.mubr.bf16.mxu0 %v6995_v15 }
 0x544   :  { %7427 = vmatmul.mubr.bf16.vlgmr.msra.gmra.mxu0 %v6994_v34 }
 0x545   :  { %8675 = vmatpush3.bf16.msra.mxu0 %v9216_v13 }
 0x546   :  { %8676 = vmatprep.subr.bf16.mxu0 %v9217_v63 }
 0x549   :  { %8677 = vmatpush3.bf16.msra.mxu0 %v9218_v26 }
 0x54a   :  { %8678 = vmatprep.subr.bf16.mxu0 %v9219_v23 }
 0x54d   :  { %8679 = vmatpush3.bf16.msra.mxu0 %v9220_v20 }
 0x54e   :  { %8680 = vmatprep.subr.bf16.mxu0 %v9221_v21 }
 0x551   :  { %8681 = vmatpush3.bf16.msra.mxu0 %v9222_v28 }
 0x552   :  { %8682 = vmatprep.subr.bf16.mxu0 %v9223_v29 }
 0x555   :  { %8683 = vmatpush3.bf16.msra.mxu0 %v9224_v32 }
 0x556   :  { %8684 = vmatprep.subr.bf16.mxu0 %v9225_v40 }
 0x559   :  { %8685 = vmatpush3.bf16.msra.mxu0 %v9226_v52 }
 0x55a   :  { %8686 = vmatprep.subr.bf16.mxu0 %v9227_v50 }
 0x55d   :  { %8687 = vmatpush3.bf16.msra.mxu0 %v9228_v54 }
 0x55e   :  { %8688 = vmatprep.subr.bf16.mxu0 %v9229_v3 }
 0x561   :  { %8689 = vmatpush3.bf16.msra.mxu0 %v9230_v2 }
 0x574   :  { %v6969_v35 = vpop.f32.mrf.mxu1 }
 0x575   :  { %v6970_v0 = vadd.f32 %v6969_v35, %v6927_v31 }
 0x576   :  { %v6971_v49 = vpop.f32.mrf.mxu1 }
 0x577   :  { %v6972_v51 = vadd.f32 %v6971_v49, %v6929_v5  ;;  %v6980_v14 = vmax.f32 %v6970_v0, 0.0 }
 0x578   :  { %v6973_v53 = vpop.f32.mrf.mxu1 }
 0x579   :  { %v6974_v41 = vadd.f32 %v6973_v53, %v6931_v17  ;;  %v6981_v38 = vmax.f32 %v6972_v51, 0.0  ;;  %v6988_v60 = vadd.f32 %v6980_v14, %v5020_v36  ;;  %v8657_v17 = vld [vmem:[#allocation22] ss:$0 sm:$0xff] }
 0x57a   :  { %v6975_v58 = vpop.f32.mrf.mxu1 }
 0x57b   :  { %v6984_v11 = vmax.f32 %v6974_v41, 0.0  ;;  %v6976_v9 = vadd.f32 %v6975_v58, %v6933_v62  ;;  %v6989_v18 = vadd.f32 %v6981_v38, %v5021_v43 }
 0x57d   :  { %v6992_v61 = vadd.f32 %v6984_v11, %v5028_v7  ;;  %v6985_v1 = vmax.f32 %v6976_v9, 0.0 }
 0x57f   :  { %v6996_v19 = vpack.c.bf16 %v6992_v61, %v6988_v60  ;;  %v6993_v48 = vadd.f32 %v6985_v1, %v5029_v27 }
 0x581   :  { %v6997_v25 = vpack.c.bf16 %v6993_v48, %v6989_v18 }
 0x583   :  { %7469 = vmatprep.mubr.bf16.mxu1 %v6997_v25 }
 0x584   :  { %7470 = vmatmul.mubr.bf16.vlgmr.msra.gmra.mxu1 %v6996_v19 }
 0x604   :  { %v7428_v42 = vpop.f32.mrf.mxu0 }
 0x605   :  { %v7429_v45 = vadd.f32 %v7428_v42, %v7067_v24 }
 0x606   :  { %v7430_v44 = vpop.f32.mrf.mxu0 }
 0x607   :  { %v7431_v15 = vadd.f32 %v7430_v44, %v7071_v46 }
 0x608   :  { %v7432_v47 = vpop.f32.mrf.mxu0 }
 0x609   :  { %v7433_v8 = vadd.f32 %v7432_v47, %v7067_v24 }
 0x60a   :  { %v7434_v34 = vpop.f32.mrf.mxu0 }
 0x60b   :  { %v7435_v30 = vadd.f32 %v7434_v34, %v7071_v46 }
 0x644   :  { %v7471_v39 = vpop.f32.mrf.mxu1 }
 0x645   :  { %v7472_v31 = vadd.f32 %v7471_v39, %v7429_v45 }
 0x646   :  { %v7473_v12 = vpop.f32.mrf.mxu1 }
 0x647   :  { %v7474_v57 = vadd.f32 %v7473_v12, %v7431_v15  ;;  %v7480_v6 = vmax.f32 %v7472_v31, 0.0 }
 0x648   :  { %v7475_v4 = vpop.f32.mrf.mxu1 }
 0x649   :  { %v7476_v56 = vadd.f32 %v7475_v4, %v7433_v8  ;;  %v7481_v0 = vmax.f32 %v7474_v57, 0.0 }
 0x64a   :  { %v7477_v33 = vpop.f32.mrf.mxu1 }
 0x64b   :  { %v7478_v35 = vadd.f32 %v7477_v33, %v7435_v30  ;;  %v7482_v5 = vmax.f32 %v7476_v56, 0.0 }
 0x64d   :  { %v7483_v59 = vmax.f32 %v7478_v35, 0.0  ;;  %v7484_v49 = vpack.c.bf16 %v7482_v5, %v7480_v6 }
 0x64f   :  { %v7485_v37 = vpack.c.bf16 %v7483_v59, %v7481_v0 }
 0x651   :  { %7653 = vmatprep.mubr.bf16.mxu0 %v7485_v37 }
 0x652   :  { %7654 = vmatmul.mubr.bf16.vlgmr.msra.gmra.mxu0 %v7484_v49 }
 0x712   :  { %v8690_v22 = vpop.f32.mrf.mxu0 }
 0x714   :  { %v8691_v51 = vpop.f32.mrf.mxu0 }
 0x715   :  { %v8692_v10 = vadd.f32 %v8691_v51, %v8690_v22 }
 0x716   :  { %v8693_v53 = vpop.f32.mrf.mxu0 }
 0x717   :  { %v7656_v62 = vadd.f32 %v8692_v10, %v8657_v17 }
 0x718   :  { %v8694_v14 = vpop.f32.mrf.mxu0 }
 0x719   :  { %7662 = vst [vmem:[#allocation23] sm:$0xff] %v7656_v62  ;;  %v8695_v41 = vadd.f32 %v8694_v14, %v8693_v53 }
 0x71b   :  { %v7659_v36 = vadd.f32 %v8695_v41, %v8657_v17 }
 0x71d   :  { %7663 = vst [vmem:[#allocation23 + $0x8] sm:$0xff] %v7659_v36 }
 0x71e   :  { %9513 = shalt.err (!%p9510_p13)
}
 0x71f   :  { %7675 = dma.vmem_to_hbm [thread:$0]  %s7670_s12, 256, %s9976_s13, [#allocation4], %s9547_s17, %s9547_s17, %s9548_s18  }
 0x720   :  { %9536 = dma.done.wait [#allocation4], 256  }
 0x721   :  { %9537 = vsyncadd [#allocation4], 4294967040 }
 0x722   :  { %7679 = vsyncpa [#allocation3], 1 }
 0x723   :  { %7680 = vsyncpa [#allocation6], 1 }
 0x724   :  { %7681 = vsyncpa [#allocation9], 1 }
 0x725   :  { %7682 = vsyncpa [#allocation12], 1 }
 0x726   :  { %7683 = vsyncpa [#allocation15], 1 }
 0x727   :  { %7684 = vsyncpa [#allocation18], 1 }
 0x728   :  { %7685 = vsyncpa [#allocation21], 1 }
 0x729   :  { %7686 = vsyncpa [#allocation4], 1 }

</bundles_post_ra>
